<compile_context>
chip_gen: v5e
topology: v5e:2x2
jax: 0.10.0
libtpu: 0.0.40
codegen_flags: <defaults>
</compile_context>

<pallas_src>
import functools
import math

import jax
import jax.numpy as jnp
from jax.experimental import pallas as pl
from jax.experimental.pallas import tpu as pltpu

EPS = 1e-6
NEG_INF = -1e9


# --------------------------------------------------------------------------
# In-kernel helpers
# --------------------------------------------------------------------------

def _layernorm_math(x, g, b):
    """Annotated-Transformer LayerNorm: unbiased std (n-1), eps added to std.

    Exact division (not approx reciprocal) to keep parity with the reference.
    """
    n = x.shape[-1]
    mean = jnp.mean(x, axis=-1, keepdims=True)
    var = jnp.sum((x - mean) ** 2, axis=-1, keepdims=True) * (1.0 / (n - 1))
    return g * (x - mean) / (jnp.sqrt(var) + EPS) + b


def _mm(a_f32, w_bf16):
    """bf16 x bf16 MXU matmul with f32 accumulation."""
    return jnp.dot(a_f32.astype(jnp.bfloat16), w_bf16,
                   preferred_element_type=jnp.float32)


def _split_heads(x, head):
    """(S, D) -> (head, S, dk) via lane-split reshape + axis swap.

    No per-head slicing / jnp.stack (avoids H sub-vreg lane shuffles)."""
    S, D = x.shape
    return jnp.swapaxes(x.reshape(S, head, D // head), 0, 1)


def _mha_heads(q, k, v, mask, head):
    """q: (Sq, D), k/v: (Sk, D), mask: (H, Sq, Sk).

    Returns the merged-head attention output, lane-dense (Sq, D) f32."""
    Sq, D = q.shape
    dk = D // head
    scale = 1.0 / math.sqrt(dk)
    qh = _split_heads(q, head).astype(jnp.bfloat16)      # (H, Sq, dk)
    kh = _split_heads(k, head).astype(jnp.bfloat16)      # (H, Sk, dk)
    vh = _split_heads(v, head).astype(jnp.bfloat16)      # (H, Sk, dk)
    # scores = q @ k^T / sqrt(dk), batched over all heads on the MXU
    s = jnp.einsum('hqd,hkd->hqk', qh, kh,
                   preferred_element_type=jnp.float32) * scale
    # masked_fill(mask == 0, -1e9): exact reference semantics (NOT additive bias
    # -- an additive bias would change the all-masked degenerate test case).
    s = jnp.where(mask == 0.0, jnp.float32(NEG_INF), s)
    mx = jnp.max(s, axis=-1, keepdims=True)
    e = jnp.exp(s - mx)
    p = e * pl.reciprocal(jnp.sum(e, axis=-1, keepdims=True), approx=True)
    oh = jnp.einsum('hqk,hkd->hqd', p.astype(jnp.bfloat16), vh,
                    preferred_element_type=jnp.float32)  # (H, Sq, dk)
    # Merge heads back lane-dense: (H, Sq, dk) -> (Sq, D); one full-width slab.
    return jnp.swapaxes(oh, 0, 1).reshape(Sq, D)


# --------------------------------------------------------------------------
# Fused attention-sublayer kernels: x + Wo(MHA(LN(x))) in ONE kernel
# --------------------------------------------------------------------------

def _self_attn_sublayer_kernel(mask_ref, x_ref, g_ref, b_ref,
                               wqkv_ref, bqkv_ref, wo_ref, bo_ref, o_ref,
                               *, head, d_model):
    x = x_ref[0]                                          # (S, D) f32
    xn = _layernorm_math(x, g_ref[...], b_ref[...])
    qkv = _mm(xn, wqkv_ref[...]) + bqkv_ref[...]          # (S, 3D) f32
    q = qkv[:, :d_model]
    k = qkv[:, d_model:2 * d_model]
    v = qkv[:, 2 * d_model:]
    attn = _mha_heads(q, k, v, mask_ref[...], head)       # (S, D) f32
    # Single full-width (lane-dense) store of the whole sublayer result.
    o_ref[0] = x + _mm(attn, wo_ref[...]) + bo_ref[...]


def _cross_attn_sublayer_kernel(mask_ref, x_ref, mem_ref, g_ref, b_ref,
                                wq_ref, bq_ref, wkv_ref, bkv_ref,
                                wo_ref, bo_ref, o_ref,
                                *, head, d_model):
    x = x_ref[0]                                          # (St, D) f32
    m = mem_ref[0]                                        # (Ss, D) f32
    xn = _layernorm_math(x, g_ref[...], b_ref[...])
    q = _mm(xn, wq_ref[...]) + bq_ref[...]                # (St, D)
    kv = _mm(m, wkv_ref[...]) + bkv_ref[...]              # (Ss, 2D)
    k = kv[:, :d_model]
    v = kv[:, d_model:]
    attn = _mha_heads(q, k, v, mask_ref[...], head)       # (St, D)
    o_ref[0] = x + _mm(attn, wo_ref[...]) + bo_ref[...]


def _const_spec(c):
    """Full-array, untiled operand (weights / biases / LN params)."""
    return pl.BlockSpec(c.shape, lambda i, nd=c.ndim: (0,) * nd)


def self_attn_sublayer(x, mask, ln, ap, head):
    """x: (B, S, D); mask: (H, S, S) shared across batch. Returns (B, S, D)."""
    B, S, D = x.shape
    H, Sq, Sk = mask.shape
    consts = [ln["g"].reshape(1, -1), ln["b"].reshape(1, -1),
              ap["wqkv"], ap["bqkv"].reshape(1, -1),
              ap["wo"], ap["bo"].reshape(1, -1)]
    kern = functools.partial(_self_attn_sublayer_kernel, head=head, d_model=D)
    return pl.pallas_call(
        kern,
        grid=(B,),
        in_specs=[pl.BlockSpec((H, Sq, Sk), lambda b: (0, 0, 0)),   # not broadcast
                  pl.BlockSpec((1, S, D), lambda b: (b, 0, 0))]
                 + [_const_spec(c) for c in consts],
        out_specs=pl.BlockSpec((1, S, D), lambda b: (b, 0, 0)),     # lane-dense D
        out_shape=jax.ShapeDtypeStruct((B, S, D), jnp.float32),
        compiler_params=pltpu.CompilerParams(dimension_semantics=("parallel",)),
    )(mask, x, *consts)


def cross_attn_sublayer(x, memory, mask, ln, ap, head):
    """x: (B, St, D); memory: (B, Ss, D); mask: (H, St, Ss). Returns (B, St, D)."""
    B, St, D = x.shape
    Ss = memory.shape[1]
    H = mask.shape[0]
    consts = [ln["g"].reshape(1, -1), ln["b"].reshape(1, -1),
              ap["wq"], ap["bq"].reshape(1, -1),
              ap["wkv"], ap["bkv"].reshape(1, -1),
              ap["wo"], ap["bo"].reshape(1, -1)]
    kern = functools.partial(_cross_attn_sublayer_kernel, head=head, d_model=D)
    return pl.pallas_call(
        kern,
        grid=(B,),
        in_specs=[pl.BlockSpec((H, St, Ss), lambda b: (0, 0, 0)),
                  pl.BlockSpec((1, St, D), lambda b: (b, 0, 0)),
                  pl.BlockSpec((1, Ss, D), lambda b: (b, 0, 0))]
                 + [_const_spec(c) for c in consts],
        out_specs=pl.BlockSpec((1, St, D), lambda b: (b, 0, 0)),
        out_shape=jax.ShapeDtypeStruct((B, St, D), jnp.float32),
        compiler_params=pltpu.CompilerParams(dimension_semantics=("parallel",)),
    )(mask, x, memory, *consts)


# --------------------------------------------------------------------------
# Row-tiled dense kernels (FFN sublayer, final LayerNorm)
# --------------------------------------------------------------------------

def _ln_ffn_res_kernel(x_ref, g_ref, b_ref, w1_ref, b1_ref, w2_ref, b2_ref, o_ref):
    x = x_ref[...]
    xn = _layernorm_math(x, g_ref[...], b_ref[...])
    h = jnp.maximum(_mm(xn, w1_ref[...]) + b1_ref[...], 0.0)   # ReLU
    o_ref[...] = x + _mm(h, w2_ref[...]) + b2_ref[...]


def _layernorm_kernel(x_ref, g_ref, b_ref, o_ref):
    o_ref[...] = _layernorm_math(x_ref[...], g_ref[...], b_ref[...])


def _pick_bm(m):
    """Largest row block <= 512 that tiles M (v5e/v6e roofline sweet spot)."""
    if m <= 512:
        return m
    for bm in (512, 256, 128, 64, 32, 16, 8):
        if m % bm == 0:
            return bm
    return m


def _row_call(kernel, row_args, const_args, out_dim):
    """Run `kernel` over row tiles of `row_args` (all (M, Ki)); `const_args`
    are full, untiled operands (weights / biases / LN params)."""
    M = row_args[0].shape[0]
    bm = _pick_bm(M)
    in_specs = []
    args = []
    for a in row_args:
        in_specs.append(pl.BlockSpec((bm, a.shape[1]), lambda i: (i, 0)))
        args.append(a)
    for c in const_args:
        in_specs.append(_const_spec(c))
        args.append(c)
    return pl.pallas_call(
        kernel,
        grid=(M // bm,),
        in_specs=in_specs,
        out_specs=pl.BlockSpec((bm, out_dim), lambda i: (i, 0)),
        out_shape=jax.ShapeDtypeStruct((M, out_dim), jnp.float32),
        compiler_params=pltpu.CompilerParams(dimension_semantics=("parallel",)),
    )(*args)


def ln_ffn_residual(x2d, g, b, w1, b1, w2, b2):
    return _row_call(_ln_ffn_res_kernel, [x2d],
                     [g.reshape(1, -1), b.reshape(1, -1),
                      w1, b1.reshape(1, -1), w2, b2.reshape(1, -1)],
                     x2d.shape[1])


def layernorm(x2d, g, b):
    return _row_call(_layernorm_kernel, [x2d],
                     [g.reshape(1, -1), b.reshape(1, -1)], x2d.shape[1])


# --------------------------------------------------------------------------
# Model glue
# --------------------------------------------------------------------------

def encoder_layer_fwd(p, x, mask, head):
    B, S, D = x.shape
    # sublayer 0: x + Wo(self_attn(LN(x)))  -- one fused pallas_call
    x = self_attn_sublayer(x, mask, p["ln1"], p["self_attn"], head)
    # sublayer 1: x + FFN(LN(x))            -- one fused pallas_call
    x2d = ln_ffn_residual(x.reshape(B * S, D), p["ln2"]["g"], p["ln2"]["b"],
                          p["ff"]["w1"], p["ff"]["b1"],
                          p["ff"]["w2"], p["ff"]["b2"])
    return x2d.reshape(B, S, D)


def decoder_layer_fwd(p, x, memory, source_mask, target_mask, head):
    B, St, D = x.shape
    x = self_attn_sublayer(x, target_mask, p["ln1"], p["self_attn"], head)
    x = cross_attn_sublayer(x, memory, source_mask, p["ln2"], p["src_attn"], head)
    x2d = ln_ffn_residual(x.reshape(B * St, D), p["ln3"]["g"], p["ln3"]["b"],
                          p["ff"]["w1"], p["ff"]["b1"],
                          p["ff"]["w2"], p["ff"]["b2"])
    return x2d.reshape(B, St, D)


def encoder_fwd(p, x, mask, head):
    B, S, D = x.shape
    for lp in p["layers"]:
        x = encoder_layer_fwd(lp, x, mask, head)
    return layernorm(x.reshape(B * S, D),
                     p["norm"]["g"], p["norm"]["b"]).reshape(B, S, D)


def decoder_fwd(p, x, memory, source_mask, target_mask, head):
    B, St, D = x.shape
    for lp in p["layers"]:
        x = decoder_layer_fwd(lp, x, memory, source_mask, target_mask, head)
    return layernorm(x.reshape(B * St, D),
                     p["norm"]["g"], p["norm"]["b"]).reshape(B, St, D)


def encoder_decoder_fwd(params, source, target, source_mask, target_mask, head):
    # encode: encoder(src_embed(source), source_mask); plain embedding lookup
    src_x = params["src_emb"][source]
    memory = encoder_fwd(params["encoder"], src_x, source_mask, head)
    # decode: decoder(tgt_embed(target), memory, source_mask, target_mask)
    tgt_x = params["tgt_emb"][target]
    return decoder_fwd(params["decoder"], tgt_x, memory,
                       source_mask, target_mask, head)
    # TODO(synk): Generator (log_softmax head) exists on the module but is never
    # invoked by EncoderDecoder.forward, so it is intentionally not applied.
    # TODO(synk): dropout is identity (eval / deterministic).


# --------------------------------------------------------------------------
# Parameter init (weights for matmuls stored bf16; LN params / biases f32)
# --------------------------------------------------------------------------

def _xavier(key, din, dout):
    limit = math.sqrt(6.0 / (din + dout))
    return jax.random.uniform(key, (din, dout), jnp.float32, -limit, limit)


def _init_self_mha(key, d):
    kq, kk, kv, ko = jax.random.split(key, 4)
    wqkv = jnp.concatenate([_xavier(kq, d, d), _xavier(kk, d, d), _xavier(kv, d, d)],
                           axis=1)
    return dict(wqkv=wqkv.astype(jnp.bfloat16),
                bqkv=jnp.zeros((3 * d,), jnp.float32),
                wo=_xavier(ko, d, d).astype(jnp.bfloat16),
                bo=jnp.zeros((d,), jnp.float32))


def _init_cross_mha(key, d):
    kq, kk, kv, ko = jax.random.split(key, 4)
    wkv = jnp.concatenate([_xavier(kk, d, d), _xavier(kv, d, d)], axis=1)
    return dict(wq=_xavier(kq, d, d).astype(jnp.bfloat16),
                bq=jnp.zeros((d,), jnp.float32),
                wkv=wkv.astype(jnp.bfloat16),
                bkv=jnp.zeros((2 * d,), jnp.float32),
                wo=_xavier(ko, d, d).astype(jnp.bfloat16),
                bo=jnp.zeros((d,), jnp.float32))


def _init_ffn(key, d, dff):
    k1, k2 = jax.random.split(key)
    return dict(w1=_xavier(k1, d, dff).astype(jnp.bfloat16),
                b1=jnp.zeros((dff,), jnp.float32),
                w2=_xavier(k2, dff, d).astype(jnp.bfloat16),
                b2=jnp.zeros((d,), jnp.float32))


def _init_ln(d):
    return dict(g=jnp.ones((d,), jnp.float32), b=jnp.zeros((d,), jnp.float32))


def _init_encoder_layer(key, d, dff):
    k1, k2 = jax.random.split(key)
    return dict(self_attn=_init_self_mha(k1, d), ff=_init_ffn(k2, d, dff),
                ln1=_init_ln(d), ln2=_init_ln(d))


def _init_decoder_layer(key, d, dff):
    k1, k2, k3 = jax.random.split(key, 3)
    return dict(self_attn=_init_self_mha(k1, d), src_attn=_init_cross_mha(k2, d),
                ff=_init_ffn(k3, d, dff),
                ln1=_init_ln(d), ln2=_init_ln(d), ln3=_init_ln(d))


def init_params(key, vocab, d_model, d_ff, n_layers):
    keys = jax.random.split(key, 2 + 2 * n_layers)
    src_emb = 0.02 * jax.random.normal(keys[0], (vocab, d_model), jnp.float32)
    tgt_emb = 0.02 * jax.random.normal(keys[1], (vocab, d_model), jnp.float32)
    enc_layers = [_init_encoder_layer(keys[2 + i], d_model, d_ff)
                  for i in range(n_layers)]
    dec_layers = [_init_decoder_layer(keys[2 + n_layers + i], d_model, d_ff)
                  for i in range(n_layers)]
    return dict(src_emb=src_emb, tgt_emb=tgt_emb,
                encoder=dict(layers=enc_layers, norm=_init_ln(d_model)),
                decoder=dict(layers=dec_layers, norm=_init_ln(d_model)))


# --------------------------------------------------------------------------
# Main
# --------------------------------------------------------------------------

if __name__ == "__main__":
    # Small shapes consistent with the test harness: seq=4, batch=2,
    # d_model=512, head=8 (d_k=64), d_ff=64; N=2 layers to keep it light.
    B, S, D, HEAD, DFF, VOCAB, NLAYERS = 2, 4, 512, 8, 64, 1000, 2

    key = jax.random.PRNGKey(0)
    params = init_params(key, VOCAB, D, DFF, NLAYERS)

    source = jnp.array([[100, 2, 421, 508], [491, 998, 1, 221]], dtype=jnp.int32)
    target = source
    # test harness uses torch.zeros(head, seq, seq) for both masks
    source_mask = jnp.zeros((HEAD, S, S), jnp.float32)
    target_mask = jnp.zeros((HEAD, S, S), jnp.float32)

    fwd = jax.jit(encoder_decoder_fwd, static_argnames=("head",))
    out = fwd(params, source, target, source_mask, target_mask, head=HEAD)
    out = jax.block_until_ready(out)

    assert out.shape == (B, S, D) and out.dtype == jnp.float32
    assert bool(jnp.all(jnp.isfinite(out)))
    print("KERNEL_OK")
</pallas_src>

<mosaic_0001>
module attributes {stable_mosaic.version = 11 : i64} {
  func.func @_ln_ffn_res_kernel(%arg0: i32, %arg1: memref<8x512xf32, #tpu.memory_space<vmem>>, %arg2: memref<1x512xf32, #tpu.memory_space<vmem>>, %arg3: memref<1x512xf32, #tpu.memory_space<vmem>>, %arg4: memref<512x64xbf16, #tpu.memory_space<vmem>>, %arg5: memref<1x64xf32, #tpu.memory_space<vmem>>, %arg6: memref<64x512xbf16, #tpu.memory_space<vmem>>, %arg7: memref<1x512xf32, #tpu.memory_space<vmem>>, %arg8: memref<8x512xf32, #tpu.memory_space<vmem>>) attributes {dimension_semantics = [#tpu.dimension_semantics<parallel>], iteration_bounds = array<i64: 1>, scalar_prefetch = 0 : i64, scratch_operands = 0 : i64, tpu.core_type = #tpu.core_type<tc>, window_params = [{transform_indices = @transform_0, window_bounds = array<i64: 8, 512>}, {pipeline_mode = #tpu.pipeline_mode<synchronous>, transform_indices = @transform_1, window_bounds = array<i64: 1, 512>}, {pipeline_mode = #tpu.pipeline_mode<synchronous>, transform_indices = @transform_2, window_bounds = array<i64: 1, 512>}, {pipeline_mode = #tpu.pipeline_mode<synchronous>, transform_indices = @transform_3, window_bounds = array<i64: 512, 64>}, {pipeline_mode = #tpu.pipeline_mode<synchronous>, transform_indices = @transform_4, window_bounds = array<i64: 1, 64>}, {pipeline_mode = #tpu.pipeline_mode<synchronous>, transform_indices = @transform_5, window_bounds = array<i64: 64, 512>}, {pipeline_mode = #tpu.pipeline_mode<synchronous>, transform_indices = @transform_6, window_bounds = array<i64: 1, 512>}, {transform_indices = @transform_7, window_bounds = array<i64: 8, 512>}]} {
    %c0 = arith.constant 0 : index
    %c0_0 = arith.constant 0 : index
    %0 = vector.load %arg1[%c0, %c0_0] : memref<8x512xf32, #tpu.memory_space<vmem>>, vector<8x512xf32>
    %c0_1 = arith.constant 0 : index
    %c0_2 = arith.constant 0 : index
    %1 = vector.load %arg2[%c0_1, %c0_2] : memref<1x512xf32, #tpu.memory_space<vmem>>, vector<1x512xf32>
    %c0_3 = arith.constant 0 : index
    %c0_4 = arith.constant 0 : index
    %2 = vector.load %arg3[%c0_3, %c0_4] : memref<1x512xf32, #tpu.memory_space<vmem>>, vector<1x512xf32>
    %cst = arith.constant dense<0.000000e+00> : vector<8xf32>
    %3 = vector.multi_reduction <add>, %0, %cst [1] : vector<8x512xf32> to vector<8xf32>
    %4 = vector.shape_cast %3 : vector<8xf32> to vector<8x1xf32>
    %cst_5 = arith.constant 5.120000e+02 : f32
    %5 = vector.broadcast %cst_5 : f32 to vector<8x1xf32>
    %6 = arith.divf %4, %5 : vector<8x1xf32>
    %7 = vector.broadcast %6 : vector<8x1xf32> to vector<8x512xf32>
    %8 = arith.subf %0, %7 : vector<8x512xf32>
    %9 = arith.mulf %8, %8 : vector<8x512xf32>
    %cst_6 = arith.constant dense<0.000000e+00> : vector<8xf32>
    %10 = vector.multi_reduction <add>, %9, %cst_6 [1] : vector<8x512xf32> to vector<8xf32>
    %11 = vector.shape_cast %10 : vector<8xf32> to vector<8x1xf32>
    %cst_7 = arith.constant 0.00195694715 : f32
    %12 = vector.broadcast %cst_7 : f32 to vector<8x1xf32>
    %13 = arith.mulf %11, %12 : vector<8x1xf32>
    %14 = vector.broadcast %6 : vector<8x1xf32> to vector<8x512xf32>
    %15 = arith.subf %0, %14 : vector<8x512xf32>
    %16 = vector.broadcast %1 : vector<1x512xf32> to vector<8x512xf32>
    %17 = arith.mulf %16, %15 : vector<8x512xf32>
    %18 = math.sqrt %13 : vector<8x1xf32>
    %cst_8 = arith.constant 9.99999997E-7 : f32
    %19 = vector.broadcast %cst_8 : f32 to vector<8x1xf32>
    %20 = arith.addf %18, %19 : vector<8x1xf32>
    %21 = vector.broadcast %20 : vector<8x1xf32> to vector<8x512xf32>
    %22 = arith.divf %17, %21 : vector<8x512xf32>
    %23 = vector.broadcast %2 : vector<1x512xf32> to vector<8x512xf32>
    %24 = arith.addf %22, %23 : vector<8x512xf32>
    %c0_9 = arith.constant 0 : index
    %c0_10 = arith.constant 0 : index
    %25 = vector.load %arg4[%c0_9, %c0_10] : memref<512x64xbf16, #tpu.memory_space<vmem>>, vector<512x64xbf16>
    %26 = arith.truncf %24 : vector<8x512xf32> to vector<8x512xbf16>
    %cst_11 = arith.constant dense<0.000000e+00> : vector<8x64xf32>
    %27 = tpu.matmul %26, %25, %cst_11 {dimension_numbers = #tpu.dot_dimension_numbers<[1], [0], [0], [1], [0, 0, 1, 1], [], []>} : vector<8x512xbf16>, vector<512x64xbf16>, vector<8x64xf32> -> vector<8x64xf32>
    %c0_12 = arith.constant 0 : index
    %c0_13 = arith.constant 0 : index
    %28 = vector.load %arg5[%c0_12, %c0_13] : memref<1x64xf32, #tpu.memory_space<vmem>>, vector<1x64xf32>
    %29 = vector.broadcast %28 : vector<1x64xf32> to vector<8x64xf32>
    %30 = arith.addf %27, %29 : vector<8x64xf32>
    %cst_14 = arith.constant 0.000000e+00 : f32
    %31 = vector.broadcast %cst_14 : f32 to vector<8x64xf32>
    %32 = arith.maximumf %30, %31 : vector<8x64xf32>
    %c0_15 = arith.constant 0 : index
    %c0_16 = arith.constant 0 : index
    %33 = vector.load %arg6[%c0_15, %c0_16] : memref<64x512xbf16, #tpu.memory_space<vmem>>, vector<64x512xbf16>
    %34 = arith.truncf %32 : vector<8x64xf32> to vector<8x64xbf16>
    %cst_17 = arith.constant dense<0.000000e+00> : vector<8x512xf32>
    %35 = tpu.matmul %34, %33, %cst_17 {dimension_numbers = #tpu.dot_dimension_numbers<[1], [0], [0], [1], [0, 0, 1, 1], [], []>} : vector<8x64xbf16>, vector<64x512xbf16>, vector<8x512xf32> -> vector<8x512xf32>
    %36 = arith.addf %0, %35 : vector<8x512xf32>
    %c0_18 = arith.constant 0 : index
    %c0_19 = arith.constant 0 : index
    %37 = vector.load %arg7[%c0_18, %c0_19] : memref<1x512xf32, #tpu.memory_space<vmem>>, vector<1x512xf32>
    %38 = vector.broadcast %37 : vector<1x512xf32> to vector<8x512xf32>
    %39 = arith.addf %36, %38 : vector<8x512xf32>
    %c0_20 = arith.constant 0 : index
    %c0_21 = arith.constant 0 : index
    %40 = vector.load %arg8[%c0_20, %c0_21] : memref<8x512xf32, #tpu.memory_space<vmem>>, vector<8x512xf32>
    tpu.vector_store %arg8[%c0_20, %c0_21], %39 {strides = array<i32>} : memref<8x512xf32, #tpu.memory_space<vmem>>, vector<8x512xf32>,
    return
  }
  func.func @transform_0(%arg0: i32) -> (i32, i32) {
    %c0_i32 = arith.constant 0 : i32
    %c0_i32_0 = arith.constant 0 : i32
    return %arg0, %c0_i32 : i32, i32
  }
  func.func @transform_1(%arg0: i32) -> (i32, i32) {
    %c0_i32 = arith.constant 0 : i32
    %c0_i32_0 = arith.constant 0 : i32
    %c0_i32_1 = arith.constant 0 : i32
    return %c0_i32, %c0_i32_0 : i32, i32
  }
  func.func @transform_2(%arg0: i32) -> (i32, i32) {
    %c0_i32 = arith.constant 0 : i32
    %c0_i32_0 = arith.constant 0 : i32
    %c0_i32_1 = arith.constant 0 : i32
    return %c0_i32, %c0_i32_0 : i32, i32
  }
  func.func @transform_3(%arg0: i32) -> (i32, i32) {
    %c0_i32 = arith.constant 0 : i32
    %c0_i32_0 = arith.constant 0 : i32
    %c0_i32_1 = arith.constant 0 : i32
    return %c0_i32, %c0_i32_0 : i32, i32
  }
  func.func @transform_4(%arg0: i32) -> (i32, i32) {
    %c0_i32 = arith.constant 0 : i32
    %c0_i32_0 = arith.constant 0 : i32
    %c0_i32_1 = arith.constant 0 : i32
    return %c0_i32, %c0_i32_0 : i32, i32
  }
  func.func @transform_5(%arg0: i32) -> (i32, i32) {
    %c0_i32 = arith.constant 0 : i32
    %c0_i32_0 = arith.constant 0 : i32
    %c0_i32_1 = arith.constant 0 : i32
    return %c0_i32, %c0_i32_0 : i32, i32
  }
  func.func @transform_6(%arg0: i32) -> (i32, i32) {
    %c0_i32 = arith.constant 0 : i32
    %c0_i32_0 = arith.constant 0 : i32
    %c0_i32_1 = arith.constant 0 : i32
    return %c0_i32, %c0_i32_0 : i32, i32
  }
  func.func @transform_7(%arg0: i32) -> (i32, i32) {
    %c0_i32 = arith.constant 0 : i32
    %c0_i32_0 = arith.constant 0 : i32
    return %arg0, %c0_i32 : i32, i32
  }
}

module attributes {stable_mosaic.version = 11 : i64} {
  func.func @_layernorm_kernel(%arg0: i32, %arg1: memref<8x512xf32, #tpu.memory_space<vmem>>, %arg2: memref<1x512xf32, #tpu.memory_space<vmem>>, %arg3: memref<1x512xf32, #tpu.memory_space<vmem>>, %arg4: memref<8x512xf32, #tpu.memory_space<vmem>>) attributes {dimension_semantics = [#tpu.dimension_semantics<parallel>], iteration_bounds = array<i64: 1>, scalar_prefetch = 0 : i64, scratch_operands = 0 : i64, tpu.core_type = #tpu.core_type<tc>, window_params = [{transform_indices = @transform_0, window_bounds = array<i64: 8, 512>}, {pipeline_mode = #tpu.pipeline_mode<synchronous>, transform_indices = @transform_1, window_bounds = array<i64: 1, 512>}, {pipeline_mode = #tpu.pipeline_mode<synchronous>, transform_indices = @transform_2, window_bounds = array<i64: 1, 512>}, {transform_indices = @transform_3, window_bounds = array<i64: 8, 512>}]} {
    %c0 = arith.constant 0 : index
    %c0_0 = arith.constant 0 : index
    %0 = vector.load %arg1[%c0, %c0_0] : memref<8x512xf32, #tpu.memory_space<vmem>>, vector<8x512xf32>
    %c0_1 = arith.constant 0 : index
    %c0_2 = arith.constant 0 : index
    %1 = vector.load %arg2[%c0_1, %c0_2] : memref<1x512xf32, #tpu.memory_space<vmem>>, vector<1x512xf32>
    %c0_3 = arith.constant 0 : index
    %c0_4 = arith.constant 0 : index
    %2 = vector.load %arg3[%c0_3, %c0_4] : memref<1x512xf32, #tpu.memory_space<vmem>>, vector<1x512xf32>
    %cst = arith.constant dense<0.000000e+00> : vector<8xf32>
    %3 = vector.multi_reduction <add>, %0, %cst [1] : vector<8x512xf32> to vector<8xf32>
    %4 = vector.shape_cast %3 : vector<8xf32> to vector<8x1xf32>
    %cst_5 = arith.constant 5.120000e+02 : f32
    %5 = vector.broadcast %cst_5 : f32 to vector<8x1xf32>
    %6 = arith.divf %4, %5 : vector<8x1xf32>
    %7 = vector.broadcast %6 : vector<8x1xf32> to vector<8x512xf32>
    %8 = arith.subf %0, %7 : vector<8x512xf32>
    %9 = arith.mulf %8, %8 : vector<8x512xf32>
    %cst_6 = arith.constant dense<0.000000e+00> : vector<8xf32>
    %10 = vector.multi_reduction <add>, %9, %cst_6 [1] : vector<8x512xf32> to vector<8xf32>
    %11 = vector.shape_cast %10 : vector<8xf32> to vector<8x1xf32>
    %cst_7 = arith.constant 0.00195694715 : f32
    %12 = vector.broadcast %cst_7 : f32 to vector<8x1xf32>
    %13 = arith.mulf %11, %12 : vector<8x1xf32>
    %14 = vector.broadcast %6 : vector<8x1xf32> to vector<8x512xf32>
    %15 = arith.subf %0, %14 : vector<8x512xf32>
    %16 = vector.broadcast %1 : vector<1x512xf32> to vector<8x512xf32>
    %17 = arith.mulf %16, %15 : vector<8x512xf32>
    %18 = math.sqrt %13 : vector<8x1xf32>
    %cst_8 = arith.constant 9.99999997E-7 : f32
    %19 = vector.broadcast %cst_8 : f32 to vector<8x1xf32>
    %20 = arith.addf %18, %19 : vector<8x1xf32>
    %21 = vector.broadcast %20 : vector<8x1xf32> to vector<8x512xf32>
    %22 = arith.divf %17, %21 : vector<8x512xf32>
    %23 = vector.broadcast %2 : vector<1x512xf32> to vector<8x512xf32>
    %24 = arith.addf %22, %23 : vector<8x512xf32>
    %c0_9 = arith.constant 0 : index
    %c0_10 = arith.constant 0 : index
    %25 = vector.load %arg4[%c0_9, %c0_10] : memref<8x512xf32, #tpu.memory_space<vmem>>, vector<8x512xf32>
    tpu.vector_store %arg4[%c0_9, %c0_10], %24 {strides = array<i32>} : memref<8x512xf32, #tpu.memory_space<vmem>>, vector<8x512xf32>,
    return
  }
  func.func @transform_0(%arg0: i32) -> (i32, i32) {
    %c0_i32 = arith.constant 0 : i32
    %c0_i32_0 = arith.constant 0 : i32
    return %arg0, %c0_i32 : i32, i32
  }
  func.func @transform_1(%arg0: i32) -> (i32, i32) {
    %c0_i32 = arith.constant 0 : i32
    %c0_i32_0 = arith.constant 0 : i32
    %c0_i32_1 = arith.constant 0 : i32
    return %c0_i32, %c0_i32_0 : i32, i32
  }
  func.func @transform_2(%arg0: i32) -> (i32, i32) {
    %c0_i32 = arith.constant 0 : i32
    %c0_i32_0 = arith.constant 0 : i32
    %c0_i32_1 = arith.constant 0 : i32
    return %c0_i32, %c0_i32_0 : i32, i32
  }
  func.func @transform_3(%arg0: i32) -> (i32, i32) {
    %c0_i32 = arith.constant 0 : i32
    %c0_i32_0 = arith.constant 0 : i32
    return %arg0, %c0_i32 : i32, i32
  }
}

module attributes {stable_mosaic.version = 11 : i64} {
  func.func @_self_attn_sublayer_kernel(%arg0: i32, %arg1: memref<8x4x4xf32, #tpu.memory_space<vmem>>, %arg2: memref<1x4x512xf32, #tpu.memory_space<vmem>>, %arg3: memref<1x512xf32, #tpu.memory_space<vmem>>, %arg4: memref<1x512xf32, #tpu.memory_space<vmem>>, %arg5: memref<512x1536xbf16, #tpu.memory_space<vmem>>, %arg6: memref<1x1536xf32, #tpu.memory_space<vmem>>, %arg7: memref<512x512xbf16, #tpu.memory_space<vmem>>, %arg8: memref<1x512xf32, #tpu.memory_space<vmem>>, %arg9: memref<1x4x512xf32, #tpu.memory_space<vmem>>) attributes {dimension_semantics = [#tpu.dimension_semantics<parallel>], iteration_bounds = array<i64: 2>, scalar_prefetch = 0 : i64, scratch_operands = 0 : i64, tpu.core_type = #tpu.core_type<tc>, window_params = [{pipeline_mode = #tpu.pipeline_mode<synchronous>, transform_indices = @transform_0, window_bounds = array<i64: 8, 4, 4>}, {transform_indices = @transform_1, window_bounds = array<i64: 1, 4, 512>}, {pipeline_mode = #tpu.pipeline_mode<synchronous>, transform_indices = @transform_2, window_bounds = array<i64: 1, 512>}, {pipeline_mode = #tpu.pipeline_mode<synchronous>, transform_indices = @transform_3, window_bounds = array<i64: 1, 512>}, {pipeline_mode = #tpu.pipeline_mode<synchronous>, transform_indices = @transform_4, window_bounds = array<i64: 512, 1536>}, {pipeline_mode = #tpu.pipeline_mode<synchronous>, transform_indices = @transform_5, window_bounds = array<i64: 1, 1536>}, {pipeline_mode = #tpu.pipeline_mode<synchronous>, transform_indices = @transform_6, window_bounds = array<i64: 512, 512>}, {pipeline_mode = #tpu.pipeline_mode<synchronous>, transform_indices = @transform_7, window_bounds = array<i64: 1, 512>}, {transform_indices = @transform_8, window_bounds = array<i64: 1, 4, 512>}]} {
    %c0 = arith.constant 0 : index
    %c0_0 = arith.constant 0 : index
    %c0_1 = arith.constant 0 : index
    %0 = vector.load %arg2[%c0, %c0_0, %c0_1] : memref<1x4x512xf32, #tpu.memory_space<vmem>>, vector<1x4x512xf32>
    %1 = vector.shape_cast %0 : vector<1x4x512xf32> to vector<4x512xf32>
    %c0_2 = arith.constant 0 : index
    %c0_3 = arith.constant 0 : index
    %2 = vector.load %arg3[%c0_2, %c0_3] : memref<1x512xf32, #tpu.memory_space<vmem>>, vector<1x512xf32>
    %c0_4 = arith.constant 0 : index
    %c0_5 = arith.constant 0 : index
    %3 = vector.load %arg4[%c0_4, %c0_5] : memref<1x512xf32, #tpu.memory_space<vmem>>, vector<1x512xf32>
    %cst = arith.constant dense<0.000000e+00> : vector<4xf32>
    %4 = vector.multi_reduction <add>, %1, %cst [1] : vector<4x512xf32> to vector<4xf32>
    %5 = vector.shape_cast %4 : vector<4xf32> to vector<4x1xf32>
    %cst_6 = arith.constant 5.120000e+02 : f32
    %6 = vector.broadcast %cst_6 : f32 to vector<4x1xf32>
    %7 = arith.divf %5, %6 : vector<4x1xf32>
    %8 = vector.broadcast %7 : vector<4x1xf32> to vector<4x512xf32>
    %9 = arith.subf %1, %8 : vector<4x512xf32>
    %10 = arith.mulf %9, %9 : vector<4x512xf32>
    %cst_7 = arith.constant dense<0.000000e+00> : vector<4xf32>
    %11 = vector.multi_reduction <add>, %10, %cst_7 [1] : vector<4x512xf32> to vector<4xf32>
    %12 = vector.shape_cast %11 : vector<4xf32> to vector<4x1xf32>
    %cst_8 = arith.constant 0.00195694715 : f32
    %13 = vector.broadcast %cst_8 : f32 to vector<4x1xf32>
    %14 = arith.mulf %12, %13 : vector<4x1xf32>
    %15 = vector.broadcast %7 : vector<4x1xf32> to vector<4x512xf32>
    %16 = arith.subf %1, %15 : vector<4x512xf32>
    %17 = vector.broadcast %2 : vector<1x512xf32> to vector<4x512xf32>
    %18 = arith.mulf %17, %16 : vector<4x512xf32>
    %19 = math.sqrt %14 : vector<4x1xf32>
    %cst_9 = arith.constant 9.99999997E-7 : f32
    %20 = vector.broadcast %cst_9 : f32 to vector<4x1xf32>
    %21 = arith.addf %19, %20 : vector<4x1xf32>
    %22 = vector.broadcast %21 : vector<4x1xf32> to vector<4x512xf32>
    %23 = arith.divf %18, %22 : vector<4x512xf32>
    %24 = vector.broadcast %3 : vector<1x512xf32> to vector<4x512xf32>
    %25 = arith.addf %23, %24 : vector<4x512xf32>
    %c0_10 = arith.constant 0 : index
    %c0_11 = arith.constant 0 : index
    %26 = vector.load %arg5[%c0_10, %c0_11] : memref<512x1536xbf16, #tpu.memory_space<vmem>>, vector<512x1536xbf16>
    %27 = arith.truncf %25 : vector<4x512xf32> to vector<4x512xbf16>
    %cst_12 = arith.constant dense<0.000000e+00> : vector<4x1536xf32>
    %28 = tpu.matmul %27, %26, %cst_12 {dimension_numbers = #tpu.dot_dimension_numbers<[1], [0], [0], [1], [0, 0, 1, 1], [], []>} : vector<4x512xbf16>, vector<512x1536xbf16>, vector<4x1536xf32> -> vector<4x1536xf32>
    %c0_13 = arith.constant 0 : index
    %c0_14 = arith.constant 0 : index
    %29 = vector.load %arg6[%c0_13, %c0_14] : memref<1x1536xf32, #tpu.memory_space<vmem>>, vector<1x1536xf32>
    %30 = vector.broadcast %29 : vector<1x1536xf32> to vector<4x1536xf32>
    %31 = arith.addf %28, %30 : vector<4x1536xf32>
    %32 = vector.extract_strided_slice %31 {offsets = [0, 0], sizes = [4, 512], strides = [1, 1]} : vector<4x1536xf32> to vector<4x512xf32>
    %33 = vector.extract_strided_slice %31 {offsets = [0, 512], sizes = [4, 512], strides = [1, 1]} : vector<4x1536xf32> to vector<4x512xf32>
    %34 = vector.extract_strided_slice %31 {offsets = [0, 1024], sizes = [4, 512], strides = [1, 1]} : vector<4x1536xf32> to vector<4x512xf32>
    %c0_15 = arith.constant 0 : index
    %c0_16 = arith.constant 0 : index
    %c0_17 = arith.constant 0 : index
    %35 = vector.load %arg1[%c0_15, %c0_16, %c0_17] : memref<8x4x4xf32, #tpu.memory_space<vmem>>, vector<8x4x4xf32>
    %36 = vector.shape_cast %32 : vector<4x512xf32> to vector<4x8x64xf32>
    %37 = tpu.transpose %36, [1, 0, 2] : vector<4x8x64xf32> -> vector<8x4x64xf32>
    %38 = arith.truncf %37 : vector<8x4x64xf32> to vector<8x4x64xbf16>
    %39 = vector.shape_cast %33 : vector<4x512xf32> to vector<4x8x64xf32>
    %40 = tpu.transpose %39, [1, 0, 2] : vector<4x8x64xf32> -> vector<8x4x64xf32>
    %41 = arith.truncf %40 : vector<8x4x64xf32> to vector<8x4x64xbf16>
    %42 = vector.shape_cast %34 : vector<4x512xf32> to vector<4x8x64xf32>
    %43 = tpu.transpose %42, [1, 0, 2] : vector<4x8x64xf32> -> vector<8x4x64xf32>
    %44 = arith.truncf %43 : vector<8x4x64xf32> to vector<8x4x64xbf16>
    "tpu.trace_start"() <{level = 10 : i32, message = "hqd,hkd->hqk"}> : () -> ()
    %cst_18 = arith.constant dense<0.000000e+00> : vector<8x4x4xf32>
    %45 = tpu.matmul %38, %41, %cst_18 {dimension_numbers = #tpu.dot_dimension_numbers<[2], [2], [1], [1], [0, 0, 0, 1, 1, 1], [0], [0]>} : vector<8x4x64xbf16>, vector<8x4x64xbf16>, vector<8x4x4xf32> -> vector<8x4x4xf32>
    "tpu.trace_stop"() : () -> ()
    %cst_19 = arith.constant 1.250000e-01 : f32
    %46 = vector.broadcast %cst_19 : f32 to vector<8x4x4xf32>
    %47 = arith.mulf %45, %46 : vector<8x4x4xf32>
    %cst_20 = arith.constant 0.000000e+00 : f32
    %48 = vector.broadcast %cst_20 : f32 to vector<8x4x4xf32>
    %49 = arith.cmpf oeq, %35, %48 : vector<8x4x4xf32>
    %cst_21 = arith.constant -1.000000e+09 : f32
    %50 = vector.broadcast %cst_21 : f32 to vector<8x4x4xf32>
    %51 = arith.select %49, %50, %47 : vector<8x4x4xi1>, vector<8x4x4xf32>
    %cst_22 = arith.constant dense<0xFF800000> : vector<8x4xf32>
    %52 = vector.multi_reduction <maximumf>, %51, %cst_22 [2] : vector<8x4x4xf32> to vector<8x4xf32>
    %53 = vector.shape_cast %52 : vector<8x4xf32> to vector<8x4x1xf32>
    %54 = vector.broadcast %53 : vector<8x4x1xf32> to vector<8x4x4xf32>
    %55 = arith.subf %51, %54 : vector<8x4x4xf32>
    %56 = math.exp %55 : vector<8x4x4xf32>
    %cst_23 = arith.constant dense<0.000000e+00> : vector<8x4xf32>
    %57 = vector.multi_reduction <add>, %56, %cst_23 [2] : vector<8x4x4xf32> to vector<8x4xf32>
    %58 = vector.shape_cast %57 : vector<8x4xf32> to vector<8x4x1xf32>
    %59 = tpu.reciprocal %58 {approx = true} : vector<8x4x1xf32> -> vector<8x4x1xf32>
    %60 = vector.broadcast %59 : vector<8x4x1xf32> to vector<8x4x4xf32>
    %61 = arith.mulf %56, %60 : vector<8x4x4xf32>
    %62 = arith.truncf %61 : vector<8x4x4xf32> to vector<8x4x4xbf16>
    "tpu.trace_start"() <{level = 10 : i32, message = "hqk,hkd->hqd"}> : () -> ()
    %cst_24 = arith.constant dense<0.000000e+00> : vector<8x4x64xf32>
    %63 = tpu.matmul %62, %44, %cst_24 {dimension_numbers = #tpu.dot_dimension_numbers<[2], [1], [1], [2], [0, 0, 0, 1, 1, 2], [0], [0]>} : vector<8x4x4xbf16>, vector<8x4x64xbf16>, vector<8x4x64xf32> -> vector<8x4x64xf32>
    "tpu.trace_stop"() : () -> ()
    %64 = tpu.transpose %63, [1, 0, 2] : vector<8x4x64xf32> -> vector<4x8x64xf32>
    %65 = vector.shape_cast %64 : vector<4x8x64xf32> to vector<4x512xf32>
    %c0_25 = arith.constant 0 : index
    %c0_26 = arith.constant 0 : index
    %66 = vector.load %arg7[%c0_25, %c0_26] : memref<512x512xbf16, #tpu.memory_space<vmem>>, vector<512x512xbf16>
    %67 = arith.truncf %65 : vector<4x512xf32> to vector<4x512xbf16>
    %cst_27 = arith.constant dense<0.000000e+00> : vector<4x512xf32>
    %68 = tpu.matmul %67, %66, %cst_27 {dimension_numbers = #tpu.dot_dimension_numbers<[1], [0], [0], [1], [0, 0, 1, 1], [], []>} : vector<4x512xbf16>, vector<512x512xbf16>, vector<4x512xf32> -> vector<4x512xf32>
    %69 = arith.addf %1, %68 : vector<4x512xf32>
    %c0_28 = arith.constant 0 : index
    %c0_29 = arith.constant 0 : index
    %70 = vector.load %arg8[%c0_28, %c0_29] : memref<1x512xf32, #tpu.memory_space<vmem>>, vector<1x512xf32>
    %71 = vector.broadcast %70 : vector<1x512xf32> to vector<4x512xf32>
    %72 = arith.addf %69, %71 : vector<4x512xf32>
    %c0_30 = arith.constant 0 : index
    %c0_31 = arith.constant 0 : index
    %c0_32 = arith.constant 0 : index
    %73 = vector.load %arg9[%c0_30, %c0_31, %c0_32] : memref<1x4x512xf32, #tpu.memory_space<vmem>>, vector<1x4x512xf32>
    %74 = vector.shape_cast %73 : vector<1x4x512xf32> to vector<4x512xf32>
    %75 = vector.shape_cast %72 : vector<4x512xf32> to vector<1x4x512xf32>
    tpu.vector_store %arg9[%c0_30, %c0_31, %c0_32], %75 {strides = array<i32>} : memref<1x4x512xf32, #tpu.memory_space<vmem>>, vector<1x4x512xf32>,
    return
  }
  func.func @transform_0(%arg0: i32) -> (i32, i32, i32) {
    %c0_i32 = arith.constant 0 : i32
    %c0_i32_0 = arith.constant 0 : i32
    %c0_i32_1 = arith.constant 0 : i32
    %c0_i32_2 = arith.constant 0 : i32
    return %c0_i32, %c0_i32_0, %c0_i32_1 : i32, i32, i32
  }
  func.func @transform_1(%arg0: i32) -> (i32, i32, i32) {
    %c0_i32 = arith.constant 0 : i32
    %c0_i32_0 = arith.constant 0 : i32
    %c0_i32_1 = arith.constant 0 : i32
    return %arg0, %c0_i32, %c0_i32_0 : i32, i32, i32
  }
  func.func @transform_2(%arg0: i32) -> (i32, i32) {
    %c0_i32 = arith.constant 0 : i32
    %c0_i32_0 = arith.constant 0 : i32
    %c0_i32_1 = arith.constant 0 : i32
    return %c0_i32, %c0_i32_0 : i32, i32
  }
  func.func @transform_3(%arg0: i32) -> (i32, i32) {
    %c0_i32 = arith.constant 0 : i32
    %c0_i32_0 = arith.constant 0 : i32
    %c0_i32_1 = arith.constant 0 : i32
    return %c0_i32, %c0_i32_0 : i32, i32
  }
  func.func @transform_4(%arg0: i32) -> (i32, i32) {
    %c0_i32 = arith.constant 0 : i32
    %c0_i32_0 = arith.constant 0 : i32
    %c0_i32_1 = arith.constant 0 : i32
    return %c0_i32, %c0_i32_0 : i32, i32
  }
  func.func @transform_5(%arg0: i32) -> (i32, i32) {
    %c0_i32 = arith.constant 0 : i32
    %c0_i32_0 = arith.constant 0 : i32
    %c0_i32_1 = arith.constant 0 : i32
    return %c0_i32, %c0_i32_0 : i32, i32
  }
  func.func @transform_6(%arg0: i32) -> (i32, i32) {
    %c0_i32 = arith.constant 0 : i32
    %c0_i32_0 = arith.constant 0 : i32
    %c0_i32_1 = arith.constant 0 : i32
    return %c0_i32, %c0_i32_0 : i32, i32
  }
  func.func @transform_7(%arg0: i32) -> (i32, i32) {
    %c0_i32 = arith.constant 0 : i32
    %c0_i32_0 = arith.constant 0 : i32
    %c0_i32_1 = arith.constant 0 : i32
    return %c0_i32, %c0_i32_0 : i32, i32
  }
  func.func @transform_8(%arg0: i32) -> (i32, i32, i32) {
    %c0_i32 = arith.constant 0 : i32
    %c0_i32_0 = arith.constant 0 : i32
    %c0_i32_1 = arith.constant 0 : i32
    return %arg0, %c0_i32, %c0_i32_0 : i32, i32, i32
  }
}

module attributes {stable_mosaic.version = 11 : i64} {
  func.func @_cross_attn_sublayer_kernel(%arg0: i32, %arg1: memref<8x4x4xf32, #tpu.memory_space<vmem>>, %arg2: memref<1x4x512xf32, #tpu.memory_space<vmem>>, %arg3: memref<1x4x512xf32, #tpu.memory_space<vmem>>, %arg4: memref<1x512xf32, #tpu.memory_space<vmem>>, %arg5: memref<1x512xf32, #tpu.memory_space<vmem>>, %arg6: memref<512x512xbf16, #tpu.memory_space<vmem>>, %arg7: memref<1x512xf32, #tpu.memory_space<vmem>>, %arg8: memref<512x1024xbf16, #tpu.memory_space<vmem>>, %arg9: memref<1x1024xf32, #tpu.memory_space<vmem>>, %arg10: memref<512x512xbf16, #tpu.memory_space<vmem>>, %arg11: memref<1x512xf32, #tpu.memory_space<vmem>>, %arg12: memref<1x4x512xf32, #tpu.memory_space<vmem>>) attributes {dimension_semantics = [#tpu.dimension_semantics<parallel>], iteration_bounds = array<i64: 2>, scalar_prefetch = 0 : i64, scratch_operands = 0 : i64, tpu.core_type = #tpu.core_type<tc>, window_params = [{pipeline_mode = #tpu.pipeline_mode<synchronous>, transform_indices = @transform_0, window_bounds = array<i64: 8, 4, 4>}, {transform_indices = @transform_1, window_bounds = array<i64: 1, 4, 512>}, {transform_indices = @transform_2, window_bounds = array<i64: 1, 4, 512>}, {pipeline_mode = #tpu.pipeline_mode<synchronous>, transform_indices = @transform_3, window_bounds = array<i64: 1, 512>}, {pipeline_mode = #tpu.pipeline_mode<synchronous>, transform_indices = @transform_4, window_bounds = array<i64: 1, 512>}, {pipeline_mode = #tpu.pipeline_mode<synchronous>, transform_indices = @transform_5, window_bounds = array<i64: 512, 512>}, {pipeline_mode = #tpu.pipeline_mode<synchronous>, transform_indices = @transform_6, window_bounds = array<i64: 1, 512>}, {pipeline_mode = #tpu.pipeline_mode<synchronous>, transform_indices = @transform_7, window_bounds = array<i64: 512, 1024>}, {pipeline_mode = #tpu.pipeline_mode<synchronous>, transform_indices = @transform_8, window_bounds = array<i64: 1, 1024>}, {pipeline_mode = #tpu.pipeline_mode<synchronous>, transform_indices = @transform_9, window_bounds = array<i64: 512, 512>}, {pipeline_mode = #tpu.pipeline_mode<synchronous>, transform_indices = @transform_10, window_bounds = array<i64: 1, 512>}, {transform_indices = @transform_11, window_bounds = array<i64: 1, 4, 512>}]} {
    %c0 = arith.constant 0 : index
    %c0_0 = arith.constant 0 : index
    %c0_1 = arith.constant 0 : index
    %0 = vector.load %arg2[%c0, %c0_0, %c0_1] : memref<1x4x512xf32, #tpu.memory_space<vmem>>, vector<1x4x512xf32>
    %1 = vector.shape_cast %0 : vector<1x4x512xf32> to vector<4x512xf32>
    %c0_2 = arith.constant 0 : index
    %c0_3 = arith.constant 0 : index
    %c0_4 = arith.constant 0 : index
    %2 = vector.load %arg3[%c0_2, %c0_3, %c0_4] : memref<1x4x512xf32, #tpu.memory_space<vmem>>, vector<1x4x512xf32>
    %3 = vector.shape_cast %2 : vector<1x4x512xf32> to vector<4x512xf32>
    %c0_5 = arith.constant 0 : index
    %c0_6 = arith.constant 0 : index
    %4 = vector.load %arg4[%c0_5, %c0_6] : memref<1x512xf32, #tpu.memory_space<vmem>>, vector<1x512xf32>
    %c0_7 = arith.constant 0 : index
    %c0_8 = arith.constant 0 : index
    %5 = vector.load %arg5[%c0_7, %c0_8] : memref<1x512xf32, #tpu.memory_space<vmem>>, vector<1x512xf32>
    %cst = arith.constant dense<0.000000e+00> : vector<4xf32>
    %6 = vector.multi_reduction <add>, %1, %cst [1] : vector<4x512xf32> to vector<4xf32>
    %7 = vector.shape_cast %6 : vector<4xf32> to vector<4x1xf32>
    %cst_9 = arith.constant 5.120000e+02 : f32
    %8 = vector.broadcast %cst_9 : f32 to vector<4x1xf32>
    %9 = arith.divf %7, %8 : vector<4x1xf32>
    %10 = vector.broadcast %9 : vector<4x1xf32> to vector<4x512xf32>
    %11 = arith.subf %1, %10 : vector<4x512xf32>
    %12 = arith.mulf %11, %11 : vector<4x512xf32>
    %cst_10 = arith.constant dense<0.000000e+00> : vector<4xf32>
    %13 = vector.multi_reduction <add>, %12, %cst_10 [1] : vector<4x512xf32> to vector<4xf32>
    %14 = vector.shape_cast %13 : vector<4xf32> to vector<4x1xf32>
    %cst_11 = arith.constant 0.00195694715 : f32
    %15 = vector.broadcast %cst_11 : f32 to vector<4x1xf32>
    %16 = arith.mulf %14, %15 : vector<4x1xf32>
    %17 = vector.broadcast %9 : vector<4x1xf32> to vector<4x512xf32>
    %18 = arith.subf %1, %17 : vector<4x512xf32>
    %19 = vector.broadcast %4 : vector<1x512xf32> to vector<4x512xf32>
    %20 = arith.mulf %19, %18 : vector<4x512xf32>
    %21 = math.sqrt %16 : vector<4x1xf32>
    %cst_12 = arith.constant 9.99999997E-7 : f32
    %22 = vector.broadcast %cst_12 : f32 to vector<4x1xf32>
    %23 = arith.addf %21, %22 : vector<4x1xf32>
    %24 = vector.broadcast %23 : vector<4x1xf32> to vector<4x512xf32>
    %25 = arith.divf %20, %24 : vector<4x512xf32>
    %26 = vector.broadcast %5 : vector<1x512xf32> to vector<4x512xf32>
    %27 = arith.addf %25, %26 : vector<4x512xf32>
    %c0_13 = arith.constant 0 : index
    %c0_14 = arith.constant 0 : index
    %28 = vector.load %arg6[%c0_13, %c0_14] : memref<512x512xbf16, #tpu.memory_space<vmem>>, vector<512x512xbf16>
    %29 = arith.truncf %27 : vector<4x512xf32> to vector<4x512xbf16>
    %cst_15 = arith.constant dense<0.000000e+00> : vector<4x512xf32>
    %30 = tpu.matmul %29, %28, %cst_15 {dimension_numbers = #tpu.dot_dimension_numbers<[1], [0], [0], [1], [0, 0, 1, 1], [], []>} : vector<4x512xbf16>, vector<512x512xbf16>, vector<4x512xf32> -> vector<4x512xf32>
    %c0_16 = arith.constant 0 : index
    %c0_17 = arith.constant 0 : index
    %31 = vector.load %arg7[%c0_16, %c0_17] : memref<1x512xf32, #tpu.memory_space<vmem>>, vector<1x512xf32>
    %32 = vector.broadcast %31 : vector<1x512xf32> to vector<4x512xf32>
    %33 = arith.addf %30, %32 : vector<4x512xf32>
    %c0_18 = arith.constant 0 : index
    %c0_19 = arith.constant 0 : index
    %34 = vector.load %arg8[%c0_18, %c0_19] : memref<512x1024xbf16, #tpu.memory_space<vmem>>, vector<512x1024xbf16>
    %35 = arith.truncf %3 : vector<4x512xf32> to vector<4x512xbf16>
    %cst_20 = arith.constant dense<0.000000e+00> : vector<4x1024xf32>
    %36 = tpu.matmul %35, %34, %cst_20 {dimension_numbers = #tpu.dot_dimension_numbers<[1], [0], [0], [1], [0, 0, 1, 1], [], []>} : vector<4x512xbf16>, vector<512x1024xbf16>, vector<4x1024xf32> -> vector<4x1024xf32>
    %c0_21 = arith.constant 0 : index
    %c0_22 = arith.constant 0 : index
    %37 = vector.load %arg9[%c0_21, %c0_22] : memref<1x1024xf32, #tpu.memory_space<vmem>>, vector<1x1024xf32>
    %38 = vector.broadcast %37 : vector<1x1024xf32> to vector<4x1024xf32>
    %39 = arith.addf %36, %38 : vector<4x1024xf32>
    %40 = vector.extract_strided_slice %39 {offsets = [0, 0], sizes = [4, 512], strides = [1, 1]} : vector<4x1024xf32> to vector<4x512xf32>
    %41 = vector.extract_strided_slice %39 {offsets = [0, 512], sizes = [4, 512], strides = [1, 1]} : vector<4x1024xf32> to vector<4x512xf32>
    %c0_23 = arith.constant 0 : index
    %c0_24 = arith.constant 0 : index
    %c0_25 = arith.constant 0 : index
    %42 = vector.load %arg1[%c0_23, %c0_24, %c0_25] : memref<8x4x4xf32, #tpu.memory_space<vmem>>, vector<8x4x4xf32>
    %43 = vector.shape_cast %33 : vector<4x512xf32> to vector<4x8x64xf32>
    %44 = tpu.transpose %43, [1, 0, 2] : vector<4x8x64xf32> -> vector<8x4x64xf32>
    %45 = arith.truncf %44 : vector<8x4x64xf32> to vector<8x4x64xbf16>
    %46 = vector.shape_cast %40 : vector<4x512xf32> to vector<4x8x64xf32>
    %47 = tpu.transpose %46, [1, 0, 2] : vector<4x8x64xf32> -> vector<8x4x64xf32>
    %48 = arith.truncf %47 : vector<8x4x64xf32> to vector<8x4x64xbf16>
    %49 = vector.shape_cast %41 : vector<4x512xf32> to vector<4x8x64xf32>
    %50 = tpu.transpose %49, [1, 0, 2] : vector<4x8x64xf32> -> vector<8x4x64xf32>
    %51 = arith.truncf %50 : vector<8x4x64xf32> to vector<8x4x64xbf16>
    "tpu.trace_start"() <{level = 10 : i32, message = "hqd,hkd->hqk"}> : () -> ()
    %cst_26 = arith.constant dense<0.000000e+00> : vector<8x4x4xf32>
    %52 = tpu.matmul %45, %48, %cst_26 {dimension_numbers = #tpu.dot_dimension_numbers<[2], [2], [1], [1], [0, 0, 0, 1, 1, 1], [0], [0]>} : vector<8x4x64xbf16>, vector<8x4x64xbf16>, vector<8x4x4xf32> -> vector<8x4x4xf32>
    "tpu.trace_stop"() : () -> ()
    %cst_27 = arith.constant 1.250000e-01 : f32
    %53 = vector.broadcast %cst_27 : f32 to vector<8x4x4xf32>
    %54 = arith.mulf %52, %53 : vector<8x4x4xf32>
    %cst_28 = arith.constant 0.000000e+00 : f32
    %55 = vector.broadcast %cst_28 : f32 to vector<8x4x4xf32>
    %56 = arith.cmpf oeq, %42, %55 : vector<8x4x4xf32>
    %cst_29 = arith.constant -1.000000e+09 : f32
    %57 = vector.broadcast %cst_29 : f32 to vector<8x4x4xf32>
    %58 = arith.select %56, %57, %54 : vector<8x4x4xi1>, vector<8x4x4xf32>
    %cst_30 = arith.constant dense<0xFF800000> : vector<8x4xf32>
    %59 = vector.multi_reduction <maximumf>, %58, %cst_30 [2] : vector<8x4x4xf32> to vector<8x4xf32>
    %60 = vector.shape_cast %59 : vector<8x4xf32> to vector<8x4x1xf32>
    %61 = vector.broadcast %60 : vector<8x4x1xf32> to vector<8x4x4xf32>
    %62 = arith.subf %58, %61 : vector<8x4x4xf32>
    %63 = math.exp %62 : vector<8x4x4xf32>
    %cst_31 = arith.constant dense<0.000000e+00> : vector<8x4xf32>
    %64 = vector.multi_reduction <add>, %63, %cst_31 [2] : vector<8x4x4xf32> to vector<8x4xf32>
    %65 = vector.shape_cast %64 : vector<8x4xf32> to vector<8x4x1xf32>
    %66 = tpu.reciprocal %65 {approx = true} : vector<8x4x1xf32> -> vector<8x4x1xf32>
    %67 = vector.broadcast %66 : vector<8x4x1xf32> to vector<8x4x4xf32>
    %68 = arith.mulf %63, %67 : vector<8x4x4xf32>
    %69 = arith.truncf %68 : vector<8x4x4xf32> to vector<8x4x4xbf16>
    "tpu.trace_start"() <{level = 10 : i32, message = "hqk,hkd->hqd"}> : () -> ()
    %cst_32 = arith.constant dense<0.000000e+00> : vector<8x4x64xf32>
    %70 = tpu.matmul %69, %51, %cst_32 {dimension_numbers = #tpu.dot_dimension_numbers<[2], [1], [1], [2], [0, 0, 0, 1, 1, 2], [0], [0]>} : vector<8x4x4xbf16>, vector<8x4x64xbf16>, vector<8x4x64xf32> -> vector<8x4x64xf32>
    "tpu.trace_stop"() : () -> ()
    %71 = tpu.transpose %70, [1, 0, 2] : vector<8x4x64xf32> -> vector<4x8x64xf32>
    %72 = vector.shape_cast %71 : vector<4x8x64xf32> to vector<4x512xf32>
    %c0_33 = arith.constant 0 : index
    %c0_34 = arith.constant 0 : index
    %73 = vector.load %arg10[%c0_33, %c0_34] : memref<512x512xbf16, #tpu.memory_space<vmem>>, vector<512x512xbf16>
    %74 = arith.truncf %72 : vector<4x512xf32> to vector<4x512xbf16>
    %cst_35 = arith.constant dense<0.000000e+00> : vector<4x512xf32>
    %75 = tpu.matmul %74, %73, %cst_35 {dimension_numbers = #tpu.dot_dimension_numbers<[1], [0], [0], [1], [0, 0, 1, 1], [], []>} : vector<4x512xbf16>, vector<512x512xbf16>, vector<4x512xf32> -> vector<4x512xf32>
    %76 = arith.addf %1, %75 : vector<4x512xf32>
    %c0_36 = arith.constant 0 : index
    %c0_37 = arith.constant 0 : index
    %77 = vector.load %arg11[%c0_36, %c0_37] : memref<1x512xf32, #tpu.memory_space<vmem>>, vector<1x512xf32>
    %78 = vector.broadcast %77 : vector<1x512xf32> to vector<4x512xf32>
    %79 = arith.addf %76, %78 : vector<4x512xf32>
    %c0_38 = arith.constant 0 : index
    %c0_39 = arith.constant 0 : index
    %c0_40 = arith.constant 0 : index
    %80 = vector.load %arg12[%c0_38, %c0_39, %c0_40] : memref<1x4x512xf32, #tpu.memory_space<vmem>>, vector<1x4x512xf32>
    %81 = vector.shape_cast %80 : vector<1x4x512xf32> to vector<4x512xf32>
    %82 = vector.shape_cast %79 : vector<4x512xf32> to vector<1x4x512xf32>
    tpu.vector_store %arg12[%c0_38, %c0_39, %c0_40], %82 {strides = array<i32>} : memref<1x4x512xf32, #tpu.memory_space<vmem>>, vector<1x4x512xf32>,
    return
  }
  func.func @transform_0(%arg0: i32) -> (i32, i32, i32) {
    %c0_i32 = arith.constant 0 : i32
    %c0_i32_0 = arith.constant 0 : i32
    %c0_i32_1 = arith.constant 0 : i32
    %c0_i32_2 = arith.constant 0 : i32
    return %c0_i32, %c0_i32_0, %c0_i32_1 : i32, i32, i32
  }
  func.func @transform_1(%arg0: i32) -> (i32, i32, i32) {
    %c0_i32 = arith.constant 0 : i32
    %c0_i32_0 = arith.constant 0 : i32
    %c0_i32_1 = arith.constant 0 : i32
    return %arg0, %c0_i32, %c0_i32_0 : i32, i32, i32
  }
  func.func @transform_2(%arg0: i32) -> (i32, i32, i32) {
    %c0_i32 = arith.constant 0 : i32
    %c0_i32_0 = arith.constant 0 : i32
    %c0_i32_1 = arith.constant 0 : i32
    return %arg0, %c0_i32, %c0_i32_0 : i32, i32, i32
  }
  func.func @transform_3(%arg0: i32) -> (i32, i32) {
    %c0_i32 = arith.constant 0 : i32
    %c0_i32_0 = arith.constant 0 : i32
    %c0_i32_1 = arith.constant 0 : i32
    return %c0_i32, %c0_i32_0 : i32, i32
  }
  func.func @transform_4(%arg0: i32) -> (i32, i32) {
    %c0_i32 = arith.constant 0 : i32
    %c0_i32_0 = arith.constant 0 : i32
    %c0_i32_1 = arith.constant 0 : i32
    return %c0_i32, %c0_i32_0 : i32, i32
  }
  func.func @transform_5(%arg0: i32) -> (i32, i32) {
    %c0_i32 = arith.constant 0 : i32
    %c0_i32_0 = arith.constant 0 : i32
    %c0_i32_1 = arith.constant 0 : i32
    return %c0_i32, %c0_i32_0 : i32, i32
  }
  func.func @transform_6(%arg0: i32) -> (i32, i32) {
    %c0_i32 = arith.constant 0 : i32
    %c0_i32_0 = arith.constant 0 : i32
    %c0_i32_1 = arith.constant 0 : i32
    return %c0_i32, %c0_i32_0 : i32, i32
  }
  func.func @transform_7(%arg0: i32) -> (i32, i32) {
    %c0_i32 = arith.constant 0 : i32
    %c0_i32_0 = arith.constant 0 : i32
    %c0_i32_1 = arith.constant 0 : i32
    return %c0_i32, %c0_i32_0 : i32, i32
  }
  func.func @transform_8(%arg0: i32) -> (i32, i32) {
    %c0_i32 = arith.constant 0 : i32
    %c0_i32_0 = arith.constant 0 : i32
    %c0_i32_1 = arith.constant 0 : i32
    return %c0_i32, %c0_i32_0 : i32, i32
  }
  func.func @transform_9(%arg0: i32) -> (i32, i32) {
    %c0_i32 = arith.constant 0 : i32
    %c0_i32_0 = arith.constant 0 : i32
    %c0_i32_1 = arith.constant 0 : i32
    return %c0_i32, %c0_i32_0 : i32, i32
  }
  func.func @transform_10(%arg0: i32) -> (i32, i32) {
    %c0_i32 = arith.constant 0 : i32
    %c0_i32_0 = arith.constant 0 : i32
    %c0_i32_1 = arith.constant 0 : i32
    return %c0_i32, %c0_i32_0 : i32, i32
  }
  func.func @transform_11(%arg0: i32) -> (i32, i32, i32) {
    %c0_i32 = arith.constant 0 : i32
    %c0_i32_0 = arith.constant 0 : i32
    %c0_i32_1 = arith.constant 0 : i32
    return %arg0, %c0_i32, %c0_i32_0 : i32, i32, i32
  }
}

</mosaic_0001>

<bundles_post_ra>
// kernel: encoder_decoder_fwd.16
= control target key start
LH: loop header
LB: loop body
LE: loop exit
PB: predicated region body
PF: predicated region fallthrough
CT: control target
= control target key end

     0   :  { %8 = vsyncpa [#allocation3], 0  ;;  %s256_s0 = inlined_call_operand.vmem [shape: f32[8,512], index: 0, kind: input, shape index: {}]   ;;  %s257_s1 = inlined_call_operand.hbm [shape: f32[1,512], index: 1, kind: input, shape index: {}]   ;;  %s258_s2 = inlined_call_operand.hbm [shape: f32[1,512], index: 2, kind: input, shape index: {}]   ;;  %s259_s3 = inlined_call_operand.vmem [shape: f32[8,512], index: 3, kind: output, shape index: {}]  }
   0x1   :  { %s17_s14 = sshll.u32 %s257_s1, 4  ;;  %s18_s14 = int_to_ptr.hbm [resolvable:$true] %s17_s14 }
   0x2   :  { %9 = vsyncpa [#allocation5], 0  ;;  %s203_s15 = smov [#allocation2]   ;;  %s28_s19 = sshll.u32 %s258_s2, 4  ;;  %s29_s19 = int_to_ptr.hbm [resolvable:$true] %s28_s19 }
   0x3   :  { %s19_s16 = sshll.u32 %s203_s15, 4  ;;  %s204_s20 = smov [#allocation4]   ;;  %s20_s16 = int_to_ptr.vmem [resolvable:$true] %s19_s16 }
   0x4   :  { %22 = dma.hbm_to_vmem [thread:$0]  %s18_s14, 64, %s20_s16, [#allocation3]  }
   0x5   :  { %s30_s21 = sshll.u32 %s204_s20, 4  ;;  %s31_s21 = int_to_ptr.vmem [resolvable:$true] %s30_s21 }
   0x6   :  { %33 = dma.hbm_to_vmem [thread:$0]  %s29_s19, 64, %s31_s21, [#allocation5]  }
   0x7   :  { %199 = dma.done.wait [#allocation3], 64  }
   0x8   :  { %200 = vsyncadd [#allocation3], 4294967232 }
   0x9   :  { %201 = dma.done.wait [#allocation5], 64  }
   0xa   :  { %202 = vsyncadd [#allocation5], 4294967232  ;;  %v42_v0 = vld [vmem:[%s256_s0] sm:$0xff]  ;;  %v43_v1 = vld [vmem:[%s256_s0 + $0x8] sm:$0xff]  ;;  %v205_v7 = vmov 512.0  }
   0xb   :  { %v44_v2 = vld [vmem:[%s256_s0 + $0x10] sm:$0xff]  ;;  %v48_v3 = vadd.f32 %v43_v1, %v42_v0  ;;  %v45_v4 = vld [vmem:[%s256_s0 + $0x18] sm:$0xff]  ;;  %145 = vrcp.f32 %v205_v7  ;;  %v46_v41 = vld [vmem:[#allocation2] sm:$0xf] }
   0xc   :  { %v76_v44 = vperm.slane %v46_v41, 0  ;;  %v77_v45 = vperm.slane %v46_v41, 1  ;;  %v78_v46 = vperm.slane %v46_v41, 2  ;;  %v47_v47 = vld [vmem:[#allocation4] sm:$0xf]  ;;  %v79_v49 = vperm.slane %v46_v41, 3 }
   0xd   :  { %v49_v5 = vadd.f32 %v48_v3, %v44_v2  ;;  %v120_v52 = vperm.slane %v47_v47, 0  ;;  %v121_v53 = vperm.slane %v47_v47, 1  ;;  %v122_v57 = vperm.slane %v47_v47, 2 }
   0xe   :  { %v123_v62 = vperm.slane %v47_v47, 3 }
   0xf   :  { %v50_v6 = vadd.f32 %v49_v5, %v45_v4 }
  0x11   :  { %51 = vadd.xlane.f32.xlu0 %v50_v6  ;;  %v146_v8 = vpop.eup %145 }
  0x12   :  { %v54_v9 = vmul.f32 512.0, %v146_v8  ;;  %vm58_vm0 = vweird.f32 %v146_v8 }
  0x14   :  { %v55_v10 = vsub.f32 1.0, %v54_v9 }
  0x16   :  { %v56_v11 = vmul.f32 %v146_v8, %v55_v10 }
  0x18   :  { %v57_v12 = vadd.f32 %v146_v8, %v56_v11 }
  0x1a   :  { %v59_v13 = vsel %vm58_vm0, %v146_v8, %v57_v12 }
  0x84   :  { %v52_v14 = vpop.xlane.xlu0 %51 }
  0x85   :  { %v60_v15 = vmul.f32 %v59_v13, %v52_v14 }
  0x87   :  { %v61_v16 = vsub.f32 %v42_v0, %v60_v15  ;;  %v62_v17 = vsub.f32 %v43_v1, %v60_v15  ;;  %v63_v18 = vsub.f32 %v44_v2, %v60_v15  ;;  %v64_v19 = vsub.f32 %v45_v4, %v60_v15 }
  0x89   :  { %v65_v20 = vmul.f32 %v61_v16, %v61_v16  ;;  %v66_v21 = vmul.f32 %v62_v17, %v62_v17  ;;  %v67_v22 = vmul.f32 %v63_v18, %v63_v18  ;;  %v68_v24 = vmul.f32 %v64_v19, %v64_v19 }
  0x8a   :  { %v84_v55 = vmul.f32 %v76_v44, %v61_v16  ;;  %v85_v56 = vmul.f32 %v77_v45, %v62_v17  ;;  %v86_v59 = vmul.f32 %v78_v46, %v63_v18  ;;  %v87_v60 = vmul.f32 %v79_v49, %v64_v19 }
  0x8b   :  { %v69_v23 = vadd.f32 %v66_v21, %v65_v20 }
  0x8d   :  { %v70_v25 = vadd.f32 %v69_v23, %v67_v22 }
  0x8f   :  { %v71_v26 = vadd.f32 %v70_v25, %v68_v24 }
  0x91   :  { %72 = vadd.xlane.f32.xlu0 %v71_v26 }
 0x104   :  { %v73_v27 = vpop.xlane.xlu0 %72 }
 0x105   :  { %v74_v28 = vmul.f32 0.0019569471, %v73_v27 }
 0x107   :  { %147 = vrsqrt.f32 %v74_v28  ;;  %vm95_vm1 = vcmp.eq.f32.partialorder %v74_v28, inf  ;;  %v98_v36 = vand.u32 2147483648, %v74_v28  ;;  %vm97_vm2 = vcmp.eq.f32.partialorder %v74_v28, 0.0 }
 0x10d   :  { %v148_v29 = vpop.eup %147 }
 0x10e   :  { %v89_v30 = vmul.f32 %v148_v29, %v74_v28 }
 0x110   :  { %v90_v31 = vmul.f32 %v148_v29, %v89_v30 }
 0x112   :  { %v91_v32 = vmul.f32 0.5, %v90_v31 }
 0x114   :  { %v92_v33 = vsub.f32 1.5, %v91_v32 }
 0x116   :  { %v93_v34 = vmul.f32 %v148_v29, %v92_v33 }
 0x118   :  { %v94_v35 = vmul.f32 %v93_v34, %v74_v28 }
 0x11a   :  { %v96_v37 = vsel %vm95_vm1, %v74_v28, %v94_v35 }
 0x11b   :  { %v99_v38 = vsel %vm97_vm2, %v98_v36, %v96_v37 }
 0x11c   :  { %v100_v39 = vadd.f32 1e-06, %v99_v38 }
 0x11e   :  { %149 = vrcp.f32 %v100_v39  ;;  %v112_v48 = vand.u32 2147483648, %v100_v39  ;;  %v110_v51 = vand.u32 2147483647, %v100_v39  ;;  %vm106_vm4 = vweird.f32 %v100_v39 }
 0x120   :  { %v113_v58 = vor.u32 1.1754944e-38, %v112_v48  ;;  %vm111_vm6 = vcmp.eq.f32.partialorder %v110_v51, 8.507059e+37 }
 0x124   :  { %v150_v40 = vpop.eup %149 }
 0x125   :  { %v102_v42 = vmul.f32 %v150_v40, %v100_v39  ;;  %vm107_vm3 = vweird.f32 %v150_v40 }
 0x126   :  { %vm108_vm5 = vmor %vm106_vm4, %vm107_vm3 }
 0x127   :  { %v103_v43 = vsub.f32 1.0, %v102_v42 }
 0x129   :  { %v104_v50 = vmul.f32 %v150_v40, %v103_v43 }
 0x12b   :  { %v105_v54 = vadd.f32 %v150_v40, %v104_v50 }
 0x12d   :  { %v109_v61 = vsel %vm108_vm5, %v150_v40, %v105_v54 }
 0x12e   :  { %v114_v63 = vsel %vm111_vm6, %v113_v58, %v109_v61 }
 0x12f   :  { %v115_v0 = vmul.f32 %v114_v63, %v84_v55  ;;  %v116_v1 = vmul.f32 %v114_v63, %v85_v56  ;;  %v117_v2 = vmul.f32 %v114_v63, %v86_v59  ;;  %v118_v3 = vmul.f32 %v114_v63, %v87_v60 }
 0x131   :  { %v128_v4 = vadd.f32 %v120_v52, %v115_v0  ;;  %v129_v5 = vadd.f32 %v121_v53, %v116_v1  ;;  %v130_v6 = vadd.f32 %v122_v57, %v117_v2  ;;  %v131_v7 = vadd.f32 %v123_v62, %v118_v3 }
 0x133   :  { %132 = vst [vmem:[%s259_s3] sm:$0xff] %v128_v4 }
 0x134   :  { %133 = vst [vmem:[%s259_s3 + $0x8] sm:$0xff] %v129_v5 }
 0x135   :  { %134 = vst [vmem:[%s259_s3 + $0x10] sm:$0xff] %v130_v6 }
 0x136   :  { %135 = vst [vmem:[%s259_s3 + $0x18] sm:$0xff] %v131_v7 }
 0x137   :  { %140 = vsyncpa [#allocation3], 1 }
 0x138   :  { %141 = vsyncpa [#allocation5], 1 }

// kernel: encoder_decoder_fwd.13
= control target key start
LH: loop header
LB: loop body
LE: loop exit
PB: predicated region body
PF: predicated region fallthrough
CT: control target
= control target key end

     0   :  { %12 = vsyncpa [#allocation3], 0  ;;  %s1294_s0 = inlined_call_operand.vmem [shape: f32[8,512], index: 0, kind: input, shape index: {}]   ;;  %s1295_s1 = inlined_call_operand.hbm [shape: f32[1,512], index: 1, kind: input, shape index: {}]   ;;  %s1296_s2 = inlined_call_operand.hbm [shape: f32[1,512], index: 2, kind: input, shape index: {}]   ;;  %s1297_s3 = inlined_call_operand.vmem [shape: bf16[512,64], index: 3, kind: input, shape index: {}]   ;;  %s1298_s4 = inlined_call_operand.hbm [shape: f32[1,64], index: 4, kind: input, shape index: {}]   ;;  %s1299_s5 = inlined_call_operand.hbm [shape: bf16[64,512], index: 5, kind: input, shape index: {}]   ;;  %s1300_s6 = inlined_call_operand.hbm [shape: f32[1,512], index: 6, kind: input, shape index: {}]   ;;  %s1301_s7 = inlined_call_operand.vmem [shape: f32[8,512], index: 7, kind: output, shape index: {}]  }
   0x1   :  { %13 = vsyncpa [#allocation5], 0  ;;  %s33_s26 = sshll.u32 %s1296_s2, 4  ;;  %s34_s26 = int_to_ptr.hbm [resolvable:$true] %s33_s26 }
   0x2   :  { %14 = vsyncpa [#allocation8], 0  ;;  %s1071_s27 = smov [#allocation4]   ;;  %s56_s8 = sshll.u32 %s1299_s5, 4  ;;  %s57_s8 = int_to_ptr.hbm [resolvable:$true] %s56_s8 }
   0x3   :  { %s35_s28 = sshll.u32 %s1071_s27, 4  ;;  %s1072_s9 = smov [#allocation7]   ;;  %s36_s28 = int_to_ptr.vmem [resolvable:$true] %s35_s28 }
   0x4   :  { %38 = dma.hbm_to_vmem [thread:$0]  %s34_s26, 64, %s36_s28, [#allocation5]  }
   0x5   :  { %s58_s10 = sshll.u32 %s1072_s9, 4  ;;  %s1073_s11 = smov 256   ;;  %s59_s10 = int_to_ptr.vmem [resolvable:$true] %s58_s10 }
   0x6   :  { %s1074_s12 = smov 16   ;;  %s22_s2 = sshll.u32 %s1295_s1, 4  ;;  %s23_s2 = int_to_ptr.hbm [resolvable:$true] %s22_s2 }
   0x7   :  { %64 = dma.hbm_to_vmem [thread:$0]  %s57_s8, 2048, %s59_s10, [#allocation8], %s1073_s11, %s1073_s11, %s1074_s12  }
   0x8   :  { %s1075_s15 = smov [#allocation2]   ;;  %s46_s5 = sshll.u32 %s1298_s4, 4  ;;  %s47_s5 = int_to_ptr.hbm [resolvable:$true] %s46_s5 }
   0x9   :  { %s24_s16 = sshll.u32 %s1075_s15, 4  ;;  %s1076_s19 = smov [#allocation6]   ;;  %s25_s16 = int_to_ptr.vmem [resolvable:$true] %s24_s16 }
   0xa   :  { %27 = dma.hbm_to_vmem [thread:$0]  %s23_s2, 64, %s25_s16, [#allocation3]  }
   0xb   :  { %s48_s20 = sshll.u32 %s1076_s19, 4  ;;  %s70_s23 = sshll.u32 %s1300_s6, 4  ;;  %s49_s20 = int_to_ptr.vmem [resolvable:$true] %s48_s20  ;;  %s71_s23 = int_to_ptr.hbm [resolvable:$true] %s70_s23 }
   0xc   :  { %51 = dma.hbm_to_vmem [thread:$0]  %s47_s5, 16, %s49_s20, [#allocation5]  }
   0xd   :  { %s1077_s1 = smov [#allocation9]  }
   0xe   :  { %s72_s24 = sshll.u32 %s1077_s1, 4  ;;  %s73_s24 = int_to_ptr.vmem [resolvable:$true] %s72_s24 }
   0xf   :  { %75 = dma.hbm_to_vmem [thread:$0]  %s71_s23, 64, %s73_s24, [#allocation8]  }
  0x10   :  { %1065 = dma.done.wait [#allocation3], 64  }
  0x11   :  { %1066 = vsyncadd [#allocation3], 4294967232 }
  0x12   :  { %1067 = dma.done.wait [#allocation5], 80  }
  0x13   :  { %1068 = vsyncadd [#allocation5], 4294967216 }
  0x14   :  { %1069 = dma.done.wait [#allocation8], 2112  }
  0x15   :  { %1070 = vsyncadd [#allocation8], 4294965184  ;;  %v1137_v0 = vld [vmem:[%s1294_s0] sm:$0xff]  ;;  %v1142_v1 = vld [vmem:[%s1294_s0 + $0x8] sm:$0xff]  ;;  %v1078_v7 = vmov 512.0   ;;  %vm601_vm7 = vcmask 523264  }
  0x16   :  { %v1147_v2 = vld [vmem:[%s1294_s0 + $0x10] sm:$0xff]  ;;  %v103_v3 = vadd.f32 %v1142_v1, %v1137_v0  ;;  %v1154_v4 = vld [vmem:[%s1294_s0 + $0x18] sm:$0xff]  ;;  %939 = vrcp.f32 %v1078_v7  ;;  %v887_v35 = vld [vmem:[%s1297_s3 + $0x28] sm:$0xff] }
  0x17   :  { %v889_v27 = vld [vmem:[%s1297_s3 + $0x38] sm:$0xff]  ;;  %v888_v31 = vld [vmem:[%s1297_s3 + $0x30] sm:$0xff]  ;;  %v895_v36 = vld [vmem:[%s1297_s3 + $0x68] sm:$0xff] }
  0x18   :  { %v104_v5 = vadd.f32 %v103_v3, %v1147_v2  ;;  %v897_v28 = vld [vmem:[%s1297_s3 + $0x78] sm:$0xff]  ;;  %451 = vmatpush.bf16.msra.mxu0 %v889_v27  ;;  %v896_v32 = vld [vmem:[%s1297_s3 + $0x70] sm:$0xff]  ;;  %v903_v37 = vld [vmem:[%s1297_s3 + $0xa8] sm:$0xff] }
  0x19   :  { %v905_v29 = vld [vmem:[%s1297_s3 + $0xb8] sm:$0xff]  ;;  %464 = vmatpush.bf16.msra.mxu1 %v897_v28  ;;  %v904_v33 = vld [vmem:[%s1297_s3 + $0xb0] sm:$0xff]  ;;  %v911_v38 = vld [vmem:[%s1297_s3 + $0xe8] sm:$0xff] }
  0x1a   :  { %v105_v6 = vadd.f32 %v104_v5, %v1154_v4  ;;  %v913_v30 = vld [vmem:[%s1297_s3 + $0xf8] sm:$0xff]  ;;  %477 = vmatpush.bf16.msra.mxu2 %v905_v29  ;;  %v912_v34 = vld [vmem:[%s1297_s3 + $0xf0] sm:$0xff]  ;;  %v886_v39 = vld [vmem:[%s1297_s3 + $0x20] sm:$0xff] }
  0x1b   :  { %490 = vmatpush.bf16.msra.mxu3 %v913_v30  ;;  %v894_v40 = vld [vmem:[%s1297_s3 + $0x60] sm:$0xff]  ;;  %v885_v43 = vld [vmem:[%s1297_s3 + $0x18] sm:$0xff]  ;;  %v884_v49 = vld [vmem:[%s1297_s3 + $0x10] sm:$0xff] }
  0x1c   :  { %106 = vadd.xlane.f32.xlu0 %v105_v6  ;;  %v940_v8 = vpop.eup %939  ;;  %452 = vmatpush.bf16.msra.mxu0 %v888_v31  ;;  %v902_v41 = vld [vmem:[%s1297_s3 + $0xa0] sm:$0xff]  ;;  %v893_v44 = vld [vmem:[%s1297_s3 + $0x58] sm:$0xff]  ;;  %v892_v50 = vld [vmem:[%s1297_s3 + $0x50] sm:$0xff] }
  0x1d   :  { %v109_v9 = vmul.f32 512.0, %v940_v8  ;;  %vm113_vm0 = vweird.f32 %v940_v8  ;;  %465 = vmatpush.bf16.msra.mxu1 %v896_v32  ;;  %v910_v42 = vld [vmem:[%s1297_s3 + $0xe0] sm:$0xff]  ;;  %v901_v45 = vld [vmem:[%s1297_s3 + $0x98] sm:$0xff]  ;;  %v900_v51 = vld [vmem:[%s1297_s3 + $0x90] sm:$0xff] }
  0x1e   :  { %478 = vmatpush.bf16.msra.mxu2 %v904_v33  ;;  %v909_v46 = vld [vmem:[%s1297_s3 + $0xd8] sm:$0xff]  ;;  %v908_v52 = vld [vmem:[%s1297_s3 + $0xd0] sm:$0xff]  ;;  %v883_v53 = vld [vmem:[%s1297_s3 + $0x8] sm:$0xff] }
  0x1f   :  { %v110_v10 = vsub.f32 1.0, %v109_v9  ;;  %491 = vmatpush.bf16.msra.mxu3 %v912_v34  ;;  %v891_v54 = vld [vmem:[%s1297_s3 + $0x48] sm:$0xff]  ;;  %v882_v59 = vld [vmem:[%s1297_s3] sm:$0xff]  ;;  %v872_v7 = vld [vmem:[#allocation7 + $0x68] sm:$0xf] }
  0x20   :  { %453 = vmatpush.bf16.msra.mxu0 %v887_v35  ;;  %v899_v55 = vld [vmem:[%s1297_s3 + $0x88] sm:$0xff]  ;;  %v890_v60 = vld [vmem:[%s1297_s3 + $0x40] sm:$0xff]  ;;  %v927_v9 = vld [vmem:[#allocation7 + $0x6c] sm:$0xf] }
  0x21   :  { %v111_v11 = vmul.f32 %v940_v8, %v110_v10  ;;  %466 = vmatpush.bf16.msra.mxu1 %v895_v36  ;;  %v907_v56 = vld [vmem:[%s1297_s3 + $0xc8] sm:$0xff]  ;;  %v898_v61 = vld [vmem:[%s1297_s3 + $0x80] sm:$0xff] }
  0x22   :  { %479 = vmatpush.bf16.msra.mxu2 %v903_v37  ;;  %v906_v62 = vld [vmem:[%s1297_s3 + $0xc0] sm:$0xff] }
  0x23   :  { %v112_v12 = vadd.f32 %v940_v8, %v111_v11  ;;  %492 = vmatpush.bf16.msra.mxu3 %v911_v38  ;;  %v874_v11 = vld [vmem:[#allocation7 + $0x78] sm:$0xf0] }
  0x24   :  { %454 = vmatpush.bf16.msra.mxu0 %v886_v39  ;;  %v102_v31 = vld [vmem:[#allocation4] sm:$0xf] }
  0x25   :  { %v114_v13 = vsel %vm113_vm0, %v940_v8, %v112_v12  ;;  %467 = vmatpush.bf16.msra.mxu1 %v894_v40  ;;  %v929_v8 = vld [vmem:[#allocation7 + $0x74] sm:$0xf0]  ;;  %v175_v39 = vperm.slane %v102_v31, 0  ;;  %v176_v40 = vperm.slane %v102_v31, 1 }
  0x26   :  { %480 = vmatpush.bf16.msra.mxu2 %v902_v41  ;;  %v873_v10 = vor.u32 %v929_v8, %v872_v7 }
  0x27   :  { %493 = vmatpush.bf16.msra.mxu3 %v910_v42 }
  0x28   :  { %455 = vmatpush.bf16.msra.mxu0 %v885_v43  ;;  %v177_v43 = vperm.slane %v102_v31, 2 }
  0x29   :  { %468 = vmatpush.bf16.msra.mxu1 %v893_v44  ;;  %v178_v44 = vperm.slane %v102_v31, 3 }
  0x2a   :  { %481 = vmatpush.bf16.msra.mxu2 %v901_v45 }
  0x2b   :  { %494 = vmatpush.bf16.msra.mxu3 %v909_v46 }
  0x2c   :  { %456 = vmatpush.bf16.msra.mxu0 %v884_v49 }
  0x2d   :  { %469 = vmatpush.bf16.msra.mxu1 %v892_v50 }
  0x2e   :  { %482 = vmatpush.bf16.msra.mxu2 %v900_v51 }
  0x2f   :  { %495 = vmatpush.bf16.msra.mxu3 %v908_v52 }
  0x30   :  { %457 = vmatpush.bf16.msra.mxu0 %v883_v53 }
  0x31   :  { %470 = vmatpush.bf16.msra.mxu1 %v891_v54 }
  0x32   :  { %483 = vmatpush.bf16.msra.mxu2 %v899_v55  ;;  %v928_v55 = vld [vmem:[#allocation7 + $0x6c] sm:$0xf0] }
  0x33   :  { %496 = vmatpush.bf16.msra.mxu3 %v907_v56  ;;  %v926_v56 = vld [vmem:[#allocation7 + $0x64] sm:$0xf] }
  0x34   :  { %458 = vmatpush.bf16.msra.mxu0 %v882_v59 }
  0x35   :  { %471 = vmatpush.bf16.msra.mxu1 %v890_v60  ;;  %v856_v60 = vld [vmem:[#allocation7 + $0x48] sm:$0xf] }
  0x36   :  { %484 = vmatpush.bf16.msra.mxu2 %v898_v61  ;;  %v925_v61 = vld [vmem:[#allocation7 + $0x54] sm:$0xf0] }
  0x37   :  { %497 = vmatpush.bf16.msra.mxu3 %v906_v62  ;;  %v923_v62 = vld [vmem:[#allocation7 + $0x4c] sm:$0xf] }
  0x3a   :  { %635 = vmatpush.bf16.msrb.mxu2 %v873_v10  ;;  %v850_v10 = vld [vmem:[#allocation7 + $0x50] sm:$0xf0] }
  0x8f   :  { %v107_v14 = vpop.xlane.xlu0 %106 }
  0x90   :  { %v115_v15 = vmul.f32 %v114_v13, %v107_v14  ;;  %v877_v13 = vor.u32 %v927_v9, %v874_v11  ;;  %v922_v9 = vld [vmem:[#allocation7 + $0x44] sm:$0xf] }
  0x91   :  { %v853_v11 = vor.u32 %v922_v9, %v850_v10 }
  0x92   :  { %v1159_v16 = vsub.f32 %v1137_v0, %v115_v15  ;;  %v1162_v17 = vsub.f32 %v1142_v1, %v115_v15  ;;  %v1165_v18 = vsub.f32 %v1147_v2, %v115_v15  ;;  %v1168_v19 = vsub.f32 %v1154_v4, %v115_v15  ;;  %648 = vmatpush.bf16.msrb.mxu3 %v877_v13  ;;  %v921_v13 = vld [vmem:[#allocation7 + $0x34] sm:$0xf0] }
  0x94   :  { %v120_v20 = vmul.f32 %v1159_v16, %v1159_v16  ;;  %v121_v21 = vmul.f32 %v1162_v17, %v1162_v17  ;;  %v122_v22 = vmul.f32 %v1165_v18, %v1165_v18  ;;  %v123_v24 = vmul.f32 %v1168_v19, %v1168_v19 }
  0x96   :  { %v124_v23 = vadd.f32 %v121_v21, %v120_v20 }
  0x98   :  { %v125_v25 = vadd.f32 %v124_v23, %v122_v22  ;;  %v101_v22 = vld [vmem:[#allocation2] sm:$0xf] }
  0x99   :  { %v132_v27 = vperm.slane %v101_v22, 1  ;;  %v133_v28 = vperm.slane %v101_v22, 2  ;;  %v134_v30 = vperm.slane %v101_v22, 3 }
  0x9a   :  { %v126_v26 = vadd.f32 %v125_v25, %v123_v24  ;;  %v131_v25 = vperm.slane %v101_v22, 0  ;;  %v920_v22 = vld [vmem:[#allocation7 + $0x2c] sm:$0xf0] }
  0x9b   :  { %v140_v36 = vmul.f32 %v132_v27, %v1162_v17  ;;  %v141_v37 = vmul.f32 %v133_v28, %v1165_v18  ;;  %v142_v41 = vmul.f32 %v134_v30, %v1168_v19  ;;  %v864_v19 = vld [vmem:[#allocation7 + $0x60] sm:$0xf]  ;;  %v824_v28 = vld [vmem:[#allocation7 + $0x8] sm:$0xf]  ;;  %v915_v30 = vld [vmem:[#allocation7 + $0xc] sm:$0xf] }
  0x9c   :  { %127 = vadd.xlane.f32.xlu0 %v126_v26  ;;  %v139_v34 = vmul.f32 %v131_v25, %v1159_v16  ;;  %v918_v25 = vld [vmem:[#allocation7 + $0x24] sm:$0xf] }
 0x10f   :  { %v128_v47 = vpop.xlane.xlu0 %127 }
 0x110   :  { %v129_v48 = vmul.f32 0.0019569471, %v128_v47 }
 0x112   :  { %941 = vrsqrt.f32 %v129_v48  ;;  %vm150_vm1 = vcmp.eq.f32.partialorder %v129_v48, inf  ;;  %v153_v14 = vand.u32 2147483648, %v129_v48  ;;  %vm152_vm2 = vcmp.eq.f32.partialorder %v129_v48, 0.0 }
 0x118   :  { %v942_v57 = vpop.eup %941 }
 0x119   :  { %v144_v58 = vmul.f32 %v942_v57, %v129_v48 }
 0x11b   :  { %v145_v63 = vmul.f32 %v942_v57, %v144_v58  ;;  %v866_v58 = vld [vmem:[#allocation7 + $0x70] sm:$0xf0] }
 0x11c   :  { %v869_v59 = vor.u32 %v926_v56, %v866_v58 }
 0x11d   :  { %v146_v3 = vmul.f32 0.5, %v145_v63  ;;  %v857_v63 = vor.u32 %v925_v61, %v856_v60 }
 0x11e   :  { %622 = vmatpush.bf16.msrb.mxu1 %v869_v59 }
 0x11f   :  { %v147_v5 = vsub.f32 1.5, %v146_v3  ;;  %v858_v3 = vld [vmem:[#allocation7 + $0x58] sm:$0xf0]  ;;  %636 = vmatpush.bf16.msrb.mxu2 %v857_v63 }
 0x120   :  { %v861_v7 = vor.u32 %v923_v62, %v858_v3 }
 0x121   :  { %v148_v6 = vmul.f32 %v942_v57, %v147_v5  ;;  %v865_v57 = vor.u32 %v928_v55, %v864_v19  ;;  %v848_v5 = vld [vmem:[#allocation7 + $0x40] sm:$0xf] }
 0x122   :  { %649 = vmatpush.bf16.msrb.mxu3 %v861_v7  ;;  %623 = vmatpush.bf16.msrb.mxu1 %v853_v11 }
 0x123   :  { %v149_v12 = vmul.f32 %v148_v6, %v129_v48  ;;  %609 = vmatpush.bf16.msrb.mxu0 %v865_v57  ;;  %v924_v6 = vld [vmem:[#allocation7 + $0x4c] sm:$0xf0] }
 0x124   :  { %v849_v8 = vor.u32 %v924_v6, %v848_v5 }
 0x125   :  { %v151_v15 = vsel %vm150_vm1, %v129_v48, %v149_v12  ;;  %v840_v12 = vld [vmem:[#allocation7 + $0x28] sm:$0xf] }
 0x126   :  { %v154_v20 = vsel %vm152_vm2, %v153_v14, %v151_v15  ;;  %v919_v14 = vld [vmem:[#allocation7 + $0x2c] sm:$0xf]  ;;  %v841_v15 = vor.u32 %v921_v13, %v840_v12 }
 0x127   :  { %v155_v21 = vadd.f32 1e-06, %v154_v20  ;;  %610 = vmatpush.bf16.msrb.mxu0 %v849_v8  ;;  %v842_v20 = vld [vmem:[#allocation7 + $0x38] sm:$0xf0] }
 0x128   :  { %637 = vmatpush.bf16.msrb.mxu2 %v841_v15 }
 0x129   :  { %943 = vrcp.f32 %v155_v21  ;;  %v167_v29 = vand.u32 2147483648, %v155_v21  ;;  %v165_v33 = vand.u32 2147483647, %v155_v21  ;;  %vm161_vm4 = vweird.f32 %v155_v21 }
 0x12b   :  { %v168_v38 = vor.u32 1.1754944e-38, %v167_v29  ;;  %vm166_vm6 = vcmp.eq.f32.partialorder %v165_v33, 8.507059e+37  ;;  %v917_v29 = vld [vmem:[#allocation7 + $0x14] sm:$0xf0]  ;;  %v816_v33 = vld [vmem:[#allocation7] sm:$0xf] }
 0x12c   :  { %v825_v31 = vor.u32 %v917_v29, %v824_v28 }
 0x12e   :  { %638 = vmatpush.bf16.msrb.mxu2 %v825_v31 }
 0x12f   :  { %v944_v23 = vpop.eup %943 }
 0x130   :  { %v157_v24 = vmul.f32 %v944_v23, %v155_v21  ;;  %vm162_vm3 = vweird.f32 %v944_v23  ;;  %v832_v21 = vld [vmem:[#allocation7 + $0x20] sm:$0xf] }
 0x131   :  { %vm163_vm5 = vmor %vm161_vm4, %vm162_vm3 }
 0x132   :  { %v158_v26 = vsub.f32 1.0, %v157_v24  ;;  %v833_v24 = vor.u32 %v920_v22, %v832_v21 }
 0x134   :  { %v159_v32 = vmul.f32 %v944_v23, %v158_v26  ;;  %v834_v26 = vld [vmem:[#allocation7 + $0x30] sm:$0xf0]  ;;  %611 = vmatpush.bf16.msrb.mxu0 %v833_v24 }
 0x135   :  { %v837_v27 = vor.u32 %v918_v25, %v834_v26 }
 0x136   :  { %v160_v35 = vadd.f32 %v944_v23, %v159_v32  ;;  %v826_v32 = vld [vmem:[#allocation7 + $0x18] sm:$0xf0] }
 0x137   :  { %624 = vmatpush.bf16.msrb.mxu1 %v837_v27 }
 0x138   :  { %v164_v42 = vsel %vm163_vm5, %v944_v23, %v160_v35  ;;  %v845_v23 = vor.u32 %v919_v14, %v842_v20  ;;  %v829_v35 = vor.u32 %v915_v30, %v826_v32 }
 0x139   :  { %v169_v45 = vsel %vm166_vm6, %v168_v38, %v164_v42  ;;  %v818_v38 = vld [vmem:[#allocation7 + $0x10] sm:$0xf0] }
 0x13a   :  { %v170_v46 = vmul.f32 %v169_v45, %v139_v34  ;;  %v171_v47 = vmul.f32 %v169_v45, %v140_v36  ;;  %v172_v16 = vmul.f32 %v169_v45, %v141_v37  ;;  %v173_v48 = vmul.f32 %v169_v45, %v142_v41  ;;  %650 = vmatpush.bf16.msrb.mxu3 %v845_v23  ;;  %v916_v34 = vld [vmem:[#allocation7 + $0xc] sm:$0xf0]  ;;  %v914_v37 = vld [vmem:[#allocation7 + $0x4] sm:$0xf] }
 0x13b   :  { %v817_v36 = vor.u32 %v916_v34, %v816_v33 }
 0x13c   :  { %v183_v49 = vadd.f32 %v175_v39, %v170_v46  ;;  %v184_v50 = vadd.f32 %v176_v40, %v171_v47  ;;  %v185_v17 = vadd.f32 %v177_v43, %v172_v16  ;;  %v186_v51 = vadd.f32 %v178_v44, %v173_v48  ;;  %v938_v40 = vld [vmem:[#allocation6] ss:$0 sm:$0xff] }
 0x13d   :  { %v821_v39 = vor.u32 %v914_v37, %v818_v38  ;;  %612 = vmatpush.bf16.msrb.mxu0 %v817_v36 }
 0x13e   :  { %v251_v18 = vpack.c.bf16 %v183_v49, %v183_v49  ;;  %v252_v52 = vpack.c.bf16 %v184_v50, %v184_v50  ;;  %v253_v53 = vpack.c.bf16 %v185_v17, %v185_v17  ;;  %v254_v54 = vpack.c.bf16 %v186_v51, %v186_v51  ;;  %651 = vmatpush.bf16.msrb.mxu3 %v829_v35 }
 0x13f   :  { %625 = vmatpush.bf16.msrb.mxu1 %v821_v39 }
 0x140   :  { %459 = vmatmul.bf16.vlgmr.msra.gmra.mxu0 %v251_v18  ;;  %472 = vmatmul.bf16.vlgmr.msra.gmra.mxu1 %v252_v52  ;;  %v661_v52 = vld [vmem:[#allocation9] sm:$0xf] }
 0x141   :  { %485 = vmatmul.bf16.vlgmr.msra.gmra.mxu2 %v253_v53  ;;  %498 = vmatmul.bf16.vlgmr.msra.gmra.mxu3 %v254_v54  ;;  %v663_v53 = vperm.slane %v661_v52, 0  ;;  %v664_v54 = vperm.slane %v661_v52, 1  ;;  %v665_v60 = vperm.slane %v661_v52, 2  ;;  %v666_v61 = vperm.slane %v661_v52, 3 }
 0x1bd   :  { %v460_v41 = vpop.f32.mrf.mxu0  ;;  %v473_v42 = vpop.f32.mrf.mxu1 }
 0x1be   :  { %v461_v43 = vadd.f32 %v938_v40, %v460_v41 }
 0x1c0   :  { %v474_v44 = vadd.f32 %v473_v42, %v461_v43 }
 0x1c4   :  { %v486_v45 = vpop.f32.mrf.mxu2  ;;  %v499_v46 = vpop.f32.mrf.mxu3 }
 0x1c5   :  { %v487_v47 = vadd.f32 %v486_v45, %v474_v44  ;;  %v462_v16 = vpop.f32.mrf.mxu0  ;;  %v475_v48 = vpop.f32.mrf.mxu1 }
 0x1c7   :  { %v500_v49 = vadd.f32 %v499_v46, %v487_v47 }
 0x1c9   :  { %v503_v50 = vmax.f32 %v500_v49, 0.0 }
 0x1cb   :  { %v520_v17 = vpack.c.bf16 %v503_v50, %v503_v50 }
 0x1cc   :  { %v488_v51 = vpop.f32.mrf.mxu2  ;;  %v501_v18 = vpop.f32.mrf.mxu3 }
 0x1cd   :  { %878 = vmatmul.msk.bf16.vlgmr.msrb.gmra.mxu0 %vm601_vm7, %v520_v17  ;;  %879 = vmatmul.msk.bf16.vlgmr.msrb.gmra.mxu1 %vm601_vm7, %v520_v17 }
 0x1ce   :  { %880 = vmatmul.msk.bf16.vlgmr.msrb.gmra.mxu2 %vm601_vm7, %v520_v17  ;;  %881 = vmatmul.msk.bf16.vlgmr.msrb.gmra.mxu3 %vm601_vm7, %v520_v17 }
 0x24a   :  { %v614_v19 = vpop.f32.mrf.mxu0  ;;  %v627_v55 = vpop.f32.mrf.mxu1 }
 0x24b   :  { %v657_v56 = vadd.f32 %v614_v19, %v1137_v0  ;;  %v658_v57 = vadd.f32 %v627_v55, %v1142_v1 }
 0x24d   :  { %v671_v58 = vadd.f32 %v663_v53, %v657_v56  ;;  %v672_v59 = vadd.f32 %v664_v54, %v658_v57 }
 0x24f   :  { %675 = vst [vmem:[%s1301_s7] sm:$0xff] %v671_v58 }
 0x250   :  { %676 = vst [vmem:[%s1301_s7 + $0x8] sm:$0xff] %v672_v59 }
 0x251   :  { %v640_v62 = vpop.f32.mrf.mxu2  ;;  %v653_v63 = vpop.f32.mrf.mxu3 }
 0x252   :  { %v659_v3 = vadd.f32 %v640_v62, %v1147_v2  ;;  %v660_v0 = vadd.f32 %v653_v63, %v1154_v4  ;;  %v616_v5 = vpop.f32.mrf.mxu0  ;;  %v629_v1 = vpop.f32.mrf.mxu1 }
 0x254   :  { %v673_v6 = vadd.f32 %v665_v60, %v659_v3  ;;  %v674_v7 = vadd.f32 %v666_v61, %v660_v0 }
 0x256   :  { %677 = vst [vmem:[%s1301_s7 + $0x10] sm:$0xff] %v673_v6 }
 0x257   :  { %678 = vst [vmem:[%s1301_s7 + $0x18] sm:$0xff] %v674_v7 }
 0x259   :  { %v642_v8 = vpop.f32.mrf.mxu2  ;;  %v655_v9 = vpop.f32.mrf.mxu3 }
 0x25a   :  { %683 = vsyncpa [#allocation3], 1 }
 0x25b   :  { %684 = vsyncpa [#allocation5], 1 }
 0x25c   :  { %685 = vsyncpa [#allocation8], 1 }

// kernel: encoder_decoder_fwd.18
= control target key start
LH: loop header
LB: loop body
LE: loop exit
PB: predicated region body
PF: predicated region fallthrough
CT: control target
= control target key end

     0   :  { %s9606_s0 = inlined_call_operand.vmem [shape: f32[8,4,4], index: 0, kind: input, shape index: {}]   ;;  %s9607_s1 = inlined_call_operand.vmem [shape: f32[2,4,512], index: 1, kind: input, shape index: {}]   ;;  %s9608_s2 = inlined_call_operand.vmem [shape: f32[2,4,512], index: 2, kind: input, shape index: {}]   ;;  %s9609_s3 = inlined_call_operand.hbm [shape: f32[1,512], index: 3, kind: input, shape index: {}]   ;;  %s9610_s4 = inlined_call_operand.hbm [shape: f32[1,512], index: 4, kind: input, shape index: {}]   ;;  %s9611_s5 = inlined_call_operand.hbm [shape: bf16[512,512], index: 5, kind: input, shape index: {}]   ;;  %s9612_s6 = inlined_call_operand.hbm [shape: f32[1,512], index: 6, kind: input, shape index: {}]   ;;  %s9613_s7 = inlined_call_operand.hbm [shape: bf16[512,1024], index: 7, kind: input, shape index: {}]   ;;  %s9614_s8 = inlined_call_operand.hbm [shape: f32[1,1024], index: 8, kind: input, shape index: {}]   ;;  %s9615_s9 = inlined_call_operand.hbm [shape: bf16[512,512], index: 9, kind: input, shape index: {}]   ;;  %s9616_s10 = inlined_call_operand.hbm [shape: f32[1,512], index: 10, kind: input, shape index: {}]   ;;  %s9617_s11 = inlined_call_operand.vmem [shape: f32[2,4,512], index: 11, kind: output, shape index: {}]  }
   0x1   :  { %9618 = sst [smem:[#allocation20_spill]] %s9609_s3 }
   0x2   :  { %16 = vsyncpa [#allocation3], 0 }
   0x3   :  { %17 = vsyncpa [#allocation5], 0 }
   0x4   :  { %18 = vsyncpa [#allocation8], 0 }
   0x5   :  { %19 = vsyncpa [#allocation11], 0 }
   0x6   :  { %20 = vsyncpa [#allocation14], 0  ;;  %s8909_s17 = smov 0  }
   0x7 LB: > { %s325_s20 = sshll.u32 %s9610_s4, 4  ;;  %s8918_s21 = sadd.s32 4294967295, %s8830_s17   ;;  %s8830_s17 = sphi %s8909_s17, %s26_s17   ;;  %s326_s20 = int_to_ptr.hbm [resolvable:$true] %s325_s20 }
   0x8   : > { %p5781_p0 = scmp.ge.s32.totalorder %s8830_s17, 1  ;;  %p298_p1 = scmp.lt.s32.totalorder %s8830_s17, 3 }
   0x9   : > { %p8444_p2 = scmp.eq.s32.totalorder %s8918_s21, 0  ;;  %s8832_s23 = smov [#allocation4]  }
   0xa   : > { %p8923_p3 = pnand %p5781_p0, %p298_p1  ;;  %s327_s24 = sshll.u32 %s8832_s23, 4  ;;  %s328_s24 = int_to_ptr.vmem [resolvable:$true] %s327_s24 }
   0xb   : > { %s351_s27 = sshll.u32 %s9612_s6, 4  ;;  %s377_s30 = sshll.u32 %s9614_s8, 4  ;;  %s352_s27 = int_to_ptr.hbm [resolvable:$true] %s351_s27  ;;  %s378_s30 = int_to_ptr.hbm [resolvable:$true] %s377_s30 }
   0xc   : > { %p8419_p4 = pneg %p8923_p3  ;;  %s8833_s13 = smov [#allocation7]  }
   0xd   : > { %s353_s14 = sshll.u32 %s8833_s13, 4  ;;  %s8834_s15 = smov [#allocation10]   ;;  %s354_s14 = int_to_ptr.vmem [resolvable:$true] %s353_s14 }
   0xe   : > { %p8937_p5 = pnand %p8444_p2, %p8419_p4  ;;  %s379_s16 = sshll.u32 %s8834_s15, 4  ;;  %s380_s16 = int_to_ptr.vmem [resolvable:$true] %s379_s16 }
   0xf   : > { %s9621_s3 = sld [smem:[#allocation20_spill]]  ;;  %s336_s28 = sshll.u32 %s9611_s5, 4  ;;  %s337_s28 = int_to_ptr.hbm [resolvable:$true] %s336_s28 }
  0x10   : > { %8425 = dma.hbm_to_vmem [thread:$0]  (!%p8937_p5), %s326_s20, 64, %s328_s24, [#allocation5]  }
  0x11   : > { %8431 = dma.hbm_to_vmem [thread:$0]  (!%p8937_p5), %s352_s27, 64, %s354_s14, [#allocation8]  }
  0x12   : > { %8437 = dma.hbm_to_vmem [thread:$0]  (!%p8937_p5), %s378_s30, 128, %s380_s16, [#allocation11]  }
  0x13   : > { %s8835_s29 = smov [#allocation2]   ;;  %s8836_s20 = smov [#allocation6]  }
  0x14   : > { %s315_s13 = sshll.u32 %s8835_s29, 4  ;;  %s338_s24 = sshll.u32 %s8836_s20, 4  ;;  %s316_s13 = int_to_ptr.vmem [resolvable:$true] %s315_s13  ;;  %s339_s24 = int_to_ptr.vmem [resolvable:$true] %s338_s24 }
  0x15   : > { %s313_s23 = sshll.u32 %s9621_s3, 4  ;;  %s8837_s27 = smov 256   ;;  %s314_s23 = int_to_ptr.hbm [resolvable:$true] %s313_s23 }
  0x16   : > { %8422 = dma.hbm_to_vmem [thread:$0]  (!%p8937_p5), %s314_s23, 64, %s316_s13, [#allocation3]  }
  0x17   : > { %s8838_s14 = smov 16   ;;  %s362_s16 = sshll.u32 %s9613_s7, 4  ;;  %s363_s16 = int_to_ptr.hbm [resolvable:$true] %s362_s16 }
  0x18   : > { %8428 = dma.hbm_to_vmem [thread:$0]  (!%p8937_p5), %s337_s28, 16384, %s339_s24, [#allocation5], %s8837_s27, %s8837_s27, %s8838_s14  }
  0x19   : > { %s8839_s18 = smov [#allocation9]   ;;  %s388_s23 = sshll.u32 %s9615_s9, 4  ;;  %s389_s23 = int_to_ptr.hbm [resolvable:$true] %s388_s23 }
  0x1a   : > { %s364_s19 = sshll.u32 %s8839_s18, 4  ;;  %s8840_s29 = smov 512   ;;  %s365_s19 = int_to_ptr.vmem [resolvable:$true] %s364_s19 }
  0x1b   : > { %s8841_s13 = smov 32   ;;  %s8842_s20 = smov [#allocation12]  }
  0x1c   : > { %8434 = dma.hbm_to_vmem [thread:$0]  (!%p8937_p5), %s363_s16, 32768, %s365_s19, [#allocation8], %s8840_s29, %s8840_s29, %s8841_s13  }
  0x1d   : > { %s390_s28 = sshll.u32 %s8842_s20, 4  ;;  %s403_s30 = sshll.u32 %s9616_s10, 4  ;;  %s391_s28 = int_to_ptr.vmem [resolvable:$true] %s390_s28  ;;  %s404_s30 = int_to_ptr.hbm [resolvable:$true] %s403_s30 }
  0x1e   : > { %8440 = dma.hbm_to_vmem [thread:$0]  (!%p8937_p5), %s389_s23, 16384, %s391_s28, [#allocation11], %s8837_s27, %s8837_s27, %s8838_s14  }
  0x1f   : > { %s8843_s15 = smov [#allocation13]   ;;  %434 = sbr.rel (%p8923_p3) target bundleno = 1770 (0x6ea), region = 64 }
  0x20   : > { %s405_s18 = sshll.u32 %s8843_s15, 4  ;;  %s406_s18 = int_to_ptr.vmem [resolvable:$true] %s405_s18 }
  0x21   : > { %8443 = dma.hbm_to_vmem [thread:$0]  (!%p8937_p5), %s404_s30, 64, %s406_s18, [#allocation14]  }
  0x24   : > { %8809 = dma.done.wait (%p8444_p2), [#allocation3], 64  }
  0x25   : > { %8811 = vsyncadd (%p8444_p2), [#allocation3], 4294967232 }
  0x26   : > { %8813 = dma.done.wait (%p8444_p2), [#allocation5], 16448  }
  0x27   : > { %8815 = vsyncadd (%p8444_p2), [#allocation5], 4294950848 }
  0x28   : > { %8817 = dma.done.wait (%p8444_p2), [#allocation8], 32832  }
  0x29   : > { %8819 = vsyncadd (%p8444_p2), [#allocation8], 4294934464 }
  0x2a   : > { %8821 = dma.done.wait (%p8444_p2), [#allocation11], 16512  }
  0x2b   : > { %8823 = vsyncadd (%p8444_p2), [#allocation11], 4294950784 }
  0x2c   : > { %8825 = dma.done.wait (%p8444_p2), [#allocation14], 64  }
  0x2d   : > { %8827 = vsyncadd (%p8444_p2), [#allocation14], 4294967232  ;;  %p515_p6 = scmp.lt.s32.totalorder %s8918_s21, 1  ;;  %vm550_vm0 = vcmask 1043456   ;;  %v8844_v13 = vmov 512.0   ;;  %vm3673_vm8 = vcmask 1047556  }
  0x2e   : > { %8525 = vrcp.f32 %v8844_v13  ;;  %v5920_v18 = vld [vmem:[#allocation6 + $0xe0] sm:$0xf]  ;;  %v7905_v19 = vld [vmem:[#allocation6 + $0xec] sm:$0xf0]  ;;  %v8845_v26 = vmov 839922192  }
  0x2f   : > { %s9623_s21 = smov (!%p515_p6, %s8918_s21), 1  ;;  %v6048_v20 = vld [vmem:[#allocation6 + $0x1e0] sm:$0xf]  ;;  %v5921_v22 = vor.u32 %v7905_v19, %v5920_v18  ;;  %v7937_v23 = vld [vmem:[#allocation6 + $0x1ec] sm:$0xf0]  ;;  %v570_v27 = vunpack.c.l.s4 %v8845_v26  ;;  %s8846_s19 = smov 64  }
  0x30   : > { %s8996_s3 = sshll.u32 %s9623_s21, 4  ;;  %v6176_v24 = vld [vmem:[#allocation6 + $0x2e0] sm:$0xf]  ;;  %v7969_v25 = vld [vmem:[#allocation6 + $0x2ec] sm:$0xf0]  ;;  %v6049_v28 = vor.u32 %v7937_v23, %v6048_v20  ;;  %vm4065_vm9 = vcmask 523264  }
  0x31   : > { %s519_s27 = scalar_lea.vmem %s9607_s1, %s8996_s3  ;;  %v6177_v29 = vor.u32 %v7969_v25, %v6176_v24  ;;  %v6304_v30 = vld [vmem:[#allocation6 + $0x3e0] sm:$0xf]  ;;  %v8001_v31 = vld [vmem:[#allocation6 + $0x3ec] sm:$0xf0]  ;;  %1453 = vmatpush.bf16.msra.mxu0 %v5921_v22  ;;  %v571_v47 = vunpack.c.0.s8 %v570_v27  ;;  %s524_s16 = scalar_lea.vmem %s9608_s2, %s8996_s3  ;;  %vm4242_vm11 = vcmask 27648  }
  0x32   : > { %v9002_v0 = vld [vmem:[%s519_s27] sm:$0xff]  ;;  %v9004_v1 = vld [vmem:[%s519_s27 + $0x8] sm:$0xff]  ;;  %v5904_v32 = vld [vmem:[#allocation6 + $0xc0] sm:$0xf]  ;;  %v6305_v33 = vor.u32 %v8001_v31, %v6304_v30  ;;  %1466 = vmatpush.bf16.msra.mxu1 %v6049_v28  ;;  %s529_s25 = scalar_lea.vmem %s9617_s11, %s8996_s3 }
  0x33   : > { %539 = vst [vmem:[#allocation1] ss:$2 sm:$0xff] %v9002_v0  ;;  %v7901_v34 = vld [vmem:[#allocation6 + $0xcc] sm:$0xf0]  ;;  %v6032_v35 = vld [vmem:[#allocation6 + $0x1c0] sm:$0xf]  ;;  %1479 = vmatpush.bf16.msra.mxu2 %v6177_v29 }
  0x34   : > { %541 = vst [vmem:[#allocation1 + $0x10] ss:$2 sm:$0xff] %v9004_v1  ;;  %v8526_v14 = vpop.eup %8525  ;;  %v7933_v36 = vld [vmem:[#allocation6 + $0x1cc] sm:$0xf0]  ;;  %v5905_v37 = vor.u32 %v7901_v34, %v5904_v32  ;;  %v6160_v39 = vld [vmem:[#allocation6 + $0x2c0] sm:$0xf]  ;;  %1492 = vmatpush.bf16.msra.mxu3 %v6305_v33 }
  0x35   : > { %v561_v15 = vmul.f32 512.0, %v8526_v14  ;;  %vm565_vm1 = vweird.f32 %v8526_v14  ;;  %v6033_v38 = vor.u32 %v7933_v36, %v6032_v35  ;;  %v7965_v40 = vld [vmem:[#allocation6 + $0x2cc] sm:$0xf0]  ;;  %v6288_v41 = vld [vmem:[#allocation6 + $0x3c0] sm:$0xf] }
  0x36   : > { %v6161_v43 = vor.u32 %v7965_v40, %v6160_v39  ;;  %v7997_v44 = vld [vmem:[#allocation6 + $0x3cc] sm:$0xf0]  ;;  %v5888_v45 = vld [vmem:[#allocation6 + $0xa0] sm:$0xf]  ;;  %1454 = vmatpush.bf16.msra.mxu0 %v5905_v37 }
  0x37   : > { %v562_v16 = vsub.f32 1.0, %v561_v15  ;;  %v7897_v46 = vld [vmem:[#allocation6 + $0xac] sm:$0xf0]  ;;  %v6289_v48 = vor.u32 %v7997_v44, %v6288_v41  ;;  %v6016_v49 = vld [vmem:[#allocation6 + $0x1a0] sm:$0xf]  ;;  %1467 = vmatpush.bf16.msra.mxu1 %v6033_v38 }
  0x38   : > { %v7929_v50 = vld [vmem:[#allocation6 + $0x1ac] sm:$0xf0]  ;;  %v6144_v51 = vld [vmem:[#allocation6 + $0x2a0] sm:$0xf]  ;;  %v5889_v53 = vor.u32 %v7897_v46, %v5888_v45  ;;  %1480 = vmatpush.bf16.msra.mxu2 %v6161_v43 }
  0x39   : > { %v563_v17 = vmul.f32 %v8526_v14, %v562_v16  ;;  %v7961_v54 = vld [vmem:[#allocation6 + $0x2ac] sm:$0xf0]  ;;  %v6272_v55 = vld [vmem:[#allocation6 + $0x3a0] sm:$0xf]  ;;  %v6017_v58 = vor.u32 %v7929_v50, %v6016_v49  ;;  %1493 = vmatpush.bf16.msra.mxu3 %v6289_v48  ;;  %v534_v16 = vld [vmem:[%s524_s16 + $0x8] sm:$0xff] }
  0x3a   : > { %v542_v2 = vld.sshfl [vmem:[#allocation1] sm:$0xff pattern:$0x75316420]  ;;  %v543_v3 = vld.sshfl [vmem:[#allocation1 + $0x8] sm:$0xff pattern:$0x75316420]  ;;  %v6145_v59 = vor.u32 %v7961_v54, %v6144_v51  ;;  %1455 = vmatpush.bf16.msra.mxu0 %v5889_v53 }
  0x3b   : > { %v544_v4 = vld.sshfl [vmem:[#allocation1 + $0x10] sm:$0xff pattern:$0x75316420]  ;;  %v545_v5 = vld.sshfl [vmem:[#allocation1 + $0x18] sm:$0xff pattern:$0x75316420]  ;;  %v564_v21 = vadd.f32 %v8526_v14, %v563_v17  ;;  %1468 = vmatpush.bf16.msra.mxu1 %v6017_v58 }
  0x3c   : > { %v551_v6 = vsel %vm550_vm0, %v542_v2, 0.0  ;;  %v552_v7 = vsel %vm550_vm0, %v543_v3, 0.0  ;;  %v554_v8 = vsel %vm550_vm0, %v544_v4, 0.0  ;;  %v556_v10 = vsel %vm550_vm0, %v545_v5, 0.0  ;;  %v7993_v56 = vld [vmem:[#allocation6 + $0x3ac] sm:$0xf0]  ;;  %1481 = vmatpush.bf16.msra.mxu2 %v6145_v59 }
  0x3d   : > { %v553_v9 = vadd.f32 %v552_v7, %v551_v6  ;;  %v566_v42 = vsel %vm565_vm1, %v8526_v14, %v564_v21  ;;  %v6273_v60 = vor.u32 %v7993_v56, %v6272_v55  ;;  %v533_v14 = vld [vmem:[%s524_s16] sm:$0xff]  ;;  %v5872_v21 = vld [vmem:[#allocation6 + $0x80] sm:$0xf] }
  0x3e   : > { %v7893_v22 = vld [vmem:[#allocation6 + $0x8c] sm:$0xf0]  ;;  %v6000_v23 = vld [vmem:[#allocation6 + $0x180] sm:$0xf] }
  0x3f   : > { %v555_v11 = vadd.f32 %v554_v8, %v553_v9  ;;  %1494 = vmatpush.bf16.msra.mxu3 %v6273_v60  ;;  %v5873_v24 = vor.u32 %v7893_v22, %v5872_v21  ;;  %v7925_v25 = vld [vmem:[#allocation6 + $0x18c] sm:$0xf0]  ;;  %v6128_v26 = vld [vmem:[#allocation6 + $0x280] sm:$0xf]  ;;  %v7903_v22 = vld [vmem:[#allocation6 + $0xe4] sm:$0xf] }
  0x40   : > { %v7957_v27 = vld [vmem:[#allocation6 + $0x28c] sm:$0xf0]  ;;  %v6001_v28 = vor.u32 %v7925_v25, %v6000_v23  ;;  %v6256_v30 = vld [vmem:[#allocation6 + $0x380] sm:$0xf]  ;;  %v7935_v25 = vld [vmem:[#allocation6 + $0x1e4] sm:$0xf] }
  0x41   : > { %v557_v12 = vadd.f32 %v556_v10, %v555_v11  ;;  %v6129_v29 = vor.u32 %v7957_v27, %v6128_v26  ;;  %v7989_v31 = vld [vmem:[#allocation6 + $0x38c] sm:$0xf0]  ;;  %1456 = vmatpush.bf16.msra.mxu0 %v5873_v24  ;;  %v5856_v33 = vld [vmem:[#allocation6 + $0x60] sm:$0xf]  ;;  %v5922_v24 = vld [vmem:[#allocation6 + $0xf0] sm:$0xf0] }
  0x42   : > { %v6257_v32 = vor.u32 %v7989_v31, %v6256_v30  ;;  %1469 = vmatpush.bf16.msra.mxu1 %v6001_v28  ;;  %v7889_v34 = vld [vmem:[#allocation6 + $0x6c] sm:$0xf0]  ;;  %v5984_v35 = vld [vmem:[#allocation6 + $0x160] sm:$0xf]  ;;  %v6050_v26 = vld [vmem:[#allocation6 + $0x1f0] sm:$0xf0]  ;;  %v5925_v27 = vor.u32 %v7903_v22, %v5922_v24 }
  0x43   : > { %558 = vadd.xlane.f32.xlu0 %v557_v12  ;;  %1482 = vmatpush.bf16.msra.mxu2 %v6129_v29  ;;  %v5857_v36 = vor.u32 %v7889_v34, %v5856_v33  ;;  %v7921_v37 = vld [vmem:[#allocation6 + $0x16c] sm:$0xf0]  ;;  %v6112_v38 = vld [vmem:[#allocation6 + $0x260] sm:$0xf]  ;;  %v6053_v28 = vor.u32 %v7935_v25, %v6050_v26  ;;  %v7967_v29 = vld [vmem:[#allocation6 + $0x2e4] sm:$0xf] }
  0x44   : > { %1495 = vmatpush.bf16.msra.mxu3 %v6257_v32  ;;  %v7953_v39 = vld [vmem:[#allocation6 + $0x26c] sm:$0xf0]  ;;  %v5985_v40 = vor.u32 %v7921_v37, %v5984_v35  ;;  %v5840_v45 = vld [vmem:[#allocation6 + $0x40] sm:$0xf]  ;;  %v6178_v30 = vld [vmem:[#allocation6 + $0x2f0] sm:$0xf0] }
  0x45   : > { %v6113_v41 = vor.u32 %v7953_v39, %v6112_v38  ;;  %v7985_v43 = vld [vmem:[#allocation6 + $0x36c] sm:$0xf0]  ;;  %1457 = vmatpush.bf16.msra.mxu0 %v5857_v36  ;;  %v6096_v50 = vld [vmem:[#allocation6 + $0x240] sm:$0xf]  ;;  %v7999_v31 = vld [vmem:[#allocation6 + $0x3e4] sm:$0xf]  ;;  %v6181_v32 = vor.u32 %v7967_v29, %v6178_v30 }
  0x46   : > { %1470 = vmatpush.bf16.msra.mxu1 %v5985_v40  ;;  %v7885_v46 = vld [vmem:[#allocation6 + $0x4c] sm:$0xf0]  ;;  %v6224_v54 = vld [vmem:[#allocation6 + $0x340] sm:$0xf]  ;;  %v6306_v33 = vld [vmem:[#allocation6 + $0x3f0] sm:$0xf0] }
  0x47   : > { %1483 = vmatpush.bf16.msra.mxu2 %v6113_v41  ;;  %v5841_v48 = vor.u32 %v7885_v46, %v5840_v45  ;;  %v7917_v49 = vld [vmem:[#allocation6 + $0x14c] sm:$0xf0]  ;;  %v5952_v59 = vld [vmem:[#allocation6 + $0x120] sm:$0xf]  ;;  %v7899_v34 = vld [vmem:[#allocation6 + $0xc4] sm:$0xf]  ;;  %v6309_v36 = vor.u32 %v7999_v31, %v6306_v33 }
  0x48   : > { %v7949_v51 = vld [vmem:[#allocation6 + $0x24c] sm:$0xf0]  ;;  %v5906_v35 = vld [vmem:[#allocation6 + $0xd0] sm:$0xf0]  ;;  %v7931_v38 = vld [vmem:[#allocation6 + $0x1c4] sm:$0xf] }
  0x49   : > { %v6097_v53 = vor.u32 %v7949_v51, %v6096_v50  ;;  %v7981_v55 = vld [vmem:[#allocation6 + $0x34c] sm:$0xf0]  ;;  %1458 = vmatpush.bf16.msra.mxu0 %v5841_v48  ;;  %v5909_v37 = vor.u32 %v7899_v34, %v5906_v35  ;;  %v6034_v39 = vld [vmem:[#allocation6 + $0x1d0] sm:$0xf0]  ;;  %v7963_v40 = vld [vmem:[#allocation6 + $0x2c4] sm:$0xf] }
  0x4a   : > { %v6225_v56 = vor.u32 %v7981_v55, %v6224_v54  ;;  %v7881_v58 = vld [vmem:[#allocation6 + $0x2c] sm:$0xf0]  ;;  %v6037_v41 = vor.u32 %v7931_v38, %v6034_v39  ;;  %v5890_v48 = vld [vmem:[#allocation6 + $0xb0] sm:$0xf0]  ;;  %v7883_v25 = vld [vmem:[#allocation6 + $0x44] sm:$0xf] }
  0x4b   : > { %1484 = vmatpush.bf16.msra.mxu2 %v6097_v53  ;;  %v7973_v21 = vld [vmem:[#allocation6 + $0x30c] sm:$0xf0]  ;;  %v6018_v51 = vld [vmem:[#allocation6 + $0x1b0] sm:$0xf0]  ;;  %v7947_v31 = vld [vmem:[#allocation6 + $0x244] sm:$0xf] }
  0x4c   : > { %v6146_v53 = vld [vmem:[#allocation6 + $0x2b0] sm:$0xf0]  ;;  %v7979_v33 = vld [vmem:[#allocation6 + $0x344] sm:$0xf] }
  0x4d   : > { %v6242_v22 = vld [vmem:[#allocation6 + $0x370] sm:$0xf0] }
  0x4e   : > { %v5970_v29 = vld [vmem:[#allocation6 + $0x150] sm:$0xf0] }
  0x4f   : > { %v6226_v34 = vld [vmem:[#allocation6 + $0x350] sm:$0xf0] }
  0x50   : > { %v5826_v39 = vld [vmem:[#allocation6 + $0x30] sm:$0xf0] }
  0xb6   : > { %v559_v52 = vpop.xlane.xlu0 %558 }
  0xb7   : > { %v567_v57 = vmul.f32 %v566_v42, %v559_v52  ;;  %v6240_v42 = vld [vmem:[#allocation6 + $0x360] sm:$0xf] }
  0xb8   : > { %v6241_v44 = vor.u32 %v7985_v43, %v6240_v42  ;;  %v6162_v42 = vld [vmem:[#allocation6 + $0x2d0] sm:$0xf0]  ;;  %v7995_v43 = vld [vmem:[#allocation6 + $0x3c4] sm:$0xf] }
  0xb9   : > { %v572_v61 = vperm.slane %v567_v57, %v571_v47  ;;  %v5968_v47 = vld [vmem:[#allocation6 + $0x140] sm:$0xf]  ;;  %v6165_v45 = vor.u32 %v7963_v40, %v6162_v42  ;;  %v7911_v40 = vld [vmem:[#allocation6 + $0x124] sm:$0xf] }
  0xba   : > { %1496 = vmatpush.bf16.msra.mxu3 %v6241_v44  ;;  %v5969_v52 = vor.u32 %v7917_v49, %v5968_v47  ;;  %v5824_v57 = vld [vmem:[#allocation6 + $0x20] sm:$0xf]  ;;  %v6290_v44 = vld [vmem:[#allocation6 + $0x3d0] sm:$0xf0]  ;;  %v7895_v47 = vld [vmem:[#allocation6 + $0xa4] sm:$0xf] }
  0xbb   : > { %v574_v62 = vsub.f32 %v9002_v0, %v572_v61  ;;  %v575_v63 = vsub.f32 %v9004_v1, %v572_v61  ;;  %v5825_v60 = vor.u32 %v7881_v58, %v5824_v57  ;;  %v7913_v61 = vld [vmem:[#allocation6 + $0x12c] sm:$0xf0]  ;;  %v6293_v46 = vor.u32 %v7995_v43, %v6290_v44  ;;  %v7927_v49 = vld [vmem:[#allocation6 + $0x1a4] sm:$0xf]  ;;  %v6274_v57 = vld [vmem:[#allocation6 + $0x3b0] sm:$0xf0] }
  0xbc   : > { %1471 = vmatpush.bf16.msra.mxu1 %v5969_v52  ;;  %v5893_v50 = vor.u32 %v7895_v47, %v5890_v48  ;;  %v7959_v52 = vld [vmem:[#allocation6 + $0x2a4] sm:$0xf]  ;;  %v6021_v54 = vor.u32 %v7927_v49, %v6018_v51  ;;  %v6229_v43 = vor.u32 %v7979_v33, %v6226_v34  ;;  %v6210_v48 = vld [vmem:[#allocation6 + $0x330] sm:$0xf0] }
  0xbd   : > { %v576_v2 = vmul.f32 %v574_v62, %v574_v62  ;;  %v577_v3 = vmul.f32 %v575_v63, %v575_v63  ;;  %1459 = vmatpush.bf16.msra.mxu0 %v5825_v60  ;;  %v6149_v55 = vor.u32 %v7959_v52, %v6146_v53  ;;  %v7891_v58 = vld [vmem:[#allocation6 + $0x84] sm:$0xf]  ;;  %v5874_v60 = vld [vmem:[#allocation6 + $0x90] sm:$0xf0] }
  0xbe   : > { %1497 = vmatpush.bf16.msra.mxu3 %v6225_v56  ;;  %v7991_v56 = vld [vmem:[#allocation6 + $0x3a4] sm:$0xf] }
  0xbf   : > { %580 = vst [vmem:[#allocation1] ss:$2 sm:$0xff] %v576_v2  ;;  %v5953_v2 = vor.u32 %v7913_v61, %v5952_v59  ;;  %v6277_v59 = vor.u32 %v7991_v56, %v6274_v57  ;;  %v7923_v61 = vld [vmem:[#allocation6 + $0x184] sm:$0xf]  ;;  %v5938_v56 = vld [vmem:[#allocation6 + $0x110] sm:$0xf0] }
  0xc0   : > { %582 = vst [vmem:[#allocation1 + $0x10] ss:$2 sm:$0xff] %v577_v3  ;;  %v7943_v44 = vld [vmem:[#allocation6 + $0x224] sm:$0xf] }
  0xc1   : > { %1472 = vmatpush.bf16.msra.mxu1 %v5953_v2  ;;  %v6130_v2 = vld [vmem:[#allocation6 + $0x290] sm:$0xf0]  ;;  %v7975_v47 = vld [vmem:[#allocation6 + $0x324] sm:$0xf] }
  0xc2   : > { %v7875_v51 = vld [vmem:[#allocation6 + $0x4] sm:$0xf]  ;;  %v6213_v57 = vor.u32 %v7975_v47, %v6210_v48 }
  0xc6   : > { %v583_v4 = vld.sshfl [vmem:[#allocation1] sm:$0xff pattern:$0x75316420]  ;;  %v584_v5 = vld.sshfl [vmem:[#allocation1 + $0x8] sm:$0xff pattern:$0x75316420] }
  0xc7   : > { %v585_v6 = vld.sshfl [vmem:[#allocation1 + $0x10] sm:$0xff pattern:$0x75316420]  ;;  %v586_v7 = vld.sshfl [vmem:[#allocation1 + $0x18] sm:$0xff pattern:$0x75316420] }
  0xc8   : > { %v591_v8 = vsel %vm550_vm0, %v583_v4, 0.0  ;;  %v592_v9 = vsel %vm550_vm0, %v584_v5, 0.0  ;;  %612 = vst [vmem:[#allocation1] ss:$2 sm:$0xff] %v574_v62  ;;  %v594_v11 = vsel %vm550_vm0, %v585_v6, 0.0  ;;  %v596_v13 = vsel %vm550_vm0, %v586_v7, 0.0 }
  0xc9   : > { %v593_v10 = vadd.f32 %v592_v9, %v591_v8  ;;  %614 = vst [vmem:[#allocation1 + $0x10] ss:$2 sm:$0xff] %v575_v63  ;;  %v6080_v62 = vld [vmem:[#allocation6 + $0x220] sm:$0xf]  ;;  %v7945_v63 = vld [vmem:[#allocation6 + $0x22c] sm:$0xf0] }
  0xca   : > { %v6081_v3 = vor.u32 %v7945_v63, %v6080_v62  ;;  %v6208_v4 = vld [vmem:[#allocation6 + $0x320] sm:$0xf]  ;;  %v7977_v5 = vld [vmem:[#allocation6 + $0x32c] sm:$0xf0]  ;;  %v6002_v62 = vld [vmem:[#allocation6 + $0x190] sm:$0xf0] }
  0xcb   : > { %v595_v12 = vadd.f32 %v594_v11, %v593_v10  ;;  %v6209_v6 = vor.u32 %v7977_v5, %v6208_v4  ;;  %v5808_v7 = vld [vmem:[#allocation6] sm:$0xf]  ;;  %v7877_v8 = vld [vmem:[#allocation6 + $0xc] sm:$0xf0]  ;;  %v7955_v63 = vld [vmem:[#allocation6 + $0x284] sm:$0xf]  ;;  %v5877_v4 = vor.u32 %v7891_v58, %v5874_v60  ;;  %v6005_v5 = vor.u32 %v7923_v61, %v6002_v62 }
  0xcc   : > { %1485 = vmatpush.bf16.msra.mxu2 %v6081_v3  ;;  %v5936_v9 = vld [vmem:[#allocation6 + $0x100] sm:$0xf]  ;;  %v5809_v10 = vor.u32 %v7877_v8, %v5808_v7  ;;  %v7909_v11 = vld [vmem:[#allocation6 + $0x10c] sm:$0xf0]  ;;  %v7987_v3 = vld [vmem:[#allocation6 + $0x384] sm:$0xf] }
  0xcd   : > { %v597_v15 = vadd.f32 %v596_v13, %v595_v12  ;;  %1498 = vmatpush.bf16.msra.mxu3 %v6209_v6  ;;  %v6064_v12 = vld [vmem:[#allocation6 + $0x200] sm:$0xf]  ;;  %v7941_v13 = vld [vmem:[#allocation6 + $0x20c] sm:$0xf0]  ;;  %v6258_v6 = vld [vmem:[#allocation6 + $0x390] sm:$0xf0] }
  0xce   : > { %1460 = vmatpush.bf16.msra.mxu0 %v5809_v10  ;;  %v7887_v7 = vld [vmem:[#allocation6 + $0x64] sm:$0xf]  ;;  %v5858_v10 = vld [vmem:[#allocation6 + $0x70] sm:$0xf0] }
  0xcf   : > { %598 = vadd.xlane.f32.xlu0 %v597_v15  ;;  %v9023_v17 = vld.sshfl [vmem:[#allocation1] sm:$0xff pattern:$0x75316420]  ;;  %v9025_v18 = vld.sshfl [vmem:[#allocation1 + $0x8] sm:$0xff pattern:$0x75316420]  ;;  %v6065_v15 = vor.u32 %v7941_v13, %v6064_v12 }
  0xd0   : > { %1919 = vst [vmem:[#allocation1] ss:$2 sm:$0xff] %v533_v14  ;;  %v9027_v19 = vld.sshfl [vmem:[#allocation1 + $0x10] sm:$0xff pattern:$0x75316420]  ;;  %v5937_v14 = vor.u32 %v7909_v11, %v5936_v9  ;;  %v6133_v9 = vor.u32 %v7955_v63, %v6130_v2 }
  0xd1   : > { %v9029_v20 = vld.sshfl [vmem:[#allocation1 + $0x18] sm:$0xff pattern:$0x75316420]  ;;  %1486 = vmatpush.bf16.msra.mxu2 %v6065_v15  ;;  %v7919_v11 = vld [vmem:[#allocation6 + $0x164] sm:$0xf] }
  0xd2   : > { %1921 = vst [vmem:[#allocation1 + $0x10] ss:$2 sm:$0xff] %v534_v16  ;;  %v6192_v16 = vld [vmem:[#allocation6 + $0x300] sm:$0xf]  ;;  %1473 = vmatpush.bf16.msra.mxu1 %v5937_v14  ;;  %1505 = vmatpush.bf16.msrb.mxu0 %v5925_v27  ;;  %v5986_v12 = vld [vmem:[#allocation6 + $0x170] sm:$0xf0]  ;;  %v6261_v14 = vor.u32 %v7987_v3, %v6258_v6 }
  0xd3   : > { %v6193_v23 = vor.u32 %v7973_v21, %v6192_v16  ;;  %v7951_v15 = vld [vmem:[#allocation6 + $0x264] sm:$0xf]  ;;  %v6114_v16 = vld [vmem:[#allocation6 + $0x270] sm:$0xf0]  ;;  %v5989_v24 = vor.u32 %v7919_v11, %v5986_v12  ;;  %v535_v12 = vld [vmem:[#allocation2] sm:$0xf] }
  0xd4   : > { %v7983_v21 = vld [vmem:[#allocation6 + $0x364] sm:$0xf]  ;;  %v6117_v26 = vor.u32 %v7951_v15, %v6114_v16  ;;  %v5842_v27 = vld [vmem:[#allocation6 + $0x50] sm:$0xf0]  ;;  %v602_v16 = vperm.slane %v535_v12, 0 }
  0xd5   : > { %1499 = vmatpush.bf16.msra.mxu3 %v6193_v23  ;;  %1531 = vmatpush.bf16.msrb.mxu2 %v6181_v32  ;;  %v5861_v23 = vor.u32 %v7887_v7, %v5858_v10  ;;  %v6245_v30 = vor.u32 %v7983_v21, %v6242_v22  ;;  %v6098_v32 = vld [vmem:[#allocation6 + $0x250] sm:$0xf0]  ;;  %v5845_v35 = vor.u32 %v7883_v25, %v5842_v27  ;;  %v7939_v58 = vld [vmem:[#allocation6 + $0x204] sm:$0xf]  ;;  %v603_v22 = vperm.slane %v535_v12, 1 }
  0xd6   : > { %1518 = vmatpush.bf16.msrb.mxu1 %v6053_v28  ;;  %1506 = vmatpush.bf16.msrb.mxu0 %v5909_v37  ;;  %v7915_v28 = vld [vmem:[#allocation6 + $0x144] sm:$0xf]  ;;  %v6101_v38 = vor.u32 %v7947_v31, %v6098_v32  ;;  %v6194_v62 = vld [vmem:[#allocation6 + $0x310] sm:$0xf0]  ;;  %v605_v25 = vperm.slane %v535_v12, 3 }
  0xd7   : > { %v7879_v37 = vld [vmem:[#allocation6 + $0x24] sm:$0xf] }
  0xd8   : > { %v5829_v49 = vor.u32 %v7879_v37, %v5826_v39  ;;  %v7971_v61 = vld [vmem:[#allocation6 + $0x304] sm:$0xf] }
  0xd9   : > { %1544 = vmatpush.bf16.msrb.mxu3 %v6309_v36  ;;  %1532 = vmatpush.bf16.msrb.mxu2 %v6165_v45  ;;  %v5973_v36 = vor.u32 %v7915_v28, %v5970_v29  ;;  %v6082_v45 = vld [vmem:[#allocation6 + $0x230] sm:$0xf0]  ;;  %v623_v29 = vmul.f32 %v9023_v17, %v602_v16  ;;  %v7962_v16 = vld [vmem:[#allocation6 + $0x2b4] sm:$0xf0] }
  0xda   : > { %1519 = vmatpush.bf16.msrb.mxu1 %v6037_v41  ;;  %1507 = vmatpush.bf16.msrb.mxu0 %v5893_v50  ;;  %v5954_v41 = vld [vmem:[#allocation6 + $0x130] sm:$0xf0]  ;;  %v6085_v53 = vor.u32 %v7943_v44, %v6082_v45  ;;  %v7906_v44 = vld [vmem:[#allocation6 + $0xf4] sm:$0xf0] }
  0xdb   : > { %v5957_v50 = vor.u32 %v7911_v40, %v5954_v41  ;;  %v5928_v40 = vld [vmem:[#allocation6 + $0xe8] sm:$0xf]  ;;  %v7938_v45 = vld [vmem:[#allocation6 + $0x1f4] sm:$0xf0] }
  0xdd   : > { %1545 = vmatpush.bf16.msrb.mxu3 %v6293_v46  ;;  %1533 = vmatpush.bf16.msrb.mxu2 %v6149_v55  ;;  %v7907_v55 = vld [vmem:[#allocation6 + $0x104] sm:$0xf] }
  0xde   : > { %1520 = vmatpush.bf16.msrb.mxu1 %v6021_v54  ;;  %1508 = vmatpush.bf16.msrb.mxu0 %v5877_v4  ;;  %v5810_v54 = vld [vmem:[#allocation6 + $0x10] sm:$0xf0]  ;;  %v5941_v2 = vor.u32 %v7907_v55, %v5938_v56 }
  0xdf   : > { %v5813_v63 = vor.u32 %v7875_v51, %v5810_v54  ;;  %v8002_v51 = vld [vmem:[#allocation6 + $0x3f4] sm:$0xf0] }
  0xe1   : > { %1546 = vmatpush.bf16.msrb.mxu3 %v6277_v59  ;;  %1534 = vmatpush.bf16.msrb.mxu2 %v6133_v9  ;;  %v6066_v59 = vld [vmem:[#allocation6 + $0x210] sm:$0xf0] }
  0xe2   : > { %1521 = vmatpush.bf16.msrb.mxu1 %v6005_v5  ;;  %1509 = vmatpush.bf16.msrb.mxu0 %v5861_v23  ;;  %v6069_v4 = vor.u32 %v7939_v58, %v6066_v59  ;;  %v6197_v5 = vor.u32 %v7971_v61, %v6194_v62  ;;  %v604_v23 = vperm.slane %v535_v12, 2  ;;  %v5912_v58 = vld [vmem:[#allocation6 + $0xc8] sm:$0xf]  ;;  %v7902_v59 = vld [vmem:[#allocation6 + $0xd4] sm:$0xf0] }
  0xe3   : > { %v6040_v62 = vld [vmem:[#allocation6 + $0x1c8] sm:$0xf] }
  0xe4   : > { %v625_v31 = vmul.f32 %v9027_v19, %v604_v23  ;;  %v6184_v19 = vld [vmem:[#allocation6 + $0x2e8] sm:$0xf] }
  0xe5   : > { %1547 = vmatpush.bf16.msrb.mxu3 %v6261_v14  ;;  %1535 = vmatpush.bf16.msrb.mxu2 %v6117_v26  ;;  %v536_v26 = vld [vmem:[#allocation4] sm:$0xf]  ;;  %v6024_v12 = vld [vmem:[#allocation6 + $0x1a8] sm:$0xf] }
  0xe6   : > { %1522 = vmatpush.bf16.msrb.mxu1 %v5989_v24  ;;  %1510 = vmatpush.bf16.msrb.mxu0 %v5845_v35  ;;  %v659_v33 = vperm.slane %v536_v26, 0  ;;  %v660_v34 = vperm.slane %v536_v26, 1  ;;  %v626_v35 = vmul.f32 %v9029_v20, %v605_v25  ;;  %v661_v37 = vperm.slane %v536_v26, 2  ;;  %v6312_v20 = vld [vmem:[#allocation6 + $0x3e8] sm:$0xf] }
  0xe7   : > { %v6313_v61 = vor.u32 %v8002_v51, %v6312_v20  ;;  %v5880_v25 = vld [vmem:[#allocation6 + $0x88] sm:$0xf]  ;;  %v7950_v51 = vld [vmem:[#allocation6 + $0x254] sm:$0xf0] }
  0xe8   : > { %v6104_v20 = vld [vmem:[#allocation6 + $0x248] sm:$0xf] }
  0xe9   : > { %1548 = vmatpush.bf16.msrb.mxu3 %v6245_v30  ;;  %1536 = vmatpush.bf16.msrb.mxu2 %v6101_v38  ;;  %v662_v38 = vperm.slane %v536_v26, 3  ;;  %v7894_v26 = vld [vmem:[#allocation6 + $0x94] sm:$0xf0] }
  0xea   : > { %1523 = vmatpush.bf16.msrb.mxu1 %v5973_v36  ;;  %1511 = vmatpush.bf16.msrb.mxu0 %v5829_v49 }
  0xed   : > { %1549 = vmatpush.bf16.msrb.mxu3 %v6229_v43  ;;  %1537 = vmatpush.bf16.msrb.mxu2 %v6085_v53 }
  0xee   : > { %1524 = vmatpush.bf16.msrb.mxu1 %v5957_v50  ;;  %1512 = vmatpush.bf16.msrb.mxu0 %v5813_v63  ;;  %v7970_v50 = vld [vmem:[#allocation6 + $0x2f4] sm:$0xf0] }
  0xef   : > { %v7934_v63 = vld [vmem:[#allocation6 + $0x1d4] sm:$0xf0] }
  0xf1   : > { %1550 = vmatpush.bf16.msrb.mxu3 %v6213_v57  ;;  %1538 = vmatpush.bf16.msrb.mxu2 %v6069_v4  ;;  %v6296_v4 = vld [vmem:[#allocation6 + $0x3c8] sm:$0xf] }
  0xf2   : > { %1525 = vmatpush.bf16.msrb.mxu1 %v5941_v2  ;;  %v6168_v2 = vld [vmem:[#allocation6 + $0x2c8] sm:$0xf] }
  0xf5   : > { %1551 = vmatpush.bf16.msrb.mxu3 %v6197_v5  ;;  %v7998_v5 = vld [vmem:[#allocation6 + $0x3d4] sm:$0xf0] }
 0x142   : > { %v599_v8 = vpop.xlane.xlu0 %598 }
 0x143   : > { %v9031_v13 = vmul.f32 0.0019569471, %v599_v8 }
 0x145   : > { %8527 = vrsqrt.f32 %v9031_v13  ;;  %vm634_vm2 = vcmp.eq.f32.partialorder %v9031_v13, inf  ;;  %v637_v8 = vand.u32 2147483648, %v9031_v13  ;;  %vm636_vm3 = vcmp.eq.f32.partialorder %v9031_v13, 0.0 }
 0x14b   : > { %v8528_v42 = vpop.eup %8527 }
 0x14c   : > { %v628_v46 = vmul.f32 %v8528_v42, %v9031_v13 }
 0x14e   : > { %v629_v52 = vmul.f32 %v8528_v42, %v628_v46 }
 0x150   : > { %v630_v60 = vmul.f32 0.5, %v629_v52  ;;  %v5929_v52 = vor.u32 %v7906_v44, %v5928_v40  ;;  %v5992_v40 = vld [vmem:[#allocation6 + $0x168] sm:$0xf]  ;;  %v7986_v44 = vld [vmem:[#allocation6 + $0x374] sm:$0xf0] }
 0x152   : > { %v631_v3 = vsub.f32 1.5, %v630_v60  ;;  %v6185_v60 = vor.u32 %v7970_v50, %v6184_v19  ;;  %v5848_v19 = vld [vmem:[#allocation6 + $0x48] sm:$0xf]  ;;  %v7918_v50 = vld [vmem:[#allocation6 + $0x154] sm:$0xf0] }
 0x154   : > { %v632_v6 = vmul.f32 %v8528_v42, %v631_v3  ;;  %v7966_v3 = vld [vmem:[#allocation6 + $0x2d4] sm:$0xf0] }
 0x156   : > { %v633_v7 = vmul.f32 %v632_v6, %v9031_v13  ;;  %v5913_v6 = vor.u32 %v7902_v59, %v5912_v58 }
 0x158   : > { %v635_v9 = vsel %vm634_vm2, %v9031_v13, %v633_v7  ;;  %v624_v13 = vmul.f32 %v9025_v18, %v603_v22  ;;  %v6056_v18 = vld [vmem:[#allocation6 + $0x1e8] sm:$0xf]  ;;  %v6041_v7 = vor.u32 %v7934_v63, %v6040_v62  ;;  %v7994_v22 = vld [vmem:[#allocation6 + $0x3b4] sm:$0xf0]  ;;  %v6105_v62 = vor.u32 %v7950_v51, %v6104_v20  ;;  %v7928_v20 = vld [vmem:[#allocation6 + $0x1ac] sm:$0xf] }
 0x159   : > { %v638_v10 = vsel %vm636_vm3, %v637_v8, %v635_v9  ;;  %v6057_v53 = vor.u32 %v7938_v45, %v6056_v18  ;;  %v5896_v8 = vld [vmem:[#allocation6 + $0xa8] sm:$0xf]  ;;  %v7898_v9 = vld [vmem:[#allocation6 + $0xb4] sm:$0xf0]  ;;  %v6026_v51 = vld [vmem:[#allocation6 + $0x1b8] sm:$0xf0] }
 0x15a   : > { %v639_v11 = vadd.f32 1e-06, %v638_v10  ;;  %v6169_v10 = vor.u32 %v7966_v3, %v6168_v2  ;;  %v5897_v23 = vor.u32 %v7898_v9, %v5896_v8  ;;  %v5960_v2 = vld [vmem:[#allocation6 + $0x128] sm:$0xf]  ;;  %v7914_v3 = vld [vmem:[#allocation6 + $0x134] sm:$0xf0] }
 0x15b   : > { %v5816_v8 = vld [vmem:[#allocation6 + $0x8] sm:$0xf] }
 0x15c   : > { %8529 = vrcp.f32 %v639_v11  ;;  %v651_v24 = vand.u32 2147483648, %v639_v11  ;;  %v649_v28 = vand.u32 2147483647, %v639_v11  ;;  %vm645_vm5 = vweird.f32 %v639_v11 }
 0x15e   : > { %v652_v32 = vor.u32 1.1754944e-38, %v651_v24  ;;  %vm650_vm7 = vcmp.eq.f32.partialorder %v649_v28, 8.507059e+37 }
 0x162   : > { %v8530_v14 = vpop.eup %8529 }
 0x163   : > { %v641_v15 = vmul.f32 %v8530_v14, %v639_v11  ;;  %vm646_vm4 = vweird.f32 %v8530_v14  ;;  %v6297_v11 = vor.u32 %v7998_v5, %v6296_v4  ;;  %v6088_v4 = vld [vmem:[#allocation6 + $0x228] sm:$0xf]  ;;  %v7946_v5 = vld [vmem:[#allocation6 + $0x234] sm:$0xf0] }
 0x164   : > { %vm647_vm6 = vmor %vm645_vm5, %vm646_vm4  ;;  %vm4343_vm4 = vcmask 1041408   ;;  %vm4339_vm5 = vcmask 31744  }
 0x165   : > { %v642_v21 = vsub.f32 1.0, %v641_v15  ;;  %v6152_v15 = vld [vmem:[#allocation6 + $0x2a8] sm:$0xf] }
 0x167   : > { %v643_v27 = vmul.f32 %v8530_v14, %v642_v21  ;;  %v6280_v21 = vld [vmem:[#allocation6 + $0x3a8] sm:$0xf] }
 0x168   : > { %v6281_v28 = vor.u32 %v7994_v22, %v6280_v21  ;;  %v6072_v21 = vld [vmem:[#allocation6 + $0x208] sm:$0xf]  ;;  %v7942_v22 = vld [vmem:[#allocation6 + $0x214] sm:$0xf0] }
 0x169   : > { %v644_v30 = vadd.f32 %v8530_v14, %v643_v27  ;;  %v6153_v27 = vor.u32 %v7962_v16, %v6152_v15  ;;  %v6089_v15 = vor.u32 %v7946_v5, %v6088_v4  ;;  %v7924_v4 = vld [vmem:[#allocation6 + $0x18c] sm:$0xf]  ;;  %v6010_v5 = vld [vmem:[#allocation6 + $0x198] sm:$0xf0] }
 0x16b   : > { %v648_v36 = vsel %vm647_vm6, %v8530_v14, %v644_v30  ;;  %v7930_v14 = vld [vmem:[#allocation6 + $0x1b4] sm:$0xf0] }
 0x16c   : > { %v653_v39 = vsel %vm650_vm7, %v652_v32, %v648_v36  ;;  %v6025_v24 = vor.u32 %v7930_v14, %v6024_v12  ;;  %v7926_v30 = vld [vmem:[#allocation6 + $0x194] sm:$0xf0]  ;;  %v6264_v32 = vld [vmem:[#allocation6 + $0x388] sm:$0xf] }
 0x16d   : > { %v654_v41 = vmul.f32 %v653_v39, %v623_v29  ;;  %v655_v17 = vmul.f32 %v653_v39, %v624_v13  ;;  %v656_v42 = vmul.f32 %v653_v39, %v625_v31  ;;  %v657_v43 = vmul.f32 %v653_v39, %v626_v35  ;;  %v6008_v29 = vld [vmem:[#allocation6 + $0x188] sm:$0xf]  ;;  %v7958_v31 = vld [vmem:[#allocation6 + $0x294] sm:$0xf0] }
 0x16e   : > { %v6136_v13 = vld [vmem:[#allocation6 + $0x288] sm:$0xf]  ;;  %v6009_v35 = vor.u32 %v7926_v30, %v6008_v29  ;;  %v7910_v14 = vld [vmem:[#allocation6 + $0x114] sm:$0xf0]  ;;  %v7968_v29 = vld [vmem:[#allocation6 + $0x2ec] sm:$0xf] }
 0x16f   : > { %v667_v46 = vadd.f32 %v659_v33, %v654_v41  ;;  %v668_v47 = vadd.f32 %v660_v34, %v655_v17  ;;  %v669_v48 = vadd.f32 %v661_v37, %v656_v42  ;;  %v670_v49 = vadd.f32 %v662_v38, %v657_v43  ;;  %v7990_v33 = vld [vmem:[#allocation6 + $0x394] sm:$0xf0]  ;;  %v5864_v36 = vld [vmem:[#allocation6 + $0x68] sm:$0xf] }
 0x170   : > { %v5881_v34 = vor.u32 %v7894_v26, %v5880_v25  ;;  %v7890_v37 = vld [vmem:[#allocation6 + $0x74] sm:$0xf0]  ;;  %v6137_v38 = vor.u32 %v7958_v31, %v6136_v13  ;;  %v6265_v39 = vor.u32 %v7990_v33, %v6264_v32  ;;  %v6120_v17 = vld [vmem:[#allocation6 + $0x268] sm:$0xf]  ;;  %v7904_v25 = vld [vmem:[#allocation6 + $0xec] sm:$0xf] }
 0x171   : > { %v9044_v54 = vpack.c.bf16 %v667_v46, %v667_v46  ;;  %v9046_v55 = vpack.c.bf16 %v668_v47, %v668_v47  ;;  %v9048_v56 = vpack.c.bf16 %v669_v48, %v669_v48  ;;  %v9050_v57 = vpack.c.bf16 %v670_v49, %v670_v49  ;;  %v7922_v41 = vld [vmem:[#allocation6 + $0x174] sm:$0xf0]  ;;  %v6248_v43 = vld [vmem:[#allocation6 + $0x368] sm:$0xf]  ;;  %v5930_v26 = vld [vmem:[#allocation6 + $0xf8] sm:$0xf0] }
 0x172   : > { %v7954_v42 = vld [vmem:[#allocation6 + $0x274] sm:$0xf0]  ;;  %v5865_v18 = vor.u32 %v7890_v37, %v5864_v36  ;;  %v5993_v45 = vor.u32 %v7922_v41, %v5992_v40  ;;  %v6249_v48 = vor.u32 %v7986_v44, %v6248_v43  ;;  %v5976_v49 = vld [vmem:[#allocation6 + $0x148] sm:$0xf]  ;;  %v6186_v31 = vld [vmem:[#allocation6 + $0x2f8] sm:$0xf0]  ;;  %v5933_v36 = vor.u32 %v7904_v25, %v5930_v26 }
 0x173   : > { %1461 = vmatmul.bf16.vlgmr.msra.gmra.mxu0 %v9044_v54  ;;  %1474 = vmatmul.bf16.vlgmr.msra.gmra.mxu1 %v9046_v55  ;;  %v7886_v46 = vld [vmem:[#allocation6 + $0x54] sm:$0xf0]  ;;  %v6121_v47 = vor.u32 %v7954_v42, %v6120_v17  ;;  %v5977_v59 = vor.u32 %v7918_v50, %v5976_v49  ;;  %v5944_v12 = vld [vmem:[#allocation6 + $0x108] sm:$0xf]  ;;  %v8000_v32 = vld [vmem:[#allocation6 + $0x3ec] sm:$0xf]  ;;  %v6189_v40 = vor.u32 %v7968_v29, %v6186_v31 }
 0x174   : > { %1487 = vmatmul.bf16.vlgmr.msra.gmra.mxu2 %v9048_v56  ;;  %1500 = vmatmul.bf16.vlgmr.msra.gmra.mxu3 %v9050_v57  ;;  %v5849_v58 = vor.u32 %v7886_v46, %v5848_v19  ;;  %v5945_v13 = vor.u32 %v7910_v14, %v5944_v12  ;;  %v6314_v33 = vld [vmem:[#allocation6 + $0x3f8] sm:$0xf0]  ;;  %v7932_v17 = vld [vmem:[#allocation6 + $0x1cc] sm:$0xf] }
 0x175   : > { %1557 = vmatpush.bf16.msra.mxu0 %v5929_v52  ;;  %1570 = vmatpush.bf16.msra.mxu1 %v6057_v53  ;;  %v6232_v52 = vld [vmem:[#allocation6 + $0x348] sm:$0xf]  ;;  %v7982_v53 = vld [vmem:[#allocation6 + $0x354] sm:$0xf0]  ;;  %v6317_v41 = vor.u32 %v8000_v32, %v6314_v33  ;;  %v6042_v42 = vld [vmem:[#allocation6 + $0x1d8] sm:$0xf0] }
 0x176   : > { %1583 = vmatpush.bf16.msra.mxu2 %v6185_v60  ;;  %1596 = vmatpush.bf16.msra.mxu3 %v6313_v61  ;;  %v5832_v60 = vld [vmem:[#allocation6 + $0x28] sm:$0xf]  ;;  %v7882_v61 = vld [vmem:[#allocation6 + $0x34] sm:$0xf0]  ;;  %v6233_v63 = vor.u32 %v7982_v53, %v6232_v52  ;;  %v7964_v43 = vld [vmem:[#allocation6 + $0x2cc] sm:$0xf]  ;;  %v6045_v46 = vor.u32 %v7932_v17, %v6042_v42 }
 0x177   : > { %v5833_v9 = vor.u32 %v7882_v61, %v5832_v60  ;;  %v6170_v44 = vld [vmem:[#allocation6 + $0x2d8] sm:$0xf0]  ;;  %v7960_v52 = vld [vmem:[#allocation6 + $0x2ac] sm:$0xf]  ;;  %v6029_v61 = vor.u32 %v7928_v20, %v6026_v51 }
 0x178   : > { %v6173_v49 = vor.u32 %v7964_v43, %v6170_v44  ;;  %v6154_v53 = vld [vmem:[#allocation6 + $0x2b8] sm:$0xf0]  ;;  %v7888_v12 = vld [vmem:[#allocation6 + $0x6c] sm:$0xf] }
 0x179   : > { %1558 = vmatpush.bf16.msra.mxu0 %v5913_v6  ;;  %1571 = vmatpush.bf16.msra.mxu1 %v6041_v7  ;;  %v6216_v6 = vld [vmem:[#allocation6 + $0x328] sm:$0xf]  ;;  %v7978_v7 = vld [vmem:[#allocation6 + $0x334] sm:$0xf0]  ;;  %v5866_v14 = vld [vmem:[#allocation6 + $0x78] sm:$0xf0] }
 0x17a   : > { %1584 = vmatpush.bf16.msra.mxu2 %v6169_v10  ;;  %1597 = vmatpush.bf16.msra.mxu3 %v6297_v11  ;;  %v5961_v10 = vor.u32 %v7914_v3, %v5960_v2  ;;  %v7878_v11 = vld [vmem:[#allocation6 + $0x14] sm:$0xf0]  ;;  %v6217_v16 = vor.u32 %v7978_v7, %v6216_v6  ;;  %v6157_v2 = vor.u32 %v7960_v52, %v6154_v53  ;;  %v7956_v6 = vld [vmem:[#allocation6 + $0x28c] sm:$0xf]  ;;  %v6138_v7 = vld [vmem:[#allocation6 + $0x298] sm:$0xf0] }
 0x17b   : > { %v5817_v30 = vor.u32 %v7878_v11, %v5816_v8  ;;  %v7988_v8 = vld [vmem:[#allocation6 + $0x38c] sm:$0xf]  ;;  %v6013_v11 = vor.u32 %v7924_v4, %v6010_v5  ;;  %v6250_v26 = vld [vmem:[#allocation6 + $0x378] sm:$0xf0]  ;;  %v7056_v4 = vld [vmem:[#allocation9 + $0x5c0] sm:$0xf] }
 0x17c   : > { %v7984_v25 = vld [vmem:[#allocation6 + $0x36c] sm:$0xf]  ;;  %v5978_v33 = vld [vmem:[#allocation6 + $0x158] sm:$0xf0] }
 0x17d   : > { %1559 = vmatpush.bf16.msra.mxu0 %v5897_v23  ;;  %1572 = vmatpush.bf16.msra.mxu1 %v6025_v24  ;;  %v6200_v23 = vld [vmem:[#allocation6 + $0x308] sm:$0xf]  ;;  %v7974_v24 = vld [vmem:[#allocation6 + $0x314] sm:$0xf0]  ;;  %v7884_v29 = vld [vmem:[#allocation6 + $0x4c] sm:$0xf]  ;;  %v6253_v31 = vor.u32 %v7984_v25, %v6250_v26 }
 0x17e   : > { %1585 = vmatpush.bf16.msra.mxu2 %v6153_v27  ;;  %1598 = vmatpush.bf16.msra.mxu3 %v6281_v28  ;;  %v7936_v27 = vld [vmem:[#allocation6 + $0x1ec] sm:$0xf]  ;;  %v6058_v28 = vld [vmem:[#allocation6 + $0x1f8] sm:$0xf0]  ;;  %v7024_v25 = vld [vmem:[#allocation9 + $0x580] sm:$0xf] }
 0x17f   : > { %v6061_v37 = vor.u32 %v7936_v27, %v6058_v28  ;;  %v5869_v27 = vor.u32 %v7888_v12, %v5866_v14  ;;  %v7916_v32 = vld [vmem:[#allocation6 + $0x14c] sm:$0xf]  ;;  %v5962_v44 = vld [vmem:[#allocation6 + $0x138] sm:$0xf0]  ;;  %v8183_v26 = vld [vmem:[#allocation9 + $0x59c] sm:$0xf0] }
 0x180   : > { %v7912_v43 = vld [vmem:[#allocation6 + $0x12c] sm:$0xf]  ;;  %v5946_v51 = vld [vmem:[#allocation6 + $0x118] sm:$0xf0] }
 0x181   : > { %1560 = vmatpush.bf16.msra.mxu0 %v5881_v34  ;;  %1573 = vmatpush.bf16.msra.mxu1 %v6009_v35  ;;  %v6073_v34 = vor.u32 %v7942_v22, %v6072_v21  ;;  %v6201_v35 = vor.u32 %v7974_v24, %v6200_v23  ;;  %v7920_v21 = vld [vmem:[#allocation6 + $0x16c] sm:$0xf]  ;;  %v5994_v22 = vld [vmem:[#allocation6 + $0x178] sm:$0xf0] }
 0x182   : > { %1586 = vmatpush.bf16.msra.mxu2 %v6137_v38  ;;  %1599 = vmatpush.bf16.msra.mxu3 %v6265_v39  ;;  %v7900_v38 = vld [vmem:[#allocation6 + $0xcc] sm:$0xf]  ;;  %v5914_v39 = vld [vmem:[#allocation6 + $0xd8] sm:$0xf0]  ;;  %v5997_v28 = vor.u32 %v7920_v21, %v5994_v22 }
 0x183   : > { %1513 = vmatmul.bf16.vlgmr.msrb.gmra.mxu0 %v9044_v54  ;;  %1526 = vmatmul.bf16.vlgmr.msrb.gmra.mxu1 %v9046_v55  ;;  %v5917_v19 = vor.u32 %v7900_v38, %v5914_v39  ;;  %v7952_v23 = vld [vmem:[#allocation6 + $0x26c] sm:$0xf]  ;;  %v6122_v24 = vld [vmem:[#allocation6 + $0x278] sm:$0xf0]  ;;  %v5981_v39 = vor.u32 %v7916_v32, %v5978_v33  ;;  %v7025_v32 = vor.u32 %v8183_v26, %v7024_v25  ;;  %v7120_v25 = vld [vmem:[#allocation9 + $0x640] sm:$0xf] }
 0x184   : > { %1539 = vmatmul.bf16.vlgmr.msrb.gmra.mxu2 %v9048_v56  ;;  %1552 = vmatmul.bf16.vlgmr.msrb.gmra.mxu3 %v9050_v57  ;;  %v7908_v20 = vld [vmem:[#allocation6 + $0x10c] sm:$0xf]  ;;  %v8207_v26 = vld [vmem:[#allocation9 + $0x65c] sm:$0xf0] }
 0x185   : > { %1561 = vmatpush.bf16.msra.mxu0 %v5865_v18  ;;  %1574 = vmatpush.bf16.msra.mxu1 %v5993_v45  ;;  %v7996_v18 = vld [vmem:[#allocation6 + $0x3cc] sm:$0xf]  ;;  %v6298_v45 = vld [vmem:[#allocation6 + $0x3d8] sm:$0xf0] }
 0x186   : > { %1587 = vmatpush.bf16.msra.mxu2 %v6121_v47  ;;  %1600 = vmatpush.bf16.msra.mxu3 %v6249_v48  ;;  %v7896_v47 = vld [vmem:[#allocation6 + $0xac] sm:$0xf]  ;;  %v5898_v48 = vld [vmem:[#allocation6 + $0xb8] sm:$0xf0]  ;;  %v6301_v50 = vor.u32 %v7996_v18, %v6298_v45 }
 0x187   : > { %v5901_v60 = vor.u32 %v7896_v47, %v5898_v48  ;;  %v7944_v18 = vld [vmem:[#allocation6 + $0x22c] sm:$0xf]  ;;  %v6090_v45 = vld [vmem:[#allocation6 + $0x238] sm:$0xf0] }
 0x188   : > { %v7876_v47 = vld [vmem:[#allocation6 + $0xc] sm:$0xf]  ;;  %v6093_v52 = vor.u32 %v7944_v18, %v6090_v45  ;;  %v8103_v18 = vld [vmem:[#allocation9 + $0x31c] sm:$0xf0] }
 0x189   : > { %1562 = vmatpush.bf16.msra.mxu0 %v5849_v58  ;;  %1575 = vmatpush.bf16.msra.mxu1 %v5977_v59  ;;  %v7992_v58 = vld [vmem:[#allocation6 + $0x3ac] sm:$0xf]  ;;  %v6282_v59 = vld [vmem:[#allocation6 + $0x3b8] sm:$0xf0]  ;;  %v8167_v45 = vld [vmem:[#allocation9 + $0x51c] sm:$0xf0] }
 0x18a   : > { %1588 = vmatpush.bf16.msra.mxu2 %v6105_v62  ;;  %1601 = vmatpush.bf16.msra.mxu3 %v6233_v63  ;;  %v7892_v62 = vld [vmem:[#allocation6 + $0x8c] sm:$0xf]  ;;  %v5882_v63 = vld [vmem:[#allocation6 + $0x98] sm:$0xf0]  ;;  %v6285_v3 = vor.u32 %v7992_v58, %v6282_v59 }
 0x18b   : > { %v7940_v58 = vld [vmem:[#allocation6 + $0x20c] sm:$0xf]  ;;  %v6074_v59 = vld [vmem:[#allocation6 + $0x218] sm:$0xf0] }
 0x18d   : > { %1563 = vmatpush.bf16.msra.mxu0 %v5833_v9  ;;  %1576 = vmatpush.bf16.msra.mxu1 %v5961_v10  ;;  %v6266_v9 = vld [vmem:[#allocation6 + $0x398] sm:$0xf0]  ;;  %v5885_v10 = vor.u32 %v7892_v62, %v5882_v63  ;;  %v6544_v62 = vld [vmem:[#allocation9 + $0x1c0] sm:$0xf] }
 0x18e   : > { %1589 = vmatpush.bf16.msra.mxu2 %v6089_v15  ;;  %1602 = vmatpush.bf16.msra.mxu3 %v6217_v16  ;;  %v6141_v15 = vor.u32 %v7956_v6, %v6138_v7  ;;  %v6269_v16 = vor.u32 %v7988_v8, %v6266_v9  ;;  %v8063_v63 = vld [vmem:[#allocation9 + $0x1dc] sm:$0xf0]  ;;  %v5949_v6 = vor.u32 %v7908_v20, %v5946_v51 }
 0x18f   : > { %v8191_v7 = vld [vmem:[#allocation9 + $0x5dc] sm:$0xf0]  ;;  %v6545_v12 = vor.u32 %v8063_v63, %v6544_v62 }
 0x190   : > { %v7312_v8 = vld [vmem:[#allocation9 + $0x7c0] sm:$0xf]  ;;  %v7057_v21 = vor.u32 %v8191_v7, %v7056_v4 }
 0x191   : > { %1564 = vmatpush.bf16.msra.mxu0 %v5817_v30  ;;  %1577 = vmatpush.bf16.msra.mxu1 %v5945_v13  ;;  %v5850_v30 = vld [vmem:[#allocation6 + $0x58] sm:$0xf0]  ;;  %v6125_v13 = vor.u32 %v7952_v23, %v6122_v24  ;;  %v8255_v9 = vld [vmem:[#allocation9 + $0x7dc] sm:$0xf0] }
 0x192   : > { %1590 = vmatpush.bf16.msra.mxu2 %v6073_v34  ;;  %1603 = vmatpush.bf16.msra.mxu3 %v6201_v35  ;;  %v7948_v34 = vld [vmem:[#allocation6 + $0x24c] sm:$0xf]  ;;  %v6106_v35 = vld [vmem:[#allocation6 + $0x258] sm:$0xf0]  ;;  %v5853_v38 = vor.u32 %v7884_v29, %v5850_v30  ;;  %v7313_v22 = vor.u32 %v8255_v9, %v7312_v8  ;;  %v6768_v23 = vld [vmem:[#allocation9 + $0x380] sm:$0xf] }
 0x193   : > { %v6109_v17 = vor.u32 %v7948_v34, %v6106_v35  ;;  %v8119_v24 = vld [vmem:[#allocation9 + $0x39c] sm:$0xf0] }
 0x194   : > { %1565 = vmatmul.bf16.vlgmr.msra.gmra.mxu0 %v9044_v54  ;;  %1578 = vmatmul.bf16.vlgmr.msra.gmra.mxu1 %v9046_v55  ;;  %v6769_v30 = vor.u32 %v8119_v24, %v6768_v23  ;;  %v6736_v34 = vld [vmem:[#allocation9 + $0x340] sm:$0xf] }
 0x195   : > { %1609 = vmatpush.bf16.msrb.mxu0 %v5933_v36  ;;  %1622 = vmatpush.bf16.msrb.mxu1 %v6061_v37  ;;  %v7980_v36 = vld [vmem:[#allocation6 + $0x34c] sm:$0xf]  ;;  %v6234_v37 = vld [vmem:[#allocation6 + $0x358] sm:$0xf0]  ;;  %v8111_v35 = vld [vmem:[#allocation9 + $0x35c] sm:$0xf0] }
 0x196   : > { %1635 = vmatpush.bf16.msrb.mxu2 %v6189_v40  ;;  %1648 = vmatpush.bf16.msrb.mxu3 %v6317_v41  ;;  %v7880_v40 = vld [vmem:[#allocation6 + $0x2c] sm:$0xf]  ;;  %v5834_v41 = vld [vmem:[#allocation6 + $0x38] sm:$0xf0]  ;;  %v6237_v42 = vor.u32 %v7980_v36, %v6234_v37  ;;  %v6992_v36 = vld [vmem:[#allocation9 + $0x540] sm:$0xf] }
 0x197   : > { %1591 = vmatmul.bf16.vlgmr.msra.gmra.mxu2 %v9048_v56  ;;  %1604 = vmatmul.bf16.vlgmr.msra.gmra.mxu3 %v9050_v57  ;;  %v5837_v48 = vor.u32 %v7880_v40, %v5834_v41  ;;  %v8175_v37 = vld [vmem:[#allocation9 + $0x55c] sm:$0xf0]  ;;  %v6737_v41 = vor.u32 %v8111_v35, %v6736_v34 }
 0x198   : > { %v6672_v20 = vld [vmem:[#allocation9 + $0x2c0] sm:$0xf] }
 0x199   : > { %1610 = vmatpush.bf16.msrb.mxu0 %v5917_v19  ;;  %1623 = vmatpush.bf16.msrb.mxu1 %v6045_v46  ;;  %v7976_v19 = vld [vmem:[#allocation6 + $0x32c] sm:$0xf]  ;;  %v6218_v46 = vld [vmem:[#allocation6 + $0x338] sm:$0xf0]  ;;  %v8095_v51 = vld [vmem:[#allocation9 + $0x2dc] sm:$0xf0] }
 0x19a   : > { %1636 = vmatpush.bf16.msrb.mxu2 %v6173_v49  ;;  %1649 = vmatpush.bf16.msrb.mxu3 %v6301_v50  ;;  %v5965_v49 = vor.u32 %v7912_v43, %v5962_v44  ;;  %v5818_v50 = vld [vmem:[#allocation6 + $0x18] sm:$0xf0]  ;;  %v6221_v53 = vor.u32 %v7976_v19, %v6218_v46  ;;  %v6993_v43 = vor.u32 %v8175_v37, %v6992_v36  ;;  %v7216_v19 = vld [vmem:[#allocation9 + $0x700] sm:$0xf] }
 0x19b   : > { %v5821_v5 = vor.u32 %v7876_v47, %v5818_v50  ;;  %v8231_v46 = vld [vmem:[#allocation9 + $0x71c] sm:$0xf0] }
 0x19c   : > { %v6416_v47 = vld [vmem:[#allocation9 + $0xc0] sm:$0xf]  ;;  %v7217_v50 = vor.u32 %v8231_v46, %v7216_v19  ;;  %v8051_v19 = vld [vmem:[#allocation9 + $0x184] sm:$0xf] }
 0x19d   : > { %1611 = vmatpush.bf16.msrb.mxu0 %v5901_v60  ;;  %1624 = vmatpush.bf16.msrb.mxu1 %v6029_v61  ;;  %v7972_v60 = vld [vmem:[#allocation6 + $0x30c] sm:$0xf]  ;;  %v6202_v61 = vld [vmem:[#allocation6 + $0x318] sm:$0xf0]  ;;  %v6384_v62 = vld [vmem:[#allocation9 + $0x80] sm:$0xf] }
 0x19e   : > { %1637 = vmatpush.bf16.msrb.mxu2 %v6157_v2  ;;  %1650 = vmatpush.bf16.msrb.mxu3 %v6285_v3  ;;  %v6800_v2 = vld [vmem:[#allocation9 + $0x3c0] sm:$0xf]  ;;  %v6514_v46 = vld [vmem:[#allocation9 + $0x1a0] sm:$0xf0] }
 0x19f   : > { %v8127_v3 = vld [vmem:[#allocation9 + $0x3dc] sm:$0xf0] }
 0x1a0   : > { %v6801_v14 = vor.u32 %v8127_v3, %v6800_v2  ;;  %v8023_v63 = vld [vmem:[#allocation9 + $0x9c] sm:$0xf0] }
 0x1a1   : > { %1612 = vmatpush.bf16.msrb.mxu0 %v5885_v10  ;;  %1625 = vmatpush.bf16.msrb.mxu1 %v6013_v11  ;;  %v6077_v10 = vor.u32 %v7940_v58, %v6074_v59  ;;  %v6205_v11 = vor.u32 %v7972_v60, %v6202_v61  ;;  %v7184_v58 = vld [vmem:[#allocation9 + $0x6c0] sm:$0xf]  ;;  %v6673_v61 = vor.u32 %v8095_v51, %v6672_v20 }
 0x1a2   : > { %1638 = vmatpush.bf16.msrb.mxu2 %v6141_v15  ;;  %1651 = vmatpush.bf16.msrb.mxu3 %v6269_v16  ;;  %v6512_v15 = vld [vmem:[#allocation9 + $0x180] sm:$0xf] }
 0x1a3   : > { %v8055_v16 = vld [vmem:[#allocation9 + $0x19c] sm:$0xf0] }
 0x1a4   : > { %v6513_v29 = vor.u32 %v8055_v16, %v6512_v15  ;;  %v8223_v59 = vld [vmem:[#allocation9 + $0x6dc] sm:$0xf0] }
 0x1a5   : > { %1613 = vmatpush.bf16.msrb.mxu0 %v5869_v27  ;;  %1626 = vmatpush.bf16.msrb.mxu1 %v5997_v28  ;;  %v7280_v27 = vld [vmem:[#allocation9 + $0x780] sm:$0xf]  ;;  %v7185_v3 = vor.u32 %v8223_v59, %v7184_v58  ;;  %v8179_v58 = vld [vmem:[#allocation9 + $0x584] sm:$0xf] }
 0x1a6   : > { %1639 = vmatpush.bf16.msrb.mxu2 %v6125_v13  ;;  %1652 = vmatpush.bf16.msrb.mxu3 %v6253_v31  ;;  %v8247_v28 = vld [vmem:[#allocation9 + $0x79c] sm:$0xf0]  ;;  %v7026_v59 = vld [vmem:[#allocation9 + $0x5a0] sm:$0xf0] }
 0x1a7   : > { %v6480_v13 = vld [vmem:[#allocation9 + $0x140] sm:$0xf]  ;;  %v7281_v33 = vor.u32 %v8247_v28, %v7280_v27 }
 0x1a8   : > { %v8047_v31 = vld [vmem:[#allocation9 + $0x15c] sm:$0xf0] }
 0x1a9   : > { %1614 = vmatpush.bf16.msrb.mxu0 %v5853_v38  ;;  %1627 = vmatpush.bf16.msrb.mxu1 %v5981_v39  ;;  %v7248_v38 = vld [vmem:[#allocation9 + $0x740] sm:$0xf]  ;;  %v6481_v40 = vor.u32 %v8047_v31, %v6480_v13 }
 0x1aa   : > { %1640 = vmatpush.bf16.msrb.mxu2 %v6109_v17  ;;  %1653 = vmatpush.bf16.msrb.mxu3 %v6237_v42  ;;  %v8239_v39 = vld [vmem:[#allocation9 + $0x75c] sm:$0xf0] }
 0x1ab   : > { %v6448_v17 = vld [vmem:[#allocation9 + $0x100] sm:$0xf]  ;;  %v7249_v44 = vor.u32 %v8239_v39, %v7248_v38  ;;  %v8059_v38 = vld [vmem:[#allocation9 + $0x1c4] sm:$0xf] }
 0x1ac   : > { %v8039_v42 = vld [vmem:[#allocation9 + $0x11c] sm:$0xf0]  ;;  %v6546_v39 = vld [vmem:[#allocation9 + $0x1e0] sm:$0xf0] }
 0x1ad   : > { %1615 = vmatpush.bf16.msrb.mxu0 %v5837_v48  ;;  %1628 = vmatpush.bf16.msrb.mxu1 %v5965_v49  ;;  %v8031_v48 = vld [vmem:[#allocation9 + $0xdc] sm:$0xf0] }
 0x1ae   : > { %1641 = vmatpush.bf16.msrb.mxu2 %v6093_v52  ;;  %1654 = vmatpush.bf16.msrb.mxu3 %v6221_v53  ;;  %v6928_v52 = vld [vmem:[#allocation9 + $0x4c0] sm:$0xf]  ;;  %v6417_v60 = vor.u32 %v8031_v48, %v6416_v47  ;;  %v6549_v47 = vor.u32 %v8059_v38, %v6546_v39  ;;  %v8091_v38 = vld [vmem:[#allocation9 + $0x2c4] sm:$0xf] }
 0x1af   : > { %v8159_v53 = vld [vmem:[#allocation9 + $0x4dc] sm:$0xf0]  ;;  %v6674_v39 = vld [vmem:[#allocation9 + $0x2e0] sm:$0xf0] }
 0x1b0   : > { %v6929_v2 = vor.u32 %v8159_v53, %v6928_v52  ;;  %v6640_v4 = vld [vmem:[#allocation9 + $0x280] sm:$0xf]  ;;  %v8115_v52 = vld [vmem:[#allocation9 + $0x384] sm:$0xf] }
 0x1b1   : > { %1616 = vmatpush.bf16.msrb.mxu0 %v5821_v5  ;;  %1629 = vmatpush.bf16.msrb.mxu1 %v5949_v6  ;;  %v8087_v5 = vld [vmem:[#allocation9 + $0x29c] sm:$0xf0]  ;;  %v6770_v53 = vld [vmem:[#allocation9 + $0x3a0] sm:$0xf0] }
 0x1b2   : > { %1642 = vmatpush.bf16.msrb.mxu2 %v6077_v10  ;;  %1655 = vmatpush.bf16.msrb.mxu3 %v6205_v11  ;;  %v6896_v6 = vld [vmem:[#allocation9 + $0x480] sm:$0xf]  ;;  %v6385_v10 = vor.u32 %v8023_v63, %v6384_v62  ;;  %v6641_v11 = vor.u32 %v8087_v5, %v6640_v4  ;;  %v6517_v4 = vor.u32 %v8051_v19, %v6514_v46  ;;  %v8083_v19 = vld [vmem:[#allocation9 + $0x284] sm:$0xf] }
 0x1b3   : > { %v8151_v7 = vld [vmem:[#allocation9 + $0x49c] sm:$0xf0]  ;;  %v6773_v5 = vor.u32 %v8115_v52, %v6770_v53  ;;  %v6642_v46 = vld [vmem:[#allocation9 + $0x2a0] sm:$0xf0] }
 0x1b4   : > { %1617 = vmatmul.bf16.vlgmr.msrb.gmra.mxu0 %v9044_v54  ;;  %1630 = vmatmul.bf16.vlgmr.msrb.gmra.mxu1 %v9046_v55  ;;  %v6704_v54 = vld [vmem:[#allocation9 + $0x300] sm:$0xf]  ;;  %v6897_v15 = vor.u32 %v8151_v7, %v6896_v6  ;;  %v8043_v6 = vld [vmem:[#allocation9 + $0x144] sm:$0xf] }
 0x1b5   : > { %3232 = vmatpush.bf16.msra.mxu0 %v6545_v12  ;;  %3245 = vmatpush.bf16.msra.mxu1 %v6801_v14  ;;  %v6960_v55 = vld [vmem:[#allocation9 + $0x500] sm:$0xf]  ;;  %v6482_v7 = vld [vmem:[#allocation9 + $0x160] sm:$0xf0] }
 0x1b6   : > { %3258 = vmatpush.bf16.msra.mxu2 %v7057_v21  ;;  %3271 = vmatpush.bf16.msra.mxu3 %v7313_v22  ;;  %v6961_v49 = vor.u32 %v8167_v45, %v6960_v55  ;;  %v7152_v8 = vld [vmem:[#allocation9 + $0x680] sm:$0xf] }
 0x1b7   : > { %1643 = vmatmul.bf16.vlgmr.msrb.gmra.mxu2 %v9048_v56  ;;  %1656 = vmatmul.bf16.vlgmr.msrb.gmra.mxu3 %v9050_v57  ;;  %v6449_v56 = vor.u32 %v8039_v42, %v6448_v17  ;;  %v6705_v57 = vor.u32 %v8103_v18, %v6704_v54  ;;  %v8215_v9 = vld [vmem:[#allocation9 + $0x69c] sm:$0xf0]  ;;  %v8187_v17 = vld [vmem:[#allocation9 + $0x5c4] sm:$0xf] }
 0x1b8   : > { %v6352_v12 = vld [vmem:[#allocation9 + $0x40] sm:$0xf]  ;;  %v7153_v16 = vor.u32 %v8215_v9, %v7152_v8  ;;  %v8251_v54 = vld [vmem:[#allocation9 + $0x7c4] sm:$0xf]  ;;  %v7029_v8 = vor.u32 %v8179_v58, %v7026_v59 }
 0x1b9   : > { %3233 = vmatpush.bf16.msra.mxu0 %v6513_v29  ;;  %3246 = vmatpush.bf16.msra.mxu1 %v6769_v30  ;;  %v8015_v14 = vld [vmem:[#allocation9 + $0x5c] sm:$0xf0]  ;;  %v7314_v18 = vld [vmem:[#allocation9 + $0x7e0] sm:$0xf0] }
 0x1ba   : > { %3259 = vmatpush.bf16.msra.mxu2 %v7025_v32  ;;  %3272 = vmatpush.bf16.msra.mxu3 %v7281_v33  ;;  %v6608_v21 = vld [vmem:[#allocation9 + $0x240] sm:$0xf]  ;;  %v6353_v28 = vor.u32 %v8015_v14, %v6352_v12  ;;  %v7121_v33 = vor.u32 %v8207_v26, %v7120_v25  ;;  %v7317_v51 = vor.u32 %v8251_v54, %v7314_v18  ;;  %v8171_v12 = vld [vmem:[#allocation9 + $0x544] sm:$0xf] }
 0x1bb   : > { %v8079_v22 = vld [vmem:[#allocation9 + $0x25c] sm:$0xf0]  ;;  %v6994_v14 = vld [vmem:[#allocation9 + $0x560] sm:$0xf0] }
 0x1bc   : > { %v6864_v23 = vld [vmem:[#allocation9 + $0x440] sm:$0xf]  ;;  %v6609_v29 = vor.u32 %v8079_v22, %v6608_v21  ;;  %v6485_v21 = vor.u32 %v8043_v6, %v6482_v7  ;;  %v6997_v25 = vor.u32 %v8171_v12, %v6994_v14  ;;  %v8019_v54 = vld [vmem:[#allocation9 + $0x84] sm:$0xf] }
 0x1bd   : > { %3234 = vmatpush.bf16.msra.mxu0 %v6481_v40  ;;  %3247 = vmatpush.bf16.msra.mxu1 %v6737_v41  ;;  %v8143_v24 = vld [vmem:[#allocation9 + $0x45c] sm:$0xf0]  ;;  %v8123_v40 = vld [vmem:[#allocation9 + $0x3c4] sm:$0xf] }
 0x1be   : > { %3260 = vmatpush.bf16.msra.mxu2 %v6993_v43  ;;  %3273 = vmatpush.bf16.msra.mxu3 %v7249_v44  ;;  %v6320_v27 = vld [vmem:[#allocation9] sm:$0xf]  ;;  %v6865_v32 = vor.u32 %v8143_v24, %v6864_v23  ;;  %v6802_v41 = vld [vmem:[#allocation9 + $0x3e0] sm:$0xf0] }
 0x1bf   : > { %v8007_v30 = vld [vmem:[#allocation9 + $0x1c] sm:$0xf0]  ;;  %v7058_v44 = vld [vmem:[#allocation9 + $0x5e0] sm:$0xf0]  ;;  %v6805_v48 = vor.u32 %v8123_v40, %v6802_v41 }
 0x1c0   : > { %v6576_v13 = vld [vmem:[#allocation9 + $0x200] sm:$0xf]  ;;  %v6321_v42 = vor.u32 %v8007_v30, %v6320_v27  ;;  %v7061_v20 = vor.u32 %v8187_v17, %v7058_v44  ;;  %v8035_v23 = vld [vmem:[#allocation9 + $0x104] sm:$0xf]  ;;  %v6677_v44 = vor.u32 %v8091_v38, %v6674_v39  ;;  %v6776_v38 = vld [vmem:[#allocation9 + $0x388] sm:$0xf] }
 0x1c1   : > { %3235 = vmatpush.bf16.msra.mxu0 %v6449_v56  ;;  %3248 = vmatpush.bf16.msra.mxu1 %v6705_v57  ;;  %v8071_v31 = vld [vmem:[#allocation9 + $0x21c] sm:$0xf0]  ;;  %v1922_v57 = vld.sshfl [vmem:[#allocation1] sm:$0xff pattern:$0x75316420] }
 0x1c2   : > { %3261 = vmatpush.bf16.msra.mxu2 %v6961_v49  ;;  %3274 = vmatpush.bf16.msra.mxu3 %v7217_v50  ;;  %v6832_v34 = vld [vmem:[#allocation9 + $0x400] sm:$0xf]  ;;  %v6577_v43 = vor.u32 %v8071_v31, %v6576_v13  ;;  %v1925_v49 = vld.sshfl [vmem:[#allocation1 + $0x18] sm:$0xff pattern:$0x75316420]  ;;  %v9070_v63 = vpack.c.bf16 %v1922_v57, %v1922_v57 }
 0x1c3   : > { %v8135_v35 = vld [vmem:[#allocation9 + $0x41c] sm:$0xf0]  ;;  %v1923_v50 = vld.sshfl [vmem:[#allocation1 + $0x8] sm:$0xff pattern:$0x75316420] }
 0x1c4   : > { %v7088_v36 = vld [vmem:[#allocation9 + $0x600] sm:$0xf]  ;;  %v6833_v55 = vor.u32 %v8135_v35, %v6832_v34  ;;  %v6450_v24 = vld [vmem:[#allocation9 + $0x120] sm:$0xf0] }
 0x1c5   : > { %3236 = vmatpush.bf16.msra.mxu0 %v6417_v60  ;;  %3249 = vmatpush.bf16.msra.mxu1 %v6673_v61  ;;  %v8199_v37 = vld [vmem:[#allocation9 + $0x61c] sm:$0xf0]  ;;  %v8243_v60 = vld [vmem:[#allocation9 + $0x784] sm:$0xf] }
 0x1c6   : > { %3262 = vmatpush.bf16.msra.mxu2 %v6929_v2  ;;  %3275 = vmatpush.bf16.msra.mxu3 %v7185_v3  ;;  %v7089_v45 = vor.u32 %v8199_v37, %v7088_v36  ;;  %v1924_v56 = vld.sshfl [vmem:[#allocation1 + $0x10] sm:$0xff pattern:$0x75316420]  ;;  %v7282_v61 = vld [vmem:[#allocation9 + $0x7a0] sm:$0xf0]  ;;  %v9072_v2 = vpack.c.bf16 %v1925_v49, %v1925_v49  ;;  %v9074_v3 = vpack.c.bf16 %v1923_v50, %v1923_v50 }
 0x1c7   : > { %v9068_v62 = vpack.c.bf16 %v1924_v56, %v1924_v56  ;;  %v7285_v9 = vor.u32 %v8243_v60, %v7282_v61  ;;  %v8099_v27 = vld [vmem:[#allocation9 + $0x304] sm:$0xf]  ;;  %v6645_v50 = vor.u32 %v8083_v19, %v6642_v46  ;;  %v8048_v19 = vld [vmem:[#allocation9 + $0x164] sm:$0xf0] }
 0x1c8   : > { %v6962_v30 = vld [vmem:[#allocation9 + $0x520] sm:$0xf0] }
 0x1c9   : > { %3237 = vmatpush.bf16.msra.mxu0 %v6385_v10  ;;  %3250 = vmatpush.bf16.msra.mxu1 %v6641_v11  ;;  %v8107_v10 = vld [vmem:[#allocation9 + $0x344] sm:$0xf] }
 0x1ca   : > { %3263 = vmatpush.bf16.msra.mxu2 %v6897_v15  ;;  %3276 = vmatpush.bf16.msra.mxu3 %v7153_v16  ;;  %v6738_v11 = vld [vmem:[#allocation9 + $0x360] sm:$0xf0] }
 0x1cb   : > { %v8235_v15 = vld [vmem:[#allocation9 + $0x744] sm:$0xf]  ;;  %v6741_v22 = vor.u32 %v8107_v10, %v6738_v11 }
 0x1cc   : > { %v7250_v16 = vld [vmem:[#allocation9 + $0x760] sm:$0xf0] }
 0x1cd   : > { %3238 = vmatpush.bf16.msra.mxu0 %v6353_v28  ;;  %3251 = vmatpush.bf16.msra.mxu1 %v6609_v29  ;;  %v7253_v26 = vor.u32 %v8235_v15, %v7250_v16  ;;  %v6706_v28 = vld [vmem:[#allocation9 + $0x320] sm:$0xf0] }
 0x1ce   : > { %3264 = vmatpush.bf16.msra.mxu2 %v6865_v32  ;;  %3277 = vmatpush.bf16.msra.mxu3 %v7121_v33  ;;  %v8163_v29 = vld [vmem:[#allocation9 + $0x504] sm:$0xf]  ;;  %v6453_v32 = vor.u32 %v8035_v23, %v6450_v24  ;;  %v6709_v33 = vor.u32 %v8099_v27, %v6706_v28  ;;  %v6552_v23 = vld [vmem:[#allocation9 + $0x1c8] sm:$0xf] }
 0x1cf   : > { %v8227_v13 = vld [vmem:[#allocation9 + $0x704] sm:$0xf]  ;;  %v6965_v36 = vor.u32 %v8163_v29, %v6962_v30  ;;  %v8064_v24 = vld [vmem:[#allocation9 + $0x1e4] sm:$0xf0] }
 0x1d0   : > { %v7218_v31 = vld [vmem:[#allocation9 + $0x720] sm:$0xf0]  ;;  %v7064_v27 = vld [vmem:[#allocation9 + $0x5c8] sm:$0xf] }
 0x1d1   : > { %3239 = vmatpush.bf16.msra.mxu0 %v6321_v42  ;;  %3252 = vmatpush.bf16.msra.mxu1 %v6577_v43  ;;  %v8027_v34 = vld [vmem:[#allocation9 + $0xc4] sm:$0xf]  ;;  %v7221_v37 = vor.u32 %v8227_v13, %v7218_v31  ;;  %v8192_v30 = vld [vmem:[#allocation9 + $0x5e4] sm:$0xf0] }
 0x1d2   : > { %3265 = vmatpush.bf16.msra.mxu2 %v6833_v55  ;;  %3278 = vmatpush.bf16.msra.mxu3 %v7089_v45  ;;  %v6418_v35 = vld [vmem:[#allocation9 + $0xe0] sm:$0xf0]  ;;  %v7320_v13 = vld [vmem:[#allocation9 + $0x7c8] sm:$0xf]  ;;  %v7065_v39 = vor.u32 %v8192_v30, %v7064_v27 }
 0x1d3   : > { %v8155_v40 = vld [vmem:[#allocation9 + $0x4c4] sm:$0xf]  ;;  %v6421_v43 = vor.u32 %v8027_v34, %v6418_v35  ;;  %v8256_v31 = vld [vmem:[#allocation9 + $0x7e4] sm:$0xf0]  ;;  %v6553_v34 = vor.u32 %v8064_v24, %v6552_v23 }
 0x1d4   : > { %3240 = vmatmul.bf16.vlgmr.msra.gmra.mxu0 %v9070_v63  ;;  %3253 = vmatmul.bf16.vlgmr.msra.gmra.mxu1 %v9074_v3  ;;  %v6930_v41 = vld [vmem:[#allocation9 + $0x4e0] sm:$0xf0]  ;;  %v6936_v27 = vld [vmem:[#allocation9 + $0x4c8] sm:$0xf] }
 0x1d5   : > { %3284 = vmatpush.bf16.msrb.mxu0 %v6549_v47  ;;  %3297 = vmatpush.bf16.msrb.mxu1 %v6805_v48  ;;  %v8219_v17 = vld [vmem:[#allocation9 + $0x6c4] sm:$0xf]  ;;  %v6933_v55 = vor.u32 %v8155_v40, %v6930_v41  ;;  %v7321_v40 = vor.u32 %v8256_v31, %v7320_v13  ;;  %v8120_v41 = vld [vmem:[#allocation9 + $0x3a4] sm:$0xf0] }
 0x1d6   : > { %3310 = vmatpush.bf16.msrb.mxu2 %v7061_v20  ;;  %3323 = vmatpush.bf16.msrb.mxu3 %v7317_v51  ;;  %v7186_v42 = vld [vmem:[#allocation9 + $0x6e0] sm:$0xf0]  ;;  %v8160_v30 = vld [vmem:[#allocation9 + $0x4e4] sm:$0xf0] }
 0x1d7   : > { %3266 = vmatmul.bf16.vlgmr.msra.gmra.mxu2 %v9068_v62  ;;  %3279 = vmatmul.bf16.vlgmr.msra.gmra.mxu3 %v9072_v2  ;;  %v6386_v18 = vld [vmem:[#allocation9 + $0xa0] sm:$0xf0]  ;;  %v7189_v45 = vor.u32 %v8219_v17, %v7186_v42  ;;  %v7032_v17 = vld [vmem:[#allocation9 + $0x588] sm:$0xf]  ;;  %v9080_v42 = vld [vmem:[#allocation7] sm:$0xf] }
 0x1d8   : > { %v8147_v56 = vld [vmem:[#allocation9 + $0x484] sm:$0xf]  ;;  %v6389_v49 = vor.u32 %v8019_v54, %v6386_v18  ;;  %v8248_v54 = vld [vmem:[#allocation9 + $0x7a4] sm:$0xf0]  ;;  %v805_v46 = vperm.slane %v9080_v42, 0 }
 0x1d9   : > { %3285 = vmatpush.bf16.msrb.mxu0 %v6517_v4  ;;  %3298 = vmatpush.bf16.msrb.mxu1 %v6773_v5  ;;  %v6898_v57 = vld [vmem:[#allocation9 + $0x4a0] sm:$0xf0]  ;;  %v7192_v13 = vld [vmem:[#allocation9 + $0x6c8] sm:$0xf] }
 0x1da   : > { %3311 = vmatpush.bf16.msrb.mxu2 %v7029_v8  ;;  %3324 = vmatpush.bf16.msrb.mxu3 %v7285_v9  ;;  %v8211_v47 = vld [vmem:[#allocation9 + $0x684] sm:$0xf]  ;;  %v6901_v52 = vor.u32 %v8147_v56, %v6898_v57  ;;  %v8224_v31 = vld [vmem:[#allocation9 + $0x6e4] sm:$0xf0] }
 0x1db   : > { %v7154_v48 = vld [vmem:[#allocation9 + $0x6a0] sm:$0xf0] }
 0x1dc   : > { %v8011_v20 = vld [vmem:[#allocation9 + $0x44] sm:$0xf]  ;;  %v7157_v53 = vor.u32 %v8211_v47, %v7154_v48  ;;  %v6744_v47 = vld [vmem:[#allocation9 + $0x348] sm:$0xf] }
 0x1dd   : > { %3286 = vmatpush.bf16.msrb.mxu0 %v6485_v21  ;;  %3299 = vmatpush.bf16.msrb.mxu1 %v6741_v22  ;;  %v6354_v51 = vld [vmem:[#allocation9 + $0x60] sm:$0xf0]  ;;  %v8112_v48 = vld [vmem:[#allocation9 + $0x364] sm:$0xf0] }
 0x1de   : > { %3312 = vmatpush.bf16.msrb.mxu2 %v6997_v25  ;;  %3325 = vmatpush.bf16.msrb.mxu3 %v7253_v26  ;;  %v8075_v58 = vld [vmem:[#allocation9 + $0x244] sm:$0xf]  ;;  %v6357_v7 = vor.u32 %v8011_v20, %v6354_v51  ;;  %v6808_v25 = vld [vmem:[#allocation9 + $0x3c8] sm:$0xf] }
 0x1df   : > { %v6610_v59 = vld [vmem:[#allocation9 + $0x260] sm:$0xf0]  ;;  %v8128_v26 = vld [vmem:[#allocation9 + $0x3e4] sm:$0xf0] }
 0x1e0   : > { %v8139_v60 = vld [vmem:[#allocation9 + $0x444] sm:$0xf]  ;;  %v6613_v8 = vor.u32 %v8075_v58, %v6610_v59  ;;  %v6809_v35 = vor.u32 %v8128_v26, %v6808_v25  ;;  %v7256_v20 = vld [vmem:[#allocation9 + $0x748] sm:$0xf]  ;;  %v6745_v59 = vor.u32 %v8112_v48, %v6744_v47 }
 0x1e1   : > { %3287 = vmatpush.bf16.msrb.mxu0 %v6453_v32  ;;  %3300 = vmatpush.bf16.msrb.mxu1 %v6709_v33  ;;  %v6866_v61 = vld [vmem:[#allocation9 + $0x460] sm:$0xf0]  ;;  %v8240_v51 = vld [vmem:[#allocation9 + $0x764] sm:$0xf0] }
 0x1e2   : > { %3313 = vmatpush.bf16.msrb.mxu2 %v6965_v36  ;;  %3326 = vmatpush.bf16.msrb.mxu3 %v7221_v37  ;;  %v8203_v4 = vld [vmem:[#allocation9 + $0x644] sm:$0xf]  ;;  %v6869_v12 = vor.u32 %v8139_v60, %v6866_v61  ;;  %v6520_v36 = vld [vmem:[#allocation9 + $0x188] sm:$0xf] }
 0x1e3   : > { %v7122_v5 = vld [vmem:[#allocation9 + $0x660] sm:$0xf0]  ;;  %v8056_v37 = vld [vmem:[#allocation9 + $0x1a4] sm:$0xf0] }
 0x1e4   : > { %v8003_v6 = vld [vmem:[#allocation9 + $0x4] sm:$0xf]  ;;  %v7125_v14 = vor.u32 %v8203_v4, %v7122_v5  ;;  %v6521_v18 = vor.u32 %v8056_v37, %v6520_v36  ;;  %v6456_v61 = vld [vmem:[#allocation9 + $0x108] sm:$0xf] }
 0x1e5   : > { %3288 = vmatpush.bf16.msrb.mxu0 %v6421_v43  ;;  %3301 = vmatpush.bf16.msrb.mxu1 %v6677_v44  ;;  %v6322_v9 = vld [vmem:[#allocation9 + $0x20] sm:$0xf0]  ;;  %v8184_v43 = vld [vmem:[#allocation9 + $0x5a4] sm:$0xf0] }
 0x1e6   : > { %3314 = vmatpush.bf16.msrb.mxu2 %v6933_v55  ;;  %3327 = vmatpush.bf16.msrb.mxu3 %v7189_v45  ;;  %v8067_v10 = vld [vmem:[#allocation9 + $0x204] sm:$0xf]  ;;  %v6325_v28 = vor.u32 %v8003_v6, %v6322_v9  ;;  %v7288_v44 = vld [vmem:[#allocation9 + $0x788] sm:$0xf]  ;;  %v6777_v55 = vor.u32 %v8120_v41, %v6776_v38  ;;  %v7033_v56 = vor.u32 %v8184_v43, %v7032_v17 }
 0x1e7   : > { %v6578_v11 = vld [vmem:[#allocation9 + $0x220] sm:$0xf0]  ;;  %v6488_v45 = vld [vmem:[#allocation9 + $0x148] sm:$0xf]  ;;  %v7289_v57 = vor.u32 %v8248_v54, %v7288_v44  ;;  %v7257_v6 = vor.u32 %v8240_v51, %v7256_v20  ;;  %v7193_v41 = vor.u32 %v8224_v31, %v7192_v13  ;;  %v806_v20 = vperm.slane %v9080_v42, 1 }
 0x1e8   : > { %v8131_v15 = vld [vmem:[#allocation9 + $0x404] sm:$0xf]  ;;  %v6581_v29 = vor.u32 %v8067_v10, %v6578_v11  ;;  %v6489_v58 = vor.u32 %v8048_v19, %v6488_v45  ;;  %v8040_v4 = vld [vmem:[#allocation9 + $0x124] sm:$0xf0]  ;;  %v7322_v13 = vld [vmem:[#allocation9 + $0x7e8] sm:$0xf0] }
 0x1e9   : > { %3289 = vmatpush.bf16.msrb.mxu0 %v6389_v49  ;;  %3302 = vmatpush.bf16.msrb.mxu1 %v6645_v50  ;;  %v6834_v16 = vld [vmem:[#allocation9 + $0x420] sm:$0xf0]  ;;  %v7000_v49 = vld [vmem:[#allocation9 + $0x548] sm:$0xf] }
 0x1ea   : > { %3315 = vmatpush.bf16.msrb.mxu2 %v6901_v52  ;;  %3328 = vmatpush.bf16.msrb.mxu3 %v7157_v53  ;;  %v8195_v21 = vld [vmem:[#allocation9 + $0x604] sm:$0xf]  ;;  %v6837_v32 = vor.u32 %v8131_v15, %v6834_v16  ;;  %v8176_v50 = vld [vmem:[#allocation9 + $0x564] sm:$0xf0]  ;;  %v6457_v15 = vor.u32 %v8040_v4, %v6456_v61 }
 0x1eb   : > { %v7090_v22 = vld [vmem:[#allocation9 + $0x620] sm:$0xf0]  ;;  %v7001_v5 = vor.u32 %v8176_v50, %v7000_v49  ;;  %v6968_v9 = vld [vmem:[#allocation9 + $0x508] sm:$0xf] }
 0x1ec   : > { %v7093_v33 = vor.u32 %v8195_v21, %v7090_v22  ;;  %v8168_v11 = vld [vmem:[#allocation9 + $0x524] sm:$0xf0] }
 0x1ed   : > { %3290 = vmatpush.bf16.msrb.mxu0 %v6357_v7  ;;  %3303 = vmatpush.bf16.msrb.mxu1 %v6613_v8  ;;  %v6712_v7 = vld [vmem:[#allocation9 + $0x308] sm:$0xf]  ;;  %v6969_v23 = vor.u32 %v8168_v11, %v6968_v9 }
 0x1ee   : > { %3316 = vmatpush.bf16.msrb.mxu2 %v6869_v12  ;;  %3329 = vmatpush.bf16.msrb.mxu3 %v7125_v14  ;;  %v8104_v8 = vld [vmem:[#allocation9 + $0x324] sm:$0xf0] }
 0x1ef   : > { %v7224_v12 = vld [vmem:[#allocation9 + $0x708] sm:$0xf]  ;;  %v6713_v16 = vor.u32 %v8104_v8, %v6712_v7 }
 0x1f0   : > { %v1462_v52 = vpop.f32.mrf.mxu0  ;;  %v1475_v53 = vpop.f32.mrf.mxu1  ;;  %v8232_v14 = vld [vmem:[#allocation9 + $0x724] sm:$0xf0] }
 0x1f1   : > { %3291 = vmatpush.bf16.msrb.mxu0 %v6325_v28  ;;  %3304 = vmatpush.bf16.msrb.mxu1 %v6581_v29  ;;  %v1463_v60 = vadd.f32 %v1462_v52, %v805_v46  ;;  %v6424_v21 = vld [vmem:[#allocation9 + $0xc8] sm:$0xf]  ;;  %v7225_v24 = vor.u32 %v8232_v14, %v7224_v12 }
 0x1f2   : > { %3317 = vmatpush.bf16.msrb.mxu2 %v6837_v32  ;;  %3330 = vmatpush.bf16.msrb.mxu3 %v7093_v33  ;;  %v8032_v22 = vld [vmem:[#allocation9 + $0xe4] sm:$0xf0] }
 0x1f3   : > { %v1476_v10 = vadd.f32 %v1475_v53, %v1463_v60  ;;  %v6680_v25 = vld [vmem:[#allocation9 + $0x2c8] sm:$0xf] }
 0x1f4   : > { %3292 = vmatmul.bf16.vlgmr.msrb.gmra.mxu0 %v9070_v63  ;;  %3305 = vmatmul.bf16.vlgmr.msrb.gmra.mxu1 %v9074_v3  ;;  %v8096_v26 = vld [vmem:[#allocation9 + $0x2e4] sm:$0xf0] }
 0x1f5   : > { %3336 = vmatpush.bf16.msra.mxu0 %v6553_v34  ;;  %3349 = vmatpush.bf16.msra.mxu1 %v6809_v35  ;;  %v6425_v35 = vor.u32 %v8032_v22, %v6424_v21  ;;  %v6681_v36 = vor.u32 %v8096_v26, %v6680_v25  ;;  %v6392_v37 = vld [vmem:[#allocation9 + $0x88] sm:$0xf]  ;;  %v8060_v22 = vld [vmem:[#allocation9 + $0x1cc] sm:$0xf] }
 0x1f6   : > { %3362 = vmatpush.bf16.msra.mxu2 %v7065_v39  ;;  %3375 = vmatpush.bf16.msra.mxu3 %v7321_v40  ;;  %v8024_v38 = vld [vmem:[#allocation9 + $0xa4] sm:$0xf0]  ;;  %v6937_v40 = vor.u32 %v8160_v30, %v6936_v27  ;;  %v6810_v25 = vld [vmem:[#allocation9 + $0x3e8] sm:$0xf0] }
 0x1f7   : > { %3318 = vmatmul.bf16.vlgmr.msrb.gmra.mxu2 %v9068_v62  ;;  %3331 = vmatmul.bf16.vlgmr.msrb.gmra.mxu3 %v9072_v2  ;;  %v1488_v28 = vpop.f32.mrf.mxu2  ;;  %v1501_v29 = vpop.f32.mrf.mxu3  ;;  %v6648_v17 = vld [vmem:[#allocation9 + $0x288] sm:$0xf]  ;;  %v6393_v45 = vor.u32 %v8024_v38, %v6392_v37  ;;  %v8188_v26 = vld [vmem:[#allocation9 + $0x5cc] sm:$0xf] }
 0x1f8   : > { %v1489_v32 = vadd.f32 %v1488_v28, %v1476_v10  ;;  %v1464_v33 = vpop.f32.mrf.mxu0  ;;  %v1477_v34 = vpop.f32.mrf.mxu1  ;;  %v8088_v43 = vld [vmem:[#allocation9 + $0x2a4] sm:$0xf0]  ;;  %v8252_v30 = vld [vmem:[#allocation9 + $0x7cc] sm:$0xf] }
 0x1f9   : > { %3337 = vmatpush.bf16.msra.mxu0 %v6521_v18  ;;  %3350 = vmatpush.bf16.msra.mxu1 %v6777_v55  ;;  %v6904_v44 = vld [vmem:[#allocation9 + $0x488] sm:$0xf]  ;;  %v6649_v19 = vor.u32 %v8088_v43, %v6648_v17  ;;  %v8052_v38 = vld [vmem:[#allocation9 + $0x18c] sm:$0xf]  ;;  %v7325_v17 = vor.u32 %v8252_v30, %v7322_v13 }
 0x1fa   : > { %3363 = vmatpush.bf16.msra.mxu2 %v7033_v56  ;;  %3376 = vmatpush.bf16.msra.mxu3 %v7289_v57  ;;  %v9087_v39 = vadd.f32 %v1501_v29, %v1489_v32  ;;  %v8152_v54 = vld [vmem:[#allocation9 + $0x4a4] sm:$0xf0]  ;;  %v7066_v29 = vld [vmem:[#allocation9 + $0x5e8] sm:$0xf0] }
 0x1fb   : > { %v7160_v18 = vld [vmem:[#allocation9 + $0x688] sm:$0xf]  ;;  %v6905_v47 = vor.u32 %v8152_v54, %v6904_v44  ;;  %v6426_v30 = vld [vmem:[#allocation9 + $0xe8] sm:$0xf0] }
 0x1fc   : > { %v8216_v55 = vld [vmem:[#allocation9 + $0x6a4] sm:$0xf0] }
 0x1fd   : > { %3338 = vmatpush.bf16.msra.mxu0 %v6489_v58  ;;  %3351 = vmatpush.bf16.msra.mxu1 %v6745_v59  ;;  %v6360_v46 = vld [vmem:[#allocation9 + $0x48] sm:$0xf]  ;;  %v7161_v48 = vor.u32 %v8216_v55, %v7160_v18  ;;  %v8116_v18 = vld [vmem:[#allocation9 + $0x38c] sm:$0xf] }
 0x1fe   : > { %3364 = vmatpush.bf16.msra.mxu2 %v7001_v5  ;;  %3377 = vmatpush.bf16.msra.mxu3 %v7257_v6  ;;  %v8016_v56 = vld [vmem:[#allocation9 + $0x64] sm:$0xf0]  ;;  %v6778_v55 = vld [vmem:[#allocation9 + $0x3a8] sm:$0xf0] }
 0x1ff   : > { %v6616_v57 = vld [vmem:[#allocation9 + $0x248] sm:$0xf]  ;;  %v1490_v51 = vpop.f32.mrf.mxu2  ;;  %v1503_v52 = vpop.f32.mrf.mxu3  ;;  %v6361_v5 = vor.u32 %v8016_v56, %v6360_v46  ;;  %v8244_v46 = vld [vmem:[#allocation9 + $0x78c] sm:$0xf] }
 0x200   : > { %v8080_v49 = vld [vmem:[#allocation9 + $0x264] sm:$0xf0]  ;;  %v1514_v60 = vpop.f32.mrf.mxu0  ;;  %v1527_v61 = vpop.f32.mrf.mxu1  ;;  %v7290_v56 = vld [vmem:[#allocation9 + $0x7a8] sm:$0xf0] }
 0x201   : > { %3339 = vmatpush.bf16.msra.mxu0 %v6457_v15  ;;  %3352 = vmatpush.bf16.msra.mxu1 %v6713_v16  ;;  %v6872_v50 = vld [vmem:[#allocation9 + $0x448] sm:$0xf]  ;;  %v6617_v6 = vor.u32 %v8080_v49, %v6616_v57  ;;  %v1515_v12 = vadd.f32 %v1514_v60, %v806_v20  ;;  %v8044_v49 = vld [vmem:[#allocation9 + $0x14c] sm:$0xf] }
 0x202   : > { %3365 = vmatpush.bf16.msra.mxu2 %v6969_v23  ;;  %3378 = vmatpush.bf16.msra.mxu3 %v7225_v24  ;;  %v8144_v53 = vld [vmem:[#allocation9 + $0x464] sm:$0xf0]  ;;  %v6554_v23 = vld [vmem:[#allocation9 + $0x1e8] sm:$0xf0] }
 0x203   : > { %v7128_v58 = vld [vmem:[#allocation9 + $0x648] sm:$0xf]  ;;  %v6873_v10 = vor.u32 %v8144_v53, %v6872_v50  ;;  %v8124_v24 = vld [vmem:[#allocation9 + $0x3cc] sm:$0xf]  ;;  %v1528_v31 = vadd.f32 %v1527_v61, %v1515_v12  ;;  %v6557_v34 = vor.u32 %v8060_v22, %v6554_v23  ;;  %v7293_v53 = vor.u32 %v8244_v46, %v7290_v56 }
 0x204   : > { %v8208_v59 = vld [vmem:[#allocation9 + $0x664] sm:$0xf0]  ;;  %v6490_v50 = vld [vmem:[#allocation9 + $0x168] sm:$0xf0] }
 0x205   : > { %3340 = vmatpush.bf16.msra.mxu0 %v6425_v35  ;;  %3353 = vmatpush.bf16.msra.mxu1 %v6681_v36  ;;  %v6328_v4 = vld [vmem:[#allocation9 + $0x8] sm:$0xf]  ;;  %v7129_v11 = vor.u32 %v8208_v59, %v7128_v58  ;;  %v6813_v35 = vor.u32 %v8124_v24, %v6810_v25  ;;  %v8108_v20 = vld [vmem:[#allocation9 + $0x34c] sm:$0xf] }
 0x206   : > { %3366 = vmatpush.bf16.msra.mxu2 %v6937_v40  ;;  %3379 = vmatpush.bf16.msra.mxu3 %v7193_v41  ;;  %v8008_v7 = vld [vmem:[#allocation9 + $0x24] sm:$0xf0]  ;;  %v6522_v40 = vld [vmem:[#allocation9 + $0x1a8] sm:$0xf0]  ;;  %v7069_v41 = vor.u32 %v8188_v26, %v7066_v29 }
 0x207   : > { %v6584_v8 = vld [vmem:[#allocation9 + $0x208] sm:$0xf]  ;;  %v6329_v27 = vor.u32 %v8008_v7, %v6328_v4  ;;  %v1540_v36 = vpop.f32.mrf.mxu2  ;;  %v1553_v37 = vpop.f32.mrf.mxu3  ;;  %v6746_v58 = vld [vmem:[#allocation9 + $0x368] sm:$0xf0] }
 0x208   : > { %v8072_v9 = vld [vmem:[#allocation9 + $0x224] sm:$0xf0]  ;;  %v1541_v43 = vadd.f32 %v1540_v36, %v1528_v31  ;;  %v1516_v44 = vpop.f32.mrf.mxu0  ;;  %v1529_v54 = vpop.f32.mrf.mxu1  ;;  %v8172_v59 = vld [vmem:[#allocation9 + $0x54c] sm:$0xf]  ;;  %v6749_v7 = vor.u32 %v8108_v20, %v6746_v58 }
 0x209   : > { %3341 = vmatpush.bf16.msra.mxu0 %v6393_v45  ;;  %3354 = vmatpush.bf16.msra.mxu1 %v6649_v19  ;;  %v6840_v14 = vld [vmem:[#allocation9 + $0x408] sm:$0xf]  ;;  %v6585_v28 = vor.u32 %v8072_v9, %v6584_v8  ;;  %v8180_v45 = vld [vmem:[#allocation9 + $0x58c] sm:$0xf] }
 0x20a   : > { %3367 = vmatpush.bf16.msra.mxu2 %v6905_v47  ;;  %3380 = vmatpush.bf16.msra.mxu3 %v7161_v48  ;;  %v8136_v15 = vld [vmem:[#allocation9 + $0x424] sm:$0xf0]  ;;  %v7034_v19 = vld [vmem:[#allocation9 + $0x5a8] sm:$0xf0]  ;;  %v9090_v57 = vadd.f32 %v1553_v37, %v1541_v43  ;;  %v6525_v47 = vor.u32 %v8052_v38, %v6522_v40  ;;  %v6781_v48 = vor.u32 %v8116_v18, %v6778_v55 }
 0x20b   : > { %v7096_v16 = vld [vmem:[#allocation9 + $0x608] sm:$0xf]  ;;  %v6841_v32 = vor.u32 %v8136_v15, %v6840_v14  ;;  %v7037_v52 = vor.u32 %v8180_v45, %v7034_v19  ;;  %v7002_v60 = vld [vmem:[#allocation9 + $0x568] sm:$0xf0] }
 0x20c   : > { %v8200_v21 = vld [vmem:[#allocation9 + $0x624] sm:$0xf0]  ;;  %v3672_v51 = vrot.slane %v9090_v57, 4  ;;  %v8236_v61 = vld [vmem:[#allocation9 + $0x74c] sm:$0xf]  ;;  %v7005_v12 = vor.u32 %v8172_v59, %v7002_v60 }
 0x20d   : > { %3342 = vmatpush.bf16.msra.mxu0 %v6361_v5  ;;  %3355 = vmatpush.bf16.msra.mxu1 %v6617_v6  ;;  %v7097_v33 = vor.u32 %v8200_v21, %v7096_v16  ;;  %v7258_v4 = vld [vmem:[#allocation9 + $0x768] sm:$0xf0]  ;;  %v6493_v6 = vor.u32 %v8044_v49, %v6490_v50 }
 0x20e   : > { %3368 = vmatpush.bf16.msra.mxu2 %v6873_v10  ;;  %3381 = vmatpush.bf16.msra.mxu3 %v7129_v11  ;;  %v9097_v5 = vsel %vm3673_vm8, %v3672_v51, %v9087_v39  ;;  %v8036_v10 = vld [vmem:[#allocation9 + $0x10c] sm:$0xf]  ;;  %v7261_v14 = vor.u32 %v8236_v61, %v7258_v4 }
 0x20f   : > { %v1542_v8 = vpop.f32.mrf.mxu2  ;;  %v1555_v9 = vpop.f32.mrf.mxu3  ;;  %v6458_v11 = vld [vmem:[#allocation9 + $0x128] sm:$0xf0] }
 0x210   : > { %v8100_v15 = vld [vmem:[#allocation9 + $0x30c] sm:$0xf] }
 0x211   : > { %3343 = vmatpush.bf16.msra.mxu0 %v6329_v27  ;;  %3356 = vmatpush.bf16.msra.mxu1 %v6585_v28  ;;  %v6714_v16 = vld [vmem:[#allocation9 + $0x328] sm:$0xf0]  ;;  %v9101_v25 = vpop.f32.mrf.mxu0  ;;  %v9103_v26 = vpop.f32.mrf.mxu1  ;;  %v6461_v27 = vor.u32 %v8036_v10, %v6458_v11 }
 0x212   : > { %3369 = vmatpush.bf16.msra.mxu2 %v6841_v32  ;;  %3382 = vmatpush.bf16.msra.mxu3 %v7097_v33  ;;  %v8164_v21 = vld [vmem:[#allocation9 + $0x50c] sm:$0xf]  ;;  %v6717_v28 = vor.u32 %v8100_v15, %v6714_v16 }
 0x213   : > { %v6970_v22 = vld [vmem:[#allocation9 + $0x528] sm:$0xf0] }
 0x214   : > { %3344 = vmatmul.bf16.vlgmr.msra.gmra.mxu0 %v9070_v63  ;;  %3357 = vmatmul.bf16.vlgmr.msra.gmra.mxu1 %v9074_v3  ;;  %v8228_v23 = vld [vmem:[#allocation9 + $0x70c] sm:$0xf]  ;;  %v6973_v13 = vor.u32 %v8164_v21, %v6970_v22 }
 0x215   : > { %3388 = vmatpush.bf16.msrb.mxu0 %v6557_v34  ;;  %3401 = vmatpush.bf16.msrb.mxu1 %v6813_v35  ;;  %v7226_v24 = vld [vmem:[#allocation9 + $0x728] sm:$0xf0] }
 0x216   : > { %3414 = vmatpush.bf16.msrb.mxu2 %v7069_v41  ;;  %3427 = vmatpush.bf16.msrb.mxu3 %v7325_v17  ;;  %v8028_v29 = vld [vmem:[#allocation9 + $0xcc] sm:$0xf]  ;;  %v7229_v31 = vor.u32 %v8228_v23, %v7226_v24 }
 0x217   : > { %3370 = vmatmul.bf16.vlgmr.msra.gmra.mxu2 %v9068_v62  ;;  %3383 = vmatmul.bf16.vlgmr.msra.gmra.mxu3 %v9072_v2  ;;  %v8092_v32 = vld [vmem:[#allocation9 + $0x2cc] sm:$0xf]  ;;  %v6429_v38 = vor.u32 %v8028_v29, %v6426_v30 }
 0x218   : > { %v6682_v33 = vld [vmem:[#allocation9 + $0x2e8] sm:$0xf0] }
 0x219   : > { %3389 = vmatpush.bf16.msrb.mxu0 %v6525_v47  ;;  %3402 = vmatpush.bf16.msrb.mxu1 %v6781_v48  ;;  %v8156_v34 = vld [vmem:[#allocation9 + $0x4cc] sm:$0xf]  ;;  %v6685_v40 = vor.u32 %v8092_v32, %v6682_v33  ;;  %v1568_v48 = vpop.f32.mrf.mxu0  ;;  %v1581_v49 = vpop.f32.mrf.mxu1  ;;  %v807_v32 = vperm.slane %v9080_v42, 2  ;;  %v808_v33 = vperm.slane %v9080_v42, 3 }
 0x21a   : > { %3415 = vmatpush.bf16.msrb.mxu2 %v7037_v52  ;;  %3428 = vmatpush.bf16.msrb.mxu3 %v7293_v53  ;;  %v6938_v35 = vld [vmem:[#allocation9 + $0x4e8] sm:$0xf0]  ;;  %v9105_v45 = vpop.f32.mrf.mxu2  ;;  %v9107_v19 = vpop.f32.mrf.mxu3 }
 0x21b   : > { %v8220_v36 = vld [vmem:[#allocation9 + $0x6cc] sm:$0xf]  ;;  %v6941_v43 = vor.u32 %v8156_v34, %v6938_v35 }
 0x21c   : > { %v7194_v37 = vld [vmem:[#allocation9 + $0x6e8] sm:$0xf0] }
 0x21d   : > { %3390 = vmatpush.bf16.msrb.mxu0 %v6493_v6  ;;  %3403 = vmatpush.bf16.msrb.mxu1 %v6749_v7  ;;  %v8020_v41 = vld [vmem:[#allocation9 + $0x8c] sm:$0xf]  ;;  %v7197_v44 = vor.u32 %v8220_v36, %v7194_v37  ;;  %v1567_v36 = vadd.f32 %v9101_v25, %v807_v32 }
 0x21e   : > { %3416 = vmatpush.bf16.msrb.mxu2 %v7005_v12  ;;  %3429 = vmatpush.bf16.msrb.mxu3 %v7261_v14  ;;  %v6394_v17 = vld [vmem:[#allocation9 + $0xa8] sm:$0xf0] }
 0x21f   : > { %v8084_v54 = vld [vmem:[#allocation9 + $0x28c] sm:$0xf]  ;;  %v6397_v50 = vor.u32 %v8020_v41, %v6394_v17 }
 0x220   : > { %v6650_v18 = vld [vmem:[#allocation9 + $0x2a8] sm:$0xf0] }
 0x221   : > { %3391 = vmatpush.bf16.msrb.mxu0 %v6461_v27  ;;  %3404 = vmatpush.bf16.msrb.mxu1 %v6717_v28  ;;  %v8148_v55 = vld [vmem:[#allocation9 + $0x48c] sm:$0xf]  ;;  %v6653_v20 = vor.u32 %v8084_v54, %v6650_v18 }
 0x222   : > { %3417 = vmatpush.bf16.msrb.mxu2 %v6973_v13  ;;  %3430 = vmatpush.bf16.msrb.mxu3 %v7229_v31  ;;  %v6906_v46 = vld [vmem:[#allocation9 + $0x4a8] sm:$0xf0]  ;;  %v1594_v22 = vpop.f32.mrf.mxu2  ;;  %v1607_v23 = vpop.f32.mrf.mxu3 }
 0x223   : > { %v8212_v56 = vld [vmem:[#allocation9 + $0x68c] sm:$0xf]  ;;  %v6909_v53 = vor.u32 %v8148_v55, %v6906_v46 }
 0x224   : > { %v7162_v47 = vld [vmem:[#allocation9 + $0x6a8] sm:$0xf0] }
 0x225   : > { %3392 = vmatpush.bf16.msrb.mxu0 %v6429_v38  ;;  %3405 = vmatpush.bf16.msrb.mxu1 %v6685_v40  ;;  %v8012_v51 = vld [vmem:[#allocation9 + $0x4c] sm:$0xf]  ;;  %v7165_v58 = vor.u32 %v8212_v56, %v7162_v47  ;;  %v1580_v38 = vadd.f32 %v9103_v26, %v1567_v36  ;;  %v6816_v36 = vld [vmem:[#allocation9 + $0x3d0] sm:$0xf] }
 0x226   : > { %v6362_v52 = vld [vmem:[#allocation9 + $0x68] sm:$0xf0]  ;;  %3418 = vmatpush.bf16.msrb.mxu2 %v6941_v43  ;;  %3431 = vmatpush.bf16.msrb.mxu3 %v7197_v44 }
 0x227   : > { %v8076_v59 = vld [vmem:[#allocation9 + $0x24c] sm:$0xf]  ;;  %v6365_v8 = vor.u32 %v8012_v51, %v6362_v52  ;;  %v1593_v43 = vadd.f32 %v9105_v45, %v1580_v38  ;;  %v9126_v45 = vld [vmem:[#allocation10] sm:$0xff]  ;;  %v7040_v38 = vld [vmem:[#allocation9 + $0x590] sm:$0xf] }
 0x228   : > { %v6618_v60 = vld [vmem:[#allocation9 + $0x268] sm:$0xf0]  ;;  %v1936_v49 = vperm.slane %v9126_v45, 0 }
 0x229   : > { %v8140_v61 = vld [vmem:[#allocation9 + $0x44c] sm:$0xf]  ;;  %3393 = vmatpush.bf16.msrb.mxu0 %v6397_v50  ;;  %3406 = vmatpush.bf16.msrb.mxu1 %v6653_v20  ;;  %v6621_v9 = vor.u32 %v8076_v59, %v6618_v60  ;;  %v1606_v46 = vadd.f32 %v9107_v19, %v1593_v43  ;;  %v8847_v43 = vmov 1983009808  }
 0x22a   : > { %v6874_v4 = vld [vmem:[#allocation9 + $0x468] sm:$0xf0]  ;;  %3419 = vmatpush.bf16.msrb.mxu2 %v6909_v53  ;;  %3432 = vmatpush.bf16.msrb.mxu3 %v7165_v58 }
 0x22b   : > { %v8204_v6 = vld [vmem:[#allocation9 + $0x64c] sm:$0xf]  ;;  %v6877_v12 = vor.u32 %v8140_v61, %v6874_v4  ;;  %v8500_v48 = vpack.i.bf16 %v9087_v39, %v1606_v46  ;;  %v1937_v39 = vperm.slane %v9126_v45, 1 }
 0x22c   : > { %v7130_v7 = vld [vmem:[#allocation9 + $0x668] sm:$0xf0] }
 0x22d   : > { %v8004_v10 = vld [vmem:[#allocation9 + $0xc] sm:$0xf]  ;;  %v7133_v14 = vor.u32 %v8204_v6, %v7130_v7  ;;  %3394 = vmatpush.bf16.msrb.mxu0 %v6365_v8  ;;  %3407 = vmatpush.bf16.msrb.mxu1 %v6621_v9 }
 0x22e   : > { %v6330_v11 = vld [vmem:[#allocation9 + $0x28] sm:$0xf0]  ;;  %3420 = vmatpush.bf16.msrb.mxu2 %v6877_v12 }
 0x22f   : > { %v8068_v15 = vld [vmem:[#allocation9 + $0x20c] sm:$0xf]  ;;  %v6333_v29 = vor.u32 %v8004_v10, %v6330_v11  ;;  %3433 = vmatpush.bf16.msrb.mxu3 %v7133_v14 }
 0x230   : > { %v6586_v16 = vld [vmem:[#allocation9 + $0x228] sm:$0xf0] }
 0x231   : > { %v8132_v21 = vld [vmem:[#allocation9 + $0x40c] sm:$0xf]  ;;  %v6589_v30 = vor.u32 %v8068_v15, %v6586_v16  ;;  %3395 = vmatpush.bf16.msrb.mxu0 %v6333_v29  ;;  %v1618_v34 = vpop.f32.mrf.mxu0  ;;  %v1631_v35 = vpop.f32.mrf.mxu1 }
 0x232   : > { %v6842_v24 = vld [vmem:[#allocation9 + $0x428] sm:$0xf0]  ;;  %v1619_v37 = vadd.f32 %v1618_v34, %v808_v33  ;;  %v8257_v33 = vld [vmem:[#allocation9 + $0x7ec] sm:$0xf0] }
 0x233   : > { %v8196_v27 = vld [vmem:[#allocation9 + $0x60c] sm:$0xf]  ;;  %v6845_v13 = vor.u32 %v8132_v21, %v6842_v24  ;;  %3408 = vmatpush.bf16.msrb.mxu1 %v6589_v30  ;;  %v6560_v30 = vld [vmem:[#allocation9 + $0x1d0] sm:$0xf] }
 0x234   : > { %v7098_v28 = vld [vmem:[#allocation9 + $0x628] sm:$0xf0]  ;;  %3396 = vmatmul.bf16.vlgmr.msrb.gmra.mxu0 %v9070_v63  ;;  %v1632_v40 = vadd.f32 %v1631_v35, %v1619_v37  ;;  %v8129_v37 = vld [vmem:[#allocation9 + $0x3ec] sm:$0xf0] }
 0x235   : > { %v7101_v31 = vor.u32 %v8196_v27, %v7098_v28  ;;  %3421 = vmatpush.bf16.msrb.mxu2 %v6845_v13  ;;  %v7072_v27 = vld [vmem:[#allocation9 + $0x5d0] sm:$0xf] }
 0x236   : > { %3409 = vmatmul.bf16.vlgmr.msrb.gmra.mxu1 %v9074_v3  ;;  %v8193_v28 = vld [vmem:[#allocation9 + $0x5ec] sm:$0xf0] }
 0x237   : > { %3434 = vmatpush.bf16.msrb.mxu3 %v7101_v31  ;;  %v7073_v29 = vor.u32 %v8193_v28, %v7072_v27  ;;  %v8065_v13 = vld [vmem:[#allocation9 + $0x1ec] sm:$0xf0] }
 0x238   : > { %3422 = vmatmul.bf16.vlgmr.msrb.gmra.mxu2 %v9068_v62  ;;  %v7328_v31 = vld [vmem:[#allocation9 + $0x7d0] sm:$0xf]  ;;  %v6561_v32 = vor.u32 %v8065_v13, %v6560_v30 }
 0x239   : > { %v1620_v54 = vpop.f32.mrf.mxu0  ;;  %v1633_v18 = vpop.f32.mrf.mxu1  ;;  %3466 = vmatpush.bf16.msra.mxu2 %v7073_v29  ;;  %v7329_v35 = vor.u32 %v8257_v33, %v7328_v31  ;;  %v8233_v28 = vld [vmem:[#allocation9 + $0x72c] sm:$0xf0]  ;;  %v1938_v33 = vperm.slane %v9126_v45, 2 }
 0x23a   : > { %3435 = vmatmul.bf16.vlgmr.msrb.gmra.mxu3 %v9072_v2  ;;  %v1644_v41 = vpop.f32.mrf.mxu2  ;;  %v1657_v17 = vpop.f32.mrf.mxu3  ;;  %3440 = vmatpush.bf16.msra.mxu0 %v6561_v32  ;;  %v6528_v18 = vld [vmem:[#allocation9 + $0x190] sm:$0xf] }
 0x23b   : > { %v1645_v44 = vadd.f32 %v1644_v41, %v1632_v40  ;;  %v6817_v41 = vor.u32 %v8129_v37, %v6816_v36  ;;  %3479 = vmatpush.bf16.msra.mxu3 %v7329_v35  ;;  %v6720_v13 = vld [vmem:[#allocation9 + $0x310] sm:$0xf] }
 0x23c   : > { %v6944_v31 = vld [vmem:[#allocation9 + $0x4d0] sm:$0xf] }
 0x23d   : > { %v1658_v55 = vadd.f32 %v1657_v17, %v1645_v44  ;;  %v8185_v17 = vld [vmem:[#allocation9 + $0x5ac] sm:$0xf0]  ;;  %v3676_v44 = vunpack.c.l.s4 %v8847_v43  ;;  %3453 = vmatpush.bf16.msra.mxu1 %v6817_v41 }
 0x23e   : > { %v7041_v54 = vor.u32 %v8185_v17, %v7040_v38  ;;  %v8161_v38 = vld [vmem:[#allocation9 + $0x4ec] sm:$0xf0] }
 0x23f   : > { %v3685_v56 = vrot.slane %v1658_v55, 4  ;;  %v8495_v42 = vpack.i.bf16 %v9090_v57, %v1658_v55  ;;  %v8057_v55 = vld [vmem:[#allocation9 + $0x1ac] sm:$0xf0] }
 0x240   : > { %3467 = vmatpush.bf16.msra.mxu2 %v7041_v54  ;;  %v8033_v54 = vld [vmem:[#allocation9 + $0xec] sm:$0xf0] }
 0x241   : > { %v9121_v47 = vsel %vm3673_vm8, %v3685_v56, %v1606_v46  ;;  %8496 = vrot.lane.b32.xlu2 %v8495_v42, %s8846_s19  ;;  %v7296_v46 = vld [vmem:[#allocation9 + $0x790] sm:$0xf]  ;;  %v6529_v56 = vor.u32 %v8057_v55, %v6528_v18 }
 0x242   : > { %v1646_v25 = vpop.f32.mrf.mxu2  ;;  %v1659_v26 = vpop.f32.mrf.mxu3  ;;  %v8249_v42 = vld [vmem:[#allocation9 + $0x7ac] sm:$0xf0] }
 0x243   : > { %v7297_v25 = vor.u32 %v8249_v42, %v7296_v46  ;;  %v6784_v26 = vld [vmem:[#allocation9 + $0x390] sm:$0xf]  ;;  %3441 = vmatpush.bf16.msra.mxu0 %v6529_v56 }
 0x244   : > { %v7200_v18 = vld [vmem:[#allocation9 + $0x6d0] sm:$0xf] }
 0x245   : > { %3480 = vmatpush.bf16.msra.mxu3 %v7297_v25  ;;  %v8225_v46 = vld [vmem:[#allocation9 + $0x6ec] sm:$0xf0] }
 0x246   : > { %v6688_v56 = vld [vmem:[#allocation9 + $0x2d0] sm:$0xf] }
 0x247   : > { %v8097_v42 = vld [vmem:[#allocation9 + $0x2ec] sm:$0xf0] }
 0x249   : > { %8501 = vrot.lane.b32.xlu2 %v8500_v48, %s8846_s19  ;;  %v8121_v48 = vld [vmem:[#allocation9 + $0x3ac] sm:$0xf0] }
 0x251   : > { %v3241_v19 = vpop.f32.mrf.mxu0  ;;  %v3254_v20 = vpop.f32.mrf.mxu1 }
 0x252   : > { %v3242_v50 = vadd.f32 %v3241_v19, %v1936_v49  ;;  %v7008_v49 = vld [vmem:[#allocation9 + $0x550] sm:$0xf]  ;;  %v9143_v19 = vunpack.c.0.s8 %v3676_v44 }
 0x253   : > { %v6432_v44 = vld [vmem:[#allocation9 + $0xd0] sm:$0xf] }
 0x254   : > { %v3255_v57 = vadd.f32 %v3254_v20, %v3242_v50  ;;  %v6785_v20 = vor.u32 %v8121_v48, %v6784_v26  ;;  %v9155_v29 = vperm.slane %v9121_v47, %v9143_v19  ;;  %v6945_v47 = vor.u32 %v8161_v38, %v6944_v31  ;;  %v8081_v38 = vld [vmem:[#allocation9 + $0x26c] sm:$0xf0] }
 0x255   : > { %v6433_v55 = vor.u32 %v8033_v54, %v6432_v44  ;;  %v1939_v26 = vperm.slane %v9126_v45, 3  ;;  %v7201_v48 = vor.u32 %v8225_v46, %v7200_v18  ;;  %v7074_v44 = vld [vmem:[#allocation9 + $0x5f0] sm:$0xf0]  ;;  %v6336_v46 = vld [vmem:[#allocation9 + $0x10] sm:$0xf] }
 0x256   : > { %3454 = vmatpush.bf16.msra.mxu1 %v6785_v20  ;;  %v3711_v25 = vrot.slane %v9155_v29, 4  ;;  %v6912_v20 = vld [vmem:[#allocation9 + $0x490] sm:$0xf] }
 0x259   : > { %v3243_v58 = vpop.f32.mrf.mxu0  ;;  %v3256_v60 = vpop.f32.mrf.mxu1 }
 0x25a   : > { %v3267_v51 = vpop.f32.mrf.mxu2  ;;  %v3280_v53 = vpop.f32.mrf.mxu3  ;;  %v8049_v58 = vld [vmem:[#allocation9 + $0x16c] sm:$0xf0] }
 0x25b   : > { %v3268_v52 = vadd.f32 %v3267_v51, %v3255_v57  ;;  %v8177_v57 = vld [vmem:[#allocation9 + $0x56c] sm:$0xf0] }
 0x25c   : > { %v7264_v60 = vld [vmem:[#allocation9 + $0x750] sm:$0xf] }
 0x25d   : > { %v9129_v59 = vadd.f32 %v3280_v53, %v3268_v52  ;;  %v7009_v52 = vor.u32 %v8177_v57, %v7008_v49  ;;  %v6496_v53 = vld [vmem:[#allocation9 + $0x150] sm:$0xf]  ;;  %v6689_v49 = vor.u32 %v8097_v42, %v6688_v56 }
 0x25e   : > { %v8153_v57 = vld [vmem:[#allocation9 + $0x4ac] sm:$0xf0] }
 0x25f   : > { %3468 = vmatpush.bf16.msra.mxu2 %v7009_v52  ;;  %v8009_v56 = vld [vmem:[#allocation9 + $0x2c] sm:$0xf0] }
 0x260   : > { %v7104_v42 = vld [vmem:[#allocation9 + $0x610] sm:$0xf] }
 0x262   : > { %v3269_v61 = vpop.f32.mrf.mxu2  ;;  %v3282_v4 = vpop.f32.mrf.mxu3 }
 0x263   : > { %v6497_v4 = vor.u32 %v8049_v58, %v6496_v53 }
 0x265   : > { %3442 = vmatpush.bf16.msra.mxu0 %v6497_v4  ;;  %v8025_v4 = vld [vmem:[#allocation9 + $0xac] sm:$0xf0] }
 0x271   : > { %v3293_v6 = vpop.f32.mrf.mxu0  ;;  %v3306_v8 = vpop.f32.mrf.mxu1 }
 0x272   : > { %v3294_v7 = vadd.f32 %v3293_v6, %v1937_v39  ;;  %v8241_v39 = vld [vmem:[#allocation9 + $0x76c] sm:$0xf0] }
 0x274   : > { %v3307_v9 = vadd.f32 %v3306_v8, %v3294_v7  ;;  %v7265_v7 = vor.u32 %v8241_v39, %v7264_v60  ;;  %v6752_v8 = vld [vmem:[#allocation9 + $0x350] sm:$0xf]  ;;  %v6913_v60 = vor.u32 %v8153_v57, %v6912_v20  ;;  %v6337_v57 = vor.u32 %v8009_v56, %v6336_v46  ;;  %v8045_v56 = vld [vmem:[#allocation9 + $0x154] sm:$0xf] }
 0x275   : > { %v7168_v39 = vld [vmem:[#allocation9 + $0x690] sm:$0xf] }
 0x276   : > { %3481 = vmatpush.bf16.msra.mxu3 %v7265_v7  ;;  %v8217_v7 = vld [vmem:[#allocation9 + $0x6ac] sm:$0xf0] }
 0x279   : > { %v3295_v14 = vpop.f32.mrf.mxu0  ;;  %v3308_v16 = vpop.f32.mrf.mxu1 }
 0x27a   : > { %v3319_v10 = vpop.f32.mrf.mxu2  ;;  %v3332_v12 = vpop.f32.mrf.mxu3  ;;  %v8169_v14 = vld [vmem:[#allocation9 + $0x52c] sm:$0xf0] }
 0x27b   : > { %v3320_v11 = vadd.f32 %v3319_v10, %v3307_v9  ;;  %v8113_v9 = vld [vmem:[#allocation9 + $0x36c] sm:$0xf0] }
 0x27c   : > { %v6976_v10 = vld [vmem:[#allocation9 + $0x510] sm:$0xf] }
 0x27d   : > { %v9132_v15 = vadd.f32 %v3332_v12, %v3320_v11  ;;  %v9151_v11 = vperm.slane %v9097_v5, %v9143_v19  ;;  %v6753_v12 = vor.u32 %v8113_v9, %v6752_v8  ;;  %v6977_v16 = vor.u32 %v8169_v14, %v6976_v10  ;;  %v8105_v5 = vld [vmem:[#allocation9 + $0x32c] sm:$0xf0] }
 0x27e   : > { %v6721_v37 = vor.u32 %v8105_v5, %v6720_v13  ;;  %v6656_v8 = vld [vmem:[#allocation9 + $0x290] sm:$0xf]  ;;  %v8848_v10 = vmov 1934713408   ;;  %v7169_v14 = vor.u32 %v8217_v7, %v7168_v39  ;;  %v8253_v39 = vld [vmem:[#allocation9 + $0x7d4] sm:$0xf] }
 0x27f   : > { %v3809_v21 = vrot.slane %v9132_v15, 4  ;;  %3455 = vmatpush.bf16.msra.mxu1 %v6753_v12  ;;  %3469 = vmatpush.bf16.msra.mxu2 %v6977_v16  ;;  %v3699_v32 = vrot.slane %v9151_v11, 4  ;;  %v8089_v9 = vld [vmem:[#allocation9 + $0x2ac] sm:$0xf0]  ;;  %v3702_v12 = vunpack.c.l.s4 %v8848_v10 }
 0x280   : > { %v6657_v16 = vor.u32 %v8089_v9, %v6656_v8  ;;  %v7136_v13 = vld [vmem:[#allocation9 + $0x650] sm:$0xf] }
 0x281   : > { %v9137_v22 = vsel %vm3673_vm8, %v3809_v21, %v9129_v59  ;;  %v6464_v21 = vld [vmem:[#allocation9 + $0x110] sm:$0xf] }
 0x282   : > { %v3321_v23 = vpop.f32.mrf.mxu2  ;;  %v3334_v24 = vpop.f32.mrf.mxu3  ;;  %v8209_v5 = vld [vmem:[#allocation9 + $0x66c] sm:$0xf0] }
 0x283   : > { %v8041_v23 = vld [vmem:[#allocation9 + $0x12c] sm:$0xf0]  ;;  %3456 = vmatpush.bf16.msra.mxu1 %v6721_v37  ;;  %3470 = vmatpush.bf16.msra.mxu2 %v6945_v47  ;;  %v8189_v47 = vld [vmem:[#allocation9 + $0x5d4] sm:$0xf] }
 0x284   : > { %v7232_v24 = vld [vmem:[#allocation9 + $0x710] sm:$0xf]  ;;  %v6465_v27 = vor.u32 %v8041_v23, %v6464_v21  ;;  %v7077_v20 = vor.u32 %v8189_v47, %v7074_v44  ;;  %v8173_v47 = vld [vmem:[#allocation9 + $0x554] sm:$0xf] }
 0x285   : > { %v7233_v30 = vor.u32 %v8233_v28, %v7232_v24  ;;  %v6880_v21 = vld [vmem:[#allocation9 + $0x450] sm:$0xf]  ;;  %v7010_v44 = vld [vmem:[#allocation9 + $0x570] sm:$0xf0] }
 0x286   : > { %3443 = vmatpush.bf16.msra.mxu0 %v6465_v27  ;;  %v6368_v23 = vld [vmem:[#allocation9 + $0x50] sm:$0xf] }
 0x287   : > { %3482 = vmatpush.bf16.msra.mxu3 %v7233_v30  ;;  %3457 = vmatpush.bf16.msra.mxu1 %v6689_v49  ;;  %v8017_v30 = vld [vmem:[#allocation9 + $0x6c] sm:$0xf0] }
 0x288   : > { %3471 = vmatpush.bf16.msra.mxu2 %v6913_v60  ;;  %v6624_v37 = vld [vmem:[#allocation9 + $0x250] sm:$0xf]  ;;  %v8061_v60 = vld [vmem:[#allocation9 + $0x1d4] sm:$0xf] }
 0x289   : > { %v6592_v7 = vld [vmem:[#allocation9 + $0x210] sm:$0xf] }
 0x28a   : > { %3444 = vmatpush.bf16.msra.mxu0 %v6433_v55 }
 0x28b   : > { %3483 = vmatpush.bf16.msra.mxu3 %v7201_v48  ;;  %3458 = vmatpush.bf16.msra.mxu1 %v6657_v16 }
 0x28f   : > { %3484 = vmatpush.bf16.msra.mxu3 %v7169_v14  ;;  %v8073_v14 = vld [vmem:[#allocation9 + $0x22c] sm:$0xf0] }
 0x291   : > { %v9139_v34 = vpop.f32.mrf.mxu0  ;;  %v9141_v40 = vpop.f32.mrf.mxu1 }
 0x292   : > { %v3346_v52 = vadd.f32 %v9139_v34, %v1938_v33  ;;  %v8145_v34 = vld [vmem:[#allocation9 + $0x46c] sm:$0xf0] }
 0x293   : > { %v6881_v28 = vor.u32 %v8145_v34, %v6880_v21 }
 0x294   : > { %v3359_v24 = vadd.f32 %v9141_v40, %v3346_v52  ;;  %v9163_v40 = vunpack.c.0.s8 %v3702_v12  ;;  %v8201_v52 = vld [vmem:[#allocation9 + $0x62c] sm:$0xf0] }
 0x295   : > { %3472 = vmatpush.bf16.msra.mxu2 %v6881_v28  ;;  %v6818_v28 = vld [vmem:[#allocation9 + $0x3f0] sm:$0xf0] }
 0x299   : > { %v3347_v61 = vpop.f32.mrf.mxu0  ;;  %v3360_v6 = vpop.f32.mrf.mxu1 }
 0x29a   : > { %v9145_v50 = vpop.f32.mrf.mxu2  ;;  %v9147_v51 = vpop.f32.mrf.mxu3  ;;  %v6400_v61 = vld [vmem:[#allocation9 + $0x90] sm:$0xf] }
 0x29b   : > { %v8497_v35 = vpop.permute.xlu2 %8496  ;;  %v6401_v6 = vor.u32 %v8025_v4, %v6400_v61  ;;  %v6562_v61 = vld [vmem:[#allocation9 + $0x1f0] sm:$0xf0]  ;;  %v9170_v4 = vadd.f32 %v9145_v50, %v3359_v24 }
 0x29c   : > { %v8499_v41 = vunpack.i.h.bf16 %v8497_v35  ;;  %v8498_v17 = vunpack.i.l.bf16 %v8497_v35  ;;  %v6369_v35 = vor.u32 %v8017_v30, %v6368_v23  ;;  %v8125_v50 = vld [vmem:[#allocation9 + $0x3d4] sm:$0xf] }
 0x29d   : > { %3445 = vmatpush.bf16.msra.mxu0 %v6401_v6  ;;  %v7330_v6 = vld [vmem:[#allocation9 + $0x7f0] sm:$0xf0]  ;;  %v6821_v45 = vor.u32 %v8125_v50, %v6818_v28 }
 0x29e   : > { %v3679_v53 = vrot.slane %v8499_v41, 4  ;;  %v3691_v58 = vrot.slane %v8498_v17, 4  ;;  %v6848_v41 = vld [vmem:[#allocation9 + $0x410] sm:$0xf]  ;;  %v6625_v17 = vor.u32 %v8081_v38, %v6624_v37  ;;  %v7333_v24 = vor.u32 %v8253_v39, %v7330_v6  ;;  %v8181_v30 = vld [vmem:[#allocation9 + $0x594] sm:$0xf] }
 0x29f   : > { %v7266_v39 = vld [vmem:[#allocation9 + $0x770] sm:$0xf0] }
 0x2a0   : > { %3459 = vmatpush.bf16.msra.mxu1 %v6625_v17  ;;  %v8117_v17 = vld [vmem:[#allocation9 + $0x394] sm:$0xf] }
 0x2a1   : > { %3446 = vmatpush.bf16.msra.mxu0 %v6369_v35  ;;  %v8245_v35 = vld [vmem:[#allocation9 + $0x794] sm:$0xf] }
 0x2a2   : > { %v3373_v36 = vpop.f32.mrf.mxu2  ;;  %v3386_v43 = vpop.f32.mrf.mxu3  ;;  %v8109_v6 = vld [vmem:[#allocation9 + $0x354] sm:$0xf] }
 0x2a3   : > { %v8502_v27 = vpop.permute.xlu2 %8501  ;;  %v7137_v36 = vor.u32 %v8209_v5, %v7136_v13  ;;  %v8137_v43 = vld [vmem:[#allocation9 + $0x42c] sm:$0xf0] }
 0x2a4   : > { %v8504_v31 = vunpack.i.h.bf16 %v8502_v27  ;;  %v8503_v33 = vunpack.i.l.bf16 %v8502_v27  ;;  %v6849_v55 = vor.u32 %v8137_v43, %v6848_v41  ;;  %v6593_v27 = vor.u32 %v8073_v14, %v6592_v7  ;;  %v6754_v7 = vld [vmem:[#allocation9 + $0x370] sm:$0xf0] }
 0x2a5   : > { %3485 = vmatpush.bf16.msra.mxu3 %v7137_v36  ;;  %3447 = vmatpush.bf16.msra.mxu0 %v6337_v57  ;;  %v6498_v57 = vld [vmem:[#allocation9 + $0x170] sm:$0xf0] }
 0x2a6   : > { %v3680_v54 = vsel %vm3673_vm8, %v3679_v53, %v8504_v31  ;;  %v3692_v18 = vsel %vm3673_vm8, %v3691_v58, %v8503_v33  ;;  %v7105_v53 = vor.u32 %v8201_v52, %v7104_v42  ;;  %v6565_v58 = vor.u32 %v8061_v60, %v6562_v61  ;;  %3473 = vmatpush.bf16.msra.mxu2 %v6849_v55  ;;  %v8053_v31 = vld [vmem:[#allocation9 + $0x194] sm:$0xf] }
 0x2a7   : > { %v3684_v48 = vperm.slane %v3680_v54, %v9143_v19  ;;  %v3696_v49 = vperm.slane %v3692_v18, %v9143_v19  ;;  %v6530_v33 = vld [vmem:[#allocation9 + $0x1b0] sm:$0xf0]  ;;  %3460 = vmatpush.bf16.msra.mxu1 %v6593_v27 }
 0x2a8   : > { %3448 = vmatmul.bf16.vlgmr.msra.gmra.mxu0 %v9070_v63  ;;  %v8237_v52 = vld [vmem:[#allocation9 + $0x754] sm:$0xf] }
 0x2a9   : > { %v3697_v8 = vrot.slane %v3684_v48, 4  ;;  %v3700_v9 = vsel %vm3673_vm8, %v3684_v48, %v3699_v32  ;;  %v3709_v10 = vrot.slane %v3696_v49, 4  ;;  %v3712_v12 = vsel %vm3673_vm8, %v3696_v49, %v3711_v25  ;;  %v7042_v32 = vld [vmem:[#allocation9 + $0x5b0] sm:$0xf0]  ;;  %3486 = vmatpush.bf16.msra.mxu3 %v7105_v53  ;;  %3492 = vmatpush.bf16.msrb.mxu0 %v6565_v58 }
 0x2aa   : > { %v3708_v16 = vperm.slane %v3700_v9, %v9163_v40  ;;  %v3720_v21 = vperm.slane %v3712_v12, %v9163_v40  ;;  %3518 = vmatpush.bf16.msrb.mxu2 %v7077_v20  ;;  %v6533_v49 = vor.u32 %v8053_v31, %v6530_v33  ;;  %v7013_v58 = vor.u32 %v8173_v47, %v7010_v44 }
 0x2ab   : > { %v3698_v13 = vsel %vm3673_vm8, %v3697_v8, %v9151_v11  ;;  %v3710_v25 = vsel %vm3673_vm8, %v3709_v10, %v9155_v29  ;;  %v7298_v11 = vld [vmem:[#allocation9 + $0x7b0] sm:$0xf0]  ;;  %v7045_v29 = vor.u32 %v8181_v30, %v7042_v32  ;;  %3474 = vmatmul.bf16.vlgmr.msra.gmra.mxu2 %v9068_v62  ;;  %3505 = vmatpush.bf16.msrb.mxu1 %v6821_v45 }
 0x2ac   : > { %v3704_v36 = vperm.slane %v3698_v13, %v9163_v40  ;;  %v3716_v37 = vperm.slane %v3710_v25, %v9163_v40  ;;  %v3725_v38 = vrot.slane %v3720_v21, 4  ;;  %v3727_v41 = vrot.slane %v3708_v16, 4  ;;  %3487 = vmatmul.bf16.vlgmr.msra.gmra.mxu3 %v9072_v2  ;;  %v8037_v32 = vld [vmem:[#allocation9 + $0x114] sm:$0xf]  ;;  %3461 = vmatmul.bf16.vlgmr.msra.gmra.mxu1 %v9074_v3 }
 0x2ad   : > { %3531 = vmatpush.bf16.msrb.mxu3 %v7333_v24  ;;  %v7301_v20 = vor.u32 %v8245_v35, %v7298_v11  ;;  %3493 = vmatpush.bf16.msrb.mxu0 %v6533_v49  ;;  %v6501_v30 = vor.u32 %v8045_v56, %v6498_v57  ;;  %v6466_v13 = vld [vmem:[#allocation9 + $0x130] sm:$0xf0]  ;;  %v7269_v33 = vor.u32 %v8237_v52, %v7266_v39 }
 0x2ae   : > { %v3721_v54 = vrot.slane %v3716_v37, 4  ;;  %v3723_v18 = vrot.slane %v3704_v36, 4  ;;  %v3726_v55 = vsel %vm3673_vm8, %v3725_v38, %v3708_v16  ;;  %v3728_v46 = vsel %vm3673_vm8, %v3720_v21, %v3727_v41  ;;  %3519 = vmatpush.bf16.msrb.mxu2 %v7045_v29  ;;  %v8165_v16 = vld [vmem:[#allocation9 + $0x514] sm:$0xf] }
 0x2af   : > { %v3729_v42 = vrot.slane %v3726_v55, 4  ;;  %v3741_v48 = vrot.slane %v3728_v46, 4  ;;  %v6978_v21 = vld [vmem:[#allocation9 + $0x530] sm:$0xf0]  ;;  %v6757_v45 = vor.u32 %v8109_v6, %v6754_v7  ;;  %v6469_v47 = vor.u32 %v8037_v32, %v6466_v13 }
 0x2b0   : > { %v3722_v60 = vsel %vm3673_vm8, %v3721_v54, %v3704_v36  ;;  %v3724_v61 = vsel %vm3673_vm8, %v3716_v37, %v3723_v18  ;;  %v8229_v25 = vld [vmem:[#allocation9 + $0x714] sm:$0xf]  ;;  %v6981_v29 = vor.u32 %v8165_v16, %v6978_v21 }
 0x2b1   : > { %v3397_v34 = vpop.f32.mrf.mxu0  ;;  %v3730_v8 = vsel %vm3673_vm8, %v3729_v42, %v3722_v60  ;;  %v3731_v9 = vrot.slane %v3722_v60, 4  ;;  %v3742_v10 = vsel %vm3673_vm8, %v3741_v48, %v3724_v61  ;;  %v3743_v12 = vrot.slane %v3724_v61, 4  ;;  %3532 = vmatpush.bf16.msrb.mxu3 %v7301_v20  ;;  %v7234_v35 = vld [vmem:[#allocation9 + $0x730] sm:$0xf0]  ;;  %3494 = vmatpush.bf16.msrb.mxu0 %v6501_v30 }
 0x2b2   : > { %v3398_v5 = vadd.f32 %v3397_v34, %v1939_v26  ;;  %v6786_v26 = vld [vmem:[#allocation9 + $0x3b0] sm:$0xf0]  ;;  %v9198_v34 = vperm.slane %v3730_v8, %v9143_v19  ;;  %3520 = vmatpush.bf16.msrb.mxu2 %v7013_v58  ;;  %v7237_v44 = vor.u32 %v8229_v25, %v7234_v35 }
 0x2b3   : > { %v3410_v23 = vpop.f32.mrf.mxu1  ;;  %v6789_v53 = vor.u32 %v8117_v17, %v6786_v26  ;;  %v3744_v31 = vsel %vm3673_vm8, %v3728_v46, %v3743_v12  ;;  %v8101_v36 = vld [vmem:[#allocation9 + $0x314] sm:$0xf]  ;;  %v3385_v26 = vadd.f32 %v9147_v51, %v9170_v4 }
 0x2b4   : > { %v3411_v43 = vadd.f32 %v3410_v23, %v3398_v5  ;;  %v9201_v23 = vperm.slane %v3742_v10, %v9143_v19  ;;  %v3732_v5 = vsel %vm3673_vm8, %v3726_v55, %v3731_v9  ;;  %v6722_v37 = vld [vmem:[#allocation9 + $0x330] sm:$0xf0]  ;;  %v3755_v17 = vrot.slane %v9198_v34, 4 }
 0x2b5   : > { %3506 = vmatpush.bf16.msrb.mxu1 %v6789_v53  ;;  %v8157_v41 = vld [vmem:[#allocation9 + $0x4d4] sm:$0xf]  ;;  %3533 = vmatpush.bf16.msrb.mxu3 %v7269_v33  ;;  %v6725_v42 = vor.u32 %v8101_v36, %v6722_v37  ;;  %v9212_v57 = vperm.slane %v3732_v5, %v9143_v19  ;;  %v9215_v52 = vperm.slane %v3744_v31, %v9143_v19 }
 0x2b6   : > { %v3753_v38 = vrot.slane %v9201_v23, 4  ;;  %v6946_v11 = vld [vmem:[#allocation9 + $0x4f0] sm:$0xf0]  ;;  %3521 = vmatpush.bf16.msrb.mxu2 %v6981_v29  ;;  %3495 = vmatpush.bf16.msrb.mxu0 %v6469_v47  ;;  %v9227_v16 = vsel %vm3673_vm8, %v9201_v23, %v3755_v17  ;;  %v8490_v31 = vpack.i.bf16 %v9129_v59, %v3385_v26 }
 0x2b7   : > { %v8029_v54 = vld [vmem:[#allocation9 + $0xd4] sm:$0xf]  ;;  %v6949_v48 = vor.u32 %v8157_v41, %v6946_v11  ;;  %v7080_v11 = vld [vmem:[#allocation9 + $0x5d8] sm:$0xf] }
 0x2b8   : > { %v6434_v18 = vld [vmem:[#allocation9 + $0xf0] sm:$0xf0]  ;;  %v9223_v39 = vsel %vm3673_vm8, %v3753_v38, %v9198_v34  ;;  %v3765_v34 = vrot.slane %v9215_v52, 4 }
 0x2b9   : > { %v3399_v27 = vpop.f32.mrf.mxu0  ;;  %v8221_v55 = vld [vmem:[#allocation9 + $0x6d4] sm:$0xf]  ;;  %3507 = vmatpush.bf16.msrb.mxu1 %v6757_v45  ;;  %v6437_v58 = vor.u32 %v8029_v54, %v6434_v18  ;;  %3534 = vmatpush.bf16.msrb.mxu3 %v7237_v44  ;;  %v6568_v44 = vld [vmem:[#allocation9 + $0x1d8] sm:$0xf] }
 0x2ba   : > { %v7202_v49 = vld [vmem:[#allocation9 + $0x6f0] sm:$0xf0]  ;;  %3522 = vmatpush.bf16.msrb.mxu2 %v6949_v48 }
 0x2bb   : > { %v3423_v14 = vpop.f32.mrf.mxu2  ;;  %v3412_v28 = vpop.f32.mrf.mxu1  ;;  %v8093_v20 = vld [vmem:[#allocation9 + $0x2d4] sm:$0xf]  ;;  %v7205_v6 = vor.u32 %v8221_v55, %v7202_v49  ;;  %3496 = vmatpush.bf16.msrb.mxu0 %v6437_v58  ;;  %v8066_v55 = vld [vmem:[#allocation9 + $0x1f4] sm:$0xf0] }
 0x2bc   : > { %v3424_v24 = vadd.f32 %v3423_v14, %v3411_v43  ;;  %v6690_v51 = vld [vmem:[#allocation9 + $0x2f0] sm:$0xf0]  ;;  %v3767_v28 = vrot.slane %v9212_v57, 4  ;;  %v6569_v58 = vor.u32 %v8066_v55, %v6568_v44  ;;  %v6952_v44 = vld [vmem:[#allocation9 + $0x4d8] sm:$0xf] }
 0x2bd   : > { %v3436_v50 = vpop.f32.mrf.mxu3  ;;  %v8149_v4 = vld [vmem:[#allocation9 + $0x494] sm:$0xf]  ;;  %3508 = vmatpush.bf16.msrb.mxu1 %v6725_v42  ;;  %v6693_v9 = vor.u32 %v8093_v20, %v6690_v51  ;;  %3535 = vmatpush.bf16.msrb.mxu3 %v7205_v6  ;;  %v6824_v20 = vld [vmem:[#allocation9 + $0x3d8] sm:$0xf] }
 0x2be   : > { %v3437_v43 = vadd.f32 %v3436_v50, %v3424_v24  ;;  %v6914_v60 = vld [vmem:[#allocation9 + $0x4b0] sm:$0xf0] }
 0x2bf   : > { %v8021_v7 = vld [vmem:[#allocation9 + $0x94] sm:$0xf]  ;;  %v6917_v10 = vor.u32 %v8149_v4, %v6914_v60  ;;  %v8130_v4 = vld [vmem:[#allocation9 + $0x3f4] sm:$0xf0] }
 0x2c0   : > { %v3821_v46 = vrot.slane %v3437_v43, 4  ;;  %v8485_v56 = vpack.i.bf16 %v9132_v15, %v3437_v43  ;;  %v6402_v8 = vld [vmem:[#allocation9 + $0xb0] sm:$0xf0]  ;;  %v8194_v43 = vld [vmem:[#allocation9 + $0x5f4] sm:$0xf0] }
 0x2c1   : > { %v8213_v12 = vld [vmem:[#allocation9 + $0x694] sm:$0xf]  ;;  %v6405_v30 = vor.u32 %v8021_v7, %v6402_v8  ;;  %3509 = vmatpush.bf16.msrb.mxu1 %v6693_v9  ;;  %3523 = vmatpush.bf16.msrb.mxu2 %v6917_v10  ;;  %v7081_v42 = vor.u32 %v8194_v43, %v7080_v11  ;;  %v7048_v60 = vld [vmem:[#allocation9 + $0x598] sm:$0xf]  ;;  %v6825_v10 = vor.u32 %v8130_v4, %v6824_v20 }
 0x2c2   : > { %v9218_v61 = vsel %vm3673_vm8, %v3821_v46, %v3385_v26  ;;  %8486 = vrot.lane.b32.xlu1 %v8485_v56, %s8846_s19  ;;  %v7170_v14 = vld [vmem:[#allocation9 + $0x6b0] sm:$0xf0]  ;;  %v7336_v46 = vld [vmem:[#allocation9 + $0x7d8] sm:$0xf] }
 0x2c3   : > { %v3425_v15 = vpop.f32.mrf.mxu2  ;;  %v8085_v50 = vld [vmem:[#allocation9 + $0x294] sm:$0xf]  ;;  %v7173_v32 = vor.u32 %v8213_v12, %v7170_v14  ;;  %3497 = vmatpush.bf16.msrb.mxu0 %v6405_v30  ;;  %v8258_v56 = vld [vmem:[#allocation9 + $0x7f4] sm:$0xf0] }
 0x2c4   : > { %v6658_v21 = vld [vmem:[#allocation9 + $0x2b0] sm:$0xf0]  ;;  %v8186_v15 = vld [vmem:[#allocation9 + $0x5b4] sm:$0xf0]  ;;  %v7337_v6 = vor.u32 %v8258_v56, %v7336_v46 }
 0x2c5   : > { %v3438_v53 = vpop.f32.mrf.mxu3  ;;  %v8141_v24 = vld [vmem:[#allocation9 + $0x454] sm:$0xf]  ;;  %v6661_v23 = vor.u32 %v8085_v50, %v6658_v21  ;;  %3536 = vmatpush.bf16.msrb.mxu3 %v7173_v32  ;;  %v6536_v8 = vld [vmem:[#allocation9 + $0x198] sm:$0xf]  ;;  %v7049_v12 = vor.u32 %v8186_v15, %v7048_v60  ;;  %v9237_v32 = vsel %vm3673_vm8, %v3765_v34, %v9212_v57 }
 0x2c6   : > { %v6882_v27 = vld [vmem:[#allocation9 + $0x470] sm:$0xf0]  ;;  %v8058_v9 = vld [vmem:[#allocation9 + $0x1b4] sm:$0xf0] }
 0x2c7   : > { %v8013_v13 = vld [vmem:[#allocation9 + $0x54] sm:$0xf]  ;;  %v6885_v33 = vor.u32 %v8141_v24, %v6882_v27  ;;  %3510 = vmatpush.bf16.msrb.mxu1 %v6661_v23  ;;  %v7304_v14 = vld [vmem:[#allocation9 + $0x798] sm:$0xf] }
 0x2c8   : > { %v6370_v25 = vld [vmem:[#allocation9 + $0x70] sm:$0xf0]  ;;  %v8250_v50 = vld [vmem:[#allocation9 + $0x7b4] sm:$0xf0] }
 0x2c9   : > { %v8205_v5 = vld [vmem:[#allocation9 + $0x654] sm:$0xf]  ;;  %v6373_v17 = vor.u32 %v8013_v13, %v6370_v25  ;;  %3524 = vmatpush.bf16.msrb.mxu2 %v6885_v33  ;;  %v6792_v21 = vld [vmem:[#allocation9 + $0x398] sm:$0xf]  ;;  %v9243_v13 = vsel %vm3673_vm8, %v9215_v52, %v3767_v28  ;;  %v6537_v25 = vor.u32 %v8058_v9, %v6536_v8 }
 0x2ca   : > { %v7138_v35 = vld [vmem:[#allocation9 + $0x670] sm:$0xf0]  ;;  %8491 = vrot.lane.b32.xlu1 %v8490_v31, %s8846_s19  ;;  %v8122_v24 = vld [vmem:[#allocation9 + $0x3b4] sm:$0xf0] }
 0x2cb   : > { %v8077_v36 = vld [vmem:[#allocation9 + $0x254] sm:$0xf]  ;;  %v7141_v47 = vor.u32 %v8205_v5, %v7138_v35  ;;  %3498 = vmatpush.bf16.msrb.mxu0 %v6373_v17  ;;  %v7016_v27 = vld [vmem:[#allocation9 + $0x558] sm:$0xf]  ;;  %v7305_v5 = vor.u32 %v8250_v50, %v7304_v14  ;;  %v6793_v33 = vor.u32 %v8122_v24, %v6792_v21 }
 0x2cc   : > { %v6626_v37 = vld [vmem:[#allocation9 + $0x270] sm:$0xf0]  ;;  %v8178_v30 = vld [vmem:[#allocation9 + $0x574] sm:$0xf0] }
 0x2cd   : > { %v8133_v38 = vld [vmem:[#allocation9 + $0x414] sm:$0xf]  ;;  %v6629_v54 = vor.u32 %v8077_v36, %v6626_v37  ;;  %3537 = vmatpush.bf16.msrb.mxu3 %v7141_v47  ;;  %v6504_v31 = vld [vmem:[#allocation9 + $0x158] sm:$0xf]  ;;  %v7017_v35 = vor.u32 %v8178_v30, %v7016_v27 }
 0x2ce   : > { %v6850_v41 = vld [vmem:[#allocation9 + $0x430] sm:$0xf0]  ;;  %v8050_v23 = vld [vmem:[#allocation9 + $0x174] sm:$0xf0] }
 0x2cf   : > { %v8005_v45 = vld [vmem:[#allocation9 + $0x14] sm:$0xf]  ;;  %v6853_v18 = vor.u32 %v8133_v38, %v6850_v41  ;;  %3511 = vmatpush.bf16.msrb.mxu1 %v6629_v54  ;;  %v7272_v34 = vld [vmem:[#allocation9 + $0x758] sm:$0xf]  ;;  %v6505_v52 = vor.u32 %v8050_v23, %v6504_v31 }
 0x2d0   : > { %v6338_v29 = vld [vmem:[#allocation9 + $0x30] sm:$0xf0]  ;;  %v8242_v36 = vld [vmem:[#allocation9 + $0x774] sm:$0xf0] }
 0x2d1   : > { %v8197_v59 = vld [vmem:[#allocation9 + $0x614] sm:$0xf]  ;;  %v6341_v51 = vor.u32 %v8005_v45, %v6338_v29  ;;  %3525 = vmatpush.bf16.msrb.mxu2 %v6853_v18  ;;  %v6760_v37 = vld [vmem:[#allocation9 + $0x358] sm:$0xf]  ;;  %v7273_v28 = vor.u32 %v8242_v36, %v7272_v34 }
 0x2d2   : > { %v7106_v26 = vld [vmem:[#allocation9 + $0x630] sm:$0xf0]  ;;  %v8114_v57 = vld [vmem:[#allocation9 + $0x374] sm:$0xf0] }
 0x2d3   : > { %v8069_v48 = vld [vmem:[#allocation9 + $0x214] sm:$0xf]  ;;  %v7109_v53 = vor.u32 %v8197_v59, %v7106_v26  ;;  %3499 = vmatpush.bf16.msrb.mxu0 %v6341_v51  ;;  %v6984_v38 = vld [vmem:[#allocation9 + $0x518] sm:$0xf]  ;;  %v6761_v43 = vor.u32 %v8114_v57, %v6760_v37 }
 0x2d4   : > { %v6594_v49 = vld [vmem:[#allocation9 + $0x230] sm:$0xf0]  ;;  %v8170_v41 = vld [vmem:[#allocation9 + $0x534] sm:$0xf0]  ;;  %3526 = vmatmul.bf16.vlgmr.msrb.gmra.mxu2 %v9068_v62 }
 0x2d5   : > { %v6597_v7 = vor.u32 %v8069_v48, %v6594_v49  ;;  %3570 = vmatpush.bf16.msra.mxu2 %v7081_v42  ;;  %3538 = vmatpush.bf16.msrb.mxu3 %v7109_v53  ;;  %v6472_v11 = vld [vmem:[#allocation9 + $0x118] sm:$0xf]  ;;  %v6985_v45 = vor.u32 %v8170_v41, %v6984_v38  ;;  %v8190_v41 = vld [vmem:[#allocation9 + $0x5dc] sm:$0xf] }
 0x2d6   : > { %3500 = vmatmul.bf16.vlgmr.msrb.gmra.mxu0 %v9070_v63  ;;  %v8042_v17 = vld [vmem:[#allocation9 + $0x134] sm:$0xf0] }
 0x2d7   : > { %3544 = vmatpush.bf16.msra.mxu0 %v6569_v58  ;;  %3512 = vmatpush.bf16.msrb.mxu1 %v6597_v7  ;;  %v7240_v29 = vld [vmem:[#allocation9 + $0x718] sm:$0xf]  ;;  %v6473_v18 = vor.u32 %v8042_v17, %v6472_v11 }
 0x2d8   : > { %3539 = vmatmul.bf16.vlgmr.msrb.gmra.mxu3 %v9072_v2  ;;  %v8234_v47 = vld [vmem:[#allocation9 + $0x734] sm:$0xf0] }
 0x2d9   : > { %3583 = vmatpush.bf16.msra.mxu3 %v7337_v6  ;;  %3571 = vmatpush.bf16.msra.mxu2 %v7049_v12  ;;  %v6728_v59 = vld [vmem:[#allocation9 + $0x318] sm:$0xf]  ;;  %v7241_v55 = vor.u32 %v8234_v47, %v7240_v29 }
 0x2da   : > { %3513 = vmatmul.bf16.vlgmr.msrb.gmra.mxu1 %v9074_v3  ;;  %v8106_v26 = vld [vmem:[#allocation9 + $0x334] sm:$0xf0] }
 0x2db   : > { %3557 = vmatpush.bf16.msra.mxu1 %v6825_v10  ;;  %3545 = vmatpush.bf16.msra.mxu0 %v6537_v25  ;;  %v8162_v54 = vld [vmem:[#allocation9 + $0x4f4] sm:$0xf0]  ;;  %v6729_v42 = vor.u32 %v8106_v26, %v6728_v59  ;;  %v8062_v59 = vld [vmem:[#allocation9 + $0x1dc] sm:$0xf] }
 0x2dc   : > { %v6440_v46 = vld [vmem:[#allocation9 + $0xd8] sm:$0xf]  ;;  %v6953_v48 = vor.u32 %v8162_v54, %v6952_v44  ;;  %v6570_v26 = vld [vmem:[#allocation9 + $0x1f8] sm:$0xf0] }
 0x2dd   : > { %3584 = vmatpush.bf16.msra.mxu3 %v7305_v5  ;;  %3572 = vmatpush.bf16.msra.mxu2 %v7017_v35  ;;  %v8034_v56 = vld [vmem:[#allocation9 + $0xf4] sm:$0xf0]  ;;  %v8254_v44 = vld [vmem:[#allocation9 + $0x7dc] sm:$0xf] }
 0x2de   : > { %v7208_v49 = vld [vmem:[#allocation9 + $0x6d8] sm:$0xf]  ;;  %v6441_v53 = vor.u32 %v8034_v56, %v6440_v46 }
 0x2df   : > { %3558 = vmatpush.bf16.msra.mxu1 %v6793_v33  ;;  %3546 = vmatpush.bf16.msra.mxu0 %v6505_v52  ;;  %v8226_v20 = vld [vmem:[#allocation9 + $0x6f4] sm:$0xf0]  ;;  %v7082_v52 = vld [vmem:[#allocation9 + $0x5f8] sm:$0xf0] }
 0x2e0   : > { %v6696_v51 = vld [vmem:[#allocation9 + $0x2d8] sm:$0xf]  ;;  %v7209_v58 = vor.u32 %v8226_v20, %v7208_v49  ;;  %v7085_v54 = vor.u32 %v8190_v41, %v7082_v52  ;;  %v6573_v20 = vor.u32 %v8062_v59, %v6570_v26  ;;  %v6474_v41 = vld [vmem:[#allocation9 + $0x138] sm:$0xf0] }
 0x2e1   : > { %3585 = vmatpush.bf16.msra.mxu3 %v7273_v28  ;;  %3573 = vmatpush.bf16.msra.mxu2 %v6985_v45  ;;  %v8098_v4 = vld [vmem:[#allocation9 + $0x2f4] sm:$0xf0]  ;;  %v6954_v59 = vld [vmem:[#allocation9 + $0x4f8] sm:$0xf0] }
 0x2e2   : > { %v6920_v60 = vld [vmem:[#allocation9 + $0x498] sm:$0xf]  ;;  %v6697_v8 = vor.u32 %v8098_v4, %v6696_v51  ;;  %v8182_v51 = vld [vmem:[#allocation9 + $0x59c] sm:$0xf] }
 0x2e3   : > { %3559 = vmatpush.bf16.msra.mxu1 %v6761_v43  ;;  %v8154_v15 = vld [vmem:[#allocation9 + $0x4b4] sm:$0xf0]  ;;  %3547 = vmatpush.bf16.msra.mxu0 %v6473_v18  ;;  %v7338_v18 = vld [vmem:[#allocation9 + $0x7f8] sm:$0xf0] }
 0x2e4   : > { %v6408_v6 = vld [vmem:[#allocation9 + $0x98] sm:$0xf]  ;;  %v6921_v9 = vor.u32 %v8154_v15, %v6920_v60  ;;  %v7050_v4 = vld [vmem:[#allocation9 + $0x5b8] sm:$0xf0]  ;;  %v7341_v60 = vor.u32 %v8254_v44, %v7338_v18 }
 0x2e5   : > { %3586 = vmatpush.bf16.msra.mxu3 %v7241_v55  ;;  %v8026_v7 = vld [vmem:[#allocation9 + $0xb4] sm:$0xf0]  ;;  %3574 = vmatpush.bf16.msra.mxu2 %v6953_v48  ;;  %v6826_v48 = vld [vmem:[#allocation9 + $0x3f8] sm:$0xf0] }
 0x2e6   : > { %v7176_v10 = vld [vmem:[#allocation9 + $0x698] sm:$0xf]  ;;  %v6409_v27 = vor.u32 %v8026_v7, %v6408_v6  ;;  %v8246_v7 = vld [vmem:[#allocation9 + $0x79c] sm:$0xf] }
 0x2e7   : > { %3560 = vmatpush.bf16.msra.mxu1 %v6729_v42  ;;  %v8218_v12 = vld [vmem:[#allocation9 + $0x6b4] sm:$0xf0]  ;;  %3548 = vmatpush.bf16.msra.mxu0 %v6441_v53  ;;  %v8126_v42 = vld [vmem:[#allocation9 + $0x3dc] sm:$0xf] }
 0x2e8   : > { %v6664_v14 = vld [vmem:[#allocation9 + $0x298] sm:$0xf]  ;;  %v7177_v30 = vor.u32 %v8218_v12, %v7176_v10  ;;  %v8054_v53 = vld [vmem:[#allocation9 + $0x19c] sm:$0xf]  ;;  %v6829_v6 = vor.u32 %v8126_v42, %v6826_v48 }
 0x2e9   : > { %v8090_v50 = vld [vmem:[#allocation9 + $0x2b4] sm:$0xf0]  ;;  %3587 = vmatpush.bf16.msra.mxu3 %v7209_v58  ;;  %3575 = vmatpush.bf16.msra.mxu2 %v6921_v9  ;;  %v6538_v58 = vld [vmem:[#allocation9 + $0x1b8] sm:$0xf0]  ;;  %v7053_v9 = vor.u32 %v8182_v51, %v7050_v4 }
 0x2ea   : > { %v6888_v21 = vld [vmem:[#allocation9 + $0x458] sm:$0xf]  ;;  %v6665_v31 = vor.u32 %v8090_v50, %v6664_v14  ;;  %v8118_v10 = vld [vmem:[#allocation9 + $0x39c] sm:$0xf]  ;;  %v6541_v14 = vor.u32 %v8054_v53, %v6538_v58 }
 0x2eb   : > { %v8146_v24 = vld [vmem:[#allocation9 + $0x474] sm:$0xf0]  ;;  %3561 = vmatpush.bf16.msra.mxu1 %v6697_v8  ;;  %3549 = vmatpush.bf16.msra.mxu0 %v6409_v27  ;;  %v7306_v8 = vld [vmem:[#allocation9 + $0x7b8] sm:$0xf0] }
 0x2ec   : > { %v6376_v25 = vld [vmem:[#allocation9 + $0x58] sm:$0xf]  ;;  %v6889_v23 = vor.u32 %v8146_v24, %v6888_v21  ;;  %v6794_v12 = vld [vmem:[#allocation9 + $0x3b8] sm:$0xf0]  ;;  %v7309_v24 = vor.u32 %v8246_v7, %v7306_v8 }
 0x2ed   : > { %v8018_v5 = vld [vmem:[#allocation9 + $0x74] sm:$0xf0]  ;;  %3588 = vmatpush.bf16.msra.mxu3 %v7177_v30  ;;  %v8174_v50 = vld [vmem:[#allocation9 + $0x55c] sm:$0xf] }
 0x2ee   : > { %v7144_v33 = vld [vmem:[#allocation9 + $0x658] sm:$0xf]  ;;  %v6377_v38 = vor.u32 %v8018_v5, %v6376_v25  ;;  %3576 = vmatpush.bf16.msra.mxu2 %v6889_v23  ;;  %v7018_v21 = vld [vmem:[#allocation9 + $0x578] sm:$0xf0]  ;;  %v6797_v25 = vor.u32 %v8118_v10, %v6794_v12 }
 0x2ef   : > { %v8210_v35 = vld [vmem:[#allocation9 + $0x674] sm:$0xf0]  ;;  %3562 = vmatpush.bf16.msra.mxu1 %v6665_v31  ;;  %v8046_v27 = vld [vmem:[#allocation9 + $0x15c] sm:$0xf]  ;;  %v7021_v23 = vor.u32 %v8174_v50, %v7018_v21 }
 0x2f0   : > { %v6632_v34 = vld [vmem:[#allocation9 + $0x258] sm:$0xf]  ;;  %v7145_v11 = vor.u32 %v8210_v35, %v7144_v33  ;;  %3550 = vmatpush.bf16.msra.mxu0 %v6377_v38  ;;  %v6506_v30 = vld [vmem:[#allocation9 + $0x178] sm:$0xf0] }
 0x2f1   : > { %v8082_v36 = vld [vmem:[#allocation9 + $0x274] sm:$0xf0]  ;;  %v8238_v5 = vld [vmem:[#allocation9 + $0x75c] sm:$0xf] }
 0x2f2   : > { %v6856_v37 = vld [vmem:[#allocation9 + $0x418] sm:$0xf]  ;;  %v6633_v29 = vor.u32 %v8082_v36, %v6632_v34  ;;  %3589 = vmatpush.bf16.msra.mxu3 %v7145_v11  ;;  %v7274_v31 = vld [vmem:[#allocation9 + $0x778] sm:$0xf0]  ;;  %v6509_v34 = vor.u32 %v8046_v27, %v6506_v30 }
 0x2f3   : > { %v8138_v57 = vld [vmem:[#allocation9 + $0x434] sm:$0xf0]  ;;  %v8110_v33 = vld [vmem:[#allocation9 + $0x35c] sm:$0xf] }
 0x2f4   : > { %v6344_v28 = vld [vmem:[#allocation9 + $0x18] sm:$0xf]  ;;  %v6857_v47 = vor.u32 %v8138_v57, %v6856_v37  ;;  %3563 = vmatpush.bf16.msra.mxu1 %v6633_v29  ;;  %v6762_v35 = vld [vmem:[#allocation9 + $0x378] sm:$0xf0]  ;;  %v7277_v57 = vor.u32 %v8238_v5, %v7274_v31 }
 0x2f5   : > { %v8010_v17 = vld [vmem:[#allocation9 + $0x34] sm:$0xf0]  ;;  %v8166_v36 = vld [vmem:[#allocation9 + $0x51c] sm:$0xf]  ;;  %v6765_v52 = vor.u32 %v8110_v33, %v6762_v35 }
 0x2f6   : > { %v7112_v43 = vld [vmem:[#allocation9 + $0x618] sm:$0xf]  ;;  %v6345_v56 = vor.u32 %v8010_v17, %v6344_v28  ;;  %3577 = vmatpush.bf16.msra.mxu2 %v6857_v47  ;;  %v6986_v37 = vld [vmem:[#allocation9 + $0x538] sm:$0xf0] }
 0x2f7   : > { %v8202_v45 = vld [vmem:[#allocation9 + $0x634] sm:$0xf0]  ;;  %v8038_v38 = vld [vmem:[#allocation9 + $0x11c] sm:$0xf]  ;;  %v6989_v17 = vor.u32 %v8166_v36, %v6986_v37 }
 0x2f8   : > { %v6600_v55 = vld [vmem:[#allocation9 + $0x218] sm:$0xf]  ;;  %v7113_v49 = vor.u32 %v8202_v45, %v7112_v43  ;;  %3551 = vmatpush.bf16.msra.mxu0 %v6345_v56  ;;  %v8230_v28 = vld [vmem:[#allocation9 + $0x71c] sm:$0xf]  ;;  %v6477_v29 = vor.u32 %v8038_v38, %v6474_v41 }
 0x2f9   : > { %v8074_v46 = vld [vmem:[#allocation9 + $0x234] sm:$0xf0]  ;;  %3578 = vmatmul.bf16.vlgmr.msra.gmra.mxu2 %v9068_v62  ;;  %v7242_v11 = vld [vmem:[#allocation9 + $0x738] sm:$0xf0] }
 0x2fa   : > { %v6601_v15 = vor.u32 %v8074_v46, %v6600_v55  ;;  %3622 = vmatpush.bf16.msrb.mxu2 %v7085_v54  ;;  %3590 = vmatpush.bf16.msra.mxu3 %v7113_v49  ;;  %v8102_v43 = vld [vmem:[#allocation9 + $0x31c] sm:$0xf]  ;;  %v7245_v26 = vor.u32 %v8230_v28, %v7242_v11 }
 0x2fb   : > { %3552 = vmatmul.bf16.vlgmr.msra.gmra.mxu0 %v9070_v63  ;;  %v6730_v45 = vld [vmem:[#allocation9 + $0x338] sm:$0xf0] }
 0x2fc   : > { %3596 = vmatpush.bf16.msrb.mxu0 %v6573_v20  ;;  %3564 = vmatpush.bf16.msra.mxu1 %v6601_v15  ;;  %v8158_v47 = vld [vmem:[#allocation9 + $0x4dc] sm:$0xf]  ;;  %v6733_v18 = vor.u32 %v8102_v43, %v6730_v45 }
 0x2fd   : > { %3591 = vmatmul.bf16.vlgmr.msra.gmra.mxu3 %v9072_v2  ;;  %v8030_v44 = vld [vmem:[#allocation9 + $0xdc] sm:$0xf]  ;;  %v6957_v56 = vor.u32 %v8158_v47, %v6954_v59 }
 0x2fe   : > { %3635 = vmatpush.bf16.msrb.mxu3 %v7341_v60  ;;  %3623 = vmatpush.bf16.msrb.mxu2 %v7053_v9  ;;  %v6442_v54 = vld [vmem:[#allocation9 + $0xf8] sm:$0xf0] }
 0x2ff   : > { %3565 = vmatmul.bf16.vlgmr.msra.gmra.mxu1 %v9074_v3  ;;  %v8222_v55 = vld [vmem:[#allocation9 + $0x6dc] sm:$0xf]  ;;  %v6445_v49 = vor.u32 %v8030_v44, %v6442_v54  ;;  %v3814_v44 = vperm.slane %v9137_v22, %v9143_v19  ;;  %v3826_v54 = vperm.slane %v9218_v61, %v9143_v19 }
 0x300   : > { %3609 = vmatpush.bf16.msrb.mxu1 %v6829_v6  ;;  %3597 = vmatpush.bf16.msrb.mxu0 %v6541_v14  ;;  %v7210_v46 = vld [vmem:[#allocation9 + $0x6f8] sm:$0xf0] }
 0x301   : > { %v8094_v42 = vld [vmem:[#allocation9 + $0x2dc] sm:$0xf]  ;;  %v7213_v4 = vor.u32 %v8222_v55, %v7210_v46 }
 0x302   : > { %3636 = vmatpush.bf16.msrb.mxu3 %v7309_v24  ;;  %3624 = vmatpush.bf16.msrb.mxu2 %v7021_v23  ;;  %v6698_v48 = vld [vmem:[#allocation9 + $0x2f8] sm:$0xf0] }
 0x303   : > { %v8150_v20 = vld [vmem:[#allocation9 + $0x49c] sm:$0xf]  ;;  %v6701_v53 = vor.u32 %v8094_v42, %v6698_v48  ;;  %v3835_v42 = vrot.slane %v3814_v44, 4 }
 0x304   : > { %3610 = vmatpush.bf16.msrb.mxu1 %v6797_v25  ;;  %3598 = vmatpush.bf16.msrb.mxu0 %v6509_v34  ;;  %v6922_v51 = vld [vmem:[#allocation9 + $0x4b8] sm:$0xf0] }
 0x305   : > { %v8022_v60 = vld [vmem:[#allocation9 + $0x9c] sm:$0xf]  ;;  %v6925_v7 = vor.u32 %v8150_v20, %v6922_v51 }
 0x306   : > { %3637 = vmatpush.bf16.msrb.mxu3 %v7277_v57  ;;  %3625 = vmatpush.bf16.msrb.mxu2 %v6989_v17  ;;  %v6410_v15 = vld [vmem:[#allocation9 + $0xb8] sm:$0xf0] }
 0x307   : > { %v8214_v58 = vld [vmem:[#allocation9 + $0x69c] sm:$0xf]  ;;  %v6413_v10 = vor.u32 %v8022_v60, %v6410_v15 }
 0x308   : > { %3611 = vmatpush.bf16.msrb.mxu1 %v6765_v52  ;;  %3599 = vmatpush.bf16.msrb.mxu0 %v6477_v29  ;;  %v7178_v6 = vld [vmem:[#allocation9 + $0x6b8] sm:$0xf0] }
 0x309   : > { %v8086_v8 = vld [vmem:[#allocation9 + $0x29c] sm:$0xf]  ;;  %v7181_v50 = vor.u32 %v8214_v58, %v7178_v6 }
 0x30a   : > { %3638 = vmatpush.bf16.msrb.mxu3 %v7245_v26  ;;  %3626 = vmatpush.bf16.msrb.mxu2 %v6957_v56  ;;  %v6666_v9 = vld [vmem:[#allocation9 + $0x2b8] sm:$0xf0] }
 0x30b   : > { %v8142_v12 = vld [vmem:[#allocation9 + $0x45c] sm:$0xf]  ;;  %v6669_v27 = vor.u32 %v8086_v8, %v6666_v9 }
 0x30c   : > { %3612 = vmatpush.bf16.msrb.mxu1 %v6733_v18  ;;  %3600 = vmatpush.bf16.msrb.mxu0 %v6445_v49  ;;  %v6890_v14 = vld [vmem:[#allocation9 + $0x478] sm:$0xf0] }
 0x30d   : > { %v8014_v21 = vld [vmem:[#allocation9 + $0x5c] sm:$0xf]  ;;  %v6893_v5 = vor.u32 %v8142_v12, %v6890_v14 }
 0x30e   : > { %3639 = vmatpush.bf16.msrb.mxu3 %v7213_v4  ;;  %v6378_v24 = vld [vmem:[#allocation9 + $0x78] sm:$0xf0]  ;;  %3627 = vmatpush.bf16.msrb.mxu2 %v6925_v7 }
 0x30f   : > { %v8206_v30 = vld [vmem:[#allocation9 + $0x65c] sm:$0xf]  ;;  %v6381_v33 = vor.u32 %v8014_v21, %v6378_v24 }
 0x310   : > { %3613 = vmatpush.bf16.msrb.mxu1 %v6701_v53  ;;  %v7146_v25 = vld [vmem:[#allocation9 + $0x678] sm:$0xf0]  ;;  %3601 = vmatpush.bf16.msrb.mxu0 %v6413_v10 }
 0x311   : > { %v8078_v31 = vld [vmem:[#allocation9 + $0x25c] sm:$0xf]  ;;  %v7149_v36 = vor.u32 %v8206_v30, %v7146_v25 }
 0x312   : > { %v6634_v23 = vld [vmem:[#allocation9 + $0x278] sm:$0xf0]  ;;  %3640 = vmatpush.bf16.msrb.mxu3 %v7181_v50  ;;  %3628 = vmatpush.bf16.msrb.mxu2 %v6893_v5 }
 0x313   : > { %v8134_v35 = vld [vmem:[#allocation9 + $0x41c] sm:$0xf]  ;;  %v6637_v38 = vor.u32 %v8078_v31, %v6634_v23 }
 0x314   : > { %v6858_v34 = vld [vmem:[#allocation9 + $0x438] sm:$0xf0]  ;;  %3614 = vmatpush.bf16.msrb.mxu1 %v6669_v27  ;;  %3602 = vmatpush.bf16.msrb.mxu0 %v6381_v33 }
 0x315   : > { %v8006_v37 = vld [vmem:[#allocation9 + $0x1c] sm:$0xf]  ;;  %v6861_v28 = vor.u32 %v8134_v35, %v6858_v34 }
 0x316   : > { %v6346_v57 = vld [vmem:[#allocation9 + $0x38] sm:$0xf0]  ;;  %3641 = vmatpush.bf16.msrb.mxu3 %v7149_v36  ;;  %v9283_v36 = vld [vmem:[#allocation10] sm:$0xff] }
 0x317   : > { %v8198_v41 = vld [vmem:[#allocation9 + $0x61c] sm:$0xf]  ;;  %v6349_v43 = vor.u32 %v8006_v37, %v6346_v57  ;;  %3629 = vmatpush.bf16.msrb.mxu2 %v6861_v28  ;;  %v1940_v37 = vperm.slane %v9283_v36, 4 }
 0x318   : > { %v7114_v52 = vld [vmem:[#allocation9 + $0x638] sm:$0xf0]  ;;  %3615 = vmatpush.bf16.msrb.mxu1 %v6637_v38 }
 0x319   : > { %v8070_v11 = vld [vmem:[#allocation9 + $0x21c] sm:$0xf]  ;;  %v7117_v45 = vor.u32 %v8198_v41, %v7114_v52  ;;  %3603 = vmatpush.bf16.msrb.mxu0 %v6349_v43 }
 0x31a   : > { %v6602_v17 = vld [vmem:[#allocation9 + $0x238] sm:$0xf0]  ;;  %3630 = vmatmul.bf16.vlgmr.msrb.gmra.mxu2 %v9068_v62 }
 0x31b   : > { %v6605_v29 = vor.u32 %v8070_v11, %v6602_v17  ;;  %3642 = vmatpush.bf16.msrb.mxu3 %v7117_v45  ;;  %v9290_v11 = vperm.slane %v9223_v39, %v9163_v40 }
 0x31c   : > { %3604 = vmatmul.bf16.vlgmr.msrb.gmra.mxu0 %v9070_v63 }
 0x31d   : > { %3616 = vmatpush.bf16.msrb.mxu1 %v6605_v29 }
 0x31e   : > { %3643 = vmatmul.bf16.vlgmr.msrb.gmra.mxu3 %v9072_v2 }
 0x320   : > { %3617 = vmatmul.bf16.vlgmr.msrb.gmra.mxu1 %v9074_v3  ;;  %v3847_v3 = vrot.slane %v3826_v54, 4 }
 0x325   : > { %v3449_v57 = vpop.f32.mrf.mxu0 }
 0x326   : > { %v3450_v17 = vadd.f32 %v3449_v57, %v1940_v37 }
 0x334   : > { %v8487_v47 = vpop.permute.xlu1 %8486 }
 0x335   : > { %v8489_v59 = vunpack.i.h.bf16 %v8487_v47  ;;  %v8488_v26 = vunpack.i.l.bf16 %v8487_v47 }
 0x337   : > { %v3815_v55 = vrot.slane %v8489_v59, 4  ;;  %v3827_v46 = vrot.slane %v8488_v26, 4 }
 0x33c   : > { %v8492_v18 = vpop.permute.xlu1 %8491 }
 0x33d   : > { %v8494_v62 = vunpack.i.h.bf16 %v8492_v18  ;;  %v8493_v56 = vunpack.i.l.bf16 %v8492_v18  ;;  %v3475_v18 = vpop.f32.mrf.mxu2 }
 0x33f   : > { %v3816_v63 = vsel %vm3673_vm8, %v3815_v55, %v8494_v62  ;;  %v3828_v2 = vsel %vm3673_vm8, %v3827_v46, %v8493_v56  ;;  %v3488_v62 = vpop.f32.mrf.mxu3 }
 0x340   : > { %v3820_v48 = vperm.slane %v3816_v63, %v9143_v19  ;;  %v3832_v49 = vperm.slane %v3828_v2, %v9143_v19 }
 0x342   : > { %v3833_v20 = vrot.slane %v3820_v48, 4  ;;  %v3836_v22 = vsel %vm3673_vm8, %v3820_v48, %v3835_v42  ;;  %v3845_v51 = vrot.slane %v3832_v49, 4  ;;  %v3848_v61 = vsel %vm3673_vm8, %v3832_v49, %v3847_v3 }
 0x343   : > { %v3844_v4 = vperm.slane %v3836_v22, %v9163_v40  ;;  %v3856_v60 = vperm.slane %v3848_v61, %v9163_v40  ;;  %v3777_v49 = vrot.slane %v9290_v11, 4 }
 0x344   : > { %v3834_v15 = vsel %vm3673_vm8, %v3833_v20, %v3814_v44  ;;  %v3846_v53 = vsel %vm3673_vm8, %v3845_v51, %v3826_v54  ;;  %v3764_v44 = vperm.slane %v9227_v16, %v9163_v40  ;;  %v3462_v54 = vpop.f32.mrf.mxu1 }
 0x345   : > { %v3840_v58 = vperm.slane %v3834_v15, %v9163_v40  ;;  %v3852_v6 = vperm.slane %v3846_v53, %v9163_v40  ;;  %v3861_v7 = vrot.slane %v3856_v60, 4  ;;  %v3863_v8 = vrot.slane %v3844_v4, 4 }
 0x346   : > { %v3463_v46 = vadd.f32 %v3462_v54, %v3450_v17  ;;  %v3787_v37 = vpack.c.bf16 %v3764_v44, %v3764_v44  ;;  %v3778_v57 = vsel %vm3673_vm8, 0.0, %v3777_v49 }
 0x347   : > { %v3857_v9 = vrot.slane %v3852_v6, 4  ;;  %v3859_v10 = vrot.slane %v3840_v58, 4  ;;  %v3862_v12 = vsel %vm3673_vm8, %v3861_v7, %v3844_v4  ;;  %v3864_v14 = vsel %vm3673_vm8, %v3856_v60, %v3863_v8  ;;  %v3451_v4 = vpop.f32.mrf.mxu0 }
 0x348   : > { %v3865_v50 = vrot.slane %v3862_v12, 4  ;;  %v3877_v21 = vrot.slane %v3864_v14, 4  ;;  %v3476_v16 = vadd.f32 %v3475_v18, %v3463_v46 }
 0x349   : > { %v3858_v24 = vsel %vm3673_vm8, %v3857_v9, %v3840_v58  ;;  %v3860_v27 = vsel %vm3673_vm8, %v3852_v6, %v3859_v10 }
 0x34a   : > { %v3866_v30 = vsel %vm3673_vm8, %v3865_v50, %v3858_v24  ;;  %v3867_v25 = vrot.slane %v3858_v24, 4  ;;  %v3878_v5 = vsel %vm3673_vm8, %v3877_v21, %v3860_v27  ;;  %v3879_v31 = vrot.slane %v3860_v27, 4 }
 0x34b   : > { %v3872_v23 = vperm.slane %v3866_v30, %v9143_v19  ;;  %v3884_v33 = vperm.slane %v3878_v5, %v9143_v19  ;;  %v9311_v50 = vadd.f32 %v3488_v62, %v3476_v16  ;;  %v3477_v5 = vpop.f32.mrf.mxu2 }
 0x34c   : > { %v3868_v35 = vsel %vm3673_vm8, %v3862_v12, %v3867_v25  ;;  %v3880_v34 = vsel %vm3673_vm8, %v3864_v14, %v3879_v31  ;;  %v3779_v14 = vrot.slane %v3764_v44, 4  ;;  %v3464_v25 = vpop.f32.mrf.mxu1  ;;  %v3490_v31 = vpop.f32.mrf.mxu3 }
 0x34d   : > { %v3889_v38 = vrot.slane %v3884_v33, 4  ;;  %v3891_v41 = vrot.slane %v3872_v23, 4  ;;  %v3876_v52 = vperm.slane %v3868_v35, %v9143_v19  ;;  %v3888_v28 = vperm.slane %v3880_v34, %v9143_v19 }
 0x34e   : > { %v3785_v34 = vpack.c.bf16 %v9290_v11, %v9290_v11 }
 0x34f   : > { %v3890_v43 = vsel %vm3673_vm8, %v3889_v38, %v3872_v23  ;;  %v3892_v45 = vsel %vm3673_vm8, %v3884_v33, %v3891_v41  ;;  %v3901_v29 = vrot.slane %v3888_v28, 4  ;;  %v3903_v47 = vrot.slane %v3876_v52, 4 }
 0x350   : > { %v3896_v59 = vperm.slane %v3890_v43, %v9163_v40  ;;  %v3900_v26 = vperm.slane %v3892_v45, %v9163_v40  ;;  %v1941_v23 = vperm.slane %v9283_v36, 5  ;;  %v3780_v38 = vsel %vm3673_vm8, 0.0, %v3779_v14 }
 0x351   : > { %v3902_v39 = vsel %vm3673_vm8, %v3901_v29, %v3876_v52  ;;  %v3904_v55 = vsel %vm3673_vm8, %v3888_v28, %v3903_v47  ;;  %v3786_v28 = vpack.c.bf16 %v3778_v57, %v3778_v57  ;;  %v3788_v17 = vpack.c.bf16 %v3780_v38, %v3780_v38 }
 0x352   : > { %v3921_v56 = vpack.c.bf16 %v3896_v59, %v3896_v59  ;;  %v3923_v63 = vpack.c.bf16 %v3900_v26, %v3900_v26  ;;  %v3908_v2 = vperm.slane %v3902_v39, %v9163_v40  ;;  %v3912_v42 = vperm.slane %v3904_v55, %v9163_v40 }
 0x353   : > { %v3913_v3 = vrot.slane %v3896_v59, 4  ;;  %v3915_v48 = vrot.slane %v3900_v26, 4  ;;  %v3501_v41 = vpop.f32.mrf.mxu0  ;;  %v3772_v47 = vperm.slane %v9237_v32, %v9163_v40  ;;  %v3776_v59 = vperm.slane %v9243_v13, %v9163_v40 }
 0x354   : > { %v4070_v20 = vsel %vm4065_vm9, %v3921_v56, 0  ;;  %v4108_v22 = vsel %vm4065_vm9, %v3923_v63, 0  ;;  %v3925_v51 = vpack.c.bf16 %v3908_v2, %v3908_v2  ;;  %v3927_v61 = vpack.c.bf16 %v3912_v42, %v3912_v42 }
 0x355   : > { %4079 = vmatpush.bf16.xpose.msra.mxu0 %v4070_v20  ;;  %4117 = vmatpush.bf16.xpose.msra.mxu2 %v4108_v22  ;;  %v3914_v60 = vsel %vm3673_vm8, 0.0, %v3913_v3  ;;  %v3916_v15 = vsel %vm3673_vm8, 0.0, %v3915_v48  ;;  %v3917_v53 = vrot.slane %v3908_v2, 4  ;;  %v3919_v58 = vrot.slane %v3912_v42, 4 }
 0x356   : > { %v4146_v6 = vsel %vm4065_vm9, %v3925_v51, 0  ;;  %v4184_v7 = vsel %vm4065_vm9, %v3927_v61, 0  ;;  %v3922_v8 = vpack.c.bf16 %v3914_v60, %v3914_v60  ;;  %v3924_v9 = vpack.c.bf16 %v3916_v15, %v3916_v15 }
 0x357   : > { %v3918_v10 = vsel %vm3673_vm8, 0.0, %v3917_v53  ;;  %v3920_v12 = vsel %vm3673_vm8, 0.0, %v3919_v58  ;;  %v3502_v52 = vadd.f32 %v3501_v41, %v1941_v23  ;;  %v3514_v11 = vpop.f32.mrf.mxu1  ;;  %v3527_v43 = vpop.f32.mrf.mxu2  ;;  %v3781_v18 = vrot.slane %v3772_v47, 4  ;;  %v3649_v41 = vld [vmem:[%s9606_s0 + $0x4] sm:$0xf] }
 0x358   : > { %v4089_v21 = vsel %vm4065_vm9, %v3922_v8, 0  ;;  %v4127_v24 = vsel %vm4065_vm9, %v3924_v9, 0  ;;  %v3926_v27 = vpack.c.bf16 %v3918_v10, %v3918_v10  ;;  %v3928_v30 = vpack.c.bf16 %v3920_v12, %v3920_v12 }
 0x359   : > { %4098 = vmatpush.bf16.xpose.msra.mxu1 %v4089_v21  ;;  %4136 = vmatpush.bf16.xpose.msra.mxu3 %v4127_v24  ;;  %v3515_v45 = vadd.f32 %v3514_v11, %v3502_v52  ;;  %v3783_v39 = vrot.slane %v3776_v59, 4  ;;  %v3789_v2 = vpack.c.bf16 %v3772_v47, %v3772_v47  ;;  %v3791_v32 = vpack.c.bf16 %v3776_v59, %v3776_v59  ;;  %v3651_v59 = vld [vmem:[%s9606_s0 + $0xc] sm:$0xf] }
 0x35a   : > { %v4165_v33 = vsel %vm4065_vm9, %v3926_v27, 0  ;;  %v4203_v35 = vsel %vm4065_vm9, %v3928_v30, 0  ;;  %v3782_v42 = vsel %vm3673_vm8, 0.0, %v3781_v18  ;;  %v1942_v3 = vperm.slane %v9283_v36, 6 }
 0x35b   : > { %v3540_v29 = vpop.f32.mrf.mxu3  ;;  %v3528_v26 = vadd.f32 %v3527_v43, %v3515_v45  ;;  %v3503_v44 = vpop.f32.mrf.mxu0  ;;  %v3784_v13 = vsel %vm3673_vm8, 0.0, %v3783_v39  ;;  %v3790_v48 = vpack.c.bf16 %v3782_v42, %v3782_v42  ;;  %v1943_v9 = vperm.slane %v9283_v36, 7  ;;  %v3648_v36 = vld [vmem:[%s9606_s0] sm:$0xf] }
 0x35c   : > { %7342 = vmatmul.msk.bf16.vlgmr.msra.gmra.mxu0 %vm4065_vm9, %v3785_v34  ;;  %7344 = vmatmul.msk.bf16.vlgmr.msra.gmra.mxu2 %vm4065_vm9, %v3787_v37  ;;  %v3792_v49 = vpack.c.bf16 %v3784_v13, %v3784_v13  ;;  %vm4226_vm10 = vcmp.eq.f32.partialorder %v3648_v36, 0.0  ;;  %vm4227_vm12 = vcmp.eq.f32.partialorder %v3649_v41, 0.0  ;;  %vm4229_vm14 = vcmp.eq.f32.partialorder %v3651_v59, 0.0  ;;  %v3654_v13 = vld [vmem:[%s9606_s0 + $0x18] sm:$0xf] }
 0x35d   : > { %4155 = vmatpush.bf16.xpose.msrb.mxu0 %v4146_v6  ;;  %4193 = vmatpush.bf16.xpose.msrb.mxu2 %v4184_v7  ;;  %v9330_v54 = vadd.f32 %v3540_v29, %v3528_v26  ;;  %vm4232_vm15 = vcmp.eq.f32.partialorder %v3654_v13, 0.0 }
 0x35f   : > { %v3945_v55 = vrot.slane %v9330_v54, 4  ;;  %v3516_v46 = vpop.f32.mrf.mxu1  ;;  %v3529_v62 = vpop.f32.mrf.mxu2 }
 0x360   : > { %7343 = vmatmul.msk.bf16.vlgmr.msra.gmra.mxu1 %vm4065_vm9, %v3786_v28  ;;  %7345 = vmatmul.msk.bf16.vlgmr.msra.gmra.mxu3 %vm4065_vm9, %v3788_v17  ;;  %v3650_v28 = vld [vmem:[%s9606_s0 + $0x8] sm:$0xf] }
 0x361   : > { %4174 = vmatpush.bf16.xpose.msrb.mxu1 %v4165_v33  ;;  %4212 = vmatpush.bf16.xpose.msrb.mxu3 %v4203_v35  ;;  %v9335_v56 = vsel %vm3673_vm8, %v3945_v55, %v9311_v50  ;;  %vm4228_vm13 = vcmp.eq.f32.partialorder %v3650_v28, 0.0 }
 0x363   : > { %v3542_v63 = vpop.f32.mrf.mxu3 }
 0x36c   : > { %7346 = vmatmul.msk.bf16.vlgmr.msrb.gmra.mxu0 %vm4065_vm9, %v3789_v2  ;;  %7348 = vmatmul.msk.bf16.vlgmr.msrb.gmra.mxu2 %vm4065_vm9, %v3791_v32 }
 0x370   : > { %7347 = vmatmul.msk.bf16.vlgmr.msrb.gmra.mxu1 %vm4065_vm9, %v3790_v48  ;;  %7349 = vmatmul.msk.bf16.vlgmr.msrb.gmra.mxu3 %vm4065_vm9, %v3792_v49 }
 0x378   : > { %v3553_v16 = vpop.f32.mrf.mxu0 }
 0x379   : > { %v3554_v20 = vadd.f32 %v3553_v16, %v1942_v3 }
 0x37c   : > { %v3566_v22 = vpop.f32.mrf.mxu1  ;;  %v3579_v61 = vpop.f32.mrf.mxu2 }
 0x37d   : > { %v3567_v51 = vadd.f32 %v3566_v22, %v3554_v20  ;;  %v3655_v22 = vld [vmem:[%s9606_s0 + $0x1c] sm:$0xf] }
 0x37e   : > { %vm4233_vm1 = vcmp.eq.f32.partialorder %v3655_v22, 0.0 }
 0x37f   : > { %v3580_v4 = vadd.f32 %v3579_v61, %v3567_v51 }
 0x380   : > { %v3592_v60 = vpop.f32.mrf.mxu3  ;;  %v3555_v53 = vpop.f32.mrf.mxu0 }
 0x381   : > { %v9344_v15 = vadd.f32 %v3592_v60, %v3580_v4 }
 0x383   : > { %v8510_v58 = vpack.i.bf16 %v9311_v50, %v9344_v15 }
 0x384   : > { %v3568_v6 = vpop.f32.mrf.mxu1  ;;  %v3581_v7 = vpop.f32.mrf.mxu2 }
 0x385   : > { %v3653_v7 = vld [vmem:[%s9606_s0 + $0x14] sm:$0xf] }
 0x386   : > { %vm4231_vm2 = vcmp.eq.f32.partialorder %v3653_v7, 0.0 }
 0x388   : > { %v3594_v8 = vpop.f32.mrf.mxu3 }
 0x399   : > { %v3605_v10 = vpop.f32.mrf.mxu0 }
 0x39a   : > { %v3606_v12 = vadd.f32 %v3605_v10, %v1943_v9 }
 0x39d   : > { %v3618_v14 = vpop.f32.mrf.mxu1  ;;  %v3631_v24 = vpop.f32.mrf.mxu2 }
 0x39e   : > { %v3619_v21 = vadd.f32 %v3618_v14, %v3606_v12  ;;  %v3652_v14 = vld [vmem:[%s9606_s0 + $0x10] sm:$0xf] }
 0x39f   : > { %vm4230_vm3 = vcmp.eq.f32.partialorder %v3652_v14, 0.0 }
 0x3a0   : > { %v3632_v27 = vadd.f32 %v3631_v24, %v3619_v21 }
 0x3a1   : > { %v3644_v30 = vpop.f32.mrf.mxu3  ;;  %v3607_v5 = vpop.f32.mrf.mxu0 }
 0x3a2   : > { %v3645_v25 = vadd.f32 %v3644_v30, %v3632_v27 }
 0x3a4   : > { %v3957_v31 = vrot.slane %v3645_v25, 4  ;;  %v8505_v23 = vpack.i.bf16 %v9330_v54, %v3645_v25 }
 0x3a5   : > { %v3620_v33 = vpop.f32.mrf.mxu1  ;;  %v3633_v34 = vpop.f32.mrf.mxu2 }
 0x3a6   : > { %v9352_v35 = vsel %vm3673_vm8, %v3957_v31, %v9344_v15 }
 0x3a9   : > { %v3646_v37 = vpop.f32.mrf.mxu3 }
 0x3d9   : > { %v4081_v57 = vpop.f32.mrf.mxu0 }
 0x3da   : > { %v4218_v38 = vmul.f32 0.125, %v4081_v57 }
 0x3dc   : > { %v9360_v52 = vsel %vm4226_vm10, -1e+09, %v4218_v38 }
 0x3dd   : > { %v4100_v17 = vpop.f32.mrf.mxu1  ;;  %v4243_v11 = vsel %vm4242_vm11, %v9360_v52, -inf }
 0x3de   : > { %v4219_v43 = vmul.f32 0.125, %v4100_v17  ;;  %4244 = vmax.xlane.f32.xlu0 %v4243_v11 }
 0x3df   : > { %v4119_v45 = vpop.f32.mrf.mxu2 }
 0x3e0   : > { %v4220_v29 = vmul.f32 0.125, %v4119_v45  ;;  %v9367_v47 = vsel %vm4227_vm12, -1e+09, %v4219_v43 }
 0x3e1   : > { %v4083_v26 = vpop.f32.mrf.mxu0  ;;  %v4246_v44 = vsel %vm4242_vm11, %v9367_v47, -inf }
 0x3e2   : > { %4247 = vmax.xlane.f32.xlu2 %v4246_v44  ;;  %v4236_v54 = vsel %vm4228_vm13, -1e+09, %v4220_v29 }
 0x3e3   : > { %v4138_v18 = vpop.f32.mrf.mxu3  ;;  %v4249_v39 = vsel %vm4242_vm11, %v4236_v54, -inf }
 0x3e4   : > { %v4221_v55 = vmul.f32 0.125, %v4138_v18  ;;  %4250 = vmax.xlane.f32.xlu1 %v4249_v39 }
 0x3e5   : > { %v4102_v46 = vpop.f32.mrf.mxu1 }
 0x3e6   : > { %v4237_v62 = vsel %vm4229_vm14, -1e+09, %v4221_v55 }
 0x3e7   : > { %v4121_v63 = vpop.f32.mrf.mxu2  ;;  %v4252_v2 = vsel %vm4242_vm11, %v4237_v62, -inf }
 0x3e8   : > { %4253 = vmax.xlane.f32.xlu0 %v4252_v2 }
 0x3e9   : > { %v4157_v32 = vpop.f32.mrf.mxu0 }
 0x3ea   : > { %v4222_v24 = vmul.f32 0.125, %v4157_v32 }
 0x3eb   : > { %v4140_v42 = vpop.f32.mrf.mxu3 }
 0x3ec   : > { %v9402_v27 = vsel %vm4230_vm3, -1e+09, %v4222_v24 }
 0x3ed   : > { %v4176_v3 = vpop.f32.mrf.mxu1  ;;  %v4255_v30 = vsel %vm4242_vm11, %v9402_v27, -inf }
 0x3ee   : > { %v4223_v10 = vmul.f32 0.125, %v4176_v3 }
 0x3ef   : > { %v4195_v48 = vpop.f32.mrf.mxu2 }
 0x3f0   : > { %v4224_v49 = vmul.f32 0.125, %v4195_v48  ;;  %v9395_v12 = vsel %vm4231_vm2, -1e+09, %v4223_v10 }
 0x3f1   : > { %v4159_v16 = vpop.f32.mrf.mxu0  ;;  %v4258_v21 = vsel %vm4242_vm11, %v9395_v12, -inf }
 0x3f2   : > { %v4240_v20 = vsel %vm4232_vm15, -1e+09, %v4224_v49 }
 0x3f3   : > { %v4214_v51 = vpop.f32.mrf.mxu3  ;;  %v4261_v61 = vsel %vm4242_vm11, %v4240_v20, -inf }
 0x3f4   : > { %v4225_v4 = vmul.f32 0.125, %v4214_v51  ;;  %4262 = vmax.xlane.f32.xlu0 %v4261_v61 }
 0x3f5   : > { %v4178_v60 = vpop.f32.mrf.mxu1 }
 0x3f6   : > { %v9383_v6 = vsel %vm4233_vm1, -1e+09, %v4225_v4 }
 0x3f7   : > { %v4197_v53 = vpop.f32.mrf.mxu2  ;;  %v4264_v9 = vsel %vm4242_vm11, %v9383_v6, -inf }
 0x3fa   : > { %8506 = vrot.lane.b32.xlu2 %v8505_v23, %s8846_s19 }
 0x3fb   : > { %v4216_v8 = vpop.f32.mrf.mxu3 }
 0x3fc   : > { %4265 = vmax.xlane.f32.xlu0 %v4264_v9 }
 0x3fd   : > { %8511 = vrot.lane.b32.xlu1 %v8510_v58, %s8846_s19 }
 0x404   : > { %4259 = vmax.xlane.f32.xlu0 %v4258_v21 }
 0x40c   : > { %4256 = vmax.xlane.f32.xlu0 %v4255_v30 }
 0x451   : > { %v4245_v50 = vpop.xlane.xlu0 %4244 }
 0x452   : > { %v4267_v15 = vsub.f32 %v9360_v52, %v4245_v50 }
 0x454   : > { %v4275_v58 = vmul.f32 1.442695, %v4267_v15 }
 0x455   : > { %v4248_v36 = vpop.xlane.xlu2 %4247 }
 0x456   : > { %8531 = vpow2.f32 %v4275_v58  ;;  %v4268_v41 = vsub.f32 %v9367_v47, %v4248_v36  ;;  %v3950_v47 = vperm.slane %v9335_v56, %v9143_v19 }
 0x457   : > { %v4251_v25 = vpop.xlane.xlu1 %4250 }
 0x458   : > { %v4269_v5 = vsub.f32 %v4236_v54, %v4251_v25  ;;  %v4277_v28 = vmul.f32 1.442695, %v4268_v41  ;;  %v3962_v54 = vperm.slane %v9352_v35, %v9143_v19  ;;  %v3971_v42 = vrot.slane %v3950_v47, 4 }
 0x45a   : > { %v4279_v31 = vmul.f32 1.442695, %v4269_v5  ;;  %v3983_v48 = vrot.slane %v3962_v54, 4 }
 0x45b   : > { %v4254_v23 = vpop.xlane.xlu0 %4253 }
 0x45c   : > { %v9407_v33 = vpop.eup %8531  ;;  %8533 = vpow2.f32 %v4279_v31  ;;  %v4270_v34 = vsub.f32 %v4237_v62, %v4254_v23 }
 0x45d   : > { %v4291_v37 = vsel %vm4242_vm11, %v9407_v33, 0.0  ;;  %v8507_v43 = vpop.permute.xlu2 %8506 }
 0x45e   : > { %v4281_v57 = vmul.f32 1.442695, %v4270_v34  ;;  %4292 = vadd.xlane.f32.xlu2 %v4291_v37  ;;  %v8509_v29 = vunpack.i.h.bf16 %v8507_v43  ;;  %v8508_v59 = vunpack.i.l.bf16 %v8507_v43 }
 0x460   : > { %8535 = vpow2.f32 %v4281_v57  ;;  %v3951_v18 = vrot.slane %v8509_v29, 4  ;;  %v3963_v39 = vrot.slane %v8508_v59, 4 }
 0x461   : > { %8537 = vpow2.f32 %v4277_v28 }
 0x462   : > { %v9411_v38 = vpop.eup %8533 }
 0x463   : > { %v4297_v52 = vsel %vm4242_vm11, %v9411_v38, 0.0 }
 0x464   : > { %4298 = vadd.xlane.f32.xlu0 %v4297_v52 }
 0x466   : > { %v9416_v11 = vpop.eup %8535 }
 0x467   : > { %v4263_v17 = vpop.xlane.xlu0 %4262  ;;  %v4300_v26 = vsel %vm4242_vm11, %v9416_v11, 0.0  ;;  %v9424_v62 = vpop.eup %8537 }
 0x468   : > { %v4273_v45 = vsub.f32 %v4240_v20, %v4263_v17  ;;  %v4294_v16 = vsel %vm4242_vm11, %v9424_v62, 0.0 }
 0x46a   : > { %v4287_v44 = vmul.f32 1.442695, %v4273_v45 }
 0x46c   : > { %4301 = vadd.xlane.f32.xlu0 %v4300_v26  ;;  %8539 = vpow2.f32 %v4287_v44 }
 0x46f   : > { %v8512_v55 = vpop.permute.xlu1 %8511  ;;  %v4266_v46 = vpop.xlane.xlu0 %4265 }
 0x470   : > { %v8514_v63 = vunpack.i.h.bf16 %v8512_v55  ;;  %v8513_v2 = vunpack.i.l.bf16 %v8512_v55  ;;  %v4274_v32 = vsub.f32 %v9383_v6, %v4266_v46 }
 0x472   : > { %v3952_v13 = vsel %vm3673_vm8, %v3951_v18, %v8514_v63  ;;  %v3964_v3 = vsel %vm3673_vm8, %v3963_v39, %v8513_v2  ;;  %v4289_v56 = vmul.f32 1.442695, %v4274_v32  ;;  %v9435_v4 = vpop.eup %8539 }
 0x473   : > { %v3956_v35 = vperm.slane %v3952_v13, %v9143_v19  ;;  %v3968_v49 = vperm.slane %v3964_v3, %v9143_v19  ;;  %v4309_v30 = vsel %vm4242_vm11, %v9435_v4, 0.0 }
 0x474   : > { %8541 = vpow2.f32 %v4289_v56  ;;  %4295 = vadd.xlane.f32.xlu0 %v4294_v16 }
 0x475   : > { %v3969_v20 = vrot.slane %v3956_v35, 4  ;;  %v3972_v22 = vsel %vm3673_vm8, %v3956_v35, %v3971_v42  ;;  %v3981_v51 = vrot.slane %v3968_v49, 4  ;;  %v3984_v61 = vsel %vm3673_vm8, %v3968_v49, %v3983_v48 }
 0x476   : > { %v3980_v60 = vperm.slane %v3972_v22, %v9163_v40  ;;  %v3992_v53 = vperm.slane %v3984_v61, %v9163_v40 }
 0x477   : > { %v3970_v6 = vsel %vm3673_vm8, %v3969_v20, %v3950_v47  ;;  %v3982_v7 = vsel %vm3673_vm8, %v3981_v51, %v3962_v54  ;;  %v4260_v8 = vpop.xlane.xlu0 %4259 }
 0x478   : > { %v3976_v9 = vperm.slane %v3970_v6, %v9163_v40  ;;  %v3988_v10 = vperm.slane %v3982_v7, %v9163_v40  ;;  %v3997_v14 = vrot.slane %v3992_v53, 4  ;;  %v3999_v21 = vrot.slane %v3980_v60, 4 }
 0x479   : > { %v4272_v24 = vsub.f32 %v9395_v12, %v4260_v8 }
 0x47a   : > { %v9446_v50 = vpop.eup %8541  ;;  %v3993_v15 = vrot.slane %v3988_v10, 4  ;;  %v3995_v58 = vrot.slane %v3976_v9, 4  ;;  %v3998_v25 = vsel %vm3673_vm8, %v3997_v14, %v3980_v60  ;;  %v4000_v5 = vsel %vm3673_vm8, %v3992_v53, %v3999_v21 }
 0x47b   : > { %v4001_v31 = vrot.slane %v3998_v25, 4  ;;  %v4013_v23 = vrot.slane %v4000_v5, 4  ;;  %v4285_v34 = vmul.f32 1.442695, %v4272_v24  ;;  %v4312_v37 = vsel %vm4242_vm11, %v9446_v50, 0.0 }
 0x47c   : > { %4313 = vadd.xlane.f32.xlu1 %v4312_v37  ;;  %4310 = vadd.xlane.f32.xlu0 %v4309_v30  ;;  %v3994_v12 = vsel %vm3673_vm8, %v3993_v15, %v3976_v9  ;;  %v3996_v36 = vsel %vm3673_vm8, %v3988_v10, %v3995_v58 }
 0x47d   : > { %8543 = vpow2.f32 %v4285_v34  ;;  %v4002_v57 = vsel %vm3673_vm8, %v4001_v31, %v3994_v12  ;;  %v4003_v41 = vrot.slane %v3994_v12, 4  ;;  %v4014_v52 = vsel %vm3673_vm8, %v4013_v23, %v3996_v36 }
 0x47e   : > { %v4008_v28 = vperm.slane %v4002_v57, %v9143_v19  ;;  %v4015_v17 = vrot.slane %v3996_v36, 4  ;;  %v4020_v43 = vperm.slane %v4014_v52, %v9143_v19 }
 0x47f   : > { %v4257_v45 = vpop.xlane.xlu0 %4256  ;;  %v4004_v29 = vsel %vm3673_vm8, %v3998_v25, %v4003_v41 }
 0x480   : > { %v4271_v59 = vsub.f32 %v9402_v27, %v4257_v45  ;;  %v4025_v26 = vrot.slane %v4020_v43, 4  ;;  %v4027_v44 = vrot.slane %v4008_v28, 4  ;;  %v4012_v47 = vperm.slane %v4004_v29, %v9143_v19 }
 0x481   : > { %v4016_v54 = vsel %vm3673_vm8, %v4000_v5, %v4015_v17 }
 0x482   : > { %v4283_v18 = vmul.f32 1.442695, %v4271_v59  ;;  %v4026_v39 = vsel %vm3673_vm8, %v4025_v26, %v4008_v28  ;;  %v4028_v55 = vsel %vm3673_vm8, %v4020_v43, %v4027_v44  ;;  %v4024_v46 = vperm.slane %v4016_v54, %v9143_v19 }
 0x483   : > { %v9465_v63 = vpop.eup %8543  ;;  %v4032_v2 = vperm.slane %v4026_v39, %v9163_v40  ;;  %v4036_v32 = vperm.slane %v4028_v55, %v9163_v40  ;;  %v4039_v27 = vrot.slane %v4012_v47, 4 }
 0x484   : > { %8545 = vpow2.f32 %v4283_v18  ;;  %v4306_v42 = vsel %vm4242_vm11, %v9465_v63, 0.0  ;;  %v4037_v13 = vrot.slane %v4024_v46, 4 }
 0x485   : > { %4307 = vadd.xlane.f32.xlu0 %v4306_v42  ;;  %v4057_v3 = vpack.c.bf16 %v4032_v2, %v4032_v2  ;;  %v4059_v56 = vpack.c.bf16 %v4036_v32, %v4036_v32  ;;  %v4040_v48 = vsel %vm3673_vm8, %v4024_v46, %v4039_v27  ;;  %v4049_v35 = vrot.slane %v4032_v2, 4 }
 0x486   : > { %v4038_v49 = vsel %vm3673_vm8, %v4037_v13, %v4012_v47  ;;  %v4048_v16 = vperm.slane %v4040_v48, %v9163_v40  ;;  %v4051_v20 = vrot.slane %v4036_v32, 4 }
 0x487   : > { %v4345_v22 = vsel %vm4343_vm4, %v4057_v3, 0  ;;  %v4383_v51 = vsel %vm4343_vm4, %v4059_v56, 0  ;;  %v4044_v61 = vperm.slane %v4038_v49, %v9163_v40  ;;  %v4050_v60 = vsel %vm3673_vm8, 0.0, %v4049_v35 }
 0x488   : > { %4354 = vmatpush.bf16.msra.mxu0 %v4345_v22  ;;  %4392 = vmatpush.bf16.msra.mxu2 %v4383_v51  ;;  %v4063_v53 = vpack.c.bf16 %v4048_v16, %v4048_v16  ;;  %v4058_v6 = vpack.c.bf16 %v4050_v60, %v4050_v60  ;;  %v4052_v7 = vsel %vm3673_vm8, 0.0, %v4051_v20  ;;  %v4055_v8 = vrot.slane %v4048_v16, 4 }
 0x489   : > { %v4061_v9 = vpack.c.bf16 %v4044_v61, %v4044_v61  ;;  %v4060_v10 = vpack.c.bf16 %v4052_v7, %v4052_v7  ;;  %v4053_v14 = vrot.slane %v4044_v61, 4 }
 0x48a   : > { %v9479_v21 = vpop.eup %8545  ;;  %v4459_v24 = vsel %vm4343_vm4, %v4063_v53, 0  ;;  %v4364_v30 = vsel %vm4343_vm4, %v4058_v6, 0  ;;  %v4056_v15 = vsel %vm3673_vm8, 0.0, %v4055_v8 }
 0x48b   : > { %v4421_v58 = vsel %vm4343_vm4, %v4061_v9, 0  ;;  %4373 = vmatpush.bf16.msra.mxu1 %v4364_v30  ;;  %v4402_v25 = vsel %vm4343_vm4, %v4060_v10, 0  ;;  %v4303_v5 = vsel %vm4242_vm11, %v9479_v21, 0.0  ;;  %v4054_v31 = vsel %vm3673_vm8, 0.0, %v4053_v14 }
 0x48c   : > { %4468 = vmatpush.bf16.msrb.mxu2 %v4459_v24  ;;  %4430 = vmatpush.bf16.msrb.mxu0 %v4421_v58  ;;  %v4062_v23 = vpack.c.bf16 %v4054_v31, %v4054_v31  ;;  %v4064_v34 = vpack.c.bf16 %v4056_v15, %v4056_v15  ;;  %v7472_v58 = vld [vmem:[#allocation12 + $0xe0] sm:$0xf] }
 0x48d   : > { %4411 = vmatpush.bf16.msra.mxu3 %v4402_v25  ;;  %4304 = vadd.xlane.f32.xlu0 %v4303_v5  ;;  %v8289_v25 = vld [vmem:[#allocation12 + $0xec] sm:$0xf0]  ;;  %v7600_v5 = vld [vmem:[#allocation12 + $0x1e0] sm:$0xf] }
 0x48e   : > { %v4440_v37 = vsel %vm4343_vm4, %v4062_v23, 0  ;;  %v4478_v12 = vsel %vm4343_vm4, %v4064_v34, 0  ;;  %v7473_v23 = vor.u32 %v8289_v25, %v7472_v58  ;;  %v8321_v34 = vld [vmem:[#allocation12 + $0x1ec] sm:$0xf0]  ;;  %v7536_v25 = vld [vmem:[#allocation12 + $0x160] sm:$0xf] }
 0x48f   : > { %4449 = vmatpush.bf16.msrb.mxu1 %v4440_v37  ;;  %v7456_v37 = vld [vmem:[#allocation12 + $0xc0] sm:$0xf] }
 0x491   : > { %4487 = vmatpush.bf16.msrb.mxu3 %v4478_v12 }
 0x4d1   : > { %v4293_v36 = vpop.xlane.xlu2 %4292 }
 0x4d2   : > { %8547 = vrcp.f32 %v4293_v36 }
 0x4d7   : > { %v4299_v57 = vpop.xlane.xlu0 %4298 }
 0x4d8   : > { %v8548_v41 = vpop.eup %8547  ;;  %8549 = vrcp.f32 %v4299_v57  ;;  %v7601_v57 = vor.u32 %v8321_v34, %v7600_v5  ;;  %v8305_v5 = vld [vmem:[#allocation12 + $0x16c] sm:$0xf0] }
 0x4d9   : > { %v4323_v52 = vmul.f32 %v8548_v41, %v9407_v33  ;;  %v8285_v41 = vld [vmem:[#allocation12 + $0xcc] sm:$0xf0] }
 0x4db   : > { %v4331_v28 = vpack.c.bf16 %v4323_v52, %v4323_v52  ;;  %v7584_v52 = vld [vmem:[#allocation12 + $0x1c0] sm:$0xf] }
 0x4dd   : > { %7350 = vmatmul.msk.bf16.vlgmr.msra.gmra.mxu0 %vm4339_vm5, %v4331_v28  ;;  %v8317_v28 = vld [vmem:[#allocation12 + $0x1cc] sm:$0xf0] }
 0x4de   : > { %v8550_v17 = vpop.eup %8549  ;;  %5397 = vmatpush.bf16.msra.mxu0 %v7473_v23 }
 0x4df   : > { %v4325_v43 = vmul.f32 %v8550_v17, %v9411_v38  ;;  %v4302_v45 = vpop.xlane.xlu0 %4301 }
 0x4e0   : > { %8551 = vrcp.f32 %v4302_v45 }
 0x4e1   : > { %v4333_v29 = vpack.c.bf16 %v4325_v43, %v4325_v43 }
 0x4e3   : > { %7352 = vmatmul.msk.bf16.vlgmr.msra.gmra.mxu2 %vm4339_vm5, %v4333_v29  ;;  %v7457_v29 = vor.u32 %v8285_v41, %v7456_v37 }
 0x4e5   : > { %5398 = vmatpush.bf16.msra.mxu0 %v7457_v29  ;;  %v7537_v29 = vor.u32 %v8305_v5, %v7536_v25  ;;  %v8337_v25 = vld [vmem:[#allocation12 + $0x26c] sm:$0xf0]  ;;  %v7792_v5 = vld [vmem:[#allocation12 + $0x360] sm:$0xf] }
 0x4e6   : > { %v8552_v59 = vpop.eup %8551 }
 0x4e7   : > { %v4326_v26 = vmul.f32 %v8552_v59, %v9416_v11  ;;  %v4296_v44 = vpop.xlane.xlu0 %4295 }
 0x4e8   : > { %8553 = vrcp.f32 %v4296_v44  ;;  %v7440_v44 = vld [vmem:[#allocation12 + $0xa0] sm:$0xf] }
 0x4e9   : > { %v4334_v47 = vpack.c.bf16 %v4326_v26, %v4326_v26  ;;  %v7585_v26 = vor.u32 %v8317_v28, %v7584_v52  ;;  %v7392_v28 = vld [vmem:[#allocation12 + $0x40] sm:$0xf] }
 0x4eb   : > { %7353 = vmatmul.msk.bf16.vlgmr.msra.gmra.mxu3 %vm4339_vm5, %v4334_v47  ;;  %v8281_v47 = vld [vmem:[#allocation12 + $0xac] sm:$0xf0] }
 0x4ee   : > { %v8554_v33 = vpop.eup %8553 }
 0x4ef   : > { %v4324_v54 = vmul.f32 %v8554_v33, %v9424_v62  ;;  %v4314_v18 = vpop.xlane.xlu1 %4313  ;;  %v4311_v39 = vpop.xlane.xlu0 %4310 }
 0x4f0   : > { %8555 = vrcp.f32 %v4314_v18  ;;  %v7568_v18 = vld [vmem:[#allocation12 + $0x1a0] sm:$0xf] }
 0x4f1   : > { %v4332_v38 = vpack.c.bf16 %v4324_v54, %v4324_v54  ;;  %8557 = vrcp.f32 %v4311_v39  ;;  %v8313_v39 = vld [vmem:[#allocation12 + $0x1ac] sm:$0xf0] }
 0x4f3   : > { %7351 = vmatmul.msk.bf16.vlgmr.msra.gmra.mxu1 %vm4339_vm5, %v4332_v38 }
 0x4f4   : > { %5410 = vmatpush.bf16.msra.mxu1 %v7601_v57 }
 0x4f6   : > { %v8556_v55 = vpop.eup %8555 }
 0x4f7   : > { %v8558_v46 = vpop.eup %8557  ;;  %v4330_v2 = vmul.f32 %v8556_v55, %v9446_v50 }
 0x4f8   : > { %v4329_v11 = vmul.f32 %v8558_v46, %v9435_v4  ;;  %v4308_v32 = vpop.xlane.xlu0 %4307  ;;  %5411 = vmatpush.bf16.msra.mxu1 %v7585_v26  ;;  %v8301_v26 = vld [vmem:[#allocation12 + $0x14c] sm:$0xf0] }
 0x4f9   : > { %v4338_v27 = vpack.c.bf16 %v4330_v2, %v4330_v2  ;;  %8559 = vrcp.f32 %v4308_v32  ;;  %v7441_v32 = vor.u32 %v8281_v47, %v7440_v44  ;;  %v7696_v44 = vld [vmem:[#allocation12 + $0x2a0] sm:$0xf] }
 0x4fa   : > { %v4337_v42 = vpack.c.bf16 %v4329_v11, %v4329_v11 }
 0x4fb   : > { %7357 = vmatmul.msk.bf16.vlgmr.msrb.gmra.mxu3 %vm4339_vm5, %v4338_v27  ;;  %v7424_v27 = vld [vmem:[#allocation12 + $0x80] sm:$0xf]  ;;  %5399 = vmatpush.bf16.msra.mxu0 %v7441_v32 }
 0x4fc   : > { %7356 = vmatmul.msk.bf16.vlgmr.msrb.gmra.mxu2 %vm4339_vm5, %v4337_v42  ;;  %v8277_v42 = vld [vmem:[#allocation12 + $0x8c] sm:$0xf0] }
 0x4ff   : > { %v8560_v62 = vpop.eup %8559 }
 0x500   : > { %v4328_v13 = vmul.f32 %v8560_v62, %v9465_v63  ;;  %v4305_v3 = vpop.xlane.xlu0 %4304  ;;  %v7552_v62 = vld [vmem:[#allocation12 + $0x180] sm:$0xf] }
 0x501   : > { %8561 = vrcp.f32 %v4305_v3  ;;  %v8309_v3 = vld [vmem:[#allocation12 + $0x18c] sm:$0xf0] }
 0x502   : > { %v4336_v56 = vpack.c.bf16 %v4328_v13, %v4328_v13  ;;  %v7569_v13 = vor.u32 %v8313_v39, %v7568_v18  ;;  %v8345_v18 = vld [vmem:[#allocation12 + $0x2ac] sm:$0xf0]  ;;  %v7824_v39 = vld [vmem:[#allocation12 + $0x3a0] sm:$0xf] }
 0x504   : > { %7355 = vmatmul.msk.bf16.vlgmr.msrb.gmra.mxu1 %vm4339_vm5, %v4336_v56  ;;  %v7728_v56 = vld [vmem:[#allocation12 + $0x2e0] sm:$0xf] }
 0x505   : > { %5412 = vmatpush.bf16.msra.mxu1 %v7569_v13  ;;  %v8265_v13 = vld [vmem:[#allocation12 + $0x2c] sm:$0xf0] }
 0x507   : > { %v8562_v48 = vpop.eup %8561 }
 0x508   : > { %v4327_v50 = vmul.f32 %v8562_v48, %v9479_v21  ;;  %v8353_v48 = vld [vmem:[#allocation12 + $0x2ec] sm:$0xf0] }
 0x50a   : > { %v4335_v4 = vpack.c.bf16 %v4327_v50, %v4327_v50 }
 0x50c   : > { %7354 = vmatmul.msk.bf16.vlgmr.msrb.gmra.mxu0 %vm4339_vm5, %v4335_v4 }
 0x55a   : > { %v4356_v35 = vpop.f32.mrf.mxu0 }
 0x562   : > { %v4358_v49 = vpop.f32.mrf.mxu0 }
 0x563   : > { %v7856_v49 = vld [vmem:[#allocation12 + $0x3e0] sm:$0xf] }
 0x566   : > { %v4394_v16 = vpop.f32.mrf.mxu2 }
 0x567   : > { %v4493_v53 = vrot.slane %v4394_v16, 4  ;;  %v8385_v16 = vld [vmem:[#allocation12 + $0x3ec] sm:$0xf0] }
 0x569   : > { %v4494_v7 = vsel %vm3673_vm8, %v4493_v53, %v4356_v35  ;;  %v7729_v35 = vor.u32 %v8353_v48, %v7728_v56  ;;  %v7425_v53 = vor.u32 %v8277_v42, %v7424_v27 }
 0x56a   : > { %v4498_v21 = vperm.slane %v4494_v7, %v9143_v19  ;;  %v7712_v7 = vld [vmem:[#allocation12 + $0x2c0] sm:$0xf] }
 0x56b   : > { %5423 = vmatpush.bf16.msra.mxu2 %v7729_v35  ;;  %5400 = vmatpush.bf16.msra.mxu0 %v7425_v53 }
 0x56c   : > { %v4519_v31 = vrot.slane %v4498_v21, 4 }
 0x56e   : > { %v4396_v20 = vpop.f32.mrf.mxu2  ;;  %v4413_v22 = vpop.f32.mrf.mxu3 }
 0x56f   : > { %v4499_v60 = vrot.slane %v4413_v22, 4 }
 0x570   : > { %v4375_v51 = vpop.f32.mrf.mxu1 }
 0x571   : > { %v4500_v6 = vsel %vm3673_vm8, %v4499_v60, %v4375_v51  ;;  %v7857_v60 = vor.u32 %v8385_v16, %v7856_v49  ;;  %v7680_v49 = vld [vmem:[#allocation12 + $0x280] sm:$0xf]  ;;  %v8341_v16 = vld [vmem:[#allocation12 + $0x28c] sm:$0xf0] }
 0x572   : > { %v4504_v9 = vperm.slane %v4500_v6, %v9143_v19  ;;  %v8273_v6 = vld [vmem:[#allocation12 + $0x6c] sm:$0xf0] }
 0x573   : > { %5436 = vmatpush.bf16.msra.mxu3 %v7857_v60  ;;  %v8373_v60 = vld [vmem:[#allocation12 + $0x38c] sm:$0xf0] }
 0x574   : > { %v4517_v30 = vrot.slane %v4504_v9, 4  ;;  %v4520_v43 = vsel %vm3673_vm8, %v4504_v9, %v4519_v31 }
 0x575   : > { %v4528_v55 = vperm.slane %v4520_v43, %v9163_v40 }
 0x576   : > { %v4415_v61 = vpop.f32.mrf.mxu3  ;;  %v4518_v17 = vsel %vm3673_vm8, %v4517_v30, %v4498_v21  ;;  %v7553_v21 = vor.u32 %v8309_v3, %v7552_v62  ;;  %v8381_v30 = vld [vmem:[#allocation12 + $0x3cc] sm:$0xf0]  ;;  %v7376_v62 = vld [vmem:[#allocation12 + $0x20] sm:$0xf] }
 0x577   : > { %v4524_v38 = vperm.slane %v4518_v17, %v9163_v40  ;;  %v4547_v22 = vrot.slane %v4528_v55, 4  ;;  %v7408_v61 = vld [vmem:[#allocation12 + $0x60] sm:$0xf]  ;;  %v8269_v17 = vld [vmem:[#allocation12 + $0x4c] sm:$0xf0] }
 0x578   : > { %v4377_v63 = vpop.f32.mrf.mxu1  ;;  %v7409_v52 = vor.u32 %v8273_v6, %v7408_v61  ;;  %5413 = vmatpush.bf16.msra.mxu1 %v7553_v21  ;;  %v7393_v27 = vor.u32 %v8269_v17, %v7392_v28  ;;  %v7504_v3 = vld [vmem:[#allocation12 + $0x120] sm:$0xf]  ;;  %v7377_v21 = vor.u32 %v8265_v13, %v7376_v62 }
 0x579   : > { %v4543_v20 = vrot.slane %v4524_v38, 4  ;;  %v7808_v61 = vld [vmem:[#allocation12 + $0x380] sm:$0xf] }
 0x57a   : > { %5401 = vmatpush.bf16.msra.mxu0 %v7409_v52  ;;  %v7602_v52 = vld [vmem:[#allocation12 + $0x1f0] sm:$0xf0]  ;;  %v7632_v13 = vld [vmem:[#allocation12 + $0x220] sm:$0xf] }
 0x57c   : > { %5414 = vmatpush.bf16.msra.mxu1 %v7537_v29 }
 0x57e   : > { %v4489_v8 = vpop.f32.mrf.mxu3  ;;  %5402 = vmatpush.bf16.msra.mxu0 %v7393_v27  ;;  %v7586_v27 = vld [vmem:[#allocation12 + $0x1d0] sm:$0xf0] }
 0x57f   : > { %v4470_v10 = vpop.f32.mrf.mxu2  ;;  %v4511_v14 = vrot.slane %v4489_v8, 4  ;;  %v8349_v8 = vld [vmem:[#allocation12 + $0x2cc] sm:$0xf0] }
 0x580   : > { %v4505_v59 = vrot.slane %v4470_v10, 4  ;;  %v7713_v31 = vor.u32 %v8349_v8, %v7712_v7  ;;  %v7360_v7 = vld [vmem:[#allocation12] sm:$0xf]  ;;  %v7809_v8 = vor.u32 %v8373_v60, %v7808_v61 }
 0x581   : > { %v4451_v24 = vpop.f32.mrf.mxu1  ;;  %v7616_v60 = vld [vmem:[#allocation12 + $0x200] sm:$0xf] }
 0x582   : > { %v4512_v15 = vsel %vm3673_vm8, %v4511_v14, %v4451_v24  ;;  %v7840_v24 = vld [vmem:[#allocation12 + $0x3c0] sm:$0xf]  ;;  %5424 = vmatpush.bf16.msra.mxu2 %v7713_v31  ;;  %v8369_v31 = vld [vmem:[#allocation12 + $0x36c] sm:$0xf0]  ;;  %5403 = vmatpush.bf16.msra.mxu0 %v7377_v21 }
 0x583   : > { %v4516_v12 = vperm.slane %v4512_v15, %v9143_v19  ;;  %v7841_v23 = vor.u32 %v8381_v30, %v7840_v24  ;;  %v7488_v24 = vld [vmem:[#allocation12 + $0x100] sm:$0xf]  ;;  %v7793_v17 = vor.u32 %v8369_v31, %v7792_v5 }
 0x584   : > { %v7664_v30 = vld [vmem:[#allocation12 + $0x260] sm:$0xf] }
 0x585   : > { %v4529_v46 = vrot.slane %v4516_v12, 4  ;;  %5437 = vmatpush.bf16.msra.mxu3 %v7841_v23  ;;  %v7665_v28 = vor.u32 %v8337_v25, %v7664_v30  ;;  %v8275_v30 = vld [vmem:[#allocation12 + $0x84] sm:$0xf]  ;;  %v7554_v25 = vld [vmem:[#allocation12 + $0x190] sm:$0xf0] }
 0x586   : > { %v4491_v36 = vpop.f32.mrf.mxu3 }
 0x587   : > { %v4472_v45 = vpop.f32.mrf.mxu2 }
 0x589   : > { %v4432_v33 = vpop.f32.mrf.mxu0  ;;  %v4453_v54 = vpop.f32.mrf.mxu1 }
 0x58a   : > { %v4506_v2 = vsel %vm3673_vm8, %v4505_v59, %v4432_v33  ;;  %v7520_v59 = vld [vmem:[#allocation12 + $0x140] sm:$0xf] }
 0x58b   : > { %v4510_v11 = vperm.slane %v4506_v2, %v9143_v19  ;;  %v7697_v2 = vor.u32 %v8345_v18, %v7696_v44  ;;  %v7521_v42 = vor.u32 %v8301_v26, %v7520_v59 }
 0x58d   : > { %v4530_v50 = vsel %vm3673_vm8, %v4529_v46, %v4510_v11  ;;  %v4531_v4 = vrot.slane %v4510_v11, 4  ;;  %v8377_v11 = vld [vmem:[#allocation12 + $0x3ac] sm:$0xf0]  ;;  %5425 = vmatpush.bf16.msra.mxu2 %v7697_v2  ;;  %5415 = vmatpush.bf16.msra.mxu1 %v7521_v42  ;;  %v7458_v2 = vld [vmem:[#allocation12 + $0xd0] sm:$0xf0] }
 0x58e   : > { %v4536_v51 = vperm.slane %v4530_v50, %v9163_v40  ;;  %v7825_v56 = vor.u32 %v8377_v11, %v7824_v39 }
 0x58f   : > { %v4532_v63 = vsel %vm3673_vm8, %v4516_v12, %v4531_v4 }
 0x590   : > { %v4540_v9 = vperm.slane %v4532_v63, %v9163_v40  ;;  %v4541_v10 = vrot.slane %v4536_v51, 4  ;;  %v4544_v14 = vsel %vm3673_vm8, %v4536_v51, %v4543_v20  ;;  %5438 = vmatpush.bf16.msra.mxu3 %v7825_v56  ;;  %v7681_v51 = vor.u32 %v8341_v16, %v7680_v49  ;;  %v7760_v56 = vld [vmem:[#allocation12 + $0x320] sm:$0xf]  ;;  %v7442_v49 = vld [vmem:[#allocation12 + $0xb0] sm:$0xf0] }
 0x591   : > { %v4563_v15 = vrot.slane %v4544_v14, 4  ;;  %v4434_v58 = vpop.f32.mrf.mxu0  ;;  %v8311_v16 = vld [vmem:[#allocation12 + $0x1a4] sm:$0xf] }
 0x592   : > { %v4542_v34 = vsel %vm3673_vm8, %v4541_v10, %v4524_v38  ;;  %v4545_v37 = vrot.slane %v4540_v9, 4  ;;  %v4548_v12 = vsel %vm3673_vm8, %v4540_v9, %v4547_v22  ;;  %v8297_v22 = vld [vmem:[#allocation12 + $0x12c] sm:$0xf0]  ;;  %5426 = vmatpush.bf16.msra.mxu2 %v7681_v51 }
 0x593   : > { %v4551_v36 = vrot.slane %v4542_v34, 4  ;;  %v4561_v57 = vrot.slane %v4548_v12, 4  ;;  %v4564_v41 = vsel %vm3673_vm8, %v4548_v12, %v4563_v15  ;;  %v7505_v58 = vor.u32 %v8297_v22, %v7504_v3  ;;  %v8293_v12 = vld [vmem:[#allocation12 + $0x10c] sm:$0xf0]  ;;  %v7570_v22 = vld [vmem:[#allocation12 + $0x1b0] sm:$0xf0] }
 0x594   : > { %v4546_v43 = vsel %vm3673_vm8, %v4545_v37, %v4528_v55  ;;  %v4572_v45 = vperm.slane %v4564_v41, %v9143_v19  ;;  %5439 = vmatpush.bf16.msra.mxu3 %v7809_v8  ;;  %v8319_v41 = vld [vmem:[#allocation12 + $0x1e4] sm:$0xf]  ;;  %v7489_v44 = vor.u32 %v8293_v12, %v7488_v24  ;;  %v8329_v3 = vld [vmem:[#allocation12 + $0x22c] sm:$0xf0]  ;;  %v7573_v24 = vor.u32 %v8311_v16, %v7570_v22  ;;  %v7826_v16 = vld [vmem:[#allocation12 + $0x3b0] sm:$0xf0] }
 0x595   : > { %v4549_v47 = vrot.slane %v4546_v43, 4  ;;  %v4562_v33 = vsel %vm3673_vm8, %v4561_v57, %v4544_v14  ;;  %v4552_v54 = vsel %vm3673_vm8, %v4546_v43, %v4551_v36  ;;  %v8287_v36 = vld [vmem:[#allocation12 + $0xe4] sm:$0xf]  ;;  %v7474_v57 = vld [vmem:[#allocation12 + $0xf0] sm:$0xf0]  ;;  %5416 = vmatpush.bf16.msra.mxu1 %v7505_v58  ;;  %v7633_v51 = vor.u32 %v8329_v3, %v7632_v13 }
 0x596   : > { %v4560_v38 = vperm.slane %v4552_v54, %v9143_v19  ;;  %v4585_v46 = vrot.slane %v4572_v45, 4  ;;  %v4568_v55 = vperm.slane %v4562_v33, %v9143_v19  ;;  %5427 = vmatpush.bf16.msra.mxu2 %v7665_v28  ;;  %v7776_v33 = vld [vmem:[#allocation12 + $0x340] sm:$0xf]  ;;  %v8365_v54 = vld [vmem:[#allocation12 + $0x34c] sm:$0xf0] }
 0x597   : > { %v4550_v32 = vsel %vm3673_vm8, %v4549_v47, %v4542_v34  ;;  %v8333_v47 = vld [vmem:[#allocation12 + $0x24c] sm:$0xf0]  ;;  %v7777_v62 = vor.u32 %v8365_v54, %v7776_v33  ;;  %v8383_v8 = vld [vmem:[#allocation12 + $0x3e4] sm:$0xf]  ;;  %v7538_v28 = vld [vmem:[#allocation12 + $0x170] sm:$0xf0] }
 0x598   : > { %v4586_v48 = vsel %vm3673_vm8, %v4585_v46, %v4560_v38  ;;  %v4587_v50 = vrot.slane %v4560_v38, 4  ;;  %v4556_v4 = vperm.slane %v4550_v32, %v9143_v19  ;;  %v4573_v35 = vrot.slane %v4568_v55, 4  ;;  %v8261_v19 = vld [vmem:[#allocation12 + $0xc] sm:$0xf0]  ;;  %5440 = vmatpush.bf16.msra.mxu3 %v7793_v17  ;;  %v8315_v32 = vld [vmem:[#allocation12 + $0x1c4] sm:$0xf] }
 0x599   : > { %v9537_v20 = vperm.slane %v4586_v48, %v9163_v40  ;;  %v7361_v59 = vor.u32 %v8261_v19, %v7360_v7  ;;  %v7477_v38 = vor.u32 %v8287_v36, %v7474_v57  ;;  %v7605_v46 = vor.u32 %v8319_v41, %v7602_v52  ;;  %v8361_v48 = vld [vmem:[#allocation12 + $0x32c] sm:$0xf0]  ;;  %5417 = vmatpush.bf16.msra.mxu1 %v7489_v44  ;;  %v8351_v7 = vld [vmem:[#allocation12 + $0x2e4] sm:$0xf]  ;;  %v7730_v19 = vld [vmem:[#allocation12 + $0x2f0] sm:$0xf0] }
 0x59a   : > { %v4588_v63 = vsel %vm3673_vm8, %v4572_v45, %v4587_v50  ;;  %v4574_v53 = vsel %vm3673_vm8, %v4573_v35, %v4556_v4  ;;  %v4575_v6 = vrot.slane %v4556_v4, 4  ;;  %v7589_v4 = vor.u32 %v8315_v32, %v7586_v27  ;;  %v8279_v35 = vld [vmem:[#allocation12 + $0xa4] sm:$0xf]  ;;  %v7410_v41 = vld [vmem:[#allocation12 + $0x70] sm:$0xf0] }
 0x59b   : > { %v9542_v9 = vperm.slane %v4588_v63, %v9163_v40  ;;  %v4601_v10 = vrot.slane %v9537_v20, 4  ;;  %v9546_v14 = vperm.slane %v4574_v53, %v9163_v40  ;;  %5404 = vmatpush.bf16.msra.mxu0 %v7361_v59  ;;  %v7761_v61 = vor.u32 %v8361_v48, %v7760_v56  ;;  %v8325_v63 = vld [vmem:[#allocation12 + $0x20c] sm:$0xf0]  ;;  %v7744_v53 = vld [vmem:[#allocation12 + $0x300] sm:$0xf] }
 0x59c   : > { %v4576_v15 = vsel %vm3673_vm8, %v4568_v55, %v4575_v6  ;;  %v8283_v55 = vld [vmem:[#allocation12 + $0xc4] sm:$0xf]  ;;  %5441 = vmatpush.bf16.msra.mxu3 %v7777_v62  ;;  %v8357_v6 = vld [vmem:[#allocation12 + $0x30c] sm:$0xf0]  ;;  %v7445_v21 = vor.u32 %v8279_v35, %v7442_v49  ;;  %v7617_v5 = vor.u32 %v8325_v63, %v7616_v60  ;;  %v7378_v33 = vld [vmem:[#allocation12 + $0x30] sm:$0xf0] }
 0x59d   : > { %v4603_v23 = vrot.slane %v9542_v9, 4  ;;  %v9551_v34 = vperm.slane %v4576_v15, %v9163_v40  ;;  %v4597_v37 = vrot.slane %v9546_v14, 4  ;;  %v4602_v43 = vsel %vm3673_vm8, 0.0, %v4601_v10  ;;  %v7648_v40 = vld [vmem:[#allocation12 + $0x240] sm:$0xf]  ;;  %5462 = vmatpush.bf16.msrb.mxu1 %v7605_v46 }
 0x59e   : > { %v7649_v42 = vor.u32 %v8333_v47, %v7648_v40  ;;  %v7461_v50 = vor.u32 %v8283_v55, %v7458_v2  ;;  %v7858_v10 = vld [vmem:[#allocation12 + $0x3f0] sm:$0xf0]  ;;  %v8307_v58 = vld [vmem:[#allocation12 + $0x184] sm:$0xf]  ;;  %v7745_v31 = vor.u32 %v8357_v6, %v7744_v53 }
 0x59f   : > { %v4604_v45 = vsel %vm3673_vm8, 0.0, %v4603_v23  ;;  %v4599_v29 = vrot.slane %v9551_v34, 4  ;;  %v4598_v18 = vsel %vm3673_vm8, 0.0, %v4597_v37  ;;  %5449 = vmatpush.bf16.msrb.mxu0 %v7477_v38  ;;  %v7426_v15 = vld [vmem:[#allocation12 + $0x90] sm:$0xf0]  ;;  %v7733_v23 = vor.u32 %v8351_v7, %v7730_v19 }
 0x5a0   : > { %v8515_v26 = vpack.i.bf16 %v4604_v45, %v4602_v43  ;;  %5428 = vmatpush.bf16.msra.mxu2 %v7649_v42  ;;  %5442 = vmatpush.bf16.msra.mxu3 %v7761_v61  ;;  %v7861_v37 = vor.u32 %v8383_v8, %v7858_v10  ;;  %v7429_v12 = vor.u32 %v8275_v30, %v7426_v15  ;;  %v8271_v57 = vld [vmem:[#allocation12 + $0x64] sm:$0xf]  ;;  %v7522_v40 = vld [vmem:[#allocation12 + $0x150] sm:$0xf0] }
 0x5a1   : > { %v4600_v39 = vsel %vm3673_vm8, 0.0, %v4599_v29  ;;  %5463 = vmatpush.bf16.msrb.mxu1 %v7589_v4  ;;  %v7557_v36 = vor.u32 %v8307_v58, %v7554_v25  ;;  %v8303_v52 = vld [vmem:[#allocation12 + $0x164] sm:$0xf]  ;;  %v7413_v17 = vor.u32 %v8271_v57, %v7410_v41  ;;  %v7394_v29 = vld [vmem:[#allocation12 + $0x50] sm:$0xf0] }
 0x5a2   : > { %8516 = vrot.lane.b32.xlu0 %v8515_v26, %s8846_s19  ;;  %v8520_v11 = vpack.i.bf16 %v4600_v39, %v4598_v18  ;;  %v7541_v43 = vor.u32 %v8303_v52, %v7538_v28  ;;  %v8267_v45 = vld [vmem:[#allocation12 + $0x44] sm:$0xf]  ;;  %v7506_v39 = vld [vmem:[#allocation12 + $0x130] sm:$0xf0] }
 0x5a3   : > { %5450 = vmatpush.bf16.msrb.mxu0 %v7461_v50  ;;  %v8299_v59 = vld [vmem:[#allocation12 + $0x144] sm:$0xf]  ;;  %v7397_v26 = vor.u32 %v8267_v45, %v7394_v29  ;;  %v7714_v46 = vld [vmem:[#allocation12 + $0x2d0] sm:$0xf0] }
 0x5a4   : > { %8521 = vrot.lane.b32.xlu2 %v8520_v11, %s8846_s19  ;;  %5429 = vmatpush.bf16.msra.mxu2 %v7633_v51  ;;  %v7525_v44 = vor.u32 %v8299_v59, %v7522_v40  ;;  %v8263_v47 = vld [vmem:[#allocation12 + $0x24] sm:$0xf]  ;;  %v7842_v32 = vld [vmem:[#allocation12 + $0x3d0] sm:$0xf0]  ;;  %v8290_v40 = vld [vmem:[#allocation12 + $0xf4] sm:$0xf0] }
 0x5a5   : > { %5464 = vmatpush.bf16.msrb.mxu1 %v7573_v24  ;;  %5443 = vmatpush.bf16.msra.mxu3 %v7745_v31  ;;  %v8295_v54 = vld [vmem:[#allocation12 + $0x124] sm:$0xf]  ;;  %v7381_v18 = vor.u32 %v8263_v47, %v7378_v33  ;;  %v7362_v62 = vld [vmem:[#allocation12 + $0x10] sm:$0xf0] }
 0x5a6   : > { %v8347_v38 = vld [vmem:[#allocation12 + $0x2c4] sm:$0xf]  ;;  %v7509_v55 = vor.u32 %v8295_v54, %v7506_v39  ;;  %v7490_v3 = vld [vmem:[#allocation12 + $0x110] sm:$0xf0] }
 0x5a7   : > { %5451 = vmatpush.bf16.msrb.mxu0 %v7445_v21  ;;  %v7717_v2 = vor.u32 %v8347_v38, %v7714_v46  ;;  %v8379_v11 = vld [vmem:[#allocation12 + $0x3c4] sm:$0xf]  ;;  %v7698_v4 = vld [vmem:[#allocation12 + $0x2b0] sm:$0xf0] }
 0x5a8   : > { %5430 = vmatpush.bf16.msra.mxu2 %v7617_v5  ;;  %v8259_v27 = vld [vmem:[#allocation12 + $0x4] sm:$0xf]  ;;  %v7845_v42 = vor.u32 %v8379_v11, %v7842_v32  ;;  %v7682_v61 = vld [vmem:[#allocation12 + $0x290] sm:$0xf0]  ;;  %v8286_v32 = vld [vmem:[#allocation12 + $0xd4] sm:$0xf0] }
 0x5a9   : > { %5488 = vmatpush.bf16.msrb.mxu3 %v7861_v37  ;;  %5465 = vmatpush.bf16.msrb.mxu1 %v7557_v36  ;;  %v8291_v13 = vld [vmem:[#allocation12 + $0x104] sm:$0xf]  ;;  %v7365_v56 = vor.u32 %v8259_v27, %v7362_v62  ;;  %v7810_v53 = vld [vmem:[#allocation12 + $0x390] sm:$0xf0]  ;;  %v7592_v27 = vld [vmem:[#allocation12 + $0x1c8] sm:$0xf] }
 0x5aa   : > { %v7493_v48 = vor.u32 %v8291_v13, %v7490_v3  ;;  %v8343_v50 = vld [vmem:[#allocation12 + $0x2a4] sm:$0xf]  ;;  %v7666_v19 = vld [vmem:[#allocation12 + $0x270] sm:$0xf0]  ;;  %v8282_v13 = vld [vmem:[#allocation12 + $0xb4] sm:$0xf0] }
 0x5ab   : > { %5452 = vmatpush.bf16.msrb.mxu0 %v7429_v12  ;;  %v7701_v35 = vor.u32 %v8343_v50, %v7698_v4  ;;  %v8375_v49 = vld [vmem:[#allocation12 + $0x3a4] sm:$0xf]  ;;  %v7794_v10 = vld [vmem:[#allocation12 + $0x370] sm:$0xf0]  ;;  %v7576_v3 = vld [vmem:[#allocation12 + $0x1a8] sm:$0xf] }
 0x5ac   : > { %5475 = vmatpush.bf16.msrb.mxu2 %v7733_v23  ;;  %v7829_v22 = vor.u32 %v8375_v49, %v7826_v16  ;;  %v8339_v51 = vld [vmem:[#allocation12 + $0x284] sm:$0xf]  ;;  %v7650_v15 = vld [vmem:[#allocation12 + $0x250] sm:$0xf0]  ;;  %v7432_v4 = vld [vmem:[#allocation12 + $0x88] sm:$0xf] }
 0x5ad   : > { %5466 = vmatpush.bf16.msrb.mxu1 %v7541_v43  ;;  %5489 = vmatpush.bf16.msrb.mxu3 %v7845_v42  ;;  %v8371_v60 = vld [vmem:[#allocation12 + $0x384] sm:$0xf]  ;;  %v7685_v63 = vor.u32 %v8339_v51, %v7682_v61  ;;  %v7778_v25 = vld [vmem:[#allocation12 + $0x350] sm:$0xf0]  ;;  %v7480_v43 = vld [vmem:[#allocation12 + $0xe8] sm:$0xf] }
 0x5ae   : > { %v7813_v6 = vor.u32 %v8371_v60, %v7810_v53  ;;  %v8335_v7 = vld [vmem:[#allocation12 + $0x264] sm:$0xf]  ;;  %v7634_v37 = vld [vmem:[#allocation12 + $0x230] sm:$0xf0]  ;;  %v7481_v38 = vor.u32 %v8290_v40, %v7480_v43  ;;  %v8318_v42 = vld [vmem:[#allocation12 + $0x1d4] sm:$0xf0] }
 0x5af   : > { %5453 = vmatpush.bf16.msrb.mxu0 %v7413_v17  ;;  %v8367_v8 = vld [vmem:[#allocation12 + $0x364] sm:$0xf]  ;;  %v7669_v21 = vor.u32 %v8335_v7, %v7666_v19  ;;  %v7762_v57 = vld [vmem:[#allocation12 + $0x330] sm:$0xf0]  ;;  %v7593_v62 = vor.u32 %v8318_v42, %v7592_v27  ;;  %v7560_v49 = vld [vmem:[#allocation12 + $0x188] sm:$0xf] }
 0x5b0   : > { %5476 = vmatpush.bf16.msrb.mxu2 %v7717_v2  ;;  %v7797_v24 = vor.u32 %v8367_v8, %v7794_v10  ;;  %v8331_v30 = vld [vmem:[#allocation12 + $0x244] sm:$0xf]  ;;  %v7618_v28 = vld [vmem:[#allocation12 + $0x210] sm:$0xf0]  ;;  %v8310_v16 = vld [vmem:[#allocation12 + $0x194] sm:$0xf0] }
 0x5b1   : > { %5467 = vmatpush.bf16.msrb.mxu1 %v7525_v44  ;;  %5490 = vmatpush.bf16.msrb.mxu3 %v7829_v22  ;;  %v8363_v58 = vld [vmem:[#allocation12 + $0x344] sm:$0xf]  ;;  %v7653_v5 = vor.u32 %v8331_v30, %v7650_v15  ;;  %v7746_v29 = vld [vmem:[#allocation12 + $0x310] sm:$0xf0]  ;;  %v8322_v44 = vld [vmem:[#allocation12 + $0x1f4] sm:$0xf0]  ;;  %v7561_v51 = vor.u32 %v8310_v16, %v7560_v49 }
 0x5b2   : > { %v7781_v31 = vor.u32 %v8363_v58, %v7778_v25  ;;  %v8327_v23 = vld [vmem:[#allocation12 + $0x224] sm:$0xf]  ;;  %v7416_v61 = vld [vmem:[#allocation12 + $0x68] sm:$0xf]  ;;  %v8274_v60 = vld [vmem:[#allocation12 + $0x74] sm:$0xf0] }
 0x5b3   : > { %5454 = vmatpush.bf16.msrb.mxu0 %v7397_v26  ;;  %v7637_v12 = vor.u32 %v8327_v23, %v7634_v37  ;;  %v8359_v36 = vld [vmem:[#allocation12 + $0x324] sm:$0xf]  ;;  %v7608_v26 = vld [vmem:[#allocation12 + $0x1e8] sm:$0xf]  ;;  %v8306_v53 = vld [vmem:[#allocation12 + $0x174] sm:$0xf0] }
 0x5b4   : > { %5477 = vmatpush.bf16.msrb.mxu2 %v7701_v35  ;;  %v7765_v41 = vor.u32 %v8359_v36, %v7762_v57  ;;  %v8323_v52 = vld [vmem:[#allocation12 + $0x204] sm:$0xf]  ;;  %v7609_v46 = vor.u32 %v8322_v44, %v7608_v26  ;;  %v8278_v35 = vld [vmem:[#allocation12 + $0x94] sm:$0xf0]  ;;  %v7400_v19 = vld [vmem:[#allocation12 + $0x48] sm:$0xf] }
 0x5b5   : > { %5468 = vmatpush.bf16.msrb.mxu1 %v7509_v55  ;;  %5491 = vmatpush.bf16.msrb.mxu3 %v7813_v6  ;;  %v8355_v17 = vld [vmem:[#allocation12 + $0x304] sm:$0xf]  ;;  %v7621_v45 = vor.u32 %v8323_v52, %v7618_v28  ;;  %v7464_v55 = vld [vmem:[#allocation12 + $0xc8] sm:$0xf]  ;;  %v7433_v22 = vor.u32 %v8278_v35, %v7432_v4  ;;  %v7417_v6 = vor.u32 %v8274_v60, %v7416_v61  ;;  %v8270_v8 = vld [vmem:[#allocation12 + $0x54] sm:$0xf0] }
 0x5b6   : > { %v7749_v47 = vor.u32 %v8355_v17, %v7746_v29  ;;  %v7528_v10 = vld [vmem:[#allocation12 + $0x148] sm:$0xf]  ;;  %v8354_v15 = vld [vmem:[#allocation12 + $0x2f4] sm:$0xf0]  ;;  %v7401_v23 = vor.u32 %v8270_v8, %v7400_v19  ;;  %v7610_v27 = vld [vmem:[#allocation12 + $0x1f8] sm:$0xf0] }
 0x5b7   : > { %5455 = vmatpush.bf16.msrb.mxu0 %v7381_v18  ;;  %v7864_v58 = vld [vmem:[#allocation12 + $0x3e8] sm:$0xf]  ;;  %v8386_v25 = vld [vmem:[#allocation12 + $0x3f4] sm:$0xf0]  ;;  %v7466_v4 = vld [vmem:[#allocation12 + $0xd8] sm:$0xf0] }
 0x5b8   : > { %5478 = vmatpush.bf16.msrb.mxu2 %v7685_v63  ;;  %v7544_v63 = vld [vmem:[#allocation12 + $0x168] sm:$0xf]  ;;  %v8266_v36 = vld [vmem:[#allocation12 + $0x34] sm:$0xf0]  ;;  %v7865_v43 = vor.u32 %v8386_v25, %v7864_v58  ;;  %v8316_v16 = vld [vmem:[#allocation12 + $0x1cc] sm:$0xf] }
 0x5b9   : > { %5469 = vmatpush.bf16.msrb.mxu1 %v7493_v48  ;;  %5492 = vmatpush.bf16.msrb.mxu3 %v7797_v24  ;;  %v7545_v7 = vor.u32 %v8306_v53, %v7544_v63  ;;  %v7736_v24 = vld [vmem:[#allocation12 + $0x2e8] sm:$0xf]  ;;  %v8350_v40 = vld [vmem:[#allocation12 + $0x2d4] sm:$0xf0] }
 0x5ba   : > { %v7512_v57 = vld [vmem:[#allocation12 + $0x128] sm:$0xf]  ;;  %v7737_v17 = vor.u32 %v8354_v15, %v7736_v24  ;;  %v8382_v44 = vld [vmem:[#allocation12 + $0x3d4] sm:$0xf0]  ;;  %v7578_v24 = vld [vmem:[#allocation12 + $0x1b8] sm:$0xf0] }
 0x5bb   : > { %5456 = vmatpush.bf16.msrb.mxu0 %v7365_v56  ;;  %v8314_v56 = vld [vmem:[#allocation12 + $0x1b4] sm:$0xf0]  ;;  %v7848_v26 = vld [vmem:[#allocation12 + $0x3c8] sm:$0xf] }
 0x5bc   : > { %5479 = vmatpush.bf16.msrb.mxu2 %v7669_v21  ;;  %v7577_v50 = vor.u32 %v8314_v56, %v7576_v3  ;;  %v8302_v21 = vld [vmem:[#allocation12 + $0x154] sm:$0xf0]  ;;  %v7704_v42 = vld [vmem:[#allocation12 + $0x2a8] sm:$0xf] }
 0x5bd   : > { %5493 = vmatpush.bf16.msrb.mxu3 %v7781_v31  ;;  %v7529_v37 = vor.u32 %v8302_v21, %v7528_v10  ;;  %v8342_v61 = vld [vmem:[#allocation12 + $0x294] sm:$0xf0]  ;;  %v7816_v60 = vld [vmem:[#allocation12 + $0x388] sm:$0xf]  ;;  %v7450_v10 = vld [vmem:[#allocation12 + $0xb8] sm:$0xf0] }
 0x5be   : > { %v8374_v63 = vld [vmem:[#allocation12 + $0x394] sm:$0xf0]  ;;  %v8312_v21 = vld [vmem:[#allocation12 + $0x1ac] sm:$0xf]  ;;  %v7800_v58 = vld [vmem:[#allocation12 + $0x368] sm:$0xf] }
 0x5bf   : > { %v7817_v8 = vor.u32 %v8374_v63, %v7816_v60  ;;  %v8338_v15 = vld [vmem:[#allocation12 + $0x274] sm:$0xf0]  ;;  %v8296_v60 = vld [vmem:[#allocation12 + $0x12c] sm:$0xf]  ;;  %v7514_v63 = vld [vmem:[#allocation12 + $0x138] sm:$0xf0] }
 0x5c0   : > { %5480 = vmatpush.bf16.msrb.mxu2 %v7653_v5  ;;  %v8370_v25 = vld [vmem:[#allocation12 + $0x374] sm:$0xf0] }
 0x5c1   : > { %5494 = vmatpush.bf16.msrb.mxu3 %v7765_v41  ;;  %v8298_v41 = vld [vmem:[#allocation12 + $0x134] sm:$0xf0] }
 0x5c4   : > { %5481 = vmatpush.bf16.msrb.mxu2 %v7637_v12  ;;  %v7384_v12 = vld [vmem:[#allocation12 + $0x28] sm:$0xf] }
 0x5c5   : > { %5495 = vmatpush.bf16.msrb.mxu3 %v7749_v47  ;;  %v7385_v47 = vor.u32 %v8266_v36, %v7384_v12  ;;  %v8308_v12 = vld [vmem:[#allocation12 + $0x18c] sm:$0xf]  ;;  %v7562_v36 = vld [vmem:[#allocation12 + $0x198] sm:$0xf0] }
 0x5c8   : > { %5482 = vmatpush.bf16.msrb.mxu2 %v7621_v45  ;;  %v7720_v45 = vld [vmem:[#allocation12 + $0x2c8] sm:$0xf] }
 0x5fe   : > { %v8522_v59 = vpop.permute.xlu2 %8521 }
 0x5ff   : > { %v8524_v33 = vunpack.i.h.bf16 %v8522_v59  ;;  %v8523_v54 = vunpack.i.l.bf16 %v8522_v59 }
 0x601   : > { %v4622_v18 = vsel %vm4065_vm9, %v9551_v34, %v8524_v33  ;;  %v4621_v39 = vsel %vm4065_vm9, %v9546_v14, %v8523_v54  ;;  %v7465_v34 = vor.u32 %v8286_v32, %v7464_v55  ;;  %v7448_v14 = vld [vmem:[#allocation12 + $0xa8] sm:$0xf]  ;;  %v7513_v33 = vor.u32 %v8298_v41, %v7512_v57  ;;  %v8320_v32 = vld [vmem:[#allocation12 + $0x1ec] sm:$0xf] }
 0x602   : > { %v9565_v2 = vpack.c.bf16 %v4622_v18, %v4622_v18  ;;  %v9567_v11 = vpack.c.bf16 %v4621_v39, %v4621_v39  ;;  %v7449_v48 = vor.u32 %v8282_v13, %v7448_v14  ;;  %v7368_v54 = vld [vmem:[#allocation12 + $0x8] sm:$0xf]  ;;  %v8262_v18 = vld [vmem:[#allocation12 + $0x14] sm:$0xf0]  ;;  %v8288_v39 = vld [vmem:[#allocation12 + $0xec] sm:$0xf]  ;;  %v7849_v55 = vor.u32 %v8382_v44, %v7848_v26 }
 0x603   : > { %v8378_v14 = vld [vmem:[#allocation12 + $0x3b4] sm:$0xf0]  ;;  %v7369_v13 = vor.u32 %v8262_v18, %v7368_v54  ;;  %v7801_v41 = vor.u32 %v8370_v25, %v7800_v58  ;;  %v8272_v26 = vld [vmem:[#allocation12 + $0x6c] sm:$0xf]  ;;  %v7418_v44 = vld [vmem:[#allocation12 + $0x78] sm:$0xf0] }
 0x604   : > { %5405 = vmatmul.bf16.vlgmr.msra.gmra.mxu0 %v9567_v11  ;;  %5418 = vmatmul.bf16.vlgmr.msra.gmra.mxu1 %v9565_v2  ;;  %v8260_v58 = vld [vmem:[#allocation12 + $0xc] sm:$0xf]  ;;  %v7370_v25 = vld [vmem:[#allocation12 + $0x18] sm:$0xf0] }
 0x605   : > { %5501 = vmatpush.bf16.msra.mxu0 %v7481_v38  ;;  %5514 = vmatpush.bf16.msra.mxu1 %v7609_v46  ;;  %v7482_v38 = vld [vmem:[#allocation12 + $0xf8] sm:$0xf0]  ;;  %v7721_v46 = vor.u32 %v8350_v40, %v7720_v45  ;;  %v7565_v40 = vor.u32 %v8308_v12, %v7562_v36  ;;  %v8344_v12 = vld [vmem:[#allocation12 + $0x2ac] sm:$0xf]  ;;  %v7373_v36 = vor.u32 %v8260_v58, %v7370_v25  ;;  %v5617_v58 = vld [vmem:[#allocation13] sm:$0xf] }
 0x606   : > { %v7485_v56 = vor.u32 %v8288_v39, %v7482_v38  ;;  %v7768_v39 = vld [vmem:[#allocation12 + $0x328] sm:$0xf]  ;;  %v8362_v38 = vld [vmem:[#allocation12 + $0x334] sm:$0xf0] }
 0x609   : > { %5502 = vmatpush.bf16.msra.mxu0 %v7465_v34  ;;  %5515 = vmatpush.bf16.msra.mxu1 %v7593_v62  ;;  %v8346_v34 = vld [vmem:[#allocation12 + $0x2b4] sm:$0xf0]  ;;  %v7832_v62 = vld [vmem:[#allocation12 + $0x3a8] sm:$0xf] }
 0x60a   : > { %v7705_v35 = vor.u32 %v8346_v34, %v7704_v42  ;;  %v7833_v49 = vor.u32 %v8378_v14, %v7832_v62  ;;  %v8300_v42 = vld [vmem:[#allocation12 + $0x14c] sm:$0xf]  ;;  %v7530_v34 = vld [vmem:[#allocation12 + $0x158] sm:$0xf0]  ;;  %v7769_v14 = vor.u32 %v8362_v38, %v7768_v39 }
 0x60d   : > { %5503 = vmatpush.bf16.msra.mxu0 %v7449_v48  ;;  %5516 = vmatpush.bf16.msra.mxu1 %v7577_v50  ;;  %v7613_v48 = vor.u32 %v8320_v32, %v7610_v27  ;;  %v8284_v50 = vld [vmem:[#allocation12 + $0xcc] sm:$0xf]  ;;  %v7402_v27 = vld [vmem:[#allocation12 + $0x58] sm:$0xf0] }
 0x60e   : > { %v7469_v53 = vor.u32 %v8284_v50, %v7466_v4  ;;  %v8268_v32 = vld [vmem:[#allocation12 + $0x4c] sm:$0xf]  ;;  %v7738_v4 = vld [vmem:[#allocation12 + $0x2f8] sm:$0xf0] }
 0x60f   : > { %v8352_v50 = vld [vmem:[#allocation12 + $0x2ec] sm:$0xf] }
 0x611   : > { %5504 = vmatpush.bf16.msra.mxu0 %v7433_v22  ;;  %5517 = vmatpush.bf16.msra.mxu1 %v7561_v51  ;;  %v7594_v22 = vld [vmem:[#allocation12 + $0x1d8] sm:$0xf0]  ;;  %v7688_v51 = vld [vmem:[#allocation12 + $0x288] sm:$0xf] }
 0x612   : > { %v7689_v19 = vor.u32 %v8342_v61, %v7688_v51  ;;  %v8264_v51 = vld [vmem:[#allocation12 + $0x2c] sm:$0xf]  ;;  %v7386_v61 = vld [vmem:[#allocation12 + $0x38] sm:$0xf0] }
 0x614   : > { %v8517_v30 = vpop.permute.xlu0 %8516  ;;  %5457 = vmatmul.bf16.vlgmr.msrb.gmra.mxu0 %v9567_v11  ;;  %5470 = vmatmul.bf16.vlgmr.msrb.gmra.mxu1 %v9565_v2 }
 0x615   : > { %v8519_v5 = vunpack.i.h.bf16 %v8517_v30  ;;  %v8518_v31 = vunpack.i.l.bf16 %v8517_v30  ;;  %5505 = vmatpush.bf16.msra.mxu0 %v7417_v6  ;;  %5518 = vmatpush.bf16.msra.mxu1 %v7545_v7  ;;  %v7597_v6 = vor.u32 %v8316_v16, %v7594_v22  ;;  %v8280_v7 = vld [vmem:[#allocation12 + $0xac] sm:$0xf]  ;;  %v7672_v30 = vld [vmem:[#allocation12 + $0x268] sm:$0xf]  ;;  %v7866_v22 = vld [vmem:[#allocation12 + $0x3f8] sm:$0xf0] }
 0x616   : > { %v7673_v57 = vor.u32 %v8338_v15, %v7672_v30  ;;  %v8384_v16 = vld [vmem:[#allocation12 + $0x3ec] sm:$0xf]  ;;  %v7850_v15 = vld [vmem:[#allocation12 + $0x3d8] sm:$0xf0] }
 0x617   : > { %v4624_v52 = vsel %vm4065_vm9, %v9542_v9, %v8519_v5  ;;  %v4623_v28 = vsel %vm4065_vm9, %v9537_v20, %v8518_v31  ;;  %v7496_v9 = vld [vmem:[#allocation12 + $0x108] sm:$0xf]  ;;  %v8294_v20 = vld [vmem:[#allocation12 + $0x114] sm:$0xf0]  ;;  %v7453_v5 = vor.u32 %v8280_v7, %v7450_v10  ;;  %v7581_v31 = vor.u32 %v8312_v21, %v7578_v24  ;;  %v7722_v10 = vld [vmem:[#allocation12 + $0x2d8] sm:$0xf0] }
 0x618   : > { %v9577_v29 = vpack.c.bf16 %v4624_v52, %v4624_v52  ;;  %v9579_v59 = vpack.c.bf16 %v4623_v28, %v4623_v28  ;;  %v7497_v3 = vor.u32 %v8294_v20, %v7496_v9  ;;  %v7656_v52 = vld [vmem:[#allocation12 + $0x248] sm:$0xf]  ;;  %v8334_v28 = vld [vmem:[#allocation12 + $0x254] sm:$0xf0]  ;;  %v7741_v7 = vor.u32 %v8352_v50, %v7738_v4  ;;  %v8380_v30 = vld [vmem:[#allocation12 + $0x3cc] sm:$0xf] }
 0x619   : > { %5506 = vmatpush.bf16.msra.mxu0 %v7401_v23  ;;  %5519 = vmatpush.bf16.msra.mxu1 %v7529_v37  ;;  %v8276_v23 = vld [vmem:[#allocation12 + $0x8c] sm:$0xf]  ;;  %v7434_v37 = vld [vmem:[#allocation12 + $0x98] sm:$0xf0]  ;;  %v7657_v54 = vor.u32 %v8334_v28, %v7656_v52  ;;  %v7640_v9 = vld [vmem:[#allocation12 + $0x228] sm:$0xf]  ;;  %v7389_v21 = vor.u32 %v8264_v51, %v7386_v61  ;;  %v7517_v24 = vor.u32 %v8296_v60, %v7514_v63 }
 0x61a   : > { %5431 = vmatmul.bf16.vlgmr.msra.gmra.mxu2 %v9579_v59  ;;  %5444 = vmatmul.bf16.vlgmr.msra.gmra.mxu3 %v9577_v29  ;;  %v7437_v45 = vor.u32 %v8276_v23, %v7434_v37  ;;  %v8330_v20 = vld [vmem:[#allocation12 + $0x234] sm:$0xf0]  ;;  %v7853_v37 = vor.u32 %v8380_v30, %v7850_v15  ;;  %v8376_v52 = vld [vmem:[#allocation12 + $0x3ac] sm:$0xf]  ;;  %v7834_v28 = vld [vmem:[#allocation12 + $0x3b8] sm:$0xf0] }
 0x61b   : > { %5527 = vmatpush.bf16.msra.mxu2 %v7737_v17  ;;  %5540 = vmatpush.bf16.msra.mxu3 %v7865_v43  ;;  %v7784_v17 = vld [vmem:[#allocation12 + $0x348] sm:$0xf]  ;;  %v8366_v43 = vld [vmem:[#allocation12 + $0x354] sm:$0xf0]  ;;  %v7641_v62 = vor.u32 %v8330_v20, %v7640_v9  ;;  %v8368_v9 = vld [vmem:[#allocation12 + $0x36c] sm:$0xf] }
 0x61c   : > { %v7785_v18 = vor.u32 %v8366_v43, %v7784_v17  ;;  %v7837_v43 = vor.u32 %v8376_v52, %v7834_v28  ;;  %v7802_v20 = vld [vmem:[#allocation12 + $0x378] sm:$0xf0]  ;;  %v8356_v50 = vld [vmem:[#allocation12 + $0x30c] sm:$0xf] }
 0x61d   : > { %5507 = vmatpush.bf16.msra.mxu0 %v7385_v47  ;;  %5520 = vmatpush.bf16.msra.mxu1 %v7513_v33  ;;  %v8304_v47 = vld [vmem:[#allocation12 + $0x16c] sm:$0xf]  ;;  %v7546_v33 = vld [vmem:[#allocation12 + $0x178] sm:$0xf0]  ;;  %v7805_v38 = vor.u32 %v8368_v9, %v7802_v20 }
 0x61e   : > { %v7754_v4 = vld [vmem:[#allocation12 + $0x318] sm:$0xf0] }
 0x61f   : > { %5528 = vmatpush.bf16.msra.mxu2 %v7721_v46  ;;  %5541 = vmatpush.bf16.msra.mxu3 %v7849_v55  ;;  %v7421_v46 = vor.u32 %v8272_v26, %v7418_v44  ;;  %v7549_v55 = vor.u32 %v8304_v47, %v7546_v33  ;;  %v8372_v26 = vld [vmem:[#allocation12 + $0x38c] sm:$0xf]  ;;  %v7818_v44 = vld [vmem:[#allocation12 + $0x398] sm:$0xf0] }
 0x620   : > { %v7821_v33 = vor.u32 %v8372_v26, %v7818_v44 }
 0x621   : > { %5508 = vmatpush.bf16.msra.mxu0 %v7369_v13  ;;  %5521 = vmatpush.bf16.msra.mxu1 %v7497_v3  ;;  %v7624_v13 = vld [vmem:[#allocation12 + $0x208] sm:$0xf]  ;;  %v8326_v3 = vld [vmem:[#allocation12 + $0x214] sm:$0xf0] }
 0x623   : > { %5529 = vmatpush.bf16.msra.mxu2 %v7705_v35  ;;  %5542 = vmatpush.bf16.msra.mxu3 %v7833_v49  ;;  %v7405_v35 = vor.u32 %v8268_v32, %v7402_v27  ;;  %v7533_v49 = vor.u32 %v8300_v42, %v7530_v34  ;;  %v8364_v32 = vld [vmem:[#allocation12 + $0x34c] sm:$0xf]  ;;  %v7786_v27 = vld [vmem:[#allocation12 + $0x358] sm:$0xf0] }
 0x624   : > { %5509 = vmatmul.bf16.vlgmr.msra.gmra.mxu0 %v9567_v11  ;;  %5522 = vmatmul.bf16.vlgmr.msra.gmra.mxu1 %v9565_v2  ;;  %v7789_v34 = vor.u32 %v8364_v32, %v7786_v27 }
 0x625   : > { %5553 = vmatpush.bf16.msrb.mxu0 %v7485_v56  ;;  %5566 = vmatpush.bf16.msrb.mxu1 %v7613_v48  ;;  %v7752_v56 = vld [vmem:[#allocation12 + $0x308] sm:$0xf]  ;;  %v8358_v48 = vld [vmem:[#allocation12 + $0x314] sm:$0xf0] }
 0x627   : > { %5530 = vmatpush.bf16.msra.mxu2 %v7689_v19  ;;  %5543 = vmatpush.bf16.msra.mxu3 %v7817_v8  ;;  %v7869_v19 = vor.u32 %v8384_v16, %v7866_v22  ;;  %v8348_v8 = vld [vmem:[#allocation12 + $0x2cc] sm:$0xf] }
 0x628   : > { %v7725_v23 = vor.u32 %v8348_v8, %v7722_v10 }
 0x629   : > { %5554 = vmatpush.bf16.msrb.mxu0 %v7469_v53  ;;  %5567 = vmatpush.bf16.msrb.mxu1 %v7597_v6  ;;  %v7625_v53 = vor.u32 %v8326_v3, %v7624_v13  ;;  %v7753_v6 = vor.u32 %v8358_v48, %v7752_v56  ;;  %v7770_v13 = vld [vmem:[#allocation12 + $0x338] sm:$0xf0]  ;;  %v8324_v56 = vld [vmem:[#allocation12 + $0x20c] sm:$0xf] }
 0x62a   : > { %5483 = vmatmul.bf16.vlgmr.msrb.gmra.mxu2 %v9579_v59  ;;  %5496 = vmatmul.bf16.vlgmr.msrb.gmra.mxu3 %v9577_v29  ;;  %v7626_v48 = vld [vmem:[#allocation12 + $0x218] sm:$0xf0] }
 0x62b   : > { %5531 = vmatpush.bf16.msra.mxu2 %v7673_v57  ;;  %5544 = vmatpush.bf16.msra.mxu3 %v7801_v41  ;;  %v7706_v41 = vld [vmem:[#allocation12 + $0x2b8] sm:$0xf0] }
 0x62c   : > { %v7709_v17 = vor.u32 %v8344_v12, %v7706_v41 }
 0x62d   : > { %5555 = vmatpush.bf16.msrb.mxu0 %v7453_v5  ;;  %5568 = vmatpush.bf16.msrb.mxu1 %v7581_v31  ;;  %v8292_v5 = vld [vmem:[#allocation12 + $0x10c] sm:$0xf]  ;;  %v7498_v31 = vld [vmem:[#allocation12 + $0x118] sm:$0xf0] }
 0x62e   : > { %v7501_v57 = vor.u32 %v8292_v5, %v7498_v31 }
 0x62f   : > { %5532 = vmatpush.bf16.msra.mxu2 %v7657_v54  ;;  %5545 = vmatpush.bf16.msra.mxu3 %v7785_v18  ;;  %v8336_v54 = vld [vmem:[#allocation12 + $0x26c] sm:$0xf]  ;;  %v7674_v18 = vld [vmem:[#allocation12 + $0x278] sm:$0xf0] }
 0x630   : > { %v7677_v39 = vor.u32 %v8336_v54, %v7674_v18 }
 0x631   : > { %5556 = vmatpush.bf16.msrb.mxu0 %v7437_v45  ;;  %5569 = vmatpush.bf16.msrb.mxu1 %v7565_v40  ;;  %v8340_v45 = vld [vmem:[#allocation12 + $0x28c] sm:$0xf]  ;;  %v7690_v40 = vld [vmem:[#allocation12 + $0x298] sm:$0xf0] }
 0x632   : > { %v7693_v47 = vor.u32 %v8340_v45, %v7690_v40 }
 0x633   : > { %5533 = vmatpush.bf16.msra.mxu2 %v7641_v62  ;;  %5546 = vmatpush.bf16.msra.mxu3 %v7769_v14  ;;  %v8328_v62 = vld [vmem:[#allocation12 + $0x22c] sm:$0xf]  ;;  %v7642_v14 = vld [vmem:[#allocation12 + $0x238] sm:$0xf0] }
 0x635   : > { %5557 = vmatpush.bf16.msrb.mxu0 %v7421_v46  ;;  %5570 = vmatpush.bf16.msrb.mxu1 %v7549_v55  ;;  %v8332_v46 = vld [vmem:[#allocation12 + $0x24c] sm:$0xf]  ;;  %v7658_v55 = vld [vmem:[#allocation12 + $0x258] sm:$0xf0] }
 0x636   : > { %v7661_v42 = vor.u32 %v8332_v46, %v7658_v55  ;;  %v5622_v55 = vperm.slane %v5617_v58, 3 }
 0x637   : > { %5534 = vmatpush.bf16.msra.mxu2 %v7625_v53  ;;  %5547 = vmatpush.bf16.msra.mxu3 %v7753_v6 }
 0x639   : > { %5558 = vmatpush.bf16.msrb.mxu0 %v7405_v35  ;;  %5571 = vmatpush.bf16.msrb.mxu1 %v7533_v49  ;;  %v7629_v35 = vor.u32 %v8324_v56, %v7626_v48  ;;  %v7757_v49 = vor.u32 %v8356_v50, %v7754_v4 }
 0x63a   : > { %5535 = vmatmul.bf16.vlgmr.msra.gmra.mxu2 %v9579_v59  ;;  %5548 = vmatmul.bf16.vlgmr.msra.gmra.mxu3 %v9577_v29 }
 0x63b   : > { %5579 = vmatpush.bf16.msrb.mxu2 %v7741_v7  ;;  %5592 = vmatpush.bf16.msrb.mxu3 %v7869_v19 }
 0x63d   : > { %5559 = vmatpush.bf16.msrb.mxu0 %v7389_v21  ;;  %5572 = vmatpush.bf16.msrb.mxu1 %v7517_v24 }
 0x63f   : > { %5580 = vmatpush.bf16.msrb.mxu2 %v7725_v23  ;;  %5593 = vmatpush.bf16.msrb.mxu3 %v7853_v37 }
 0x641   : > { %5560 = vmatpush.bf16.msrb.mxu0 %v7373_v36  ;;  %5573 = vmatpush.bf16.msrb.mxu1 %v7501_v57  ;;  %v5619_v36 = vperm.slane %v5617_v58, 0 }
 0x643   : > { %5581 = vmatpush.bf16.msrb.mxu2 %v7709_v17  ;;  %5594 = vmatpush.bf16.msrb.mxu3 %v7837_v43 }
 0x644   : > { %5561 = vmatmul.bf16.vlgmr.msrb.gmra.mxu0 %v9567_v11  ;;  %5574 = vmatmul.bf16.vlgmr.msrb.gmra.mxu1 %v9565_v2  ;;  %v8360_v11 = vld [vmem:[#allocation12 + $0x32c] sm:$0xf]  ;;  %v7645_v2 = vor.u32 %v8328_v62, %v7642_v14  ;;  %v5621_v62 = vperm.slane %v5617_v58, 2  ;;  %v5624_v14 = vrot.slane %v5622_v55, 4 }
 0x645   : > { %v7773_v3 = vor.u32 %v8360_v11, %v7770_v13 }
 0x647   : > { %5582 = vmatpush.bf16.msrb.mxu2 %v7693_v47  ;;  %5595 = vmatpush.bf16.msrb.mxu3 %v7821_v33 }
 0x64b   : > { %5583 = vmatpush.bf16.msrb.mxu2 %v7677_v39  ;;  %5596 = vmatpush.bf16.msrb.mxu3 %v7805_v38 }
 0x64f   : > { %5584 = vmatpush.bf16.msrb.mxu2 %v7661_v42  ;;  %5597 = vmatpush.bf16.msrb.mxu3 %v7789_v34 }
 0x653   : > { %5585 = vmatpush.bf16.msrb.mxu2 %v7645_v2  ;;  %5598 = vmatpush.bf16.msrb.mxu3 %v7773_v3  ;;  %v5626_v3 = vsel %vm550_vm0, %v5621_v62, %v5624_v14 }
 0x657   : > { %5586 = vmatpush.bf16.msrb.mxu2 %v7629_v35  ;;  %5599 = vmatpush.bf16.msrb.mxu3 %v7757_v49 }
 0x65a   : > { %5587 = vmatmul.bf16.vlgmr.msrb.gmra.mxu2 %v9579_v59  ;;  %5600 = vmatmul.bf16.vlgmr.msrb.gmra.mxu3 %v9577_v29  ;;  %v5620_v29 = vperm.slane %v5617_v58, 1 }
 0x65c   : > { %v5623_v57 = vrot.slane %v5620_v29, 4 }
 0x65e   : > { %v5625_v17 = vsel %vm550_vm0, %v5619_v36, %v5623_v57 }
 0x681   : > { %v5406_v16 = vpop.f32.mrf.mxu0  ;;  %v5419_v22 = vpop.f32.mrf.mxu1 }
 0x682   : > { %v5420_v59 = vadd.f32 %v5419_v22, %v5406_v16 }
 0x689   : > { %v5408_v51 = vpop.f32.mrf.mxu0  ;;  %v5421_v61 = vpop.f32.mrf.mxu1 }
 0x691   : > { %v5458_v60 = vpop.f32.mrf.mxu0  ;;  %v5471_v63 = vpop.f32.mrf.mxu1 }
 0x692   : > { %v5472_v25 = vadd.f32 %v5471_v63, %v5458_v60 }
 0x699   : > { %v5460_v53 = vpop.f32.mrf.mxu0  ;;  %v5473_v6 = vpop.f32.mrf.mxu1 }
 0x69d   : > { %v5432_v7 = vpop.f32.mrf.mxu2  ;;  %v5445_v19 = vpop.f32.mrf.mxu3 }
 0x69e   : > { %v5433_v23 = vadd.f32 %v5432_v7, %v5420_v59 }
 0x6a0   : > { %v5446_v41 = vadd.f32 %v5445_v19, %v5433_v23 }
 0x6a1   : > { %v5510_v8 = vpop.f32.mrf.mxu0  ;;  %v5523_v10 = vpop.f32.mrf.mxu1 }
 0x6a2   : > { %v5524_v38 = vadd.f32 %v5523_v10, %v5510_v8 }
 0x6a5   : > { %v5434_v21 = vpop.f32.mrf.mxu2  ;;  %v5447_v24 = vpop.f32.mrf.mxu3 }
 0x6a9   : > { %v5512_v30 = vpop.f32.mrf.mxu0  ;;  %v5525_v15 = vpop.f32.mrf.mxu1 }
 0x6ad   : > { %v5484_v5 = vpop.f32.mrf.mxu2  ;;  %v5497_v31 = vpop.f32.mrf.mxu3 }
 0x6ae   : > { %v5485_v37 = vadd.f32 %v5484_v5, %v5472_v25 }
 0x6b0   : > { %v5498_v12 = vadd.f32 %v5497_v31, %v5485_v37 }
 0x6b2   : > { %v5609_v52 = vrot.slane %v5498_v12, 4 }
 0x6b4   : > { %v5611_v28 = vsel %vm550_vm0, %v5446_v41, %v5609_v52 }
 0x6b5   : > { %v5615_v43 = vadd.f32 %v5611_v28, %v9002_v0  ;;  %v5486_v45 = vpop.f32.mrf.mxu2  ;;  %v5499_v40 = vpop.f32.mrf.mxu3 }
 0x6b7   : > { %v5629_v26 = vadd.f32 %v5625_v17, %v5615_v43 }
 0x6b9   : > { %5631 = vst [vmem:[%s529_s25] sm:$0xff] %v5629_v26 }
 0x6bd   : > { %v5536_v44 = vpop.f32.mrf.mxu2  ;;  %v5549_v47 = vpop.f32.mrf.mxu3 }
 0x6be   : > { %v5537_v27 = vadd.f32 %v5536_v44, %v5524_v38 }
 0x6c0   : > { %v5550_v11 = vadd.f32 %v5549_v47, %v5537_v27 }
 0x6c1   : > { %v5562_v33 = vpop.f32.mrf.mxu0  ;;  %v5575_v54 = vpop.f32.mrf.mxu1 }
 0x6c2   : > { %v5576_v46 = vadd.f32 %v5575_v54, %v5562_v33 }
 0x6c5   : > { %v5538_v18 = vpop.f32.mrf.mxu2  ;;  %v5551_v9 = vpop.f32.mrf.mxu3 }
 0x6c9   : > { %v5564_v20 = vpop.f32.mrf.mxu0  ;;  %v5577_v39 = vpop.f32.mrf.mxu1 }
 0x6dd   : > { %v5588_v0 = vpop.f32.mrf.mxu2  ;;  %v5601_v32 = vpop.f32.mrf.mxu3 }
 0x6de   : > { %v5589_v42 = vadd.f32 %v5588_v0, %v5576_v46 }
 0x6e0   : > { %v5602_v34 = vadd.f32 %v5601_v32, %v5589_v42 }
 0x6e2   : > { %v5610_v13 = vrot.slane %v5602_v34, 4 }
 0x6e4   : > { %v5612_v2 = vsel %vm550_vm0, %v5550_v11, %v5610_v13 }
 0x6e5   : > { %v5616_v56 = vadd.f32 %v5612_v2, %v9004_v1  ;;  %v5590_v48 = vpop.f32.mrf.mxu2  ;;  %v5603_v50 = vpop.f32.mrf.mxu3 }
 0x6e7   : > { %v5630_v4 = vadd.f32 %v5626_v3, %v5616_v56 }
 0x6e9   : > { %5632 = vst [vmem:[%s529_s25 + $0x8] sm:$0xff] %v5630_v4 }
 0x6ea PF: > { %s26_s17 = sadd.s32 1, %s8830_s17  }
 0x6eb   : > { %p23_p7 = scmp.ge.s32.totalorder %s26_s17, 4  }
 0x6ed   :  { %25 = sbr.rel (!%p23_p7) target bundleno = 7 (0x7), region = 134 }
 0x6f2   :  { %5654 = vsyncpa [#allocation3], 1 }
 0x6f3   :  { %5656 = vsyncpa [#allocation3 + $0x1], 1 }
 0x6f4   :  { %5657 = vsyncpa [#allocation5], 1 }
 0x6f5   :  { %5658 = vsyncpa [#allocation8], 1 }
 0x6f6   :  { %5659 = vsyncpa [#allocation11], 1 }
 0x6f7   :  { %5660 = vsyncpa [#allocation14], 1 }

// kernel: encoder_decoder_fwd.12
= control target key start
LH: loop header
LB: loop body
LE: loop exit
PB: predicated region body
PF: predicated region fallthrough
CT: control target
= control target key end

     0   :  { %13 = vsyncpa [#allocation3], 0  ;;  %s9172_s0 = inlined_call_operand.vmem [shape: f32[8,4,4], index: 0, kind: input, shape index: {}]   ;;  %s9173_s1 = inlined_call_operand.vmem [shape: f32[2,4,512], index: 1, kind: input, shape index: {}]   ;;  %s9174_s2 = inlined_call_operand.hbm [shape: f32[1,512], index: 2, kind: input, shape index: {}]   ;;  %s9175_s3 = inlined_call_operand.hbm [shape: f32[1,512], index: 3, kind: input, shape index: {}]   ;;  %s9176_s4 = inlined_call_operand.hbm [shape: bf16[512,1536], index: 4, kind: input, shape index: {}]   ;;  %s9177_s5 = inlined_call_operand.vmem [shape: f32[1,1536], index: 5, kind: input, shape index: {}]   ;;  %s9178_s6 = inlined_call_operand.hbm [shape: bf16[512,512], index: 6, kind: input, shape index: {}]   ;;  %s9179_s7 = inlined_call_operand.hbm [shape: f32[1,512], index: 7, kind: input, shape index: {}]   ;;  %s9180_s8 = inlined_call_operand.vmem [shape: f32[2,4,512], index: 8, kind: output, shape index: {}]  }
   0x1   :  { %14 = vsyncpa [#allocation5], 0 }
   0x2   :  { %15 = vsyncpa [#allocation8], 0  ;;  %s8547_s27 = smov 0  }
   0x3 LB: > { %s252_s30 = sshll.u32 %s9175_s3, 4  ;;  %s8556_s9 = sadd.s32 4294967295, %s8486_s27   ;;  %s8486_s27 = sphi %s8547_s27, %s21_s27   ;;  %s253_s30 = int_to_ptr.hbm [resolvable:$true] %s252_s30 }
   0x4   : > { %p5574_p0 = scmp.ge.s32.totalorder %s8486_s27, 1  ;;  %p225_p1 = scmp.lt.s32.totalorder %s8486_s27, 3 }
   0x5   : > { %p8207_p2 = scmp.eq.s32.totalorder %s8556_s9, 0  ;;  %s8488_s11 = smov [#allocation4]  }
   0x6   : > { %p8561_p3 = pnand %p5574_p0, %p225_p1  ;;  %s254_s12 = sshll.u32 %s8488_s11, 4  ;;  %s255_s12 = int_to_ptr.vmem [resolvable:$true] %s254_s12 }
   0x7   : > { %s280_s15 = sshll.u32 %s9178_s6, 4  ;;  %s8489_s17 = smov [#allocation7]   ;;  %s281_s15 = int_to_ptr.hbm [resolvable:$true] %s280_s15 }
   0x8   : > { %p8191_p4 = pneg %p8561_p3  ;;  %s282_s18 = sshll.u32 %s8489_s17, 4  ;;  %s283_s18 = int_to_ptr.vmem [resolvable:$true] %s282_s18 }
   0x9   : > { %s240_s21 = sshll.u32 %s9174_s2, 4  ;;  %s8490_s22 = smov 256   ;;  %s241_s21 = int_to_ptr.hbm [resolvable:$true] %s240_s21 }
   0xa   : > { %p8572_p5 = pnand %p8207_p2, %p8191_p4  ;;  %s8491_s23 = smov 16  }
   0xb   : > { %s8492_s24 = smov [#allocation2]   ;;  %s263_s29 = sshll.u32 %s9176_s4, 4  ;;  %s264_s29 = int_to_ptr.hbm [resolvable:$true] %s263_s29 }
   0xc   : > { %8197 = dma.hbm_to_vmem [thread:$0]  (!%p8572_p5), %s253_s30, 64, %s255_s12, [#allocation5]  }
   0xd   : > { %8203 = dma.hbm_to_vmem [thread:$0]  (!%p8572_p5), %s281_s15, 16384, %s283_s18, [#allocation8], %s8490_s22, %s8490_s22, %s8491_s23  }
   0xe   : > { %s242_s25 = sshll.u32 %s8492_s24, 4  ;;  %s8493_s11 = smov [#allocation6]   ;;  %s243_s25 = int_to_ptr.vmem [resolvable:$true] %s242_s25 }
   0xf   : > { %8194 = dma.hbm_to_vmem [thread:$0]  (!%p8572_p5), %s241_s21, 64, %s243_s25, [#allocation3]  }
  0x10   : > { %s265_s13 = sshll.u32 %s8493_s11, 4  ;;  %s295_s14 = sshll.u32 %s9179_s7, 4  ;;  %s266_s13 = int_to_ptr.vmem [resolvable:$true] %s265_s13  ;;  %s296_s14 = int_to_ptr.hbm [resolvable:$true] %s295_s14 }
  0x11   : > { %s8494_s15 = smov 768   ;;  %s8495_s17 = smov 48  }
  0x12   : > { %8200 = dma.hbm_to_vmem [thread:$0]  (!%p8572_p5), %s264_s29, 49152, %s266_s13, [#allocation5], %s8494_s15, %s8494_s15, %s8495_s17  }
  0x13   : > { %s8496_s18 = smov [#allocation9]   ;;  %318 = sbr.rel (%p8561_p3) target bundleno = 1754 (0x6da), region = 52 }
  0x14   : > { %s297_s19 = sshll.u32 %s8496_s18, 4  ;;  %s298_s19 = int_to_ptr.vmem [resolvable:$true] %s297_s19 }
  0x15   : > { %8206 = dma.hbm_to_vmem [thread:$0]  (!%p8572_p5), %s296_s14, 64, %s298_s19, [#allocation8]  }
  0x18   : > { %8473 = dma.done.wait (%p8207_p2), [#allocation3], 64  }
  0x19   : > { %8475 = vsyncadd (%p8207_p2), [#allocation3], 4294967232 }
  0x1a   : > { %8477 = dma.done.wait (%p8207_p2), [#allocation5], 49216  }
  0x1b   : > { %8479 = vsyncadd (%p8207_p2), [#allocation5], 4294918080 }
  0x1c   : > { %8481 = dma.done.wait (%p8207_p2), [#allocation8], 16448  }
  0x1d   : > { %8483 = vsyncadd (%p8207_p2), [#allocation8], 4294950848  ;;  %p373_p6 = scmp.lt.s32.totalorder %s8556_s9, 1  ;;  %vm401_vm0 = vcmask 1043456   ;;  %v8497_v13 = vmov 512.0   ;;  %vm3507_vm8 = vcmask 1047556  }
  0x1e   : > { %8279 = vrcp.f32 %v8497_v13  ;;  %v5929_v19 = vld [vmem:[#allocation6 + $0x2a0] sm:$0xf]  ;;  %v7749_v20 = vld [vmem:[#allocation6 + $0x2cc] sm:$0xf0]  ;;  %v8498_v22 = vmov 839922192  }
  0x1f   : > { %s9184_s9 = smov (!%p373_p6, %s8556_s9), 1  ;;  %v6313_v21 = vld [vmem:[#allocation6 + $0x5a0] sm:$0xf]  ;;  %v421_v23 = vunpack.c.l.s4 %v8498_v22  ;;  %v5930_v24 = vor.u32 %v7749_v20, %v5929_v19  ;;  %v7845_v25 = vld [vmem:[#allocation6 + $0x5cc] sm:$0xf0]  ;;  %s8499_s24 = smov 64  }
  0x20   : > { %s7657_s10 = sshll.u32 %s9184_s9, 4  ;;  %v6697_v26 = vld [vmem:[#allocation6 + $0x8a0] sm:$0xf]  ;;  %v7941_v27 = vld [vmem:[#allocation6 + $0x8cc] sm:$0xf0]  ;;  %v6314_v28 = vor.u32 %v7845_v25, %v6313_v21  ;;  %vm3899_vm9 = vcmask 523264  }
  0x21   : > { %s377_s21 = scalar_lea.vmem %s9173_s1, %s7657_s10  ;;  %v6698_v29 = vor.u32 %v7941_v27, %v6697_v26  ;;  %v7081_v30 = vld [vmem:[#allocation6 + $0xba0] sm:$0xf]  ;;  %v8037_v31 = vld [vmem:[#allocation6 + $0xbcc] sm:$0xf0]  ;;  %2858 = vmatpush.bf16.msra.mxu0 %v5930_v24  ;;  %v422_v43 = vunpack.c.0.s8 %v421_v23  ;;  %vm4076_vm11 = vcmask 27648   ;;  %s382_s29 = scalar_lea.vmem %s9180_s8, %s7657_s10 }
  0x22   : > { %v8619_v0 = vld [vmem:[%s377_s21] sm:$0xff]  ;;  %v8621_v1 = vld [vmem:[%s377_s21 + $0x8] sm:$0xff]  ;;  %v5881_v32 = vld [vmem:[#allocation6 + $0x240] sm:$0xf]  ;;  %v7082_v33 = vor.u32 %v8037_v31, %v7081_v30  ;;  %2871 = vmatpush.bf16.msra.mxu1 %v6314_v28 }
  0x23   : > { %390 = vst [vmem:[#allocation1] ss:$2 sm:$0xff] %v8619_v0  ;;  %v7737_v34 = vld [vmem:[#allocation6 + $0x26c] sm:$0xf0]  ;;  %v6265_v35 = vld [vmem:[#allocation6 + $0x540] sm:$0xf]  ;;  %2884 = vmatpush.bf16.msra.mxu2 %v6698_v29 }
  0x24   : > { %392 = vst [vmem:[#allocation1 + $0x10] ss:$2 sm:$0xff] %v8621_v1  ;;  %v8280_v14 = vpop.eup %8279  ;;  %v7833_v36 = vld [vmem:[#allocation6 + $0x56c] sm:$0xf0]  ;;  %v5882_v38 = vor.u32 %v7737_v34, %v5881_v32  ;;  %v6649_v40 = vld [vmem:[#allocation6 + $0x840] sm:$0xf]  ;;  %2897 = vmatpush.bf16.msra.mxu3 %v7082_v33 }
  0x25   : > { %v412_v15 = vmul.f32 512.0, %v8280_v14  ;;  %vm416_vm1 = vweird.f32 %v8280_v14  ;;  %v6266_v39 = vor.u32 %v7833_v36, %v6265_v35  ;;  %v7929_v41 = vld [vmem:[#allocation6 + $0x86c] sm:$0xf0]  ;;  %v7033_v42 = vld [vmem:[#allocation6 + $0xb40] sm:$0xf] }
  0x26   : > { %v6650_v44 = vor.u32 %v7929_v41, %v6649_v40  ;;  %v8025_v45 = vld [vmem:[#allocation6 + $0xb6c] sm:$0xf0]  ;;  %v5833_v46 = vld [vmem:[#allocation6 + $0x1e0] sm:$0xf]  ;;  %2859 = vmatpush.bf16.msra.mxu0 %v5882_v38 }
  0x27   : > { %v413_v16 = vsub.f32 1.0, %v412_v15  ;;  %v7725_v47 = vld [vmem:[#allocation6 + $0x20c] sm:$0xf0]  ;;  %v7034_v49 = vor.u32 %v8025_v45, %v7033_v42  ;;  %v6217_v50 = vld [vmem:[#allocation6 + $0x4e0] sm:$0xf]  ;;  %2872 = vmatpush.bf16.msra.mxu1 %v6266_v39 }
  0x28   : > { %v7821_v51 = vld [vmem:[#allocation6 + $0x50c] sm:$0xf0]  ;;  %v6601_v52 = vld [vmem:[#allocation6 + $0x7e0] sm:$0xf]  ;;  %v5834_v54 = vor.u32 %v7725_v47, %v5833_v46  ;;  %2885 = vmatpush.bf16.msra.mxu2 %v6650_v44 }
  0x29   : > { %v414_v17 = vmul.f32 %v8280_v14, %v413_v16  ;;  %v7917_v55 = vld [vmem:[#allocation6 + $0x80c] sm:$0xf0]  ;;  %v6985_v56 = vld [vmem:[#allocation6 + $0xae0] sm:$0xf]  ;;  %v6218_v58 = vor.u32 %v7821_v51, %v6217_v50  ;;  %2898 = vmatpush.bf16.msra.mxu3 %v7034_v49 }
  0x2a   : > { %v393_v2 = vld.sshfl [vmem:[#allocation1] sm:$0xff pattern:$0x75316420]  ;;  %v394_v3 = vld.sshfl [vmem:[#allocation1 + $0x8] sm:$0xff pattern:$0x75316420]  ;;  %v6602_v59 = vor.u32 %v7917_v55, %v6601_v52  ;;  %2860 = vmatpush.bf16.msra.mxu0 %v5834_v54 }
  0x2b   : > { %v395_v4 = vld.sshfl [vmem:[#allocation1 + $0x10] sm:$0xff pattern:$0x75316420]  ;;  %v396_v5 = vld.sshfl [vmem:[#allocation1 + $0x18] sm:$0xff pattern:$0x75316420]  ;;  %v415_v18 = vadd.f32 %v8280_v14, %v414_v17  ;;  %2873 = vmatpush.bf16.msra.mxu1 %v6218_v58 }
  0x2c   : > { %v402_v6 = vsel %vm401_vm0, %v393_v2, 0.0  ;;  %v403_v7 = vsel %vm401_vm0, %v394_v3, 0.0  ;;  %v405_v8 = vsel %vm401_vm0, %v395_v4, 0.0  ;;  %v407_v10 = vsel %vm401_vm0, %v396_v5, 0.0  ;;  %v8013_v57 = vld [vmem:[#allocation6 + $0xb0c] sm:$0xf0]  ;;  %2886 = vmatpush.bf16.msra.mxu2 %v6602_v59 }
  0x2d   : > { %v404_v9 = vadd.f32 %v403_v7, %v402_v6  ;;  %v417_v37 = vsel %vm416_vm1, %v8280_v14, %v415_v18  ;;  %v6986_v61 = vor.u32 %v8013_v57, %v6985_v56  ;;  %v5785_v15 = vld [vmem:[#allocation6 + $0x180] sm:$0xf]  ;;  %v7713_v16 = vld [vmem:[#allocation6 + $0x1ac] sm:$0xf0] }
  0x2e   : > { %v6169_v17 = vld [vmem:[#allocation6 + $0x480] sm:$0xf]  ;;  %v5786_v18 = vor.u32 %v7713_v16, %v5785_v15  ;;  %v7809_v19 = vld [vmem:[#allocation6 + $0x4ac] sm:$0xf0]  ;;  %v7839_v15 = vld [vmem:[#allocation6 + $0x5a4] sm:$0xf] }
  0x2f   : > { %v406_v11 = vadd.f32 %v405_v8, %v404_v9  ;;  %2899 = vmatpush.bf16.msra.mxu3 %v6986_v61  ;;  %v6553_v20 = vld [vmem:[#allocation6 + $0x780] sm:$0xf]  ;;  %v7905_v21 = vld [vmem:[#allocation6 + $0x7ac] sm:$0xf0]  ;;  %v6170_v22 = vor.u32 %v7809_v19, %v6169_v17  ;;  %v6315_v16 = vld [vmem:[#allocation6 + $0x5d0] sm:$0xf0] }
  0x30   : > { %v6554_v23 = vor.u32 %v7905_v21, %v6553_v20  ;;  %v6937_v24 = vld [vmem:[#allocation6 + $0xa80] sm:$0xf]  ;;  %v8001_v25 = vld [vmem:[#allocation6 + $0xaac] sm:$0xf0]  ;;  %2861 = vmatpush.bf16.msra.mxu0 %v5786_v18  ;;  %v6318_v18 = vor.u32 %v7839_v15, %v6315_v16  ;;  %v7935_v19 = vld [vmem:[#allocation6 + $0x8a4] sm:$0xf] }
  0x31   : > { %v408_v12 = vadd.f32 %v407_v10, %v406_v11  ;;  %v6938_v26 = vor.u32 %v8001_v25, %v6937_v24  ;;  %2874 = vmatpush.bf16.msra.mxu1 %v6170_v22  ;;  %v5737_v27 = vld [vmem:[#allocation6 + $0x120] sm:$0xf]  ;;  %v7701_v28 = vld [vmem:[#allocation6 + $0x14c] sm:$0xf0]  ;;  %v6699_v20 = vld [vmem:[#allocation6 + $0x8d0] sm:$0xf0] }
  0x32   : > { %2887 = vmatpush.bf16.msra.mxu2 %v6554_v23  ;;  %v6121_v29 = vld [vmem:[#allocation6 + $0x420] sm:$0xf]  ;;  %v5738_v30 = vor.u32 %v7701_v28, %v5737_v27  ;;  %v7797_v31 = vld [vmem:[#allocation6 + $0x44c] sm:$0xf0]  ;;  %v8031_v21 = vld [vmem:[#allocation6 + $0xba4] sm:$0xf]  ;;  %v6702_v22 = vor.u32 %v7935_v19, %v6699_v20 }
  0x33   : > { %409 = vadd.xlane.f32.xlu0 %v408_v12  ;;  %2900 = vmatpush.bf16.msra.mxu3 %v6938_v26  ;;  %v6505_v32 = vld [vmem:[#allocation6 + $0x720] sm:$0xf]  ;;  %v7893_v33 = vld [vmem:[#allocation6 + $0x74c] sm:$0xf0]  ;;  %v6122_v34 = vor.u32 %v7797_v31, %v6121_v29  ;;  %v7083_v23 = vld [vmem:[#allocation6 + $0xbd0] sm:$0xf0] }
  0x34   : > { %v6506_v35 = vor.u32 %v7893_v33, %v6505_v32  ;;  %v6889_v36 = vld [vmem:[#allocation6 + $0xa20] sm:$0xf]  ;;  %2862 = vmatpush.bf16.msra.mxu0 %v5738_v30  ;;  %v7689_v40 = vld [vmem:[#allocation6 + $0xec] sm:$0xf0]  ;;  %v7731_v24 = vld [vmem:[#allocation6 + $0x244] sm:$0xf]  ;;  %v7086_v26 = vor.u32 %v8031_v21, %v7083_v23 }
  0x35   : > { %2875 = vmatpush.bf16.msra.mxu1 %v6122_v34  ;;  %v5689_v39 = vld [vmem:[#allocation6 + $0xc0] sm:$0xf]  ;;  %v7881_v45 = vld [vmem:[#allocation6 + $0x6ec] sm:$0xf0]  ;;  %v5883_v25 = vld [vmem:[#allocation6 + $0x270] sm:$0xf0] }
  0x36   : > { %2888 = vmatpush.bf16.msra.mxu2 %v6506_v35  ;;  %v6073_v41 = vld [vmem:[#allocation6 + $0x3c0] sm:$0xf]  ;;  %v5690_v42 = vor.u32 %v7689_v40, %v5689_v39  ;;  %v7977_v49 = vld [vmem:[#allocation6 + $0x9ec] sm:$0xf0]  ;;  %v5886_v27 = vor.u32 %v7731_v24, %v5883_v25  ;;  %v7827_v28 = vld [vmem:[#allocation6 + $0x544] sm:$0xf] }
  0x37   : > { %v6457_v44 = vld [vmem:[#allocation6 + $0x6c0] sm:$0xf]  ;;  %v7677_v52 = vld [vmem:[#allocation6 + $0x8c] sm:$0xf0]  ;;  %v6267_v29 = vld [vmem:[#allocation6 + $0x570] sm:$0xf0] }
  0x38   : > { %v6458_v47 = vor.u32 %v7881_v45, %v6457_v44  ;;  %2863 = vmatpush.bf16.msra.mxu0 %v5690_v42  ;;  %v5641_v51 = vld [vmem:[#allocation6 + $0x60] sm:$0xf]  ;;  %v7773_v55 = vld [vmem:[#allocation6 + $0x38c] sm:$0xf0]  ;;  %v7923_v30 = vld [vmem:[#allocation6 + $0x844] sm:$0xf]  ;;  %v6270_v31 = vor.u32 %v7827_v28, %v6267_v29 }
  0x39   : > { %v5642_v54 = vor.u32 %v7677_v52, %v5641_v51  ;;  %v6409_v56 = vld [vmem:[#allocation6 + $0x660] sm:$0xf]  ;;  %v7869_v57 = vld [vmem:[#allocation6 + $0x68c] sm:$0xf0]  ;;  %v6651_v32 = vld [vmem:[#allocation6 + $0x870] sm:$0xf0] }
  0x3a   : > { %2889 = vmatpush.bf16.msra.mxu2 %v6458_v47  ;;  %v6410_v59 = vor.u32 %v7869_v57, %v6409_v56  ;;  %v7965_v61 = vld [vmem:[#allocation6 + $0x98c] sm:$0xf0]  ;;  %v8019_v33 = vld [vmem:[#allocation6 + $0xb44] sm:$0xf]  ;;  %v7035_v34 = vld [vmem:[#allocation6 + $0xb70] sm:$0xf0]  ;;  %v6654_v35 = vor.u32 %v7923_v30, %v6651_v32 }
  0x3b   : > { %v7815_v39 = vld [vmem:[#allocation6 + $0x4e4] sm:$0xf]  ;;  %v6987_v47 = vld [vmem:[#allocation6 + $0xb10] sm:$0xf0] }
  0x3c   : > { %2864 = vmatpush.bf16.msra.mxu0 %v5642_v54  ;;  %v7911_v42 = vld [vmem:[#allocation6 + $0x7e4] sm:$0xf]  ;;  %v6459_v19 = vld [vmem:[#allocation6 + $0x6f0] sm:$0xf0] }
  0x3d   : > { %v7803_v51 = vld [vmem:[#allocation6 + $0x484] sm:$0xf]  ;;  %v6843_v23 = vld [vmem:[#allocation6 + $0x9f0] sm:$0xf0] }
  0x3e   : > { %2890 = vmatpush.bf16.msra.mxu2 %v6410_v59  ;;  %v7899_v54 = vld [vmem:[#allocation6 + $0x784] sm:$0xf]  ;;  %v5643_v28 = vld [vmem:[#allocation6 + $0x90] sm:$0xf0] }
  0x3f   : > { %v7995_v59 = vld [vmem:[#allocation6 + $0xa84] sm:$0xf] }
  0x40   : > { %v7779_v15 = vld [vmem:[#allocation6 + $0x3c4] sm:$0xf] }
  0x41   : > { %v7767_v29 = vld [vmem:[#allocation6 + $0x364] sm:$0xf] }
  0x42   : > { %v7863_v32 = vld [vmem:[#allocation6 + $0x664] sm:$0xf] }
  0xa6   : > { %v410_v48 = vpop.xlane.xlu0 %409 }
  0xa7   : > { %v418_v53 = vmul.f32 %v417_v37, %v410_v48  ;;  %v7989_v37 = vld [vmem:[#allocation6 + $0xa4c] sm:$0xf0]  ;;  %v6841_v48 = vld [vmem:[#allocation6 + $0x9c0] sm:$0xf] }
  0xa8   : > { %v6890_v38 = vor.u32 %v7989_v37, %v6889_v36  ;;  %v6842_v50 = vor.u32 %v7977_v49, %v6841_v48  ;;  %v7038_v36 = vor.u32 %v8019_v33, %v7035_v34  ;;  %v7719_v37 = vld [vmem:[#allocation6 + $0x1e4] sm:$0xf]  ;;  %v6411_v33 = vld [vmem:[#allocation6 + $0x690] sm:$0xf0] }
  0xa9   : > { %v423_v60 = vperm.slane %v418_v53, %v422_v43  ;;  %v7785_v43 = vld [vmem:[#allocation6 + $0x3ec] sm:$0xf0]  ;;  %v6025_v53 = vld [vmem:[#allocation6 + $0x360] sm:$0xf]  ;;  %v7707_v49 = vld [vmem:[#allocation6 + $0x184] sm:$0xf] }
  0xaa   : > { %2901 = vmatpush.bf16.msra.mxu3 %v6890_v38  ;;  %v6074_v46 = vor.u32 %v7785_v43, %v6073_v41  ;;  %v6026_v58 = vor.u32 %v7773_v55, %v6025_v53  ;;  %v5835_v38 = vld [vmem:[#allocation6 + $0x210] sm:$0xf0] }
  0xab   : > { %v425_v62 = vsub.f32 %v8619_v0, %v423_v60  ;;  %v426_v63 = vsub.f32 %v8621_v1, %v423_v60  ;;  %v6793_v60 = vld [vmem:[#allocation6 + $0x960] sm:$0xf]  ;;  %v5838_v40 = vor.u32 %v7719_v37, %v5835_v38  ;;  %v6219_v41 = vld [vmem:[#allocation6 + $0x510] sm:$0xf0]  ;;  %v7959_v37 = vld [vmem:[#allocation6 + $0x964] sm:$0xf] }
  0xac   : > { %2876 = vmatpush.bf16.msra.mxu1 %v6074_v46  ;;  %v6603_v43 = vld [vmem:[#allocation6 + $0x810] sm:$0xf0]  ;;  %v6222_v44 = vor.u32 %v7815_v39, %v6219_v41  ;;  %v8007_v46 = vld [vmem:[#allocation6 + $0xae4] sm:$0xf] }
  0xad   : > { %v427_v2 = vmul.f32 %v425_v62, %v425_v62  ;;  %v428_v3 = vmul.f32 %v426_v63, %v426_v63  ;;  %v6606_v45 = vor.u32 %v7911_v42, %v6603_v43  ;;  %v6990_v48 = vor.u32 %v8007_v46, %v6987_v47  ;;  %v6171_v53 = vld [vmem:[#allocation6 + $0x4b0] sm:$0xf0]  ;;  %v7659_v41 = vld [vmem:[#allocation6 + $0x4] sm:$0xf] }
  0xae   : > { %2902 = vmatpush.bf16.msra.mxu3 %v6842_v50  ;;  %v5787_v50 = vld [vmem:[#allocation6 + $0x1b0] sm:$0xf0]  ;;  %v6174_v57 = vor.u32 %v7803_v51, %v6171_v53  ;;  %v7851_v46 = vld [vmem:[#allocation6 + $0x604] sm:$0xf] }
  0xaf   : > { %431 = vst [vmem:[#allocation1] ss:$2 sm:$0xff] %v427_v2  ;;  %v7665_v2 = vld [vmem:[#allocation6 + $0x2c] sm:$0xf0]  ;;  %v5790_v52 = vor.u32 %v7707_v49, %v5787_v50  ;;  %v6555_v55 = vld [vmem:[#allocation6 + $0x7b0] sm:$0xf0] }
  0xb0   : > { %433 = vst [vmem:[#allocation1 + $0x10] ss:$2 sm:$0xff] %v428_v3  ;;  %2877 = vmatpush.bf16.msra.mxu1 %v6026_v58  ;;  %v5977_v3 = vld [vmem:[#allocation6 + $0x300] sm:$0xf]  ;;  %v6558_v58 = vor.u32 %v7899_v54, %v6555_v55  ;;  %v6795_v38 = vld [vmem:[#allocation6 + $0x990] sm:$0xf0] }
  0xb1   : > { %v6798_v39 = vor.u32 %v7959_v37, %v6795_v38  ;;  %v5595_v42 = vld [vmem:[#allocation6 + $0x30] sm:$0xf0]  ;;  %v7947_v50 = vld [vmem:[#allocation6 + $0x904] sm:$0xf] }
  0xb2   : > { %v5598_v43 = vor.u32 %v7659_v41, %v5595_v42  ;;  %v6363_v49 = vld [vmem:[#allocation6 + $0x630] sm:$0xf0]  ;;  %v8038_v41 = vld [vmem:[#allocation6 + $0xbd4] sm:$0xf0] }
  0xb3   : > { %v6366_v51 = vor.u32 %v7851_v46, %v6363_v49  ;;  %v7738_v49 = vld [vmem:[#allocation6 + $0x274] sm:$0xf0] }
  0xb6   : > { %v434_v4 = vld.sshfl [vmem:[#allocation1] sm:$0xff pattern:$0x75316420]  ;;  %v435_v5 = vld.sshfl [vmem:[#allocation1 + $0x8] sm:$0xff pattern:$0x75316420] }
  0xb7   : > { %v436_v6 = vld.sshfl [vmem:[#allocation1 + $0x10] sm:$0xff pattern:$0x75316420]  ;;  %v437_v7 = vld.sshfl [vmem:[#allocation1 + $0x18] sm:$0xff pattern:$0x75316420] }
  0xb8   : > { %v442_v8 = vsel %vm401_vm0, %v434_v4, 0.0  ;;  %v443_v9 = vsel %vm401_vm0, %v435_v5, 0.0  ;;  %463 = vst [vmem:[#allocation1] ss:$2 sm:$0xff] %v425_v62  ;;  %v445_v11 = vsel %vm401_vm0, %v436_v6, 0.0  ;;  %v447_v13 = vsel %vm401_vm0, %v437_v7, 0.0 }
  0xb9   : > { %v444_v10 = vadd.f32 %v443_v9, %v442_v8  ;;  %465 = vst [vmem:[#allocation1 + $0x10] ss:$2 sm:$0xff] %v426_v63  ;;  %v6794_v62 = vor.u32 %v7965_v61, %v6793_v60  ;;  %v5593_v63 = vld [vmem:[#allocation6] sm:$0xf]  ;;  %v7761_v5 = vld [vmem:[#allocation6 + $0x32c] sm:$0xf0] }
  0xba   : > { %v5594_v4 = vor.u32 %v7665_v2, %v5593_v63  ;;  %v6361_v6 = vld [vmem:[#allocation6 + $0x600] sm:$0xf]  ;;  %v7857_v7 = vld [vmem:[#allocation6 + $0x62c] sm:$0xf0]  ;;  %v5978_v8 = vor.u32 %v7761_v5, %v5977_v3  ;;  %v6939_v60 = vld [vmem:[#allocation6 + $0xab0] sm:$0xf0] }
  0xbb   : > { %v446_v12 = vadd.f32 %v445_v11, %v444_v10  ;;  %2903 = vmatpush.bf16.msra.mxu3 %v6794_v62  ;;  %v6362_v9 = vor.u32 %v7857_v7, %v6361_v6  ;;  %v6745_v10 = vld [vmem:[#allocation6 + $0x900] sm:$0xf]  ;;  %v7953_v11 = vld [vmem:[#allocation6 + $0x92c] sm:$0xf0]  ;;  %v6942_v62 = vor.u32 %v7995_v59, %v6939_v60  ;;  %v7695_v63 = vld [vmem:[#allocation6 + $0x124] sm:$0xf] }
  0xbc   : > { %2865 = vmatpush.bf16.msra.mxu0 %v5594_v4  ;;  %2878 = vmatpush.bf16.msra.mxu1 %v5978_v8  ;;  %v5739_v2 = vld [vmem:[#allocation6 + $0x150] sm:$0xf0]  ;;  %v7791_v3 = vld [vmem:[#allocation6 + $0x424] sm:$0xf] }
  0xbd   : > { %v448_v14 = vadd.f32 %v447_v13, %v446_v12  ;;  %v7743_v12 = vld [vmem:[#allocation6 + $0x2a4] sm:$0xf]  ;;  %v6746_v13 = vor.u32 %v7953_v11, %v6745_v10  ;;  %2891 = vmatpush.bf16.msra.mxu2 %v6362_v9  ;;  %v6123_v4 = vld [vmem:[#allocation6 + $0x450] sm:$0xf0]  ;;  %v5742_v5 = vor.u32 %v7695_v63, %v5739_v2  ;;  %v387_v2 = vld [vmem:[#allocation4] sm:$0xf] }
  0xbe   : > { %v6126_v6 = vor.u32 %v7791_v3, %v6123_v4  ;;  %v7887_v7 = vld [vmem:[#allocation6 + $0x724] sm:$0xf]  ;;  %v6507_v8 = vld [vmem:[#allocation6 + $0x750] sm:$0xf0] }
  0xbf   : > { %449 = vadd.xlane.f32.xlu0 %v448_v14  ;;  %v5931_v14 = vld [vmem:[#allocation6 + $0x2d0] sm:$0xf0]  ;;  %2904 = vmatpush.bf16.msra.mxu3 %v6746_v13  ;;  %v7983_v9 = vld [vmem:[#allocation6 + $0xa24] sm:$0xf]  ;;  %v6510_v10 = vor.u32 %v7887_v7, %v6507_v8 }
  0xc0   : > { %v5934_v17 = vor.u32 %v7743_v12, %v5931_v14  ;;  %2923 = vmatpush.bf16.msrb.mxu1 %v6318_v18  ;;  %v6891_v11 = vld [vmem:[#allocation6 + $0xa50] sm:$0xf0]  ;;  %v7683_v13 = vld [vmem:[#allocation6 + $0xc4] sm:$0xf] }
  0xc1   : > { %2936 = vmatpush.bf16.msrb.mxu2 %v6702_v22  ;;  %v6894_v12 = vor.u32 %v7983_v9, %v6891_v11  ;;  %v5691_v14 = vld [vmem:[#allocation6 + $0xf0] sm:$0xf0]  ;;  %v7875_v18 = vld [vmem:[#allocation6 + $0x6c4] sm:$0xf]  ;;  %v510_v11 = vperm.slane %v387_v2, 0 }
  0xc2   : > { %2910 = vmatpush.bf16.msrb.mxu0 %v5934_v17  ;;  %v5694_v16 = vor.u32 %v7683_v13, %v5691_v14  ;;  %v6075_v17 = vld [vmem:[#allocation6 + $0x3f0] sm:$0xf0]  ;;  %v6462_v21 = vor.u32 %v7875_v18, %v6459_v19  ;;  %v7971_v22 = vld [vmem:[#allocation6 + $0x9c4] sm:$0xf] }
  0xc3   : > { %2949 = vmatpush.bf16.msrb.mxu3 %v7086_v26  ;;  %v6078_v20 = vor.u32 %v7779_v15, %v6075_v17  ;;  %v6846_v25 = vor.u32 %v7971_v22, %v6843_v23  ;;  %v466_v8 = vld.sshfl [vmem:[#allocation1] sm:$0xff pattern:$0x75316420]  ;;  %v469_v14 = vld.sshfl [vmem:[#allocation1 + $0x18] sm:$0xff pattern:$0x75316420] }
  0xc4   : > { %2924 = vmatpush.bf16.msrb.mxu1 %v6270_v31  ;;  %v6027_v31 = vld [vmem:[#allocation6 + $0x390] sm:$0xf0]  ;;  %v511_v15 = vperm.slane %v387_v2, 1 }
  0xc5   : > { %2937 = vmatpush.bf16.msrb.mxu2 %v6654_v35  ;;  %v6030_v35 = vor.u32 %v7767_v29, %v6027_v31  ;;  %v7750_v31 = vld [vmem:[#allocation6 + $0x2d4] sm:$0xf0] }
  0xc6   : > { %2911 = vmatpush.bf16.msrb.mxu0 %v5886_v27  ;;  %v7671_v27 = vld [vmem:[#allocation6 + $0x64] sm:$0xf] }
  0xc7   : > { %2950 = vmatpush.bf16.msrb.mxu3 %v7038_v36  ;;  %v5646_v30 = vor.u32 %v7671_v27, %v5643_v28  ;;  %v6414_v36 = vor.u32 %v7863_v32, %v6411_v33  ;;  %v6321_v32 = vld [vmem:[#allocation6 + $0x5a8] sm:$0xf]  ;;  %v7846_v33 = vld [vmem:[#allocation6 + $0x5d4] sm:$0xf0] }
  0xc8   : > { %2925 = vmatpush.bf16.msrb.mxu1 %v6222_v44  ;;  %v7755_v44 = vld [vmem:[#allocation6 + $0x304] sm:$0xf] }
  0xc9   : > { %2938 = vmatpush.bf16.msrb.mxu2 %v6606_v45  ;;  %v5979_v45 = vld [vmem:[#allocation6 + $0x330] sm:$0xf0] }
  0xca   : > { %2912 = vmatpush.bf16.msrb.mxu0 %v5838_v40 }
  0xcb   : > { %2951 = vmatpush.bf16.msrb.mxu3 %v6990_v48  ;;  %v5982_v48 = vor.u32 %v7755_v44, %v5979_v45 }
  0xcc   : > { %2926 = vmatpush.bf16.msrb.mxu1 %v6174_v57 }
  0xcd   : > { %2939 = vmatpush.bf16.msrb.mxu2 %v6558_v58 }
  0xce   : > { %2913 = vmatpush.bf16.msrb.mxu0 %v5790_v52  ;;  %v6747_v52 = vld [vmem:[#allocation6 + $0x930] sm:$0xf0] }
  0xcf   : > { %2952 = vmatpush.bf16.msrb.mxu3 %v6942_v62  ;;  %v6750_v54 = vor.u32 %v7947_v50, %v6747_v52  ;;  %v386_v62 = vld [vmem:[#allocation2] sm:$0xf]  ;;  %v6273_v52 = vld [vmem:[#allocation6 + $0x548] sm:$0xf] }
  0xd0   : > { %2927 = vmatpush.bf16.msrb.mxu1 %v6126_v6  ;;  %v453_v3 = vperm.slane %v386_v62, 0  ;;  %v454_v4 = vperm.slane %v386_v62, 1  ;;  %v455_v6 = vperm.slane %v386_v62, 2  ;;  %v456_v7 = vperm.slane %v386_v62, 3  ;;  %v7726_v62 = vld [vmem:[#allocation6 + $0x214] sm:$0xf0] }
  0xd1   : > { %2940 = vmatpush.bf16.msrb.mxu2 %v6510_v10  ;;  %v467_v10 = vld.sshfl [vmem:[#allocation1 + $0x8] sm:$0xff pattern:$0x75316420] }
  0xd2   : > { %2914 = vmatpush.bf16.msrb.mxu0 %v5742_v5  ;;  %v474_v18 = vmul.f32 %v466_v8, %v453_v3  ;;  %v475_v19 = vmul.f32 %v467_v10, %v454_v4  ;;  %v477_v23 = vmul.f32 %v469_v14, %v456_v7  ;;  %v6225_v3 = vld [vmem:[#allocation6 + $0x4e8] sm:$0xf]  ;;  %v7822_v4 = vld [vmem:[#allocation6 + $0x514] sm:$0xf0] }
  0xd3   : > { %2953 = vmatpush.bf16.msrb.mxu3 %v6894_v12  ;;  %v6993_v7 = vld [vmem:[#allocation6 + $0xae8] sm:$0xf]  ;;  %v8014_v8 = vld [vmem:[#allocation6 + $0xb14] sm:$0xf0]  ;;  %v6226_v10 = vor.u32 %v7822_v4, %v6225_v3 }
  0xd4   : > { %2928 = vmatpush.bf16.msrb.mxu1 %v6078_v20  ;;  %v513_v20 = vperm.slane %v387_v2, 3  ;;  %v6177_v14 = vld [vmem:[#allocation6 + $0x488] sm:$0xf]  ;;  %v7762_v4 = vld [vmem:[#allocation6 + $0x334] sm:$0xf0] }
  0xd5   : > { %2941 = vmatpush.bf16.msrb.mxu2 %v6462_v21  ;;  %v5985_v3 = vld [vmem:[#allocation6 + $0x308] sm:$0xf] }
  0xd6   : > { %2915 = vmatpush.bf16.msrb.mxu0 %v5694_v16  ;;  %v512_v16 = vperm.slane %v387_v2, 2 }
  0xd7   : > { %2954 = vmatpush.bf16.msrb.mxu3 %v6846_v25 }
  0xd8   : > { %2929 = vmatpush.bf16.msrb.mxu1 %v6030_v35 }
  0xd9   : > { %2942 = vmatpush.bf16.msrb.mxu2 %v6414_v36 }
  0xda   : > { %2916 = vmatpush.bf16.msrb.mxu0 %v5646_v30 }
  0xdb   : > { %2955 = vmatpush.bf16.msrb.mxu3 %v6798_v39  ;;  %v7942_v39 = vld [vmem:[#allocation6 + $0x8d4] sm:$0xf0] }
  0xdc   : > { %2930 = vmatpush.bf16.msrb.mxu1 %v5982_v48  ;;  %v5889_v48 = vld [vmem:[#allocation6 + $0x248] sm:$0xf] }
  0xdd   : > { %2943 = vmatpush.bf16.msrb.mxu2 %v6366_v51 }
  0xde   : > { %2917 = vmatpush.bf16.msrb.mxu0 %v5598_v43  ;;  %v6322_v43 = vor.u32 %v7846_v33, %v6321_v32 }
  0xdf   : > { %2956 = vmatpush.bf16.msrb.mxu3 %v6750_v54  ;;  %v6657_v54 = vld [vmem:[#allocation6 + $0x848] sm:$0xf] }
 0x132   : > { %v450_v56 = vpop.xlane.xlu0 %449 }
 0x133   : > { %v8636_v61 = vmul.f32 0.0019569471, %v450_v56 }
 0x135   : > { %8281 = vrsqrt.f32 %v8636_v61  ;;  %vm485_vm2 = vcmp.eq.f32.partialorder %v8636_v61, inf  ;;  %v488_v56 = vand.u32 2147483648, %v8636_v61  ;;  %vm487_vm3 = vcmp.eq.f32.partialorder %v8636_v61, 0.0 }
 0x13b   : > { %v8282_v24 = vpop.eup %8281 }
 0x13c   : > { %v479_v26 = vmul.f32 %v8282_v24, %v8636_v61 }
 0x13e   : > { %v480_v34 = vmul.f32 %v8282_v24, %v479_v26  ;;  %v5937_v26 = vld [vmem:[#allocation6 + $0x2a8] sm:$0xf] }
 0x13f   : > { %v5938_v42 = vor.u32 %v7750_v31, %v5937_v26  ;;  %v6129_v26 = vld [vmem:[#allocation6 + $0x428] sm:$0xf]  ;;  %v7990_v31 = vld [vmem:[#allocation6 + $0xa54] sm:$0xf0] }
 0x140   : > { %v481_v40 = vmul.f32 0.5, %v480_v34  ;;  %v6705_v34 = vld [vmem:[#allocation6 + $0x8a8] sm:$0xf] }
 0x141   : > { %v6706_v50 = vor.u32 %v7942_v39, %v6705_v34  ;;  %v5697_v34 = vld [vmem:[#allocation6 + $0xc8] sm:$0xf]  ;;  %v7786_v39 = vld [vmem:[#allocation6 + $0x3f4] sm:$0xf0] }
 0x142   : > { %v482_v47 = vsub.f32 1.5, %v481_v40  ;;  %v7089_v40 = vld [vmem:[#allocation6 + $0xba8] sm:$0xf] }
 0x143   : > { %v7090_v51 = vor.u32 %v8038_v41, %v7089_v40  ;;  %v6465_v40 = vld [vmem:[#allocation6 + $0x6c8] sm:$0xf]  ;;  %v7882_v41 = vld [vmem:[#allocation6 + $0x6f4] sm:$0xf0] }
 0x144   : > { %v483_v53 = vmul.f32 %v8282_v24, %v482_v47 }
 0x146   : > { %v484_v55 = vmul.f32 %v483_v53, %v8636_v61  ;;  %v7834_v53 = vld [vmem:[#allocation6 + $0x574] sm:$0xf0] }
 0x148   : > { %v486_v57 = vsel %vm485_vm2, %v8636_v61, %v484_v55  ;;  %v468_v61 = vld.sshfl [vmem:[#allocation1 + $0x10] sm:$0xff pattern:$0x75316420]  ;;  %v7930_v55 = vld [vmem:[#allocation6 + $0x874] sm:$0xf0] }
 0x149   : > { %v489_v58 = vsel %vm487_vm3, %v488_v56, %v486_v57  ;;  %v476_v22 = vmul.f32 %v468_v61, %v455_v6  ;;  %v7041_v56 = vld [vmem:[#allocation6 + $0xb48] sm:$0xf]  ;;  %v8026_v57 = vld [vmem:[#allocation6 + $0xb74] sm:$0xf0]  ;;  %v6994_v61 = vor.u32 %v8014_v8, %v6993_v7 }
 0x14a   : > { %v490_v59 = vadd.f32 1e-06, %v489_v58  ;;  %v5890_v58 = vor.u32 %v7738_v49, %v5889_v48  ;;  %v7042_v2 = vor.u32 %v8026_v57, %v7041_v56  ;;  %v7918_v6 = vld [vmem:[#allocation6 + $0x814] sm:$0xf0]  ;;  %v6417_v56 = vld [vmem:[#allocation6 + $0x668] sm:$0xf] }
 0x14b   : > { %v7870_v57 = vld [vmem:[#allocation6 + $0x694] sm:$0xf0]  ;;  %v6369_v7 = vld [vmem:[#allocation6 + $0x608] sm:$0xf] }
 0x14c   : > { %8283 = vrcp.f32 %v490_v59  ;;  %v502_v9 = vand.u32 2147483648, %v490_v59  ;;  %v500_v13 = vand.u32 2147483647, %v490_v59  ;;  %vm496_vm5 = vweird.f32 %v490_v59  ;;  %v7858_v8 = vld [vmem:[#allocation6 + $0x634] sm:$0xf0] }
 0x14e   : > { %v503_v21 = vor.u32 1.1754944e-38, %v502_v9  ;;  %vm501_vm7 = vcmp.eq.f32.partialorder %v500_v13, 8.507059e+37 }
 0x152   : > { %v8284_v60 = vpop.eup %8283 }
 0x153   : > { %v492_v63 = vmul.f32 %v8284_v60, %v490_v59  ;;  %vm497_vm4 = vweird.f32 %v8284_v60  ;;  %v6274_v59 = vor.u32 %v7834_v53, %v6273_v52  ;;  %v6466_v52 = vor.u32 %v7882_v41, %v6465_v40  ;;  %v7816_v40 = vld [vmem:[#allocation6 + $0x4ec] sm:$0xf]  ;;  %v6227_v41 = vld [vmem:[#allocation6 + $0x518] sm:$0xf0] }
 0x154   : > { %vm498_vm6 = vmor %vm496_vm5, %vm497_vm4  ;;  %vm4177_vm4 = vcmask 1041408   ;;  %vm4173_vm5 = vcmask 31744  }
 0x155   : > { %v493_v5 = vsub.f32 1.0, %v492_v63  ;;  %v6658_v63 = vor.u32 %v7930_v55, %v6657_v54  ;;  %v6033_v54 = vld [vmem:[#allocation6 + $0x368] sm:$0xf]  ;;  %v7774_v55 = vld [vmem:[#allocation6 + $0x394] sm:$0xf0] }
 0x157   : > { %v494_v12 = vmul.f32 %v8284_v60, %v493_v5  ;;  %v6609_v5 = vld [vmem:[#allocation6 + $0x7e8] sm:$0xf] }
 0x158   : > { %v6610_v13 = vor.u32 %v7918_v6, %v6609_v5  ;;  %v6418_v5 = vor.u32 %v7870_v57, %v6417_v56  ;;  %v7804_v56 = vld [vmem:[#allocation6 + $0x48c] sm:$0xf]  ;;  %v6179_v57 = vld [vmem:[#allocation6 + $0x4b8] sm:$0xf0] }
 0x159   : > { %v495_v17 = vadd.f32 %v8284_v60, %v494_v12  ;;  %v7714_v12 = vld [vmem:[#allocation6 + $0x1b4] sm:$0xf0] }
 0x15b   : > { %v499_v24 = vsel %vm498_vm6, %v8284_v60, %v495_v17  ;;  %v5841_v60 = vld [vmem:[#allocation6 + $0x1e8] sm:$0xf]  ;;  %v7906_v17 = vld [vmem:[#allocation6 + $0x7b4] sm:$0xf0] }
 0x15c   : > { %v504_v25 = vsel %vm501_vm7, %v503_v21, %v499_v24  ;;  %v5842_v9 = vor.u32 %v7726_v62, %v5841_v60  ;;  %v5601_v60 = vld [vmem:[#allocation6 + $0x8] sm:$0xf] }
 0x15d   : > { %v505_v27 = vmul.f32 %v504_v25, %v474_v18  ;;  %v506_v28 = vmul.f32 %v504_v25, %v475_v19  ;;  %v507_v29 = vmul.f32 %v504_v25, %v476_v22  ;;  %v508_v30 = vmul.f32 %v504_v25, %v477_v23  ;;  %v6945_v18 = vld [vmem:[#allocation6 + $0xa88] sm:$0xf]  ;;  %v8002_v19 = vld [vmem:[#allocation6 + $0xab4] sm:$0xf0] }
 0x15e   : > { %v5745_v22 = vld [vmem:[#allocation6 + $0x128] sm:$0xf]  ;;  %v7702_v23 = vld [vmem:[#allocation6 + $0x154] sm:$0xf0]  ;;  %v6946_v25 = vor.u32 %v8002_v19, %v6945_v18  ;;  %v8032_v18 = vld [vmem:[#allocation6 + $0xbac] sm:$0xf] }
 0x15f   : > { %v518_v35 = vadd.f32 %v510_v11, %v505_v27  ;;  %v519_v36 = vadd.f32 %v511_v15, %v506_v28  ;;  %v520_v37 = vadd.f32 %v512_v16, %v507_v29  ;;  %v521_v38 = vadd.f32 %v513_v20, %v508_v30  ;;  %v5793_v11 = vld [vmem:[#allocation6 + $0x188] sm:$0xf]  ;;  %v7810_v15 = vld [vmem:[#allocation6 + $0x4b4] sm:$0xf0]  ;;  %v7091_v19 = vld [vmem:[#allocation6 + $0xbd8] sm:$0xf0] }
 0x160   : > { %v6561_v16 = vld [vmem:[#allocation6 + $0x788] sm:$0xf]  ;;  %v5794_v20 = vor.u32 %v7714_v12, %v5793_v11  ;;  %v6178_v21 = vor.u32 %v7810_v15, %v6177_v14  ;;  %v7798_v27 = vld [vmem:[#allocation6 + $0x454] sm:$0xf0]  ;;  %v5746_v32 = vor.u32 %v7702_v23, %v5745_v22  ;;  %v7744_v11 = vld [vmem:[#allocation6 + $0x2ac] sm:$0xf] }
 0x161   : > { %v8645_v44 = vpack.c.bf16 %v518_v35, %v518_v35  ;;  %v8647_v45 = vpack.c.bf16 %v519_v36, %v519_v36  ;;  %v8649_v46 = vpack.c.bf16 %v520_v37, %v520_v37  ;;  %v8651_v47 = vpack.c.bf16 %v521_v38, %v521_v38  ;;  %v6513_v28 = vld [vmem:[#allocation6 + $0x728] sm:$0xf]  ;;  %v7894_v29 = vld [vmem:[#allocation6 + $0x754] sm:$0xf0]  ;;  %v5939_v12 = vld [vmem:[#allocation6 + $0x2d8] sm:$0xf0] }
 0x162   : > { %v6562_v24 = vor.u32 %v7906_v17, %v6561_v16  ;;  %v6897_v30 = vld [vmem:[#allocation6 + $0xa28] sm:$0xf]  ;;  %v6130_v33 = vor.u32 %v7798_v27, %v6129_v26  ;;  %v7690_v35 = vld [vmem:[#allocation6 + $0xf4] sm:$0xf0]  ;;  %v6514_v36 = vor.u32 %v7894_v29, %v6513_v28  ;;  %v7936_v14 = vld [vmem:[#allocation6 + $0x8ac] sm:$0xf]  ;;  %v5986_v16 = vor.u32 %v7762_v4, %v5985_v3 }
 0x163   : > { %2866 = vmatmul.bf16.vlgmr.msra.gmra.mxu0 %v8645_v44  ;;  %2879 = vmatmul.bf16.vlgmr.msra.gmra.mxu1 %v8647_v45  ;;  %v6898_v37 = vor.u32 %v7990_v31, %v6897_v30  ;;  %v6081_v38 = vld [vmem:[#allocation6 + $0x3c8] sm:$0xf]  ;;  %v5698_v48 = vor.u32 %v7690_v35, %v5697_v34  ;;  %v6707_v17 = vld [vmem:[#allocation6 + $0x8d8] sm:$0xf0]  ;;  %v5942_v22 = vor.u32 %v7744_v11, %v5939_v12  ;;  %v7828_v28 = vld [vmem:[#allocation6 + $0x54c] sm:$0xf] }
 0x164   : > { %2892 = vmatmul.bf16.vlgmr.msra.gmra.mxu2 %v8649_v46  ;;  %2905 = vmatmul.bf16.vlgmr.msra.gmra.mxu3 %v8651_v47  ;;  %v6082_v49 = vor.u32 %v7786_v39, %v6081_v38  ;;  %v6710_v26 = vor.u32 %v7936_v14, %v6707_v17  ;;  %v7094_v27 = vor.u32 %v8032_v18, %v7091_v19  ;;  %v6275_v29 = vld [vmem:[#allocation6 + $0x578] sm:$0xf0]  ;;  %v7924_v30 = vld [vmem:[#allocation6 + $0x84c] sm:$0xf] }
 0x165   : > { %2962 = vmatpush.bf16.msra.mxu0 %v5938_v42  ;;  %2975 = vmatpush.bf16.msra.mxu1 %v6322_v43  ;;  %v6849_v42 = vld [vmem:[#allocation6 + $0x9c8] sm:$0xf]  ;;  %v7978_v43 = vld [vmem:[#allocation6 + $0x9f4] sm:$0xf0]  ;;  %v6659_v31 = vld [vmem:[#allocation6 + $0x878] sm:$0xf0]  ;;  %v6278_v35 = vor.u32 %v7828_v28, %v6275_v29 }
 0x166   : > { %2988 = vmatpush.bf16.msra.mxu2 %v6706_v50  ;;  %3001 = vmatpush.bf16.msra.mxu3 %v7090_v51  ;;  %v5649_v50 = vld [vmem:[#allocation6 + $0x68] sm:$0xf]  ;;  %v7678_v51 = vld [vmem:[#allocation6 + $0x94] sm:$0xf0]  ;;  %v6850_v53 = vor.u32 %v7978_v43, %v6849_v42  ;;  %v6662_v38 = vor.u32 %v7924_v30, %v6659_v31  ;;  %v7912_v42 = vld [vmem:[#allocation6 + $0x7ec] sm:$0xf] }
 0x167   : > { %v5650_v62 = vor.u32 %v7678_v51, %v5649_v50  ;;  %v6611_v43 = vld [vmem:[#allocation6 + $0x818] sm:$0xf0]  ;;  %v6230_v51 = vor.u32 %v7816_v40, %v6227_v41  ;;  %v7696_v3 = vld [vmem:[#allocation6 + $0x12c] sm:$0xf] }
 0x168   : > { %v5747_v4 = vld [vmem:[#allocation6 + $0x158] sm:$0xf0]  ;;  %v7984_v11 = vld [vmem:[#allocation6 + $0xa2c] sm:$0xf] }
 0x169   : > { %2963 = vmatpush.bf16.msra.mxu0 %v5890_v58  ;;  %2976 = vmatpush.bf16.msra.mxu1 %v6274_v59  ;;  %v6801_v58 = vld [vmem:[#allocation6 + $0x968] sm:$0xf]  ;;  %v7966_v59 = vld [vmem:[#allocation6 + $0x994] sm:$0xf0]  ;;  %v6899_v12 = vld [vmem:[#allocation6 + $0xa58] sm:$0xf0] }
 0x16a   : > { %2989 = vmatpush.bf16.msra.mxu2 %v6658_v63  ;;  %3002 = vmatpush.bf16.msra.mxu3 %v7042_v2  ;;  %v6034_v63 = vor.u32 %v7774_v55, %v6033_v54  ;;  %v7666_v2 = vld [vmem:[#allocation6 + $0x34] sm:$0xf0]  ;;  %v6802_v6 = vor.u32 %v7966_v59, %v6801_v58  ;;  %v6614_v54 = vor.u32 %v7912_v42, %v6611_v43  ;;  %v7900_v58 = vld [vmem:[#allocation6 + $0x78c] sm:$0xf]  ;;  %v6563_v59 = vld [vmem:[#allocation6 + $0x7b8] sm:$0xf0] }
 0x16b   : > { %v5602_v15 = vor.u32 %v7666_v2, %v5601_v60  ;;  %v7996_v60 = vld [vmem:[#allocation6 + $0xa8c] sm:$0xf]  ;;  %v6182_v2 = vor.u32 %v7804_v56, %v6179_v57  ;;  %v6902_v17 = vor.u32 %v7984_v11, %v6899_v12  ;;  %v6083_v19 = vld [vmem:[#allocation6 + $0x3f8] sm:$0xf0]  ;;  %v6713_v56 = vld [vmem:[#allocation6 + $0x8b0] sm:$0xf] }
 0x16c   : > { %v7684_v14 = vld [vmem:[#allocation6 + $0xcc] sm:$0xf]  ;;  %v6035_v31 = vld [vmem:[#allocation6 + $0x398] sm:$0xf0]  ;;  %v6665_v11 = vld [vmem:[#allocation6 + $0x850] sm:$0xf] }
 0x16d   : > { %2964 = vmatpush.bf16.msra.mxu0 %v5842_v9  ;;  %2977 = vmatpush.bf16.msra.mxu1 %v6226_v10  ;;  %v6753_v9 = vld [vmem:[#allocation6 + $0x908] sm:$0xf]  ;;  %v7954_v10 = vld [vmem:[#allocation6 + $0x934] sm:$0xf0]  ;;  %v7780_v18 = vld [vmem:[#allocation6 + $0x3cc] sm:$0xf] }
 0x16e   : > { %2990 = vmatpush.bf16.msra.mxu2 %v6610_v13  ;;  %3003 = vmatpush.bf16.msra.mxu3 %v6994_v61  ;;  %v7840_v13 = vld [vmem:[#allocation6 + $0x5ac] sm:$0xf]  ;;  %v6323_v61 = vld [vmem:[#allocation6 + $0x5d8] sm:$0xf0]  ;;  %v7931_v12 = vld [vmem:[#allocation6 + $0x87c] sm:$0xf0] }
 0x16f   : > { %v6326_v23 = vor.u32 %v7840_v13, %v6323_v61  ;;  %v5750_v13 = vor.u32 %v7696_v3, %v5747_v4  ;;  %v7768_v30 = vld [vmem:[#allocation6 + $0x36c] sm:$0xf]  ;;  %v5987_v41 = vld [vmem:[#allocation6 + $0x338] sm:$0xf0] }
 0x170   : > { %v7756_v40 = vld [vmem:[#allocation6 + $0x30c] sm:$0xf] }
 0x171   : > { %2965 = vmatpush.bf16.msra.mxu0 %v5794_v20  ;;  %2978 = vmatpush.bf16.msra.mxu1 %v6178_v21  ;;  %v6370_v20 = vor.u32 %v7858_v8, %v6369_v7  ;;  %v6754_v21 = vor.u32 %v7954_v10, %v6753_v9  ;;  %v7792_v7 = vld [vmem:[#allocation6 + $0x42c] sm:$0xf]  ;;  %v6131_v8 = vld [vmem:[#allocation6 + $0x458] sm:$0xf0] }
 0x172   : > { %2991 = vmatpush.bf16.msra.mxu2 %v6562_v24  ;;  %3004 = vmatpush.bf16.msra.mxu3 %v6946_v25  ;;  %v7732_v24 = vld [vmem:[#allocation6 + $0x24c] sm:$0xf]  ;;  %v5891_v25 = vld [vmem:[#allocation6 + $0x278] sm:$0xf0]  ;;  %v6134_v61 = vor.u32 %v7792_v7, %v6131_v8 }
 0x173   : > { %2918 = vmatmul.bf16.vlgmr.msrb.gmra.mxu0 %v8645_v44  ;;  %2931 = vmatmul.bf16.vlgmr.msrb.gmra.mxu1 %v8647_v45  ;;  %v5894_v34 = vor.u32 %v7732_v24, %v5891_v25  ;;  %v7888_v9 = vld [vmem:[#allocation6 + $0x72c] sm:$0xf]  ;;  %v6515_v10 = vld [vmem:[#allocation6 + $0x758] sm:$0xf0]  ;;  %v6086_v25 = vor.u32 %v7780_v18, %v6083_v19  ;;  %v6666_v18 = vor.u32 %v7931_v12, %v6665_v11  ;;  %v6041_v11 = vld [vmem:[#allocation6 + $0x370] sm:$0xf] }
 0x174   : > { %2944 = vmatmul.bf16.vlgmr.msrb.gmra.mxu2 %v8649_v46  ;;  %2957 = vmatmul.bf16.vlgmr.msrb.gmra.mxu3 %v8651_v47  ;;  %v7775_v12 = vld [vmem:[#allocation6 + $0x39c] sm:$0xf0] }
 0x175   : > { %2966 = vmatpush.bf16.msra.mxu0 %v5746_v32  ;;  %2979 = vmatpush.bf16.msra.mxu1 %v6130_v33  ;;  %v8020_v32 = vld [vmem:[#allocation6 + $0xb4c] sm:$0xf]  ;;  %v7043_v33 = vld [vmem:[#allocation6 + $0xb78] sm:$0xf0] }
 0x176   : > { %2992 = vmatpush.bf16.msra.mxu2 %v6514_v36  ;;  %3005 = vmatpush.bf16.msra.mxu3 %v6898_v37  ;;  %v7720_v36 = vld [vmem:[#allocation6 + $0x1ec] sm:$0xf]  ;;  %v5843_v37 = vld [vmem:[#allocation6 + $0x218] sm:$0xf0]  ;;  %v7046_v39 = vor.u32 %v8020_v32, %v7043_v33 }
 0x177   : > { %v5846_v50 = vor.u32 %v7720_v36, %v5843_v37  ;;  %v7864_v32 = vld [vmem:[#allocation6 + $0x66c] sm:$0xf]  ;;  %v6419_v33 = vld [vmem:[#allocation6 + $0x698] sm:$0xf0] }
 0x178   : > { %v7660_v36 = vld [vmem:[#allocation6 + $0xc] sm:$0xf]  ;;  %v6422_v42 = vor.u32 %v7864_v32, %v6419_v33  ;;  %v6185_v32 = vld [vmem:[#allocation6 + $0x490] sm:$0xf]  ;;  %v7811_v33 = vld [vmem:[#allocation6 + $0x4bc] sm:$0xf0] }
 0x179   : > { %2967 = vmatpush.bf16.msra.mxu0 %v5698_v48  ;;  %2980 = vmatpush.bf16.msra.mxu1 %v6082_v49  ;;  %v8008_v48 = vld [vmem:[#allocation6 + $0xaec] sm:$0xf]  ;;  %v6995_v49 = vld [vmem:[#allocation6 + $0xb18] sm:$0xf0] }
 0x17a   : > { %2993 = vmatpush.bf16.msra.mxu2 %v6466_v52  ;;  %3006 = vmatpush.bf16.msra.mxu3 %v6850_v53  ;;  %v7708_v52 = vld [vmem:[#allocation6 + $0x18c] sm:$0xf]  ;;  %v5795_v53 = vld [vmem:[#allocation6 + $0x1b8] sm:$0xf0]  ;;  %v6998_v55 = vor.u32 %v8008_v48, %v6995_v49 }
 0x17b   : > { %v7852_v48 = vld [vmem:[#allocation6 + $0x60c] sm:$0xf]  ;;  %v6371_v49 = vld [vmem:[#allocation6 + $0x638] sm:$0xf0] }
 0x17d   : > { %2968 = vmatpush.bf16.msra.mxu0 %v5650_v62  ;;  %2981 = vmatpush.bf16.msra.mxu1 %v6034_v63  ;;  %v6947_v62 = vld [vmem:[#allocation6 + $0xab8] sm:$0xf0]  ;;  %v5798_v63 = vor.u32 %v7708_v52, %v5795_v53  ;;  %v5945_v52 = vld [vmem:[#allocation6 + $0x2b0] sm:$0xf]  ;;  %v7751_v53 = vld [vmem:[#allocation6 + $0x2dc] sm:$0xf0] }
 0x17e   : > { %2994 = vmatpush.bf16.msra.mxu2 %v6418_v5  ;;  %3007 = vmatpush.bf16.msra.mxu3 %v6802_v6  ;;  %v6566_v5 = vor.u32 %v7900_v58, %v6563_v59  ;;  %v6950_v6 = vor.u32 %v7996_v60, %v6947_v62  ;;  %v5990_v58 = vor.u32 %v7756_v40, %v5987_v41  ;;  %v7943_v59 = vld [vmem:[#allocation6 + $0x8dc] sm:$0xf0]  ;;  %v7097_v60 = vld [vmem:[#allocation6 + $0xbb0] sm:$0xf] }
 0x17f   : > { %v8039_v62 = vld [vmem:[#allocation6 + $0xbdc] sm:$0xf0]  ;;  %v5946_v3 = vor.u32 %v7751_v53, %v5945_v52  ;;  %v6714_v7 = vor.u32 %v7943_v59, %v6713_v56  ;;  %v5753_v40 = vld [vmem:[#allocation6 + $0x130] sm:$0xf] }
 0x180   : > { %v7098_v8 = vor.u32 %v8039_v62, %v7097_v60  ;;  %v7703_v41 = vld [vmem:[#allocation6 + $0x15c] sm:$0xf0]  ;;  %v6905_v52 = vld [vmem:[#allocation6 + $0xa30] sm:$0xf] }
 0x181   : > { %2969 = vmatpush.bf16.msra.mxu0 %v5602_v15  ;;  %2982 = vmatpush.bf16.msra.mxu1 %v5986_v16  ;;  %v5699_v15 = vld [vmem:[#allocation6 + $0xf8] sm:$0xf0]  ;;  %v6518_v16 = vor.u32 %v7888_v9, %v6515_v10  ;;  %v6281_v9 = vld [vmem:[#allocation6 + $0x550] sm:$0xf]  ;;  %v7835_v10 = vld [vmem:[#allocation6 + $0x57c] sm:$0xf0] }
 0x182   : > { %2995 = vmatpush.bf16.msra.mxu2 %v6370_v20  ;;  %3008 = vmatpush.bf16.msra.mxu3 %v6754_v21  ;;  %v7876_v20 = vld [vmem:[#allocation6 + $0x6cc] sm:$0xf]  ;;  %v6467_v21 = vld [vmem:[#allocation6 + $0x6f8] sm:$0xf0]  ;;  %v5702_v24 = vor.u32 %v7684_v14, %v5699_v15  ;;  %v6282_v15 = vor.u32 %v7835_v10, %v6281_v9  ;;  %v7991_v53 = vld [vmem:[#allocation6 + $0xa5c] sm:$0xf0] }
 0x183   : > { %v6470_v28 = vor.u32 %v7876_v20, %v6467_v21  ;;  %v6233_v20 = vld [vmem:[#allocation6 + $0x4f0] sm:$0xf]  ;;  %v7823_v21 = vld [vmem:[#allocation6 + $0x51c] sm:$0xf0]  ;;  %v6906_v59 = vor.u32 %v7991_v53, %v6905_v52  ;;  %v7925_v52 = vld [vmem:[#allocation6 + $0x854] sm:$0xf] }
 0x184   : > { %2970 = vmatmul.bf16.vlgmr.msra.gmra.mxu0 %v8645_v44  ;;  %2983 = vmatmul.bf16.vlgmr.msra.gmra.mxu1 %v8647_v45  ;;  %v5705_v56 = vld [vmem:[#allocation6 + $0xd0] sm:$0xf]  ;;  %v7787_v62 = vld [vmem:[#allocation6 + $0x3fc] sm:$0xf0]  ;;  %v6667_v53 = vld [vmem:[#allocation6 + $0x880] sm:$0xf0] }
 0x185   : > { %3014 = vmatpush.bf16.msrb.mxu0 %v5942_v22  ;;  %3027 = vmatpush.bf16.msrb.mxu1 %v6326_v23  ;;  %v7972_v22 = vld [vmem:[#allocation6 + $0x9cc] sm:$0xf]  ;;  %v6851_v23 = vld [vmem:[#allocation6 + $0x9f8] sm:$0xf0]  ;;  %v6089_v60 = vld [vmem:[#allocation6 + $0x3d0] sm:$0xf] }
 0x186   : > { %3040 = vmatpush.bf16.msrb.mxu2 %v6710_v26  ;;  %3053 = vmatpush.bf16.msrb.mxu3 %v7094_v27  ;;  %v7672_v26 = vld [vmem:[#allocation6 + $0x6c] sm:$0xf]  ;;  %v5651_v27 = vld [vmem:[#allocation6 + $0x98] sm:$0xf0]  ;;  %v6854_v29 = vor.u32 %v7972_v22, %v6851_v23  ;;  %v6617_v22 = vld [vmem:[#allocation6 + $0x7f0] sm:$0xf] }
 0x187   : > { %2996 = vmatmul.bf16.vlgmr.msra.gmra.mxu2 %v8649_v46  ;;  %3009 = vmatmul.bf16.vlgmr.msra.gmra.mxu3 %v8651_v47  ;;  %v5654_v37 = vor.u32 %v7672_v26, %v5651_v27  ;;  %v7919_v23 = vld [vmem:[#allocation6 + $0x81c] sm:$0xf0]  ;;  %v6234_v27 = vor.u32 %v7823_v21, %v6233_v20  ;;  %v5993_v20 = vld [vmem:[#allocation6 + $0x310] sm:$0xf] }
 0x188   : > { %v7763_v21 = vld [vmem:[#allocation6 + $0x33c] sm:$0xf0] }
 0x189   : > { %3015 = vmatpush.bf16.msrb.mxu0 %v5894_v34  ;;  %3028 = vmatpush.bf16.msrb.mxu1 %v6278_v35  ;;  %v7960_v34 = vld [vmem:[#allocation6 + $0x96c] sm:$0xf]  ;;  %v6803_v35 = vld [vmem:[#allocation6 + $0x998] sm:$0xf0] }
 0x18a   : > { %3041 = vmatpush.bf16.msrb.mxu2 %v6662_v38  ;;  %3054 = vmatpush.bf16.msrb.mxu3 %v7046_v39  ;;  %v6038_v38 = vor.u32 %v7768_v30, %v6035_v31  ;;  %v5603_v39 = vld [vmem:[#allocation6 + $0x38] sm:$0xf0]  ;;  %v6806_v43 = vor.u32 %v7960_v34, %v6803_v35  ;;  %v6618_v30 = vor.u32 %v7919_v23, %v6617_v22  ;;  %v6569_v34 = vld [vmem:[#allocation6 + $0x790] sm:$0xf]  ;;  %v7907_v35 = vld [vmem:[#allocation6 + $0x7bc] sm:$0xf0] }
 0x18b   : > { %v5606_v57 = vor.u32 %v7660_v36, %v5603_v39  ;;  %v6953_v36 = vld [vmem:[#allocation6 + $0xa90] sm:$0xf]  ;;  %v6186_v39 = vor.u32 %v7811_v33, %v6185_v32  ;;  %v7937_v32 = vld [vmem:[#allocation6 + $0x8b4] sm:$0xf] }
 0x18d   : > { %3016 = vmatpush.bf16.msrb.mxu0 %v5846_v50  ;;  %3029 = vmatpush.bf16.msrb.mxu1 %v6230_v51  ;;  %v7948_v50 = vld [vmem:[#allocation6 + $0x90c] sm:$0xf]  ;;  %v6755_v51 = vld [vmem:[#allocation6 + $0x938] sm:$0xf0] }
 0x18e   : > { %3042 = vmatpush.bf16.msrb.mxu2 %v6614_v54  ;;  %3055 = vmatpush.bf16.msrb.mxu3 %v6998_v55  ;;  %v6329_v54 = vld [vmem:[#allocation6 + $0x5b0] sm:$0xf]  ;;  %v7847_v55 = vld [vmem:[#allocation6 + $0x5dc] sm:$0xf0] }
 0x18f   : > { %v6330_v4 = vor.u32 %v7847_v55, %v6329_v54  ;;  %v5754_v54 = vor.u32 %v7703_v41, %v5753_v40 }
 0x191   : > { %3017 = vmatpush.bf16.msrb.mxu0 %v5798_v63  ;;  %3030 = vmatpush.bf16.msrb.mxu1 %v6182_v2  ;;  %v6374_v63 = vor.u32 %v7852_v48, %v6371_v49  ;;  %v6758_v2 = vor.u32 %v7948_v50, %v6755_v51  ;;  %v6137_v48 = vld [vmem:[#allocation6 + $0x430] sm:$0xf]  ;;  %v7799_v49 = vld [vmem:[#allocation6 + $0x45c] sm:$0xf0] }
 0x192   : > { %3043 = vmatpush.bf16.msrb.mxu2 %v6566_v5  ;;  %3056 = vmatpush.bf16.msrb.mxu3 %v6950_v6  ;;  %v5897_v5 = vld [vmem:[#allocation6 + $0x250] sm:$0xf]  ;;  %v7739_v6 = vld [vmem:[#allocation6 + $0x27c] sm:$0xf0]  ;;  %v6138_v55 = vor.u32 %v7799_v49, %v6137_v48 }
 0x193   : > { %v5898_v14 = vor.u32 %v7739_v6, %v5897_v5  ;;  %v6521_v50 = vld [vmem:[#allocation6 + $0x730] sm:$0xf]  ;;  %v7895_v51 = vld [vmem:[#allocation6 + $0x75c] sm:$0xf0]  ;;  %v6090_v6 = vor.u32 %v7787_v62, %v6089_v60  ;;  %v6670_v60 = vor.u32 %v7925_v52, %v6667_v53  ;;  %v7769_v52 = vld [vmem:[#allocation6 + $0x374] sm:$0xf] }
 0x194   : > { %v6043_v53 = vld [vmem:[#allocation6 + $0x3a0] sm:$0xf0] }
 0x195   : > { %3018 = vmatpush.bf16.msrb.mxu0 %v5750_v13  ;;  %3031 = vmatpush.bf16.msrb.mxu1 %v6134_v61  ;;  %v7049_v13 = vld [vmem:[#allocation6 + $0xb50] sm:$0xf]  ;;  %v8027_v61 = vld [vmem:[#allocation6 + $0xb7c] sm:$0xf0] }
 0x196   : > { %3044 = vmatpush.bf16.msrb.mxu2 %v6518_v16  ;;  %3057 = vmatpush.bf16.msrb.mxu3 %v6902_v17  ;;  %v5849_v16 = vld [vmem:[#allocation6 + $0x1f0] sm:$0xf]  ;;  %v7727_v17 = vld [vmem:[#allocation6 + $0x21c] sm:$0xf0]  ;;  %v7050_v19 = vor.u32 %v8027_v61, %v7049_v13 }
 0x197   : > { %v5850_v26 = vor.u32 %v7727_v17, %v5849_v16  ;;  %v6425_v13 = vld [vmem:[#allocation6 + $0x670] sm:$0xf]  ;;  %v7871_v61 = vld [vmem:[#allocation6 + $0x69c] sm:$0xf0] }
 0x198   : > { %v5609_v16 = vld [vmem:[#allocation6 + $0x10] sm:$0xf]  ;;  %v6426_v22 = vor.u32 %v7871_v61, %v6425_v13  ;;  %v7805_v13 = vld [vmem:[#allocation6 + $0x494] sm:$0xf]  ;;  %v6187_v61 = vld [vmem:[#allocation6 + $0x4c0] sm:$0xf0] }
 0x199   : > { %3019 = vmatpush.bf16.msrb.mxu0 %v5702_v24  ;;  %3032 = vmatpush.bf16.msrb.mxu1 %v6086_v25  ;;  %v7001_v24 = vld [vmem:[#allocation6 + $0xaf0] sm:$0xf]  ;;  %v8015_v25 = vld [vmem:[#allocation6 + $0xb1c] sm:$0xf0] }
 0x19a   : > { %3045 = vmatpush.bf16.msrb.mxu2 %v6470_v28  ;;  %3058 = vmatpush.bf16.msrb.mxu3 %v6854_v29  ;;  %v5801_v28 = vld [vmem:[#allocation6 + $0x190] sm:$0xf]  ;;  %v7715_v29 = vld [vmem:[#allocation6 + $0x1bc] sm:$0xf0]  ;;  %v7002_v31 = vor.u32 %v8015_v25, %v7001_v24 }
 0x19b   : > { %v6377_v24 = vld [vmem:[#allocation6 + $0x610] sm:$0xf]  ;;  %v7859_v25 = vld [vmem:[#allocation6 + $0x63c] sm:$0xf0] }
 0x19d   : > { %3020 = vmatpush.bf16.msrb.mxu0 %v5654_v37  ;;  %3033 = vmatpush.bf16.msrb.mxu1 %v6038_v38  ;;  %v8003_v37 = vld [vmem:[#allocation6 + $0xabc] sm:$0xf0]  ;;  %v5802_v38 = vor.u32 %v7715_v29, %v5801_v28  ;;  %v7745_v28 = vld [vmem:[#allocation6 + $0x2b4] sm:$0xf]  ;;  %v5947_v29 = vld [vmem:[#allocation6 + $0x2e0] sm:$0xf0] }
 0x19e   : > { %3046 = vmatpush.bf16.msrb.mxu2 %v6422_v42  ;;  %3059 = vmatpush.bf16.msrb.mxu3 %v6806_v43  ;;  %v6570_v42 = vor.u32 %v7907_v35, %v6569_v34  ;;  %v6954_v43 = vor.u32 %v8003_v37, %v6953_v36  ;;  %v5994_v34 = vor.u32 %v7763_v21, %v5993_v20  ;;  %v6715_v35 = vld [vmem:[#allocation6 + $0x8e0] sm:$0xf0]  ;;  %v8033_v36 = vld [vmem:[#allocation6 + $0xbb4] sm:$0xf] }
 0x19f   : > { %v7099_v37 = vld [vmem:[#allocation6 + $0xbe0] sm:$0xf0]  ;;  %v5950_v40 = vor.u32 %v7745_v28, %v5947_v29  ;;  %v6718_v48 = vor.u32 %v7937_v32, %v6715_v35  ;;  %v7697_v20 = vld [vmem:[#allocation6 + $0x134] sm:$0xf] }
 0x1a0   : > { %v7102_v49 = vor.u32 %v8033_v36, %v7099_v37  ;;  %v5755_v21 = vld [vmem:[#allocation6 + $0x160] sm:$0xf0]  ;;  %v7985_v28 = vld [vmem:[#allocation6 + $0xa34] sm:$0xf] }
 0x1a1   : > { %3021 = vmatpush.bf16.msrb.mxu0 %v5606_v57  ;;  %3034 = vmatpush.bf16.msrb.mxu1 %v5990_v58  ;;  %v7691_v57 = vld [vmem:[#allocation6 + $0xfc] sm:$0xf0]  ;;  %v6522_v58 = vor.u32 %v7895_v51, %v6521_v50  ;;  %v7829_v50 = vld [vmem:[#allocation6 + $0x554] sm:$0xf]  ;;  %v6283_v51 = vld [vmem:[#allocation6 + $0x580] sm:$0xf0] }
 0x1a2   : > { %3047 = vmatpush.bf16.msrb.mxu2 %v6374_v63  ;;  %3060 = vmatpush.bf16.msrb.mxu3 %v6758_v2  ;;  %v6473_v63 = vld [vmem:[#allocation6 + $0x6d0] sm:$0xf]  ;;  %v7883_v2 = vld [vmem:[#allocation6 + $0x6fc] sm:$0xf0]  ;;  %v5706_v5 = vor.u32 %v7691_v57, %v5705_v56  ;;  %v6286_v57 = vor.u32 %v7829_v50, %v6283_v51  ;;  %v6907_v29 = vld [vmem:[#allocation6 + $0xa60] sm:$0xf0] }
 0x1a3   : > { %v6474_v9 = vor.u32 %v7883_v2, %v6473_v63  ;;  %v7817_v63 = vld [vmem:[#allocation6 + $0x4f4] sm:$0xf]  ;;  %v6235_v2 = vld [vmem:[#allocation6 + $0x520] sm:$0xf0]  ;;  %v6910_v35 = vor.u32 %v7985_v28, %v6907_v29  ;;  %v6673_v28 = vld [vmem:[#allocation6 + $0x858] sm:$0xf] }
 0x1a4   : > { %3022 = vmatmul.bf16.vlgmr.msrb.gmra.mxu0 %v8645_v44  ;;  %3035 = vmatmul.bf16.vlgmr.msrb.gmra.mxu1 %v8647_v45  ;;  %v7685_v32 = vld [vmem:[#allocation6 + $0xd4] sm:$0xf]  ;;  %v6091_v37 = vld [vmem:[#allocation6 + $0x400] sm:$0xf0] }
 0x1a5   : > { %3066 = vmatpush.bf16.msra.mxu0 %v5946_v3  ;;  %3079 = vmatpush.bf16.msra.mxu1 %v6330_v4  ;;  %v6857_v3 = vld [vmem:[#allocation6 + $0x9d0] sm:$0xf]  ;;  %v7979_v4 = vld [vmem:[#allocation6 + $0x9fc] sm:$0xf0]  ;;  %v7781_v36 = vld [vmem:[#allocation6 + $0x3d4] sm:$0xf] }
 0x1a6   : > { %3092 = vmatpush.bf16.msra.mxu2 %v6714_v7  ;;  %3105 = vmatpush.bf16.msra.mxu3 %v7098_v8  ;;  %v5657_v7 = vld [vmem:[#allocation6 + $0x70] sm:$0xf]  ;;  %v7679_v8 = vld [vmem:[#allocation6 + $0x9c] sm:$0xf0]  ;;  %v6858_v10 = vor.u32 %v7979_v4, %v6857_v3  ;;  %v7913_v3 = vld [vmem:[#allocation6 + $0x7f4] sm:$0xf] }
 0x1a7   : > { %3048 = vmatmul.bf16.vlgmr.msrb.gmra.mxu2 %v8649_v46  ;;  %3061 = vmatmul.bf16.vlgmr.msrb.gmra.mxu3 %v8651_v47  ;;  %v5658_v17 = vor.u32 %v7679_v8, %v5657_v7  ;;  %v6619_v4 = vld [vmem:[#allocation6 + $0x820] sm:$0xf0]  ;;  %v6238_v8 = vor.u32 %v7817_v63, %v6235_v2  ;;  %v7757_v63 = vld [vmem:[#allocation6 + $0x314] sm:$0xf] }
 0x1a8   : > { %v5995_v2 = vld [vmem:[#allocation6 + $0x340] sm:$0xf0]  ;;  %v8676_v29 = vld [vmem:[%s9177_s5] sm:$0xff] }
 0x1a9   : > { %3067 = vmatpush.bf16.msra.mxu0 %v5898_v14  ;;  %3080 = vmatpush.bf16.msra.mxu1 %v6282_v15  ;;  %v6809_v14 = vld [vmem:[#allocation6 + $0x970] sm:$0xf]  ;;  %v7967_v15 = vld [vmem:[#allocation6 + $0x99c] sm:$0xf0] }
 0x1aa   : > { %3093 = vmatpush.bf16.msra.mxu2 %v6666_v18  ;;  %3106 = vmatpush.bf16.msra.mxu3 %v7050_v19  ;;  %v6042_v18 = vor.u32 %v7775_v12, %v6041_v11  ;;  %v7667_v19 = vld [vmem:[#allocation6 + $0x3c] sm:$0xf0]  ;;  %v6810_v23 = vor.u32 %v7967_v15, %v6809_v14  ;;  %v6622_v11 = vor.u32 %v7913_v3, %v6619_v4  ;;  %v7901_v14 = vld [vmem:[#allocation6 + $0x794] sm:$0xf]  ;;  %v6571_v15 = vld [vmem:[#allocation6 + $0x7c0] sm:$0xf0] }
 0x1ab   : > { %v5610_v33 = vor.u32 %v7667_v19, %v5609_v16  ;;  %v7997_v16 = vld [vmem:[#allocation6 + $0xa94] sm:$0xf]  ;;  %v6190_v19 = vor.u32 %v7805_v13, %v6187_v61  ;;  %v6721_v13 = vld [vmem:[#allocation6 + $0x8b8] sm:$0xf] }
 0x1ad   : > { %3068 = vmatpush.bf16.msra.mxu0 %v5850_v26  ;;  %3081 = vmatpush.bf16.msra.mxu1 %v6234_v27  ;;  %v6761_v26 = vld [vmem:[#allocation6 + $0x910] sm:$0xf]  ;;  %v7955_v27 = vld [vmem:[#allocation6 + $0x93c] sm:$0xf0] }
 0x1ae   : > { %3094 = vmatpush.bf16.msra.mxu2 %v6618_v30  ;;  %3107 = vmatpush.bf16.msra.mxu3 %v7002_v31  ;;  %v7841_v30 = vld [vmem:[#allocation6 + $0x5b4] sm:$0xf]  ;;  %v6331_v31 = vld [vmem:[#allocation6 + $0x5e0] sm:$0xf0] }
 0x1af   : > { %v6334_v41 = vor.u32 %v7841_v30, %v6331_v31  ;;  %v5758_v30 = vor.u32 %v7697_v20, %v5755_v21 }
 0x1b1   : > { %3069 = vmatpush.bf16.msra.mxu0 %v5802_v38  ;;  %3082 = vmatpush.bf16.msra.mxu1 %v6186_v39  ;;  %v6378_v38 = vor.u32 %v7859_v25, %v6377_v24  ;;  %v6762_v39 = vor.u32 %v7955_v27, %v6761_v26  ;;  %v7793_v24 = vld [vmem:[#allocation6 + $0x434] sm:$0xf]  ;;  %v6139_v25 = vld [vmem:[#allocation6 + $0x460] sm:$0xf0] }
 0x1b2   : > { %3095 = vmatpush.bf16.msra.mxu2 %v6570_v42  ;;  %3108 = vmatpush.bf16.msra.mxu3 %v6954_v43  ;;  %v7733_v42 = vld [vmem:[#allocation6 + $0x254] sm:$0xf]  ;;  %v5899_v43 = vld [vmem:[#allocation6 + $0x280] sm:$0xf0]  ;;  %v6142_v31 = vor.u32 %v7793_v24, %v6139_v25  ;;  %v6289_v24 = vld [vmem:[#allocation6 + $0x558] sm:$0xf] }
 0x1b3   : > { %v5902_v56 = vor.u32 %v7733_v42, %v5899_v43  ;;  %v7889_v26 = vld [vmem:[#allocation6 + $0x734] sm:$0xf]  ;;  %v6523_v27 = vld [vmem:[#allocation6 + $0x760] sm:$0xf0]  ;;  %v6094_v43 = vor.u32 %v7781_v36, %v6091_v37  ;;  %v7728_v36 = vld [vmem:[#allocation6 + $0x224] sm:$0xf0] }
 0x1b4   : > { %v914_v37 = vperm.slane %v8676_v29, 0 }
 0x1b5   : > { %3070 = vmatpush.bf16.msra.mxu0 %v5754_v54  ;;  %3083 = vmatpush.bf16.msra.mxu1 %v6138_v55  ;;  %v8021_v54 = vld [vmem:[#allocation6 + $0xb54] sm:$0xf]  ;;  %v7051_v55 = vld [vmem:[#allocation6 + $0xb80] sm:$0xf0] }
 0x1b6   : > { %3096 = vmatpush.bf16.msra.mxu2 %v6522_v58  ;;  %3109 = vmatpush.bf16.msra.mxu3 %v6906_v59  ;;  %v7721_v58 = vld [vmem:[#allocation6 + $0x1f4] sm:$0xf]  ;;  %v5851_v59 = vld [vmem:[#allocation6 + $0x220] sm:$0xf0]  ;;  %v7054_v62 = vor.u32 %v8021_v54, %v7051_v55 }
 0x1b7   : > { %v5854_v7 = vor.u32 %v7721_v58, %v5851_v59  ;;  %v7865_v54 = vld [vmem:[#allocation6 + $0x674] sm:$0xf]  ;;  %v6427_v55 = vld [vmem:[#allocation6 + $0x6a0] sm:$0xf0] }
 0x1b8   : > { %v7661_v58 = vld [vmem:[#allocation6 + $0x14] sm:$0xf]  ;;  %v6430_v3 = vor.u32 %v7865_v54, %v6427_v55  ;;  %v5809_v55 = vld [vmem:[#allocation6 + $0x198] sm:$0xf] }
 0x1b9   : > { %3071 = vmatpush.bf16.msra.mxu0 %v5706_v5  ;;  %3084 = vmatpush.bf16.msra.mxu1 %v6090_v6  ;;  %v8009_v5 = vld [vmem:[#allocation6 + $0xaf4] sm:$0xf]  ;;  %v7003_v6 = vld [vmem:[#allocation6 + $0xb20] sm:$0xf0] }
 0x1ba   : > { %3097 = vmatpush.bf16.msra.mxu2 %v6474_v9  ;;  %3110 = vmatpush.bf16.msra.mxu3 %v6858_v10  ;;  %v7709_v9 = vld [vmem:[#allocation6 + $0x194] sm:$0xf]  ;;  %v5803_v10 = vld [vmem:[#allocation6 + $0x1c0] sm:$0xf0]  ;;  %v7006_v12 = vor.u32 %v8009_v5, %v7003_v6 }
 0x1bb   : > { %v7853_v5 = vld [vmem:[#allocation6 + $0x614] sm:$0xf]  ;;  %v6379_v6 = vld [vmem:[#allocation6 + $0x640] sm:$0xf0] }
 0x1bd   : > { %3072 = vmatpush.bf16.msra.mxu0 %v5658_v17  ;;  %3085 = vmatpush.bf16.msra.mxu1 %v6042_v18  ;;  %v6955_v17 = vld [vmem:[#allocation6 + $0xac0] sm:$0xf0]  ;;  %v5806_v18 = vor.u32 %v7709_v9, %v5803_v10  ;;  %v5953_v9 = vld [vmem:[#allocation6 + $0x2b8] sm:$0xf]  ;;  %v7752_v10 = vld [vmem:[#allocation6 + $0x2e4] sm:$0xf0] }
 0x1be   : > { %3098 = vmatpush.bf16.msra.mxu2 %v6426_v22  ;;  %3111 = vmatpush.bf16.msra.mxu3 %v6810_v23  ;;  %v6574_v22 = vor.u32 %v7901_v14, %v6571_v15  ;;  %v6958_v23 = vor.u32 %v7997_v16, %v6955_v17  ;;  %v5998_v14 = vor.u32 %v7757_v63, %v5995_v2  ;;  %v7944_v15 = vld [vmem:[#allocation6 + $0x8e4] sm:$0xf0]  ;;  %v7105_v16 = vld [vmem:[#allocation6 + $0xbb8] sm:$0xf] }
 0x1bf   : > { %v8040_v17 = vld [vmem:[#allocation6 + $0xbe4] sm:$0xf0]  ;;  %v5954_v20 = vor.u32 %v7752_v10, %v5953_v9  ;;  %v6722_v25 = vor.u32 %v7944_v15, %v6721_v13  ;;  %v6529_v13 = vld [vmem:[#allocation6 + $0x738] sm:$0xf] }
 0x1c0   : > { %v7908_v2 = vld [vmem:[#allocation6 + $0x7c4] sm:$0xf0] }
 0x1c1   : > { %3073 = vmatpush.bf16.msra.mxu0 %v5610_v33  ;;  %3086 = vmatpush.bf16.msra.mxu1 %v5994_v34  ;;  %v5707_v33 = vld [vmem:[#allocation6 + $0x100] sm:$0xf0]  ;;  %v6526_v34 = vor.u32 %v7889_v26, %v6523_v27  ;;  %v7106_v26 = vor.u32 %v8040_v17, %v7105_v16  ;;  %v7836_v27 = vld [vmem:[#allocation6 + $0x584] sm:$0xf0]  ;;  %v6913_v16 = vld [vmem:[#allocation6 + $0xa38] sm:$0xf] }
 0x1c2   : > { %3099 = vmatpush.bf16.msra.mxu2 %v6378_v38  ;;  %3112 = vmatpush.bf16.msra.mxu3 %v6762_v39  ;;  %v7877_v38 = vld [vmem:[#allocation6 + $0x6d4] sm:$0xf]  ;;  %v6475_v39 = vld [vmem:[#allocation6 + $0x700] sm:$0xf0]  ;;  %v5710_v42 = vor.u32 %v7685_v32, %v5707_v33  ;;  %v8028_v32 = vld [vmem:[#allocation6 + $0xb84] sm:$0xf0] }
 0x1c3   : > { %v6478_v50 = vor.u32 %v7877_v38, %v6475_v39  ;;  %v7896_v15 = vld [vmem:[#allocation6 + $0x764] sm:$0xf0] }
 0x1c4   : > { %3074 = vmatmul.bf16.vlgmr.msra.gmra.mxu0 %v8645_v44  ;;  %3087 = vmatmul.bf16.vlgmr.msra.gmra.mxu1 %v8647_v45  ;;  %v7992_v17 = vld [vmem:[#allocation6 + $0xa64] sm:$0xf0] }
 0x1c5   : > { %3118 = vmatpush.bf16.msrb.mxu0 %v5950_v40  ;;  %3131 = vmatpush.bf16.msrb.mxu1 %v6334_v41  ;;  %v7973_v40 = vld [vmem:[#allocation6 + $0x9d4] sm:$0xf]  ;;  %v6859_v41 = vld [vmem:[#allocation6 + $0xa00] sm:$0xf0] }
 0x1c6   : > { %3144 = vmatpush.bf16.msrb.mxu2 %v6718_v48  ;;  %3157 = vmatpush.bf16.msrb.mxu3 %v7102_v49  ;;  %v7673_v48 = vld [vmem:[#allocation6 + $0x74] sm:$0xf]  ;;  %v5659_v49 = vld [vmem:[#allocation6 + $0xa0] sm:$0xf0]  ;;  %v6862_v51 = vor.u32 %v7973_v40, %v6859_v41  ;;  %v6241_v40 = vld [vmem:[#allocation6 + $0x4f8] sm:$0xf] }
 0x1c7   : > { %3100 = vmatmul.bf16.vlgmr.msra.gmra.mxu2 %v8649_v46  ;;  %3113 = vmatmul.bf16.vlgmr.msra.gmra.mxu3 %v8651_v47  ;;  %v5662_v59 = vor.u32 %v7673_v48, %v5659_v49  ;;  %v7824_v41 = vld [vmem:[#allocation6 + $0x524] sm:$0xf0]  ;;  %v7009_v48 = vld [vmem:[#allocation6 + $0xaf8] sm:$0xf] }
 0x1c8   : > { %v8016_v49 = vld [vmem:[#allocation6 + $0xb24] sm:$0xf0] }
 0x1c9   : > { %3119 = vmatpush.bf16.msrb.mxu0 %v5902_v56  ;;  %3132 = vmatpush.bf16.msrb.mxu1 %v6286_v57  ;;  %v7961_v56 = vld [vmem:[#allocation6 + $0x974] sm:$0xf]  ;;  %v6811_v57 = vld [vmem:[#allocation6 + $0x9a0] sm:$0xf0] }
 0x1ca   : > { %3145 = vmatpush.bf16.msrb.mxu2 %v6670_v60  ;;  %3158 = vmatpush.bf16.msrb.mxu3 %v7054_v62  ;;  %v6046_v60 = vor.u32 %v7769_v52, %v6043_v53  ;;  %v5611_v62 = vld [vmem:[#allocation6 + $0x40] sm:$0xf0]  ;;  %v6814_v4 = vor.u32 %v7961_v56, %v6811_v57  ;;  %v6242_v53 = vor.u32 %v7824_v41, %v6241_v40  ;;  %v7716_v56 = vld [vmem:[#allocation6 + $0x1c4] sm:$0xf0] }
 0x1cb   : > { %v5614_v61 = vor.u32 %v7661_v58, %v5611_v62  ;;  %v7010_v58 = vor.u32 %v8016_v49, %v7009_v48  ;;  %v6577_v62 = vld [vmem:[#allocation6 + $0x798] sm:$0xf]  ;;  %v915_v48 = vperm.slane %v8676_v29, 1 }
 0x1cc   : > { %v6578_v9 = vor.u32 %v7908_v2, %v6577_v62  ;;  %v7764_v62 = vld [vmem:[#allocation6 + $0x344] sm:$0xf0] }
 0x1cd   : > { %3120 = vmatpush.bf16.msrb.mxu0 %v5854_v7  ;;  %3133 = vmatpush.bf16.msrb.mxu1 %v6238_v8  ;;  %v7949_v7 = vld [vmem:[#allocation6 + $0x914] sm:$0xf]  ;;  %v6763_v8 = vld [vmem:[#allocation6 + $0x940] sm:$0xf0] }
 0x1ce   : > { %3146 = vmatpush.bf16.msrb.mxu2 %v6622_v11  ;;  %3159 = vmatpush.bf16.msrb.mxu3 %v7006_v12  ;;  %v6337_v11 = vld [vmem:[#allocation6 + $0x5b8] sm:$0xf]  ;;  %v7848_v12 = vld [vmem:[#allocation6 + $0x5e4] sm:$0xf0] }
 0x1cf   : > { %v6338_v21 = vor.u32 %v7848_v12, %v6337_v11  ;;  %v6145_v11 = vld [vmem:[#allocation6 + $0x438] sm:$0xf]  ;;  %v7800_v12 = vld [vmem:[#allocation6 + $0x464] sm:$0xf0] }
 0x1d1   : > { %3121 = vmatpush.bf16.msrb.mxu0 %v5806_v18  ;;  %3134 = vmatpush.bf16.msrb.mxu1 %v6190_v19  ;;  %v6382_v18 = vor.u32 %v7853_v5, %v6379_v6  ;;  %v6766_v19 = vor.u32 %v7949_v7, %v6763_v8  ;;  %v5810_v5 = vor.u32 %v7716_v56, %v5809_v55  ;;  %v5761_v7 = vld [vmem:[#allocation6 + $0x138] sm:$0xf]  ;;  %v7704_v8 = vld [vmem:[#allocation6 + $0x164] sm:$0xf0] }
 0x1d2   : > { %3147 = vmatpush.bf16.msrb.mxu2 %v6574_v22  ;;  %3160 = vmatpush.bf16.msrb.mxu3 %v6958_v23  ;;  %v5905_v22 = vld [vmem:[#allocation6 + $0x258] sm:$0xf]  ;;  %v7740_v23 = vld [vmem:[#allocation6 + $0x284] sm:$0xf0] }
 0x1d3   : > { %v5906_v33 = vor.u32 %v7740_v23, %v5905_v22  ;;  %v6146_v22 = vor.u32 %v7800_v12, %v6145_v11  ;;  %v5713_v23 = vld [vmem:[#allocation6 + $0xd8] sm:$0xf]  ;;  %v6339_v11 = vld [vmem:[#allocation6 + $0x5e8] sm:$0xf0]  ;;  %v7938_v12 = vld [vmem:[#allocation6 + $0x8bc] sm:$0xf] }
 0x1d4   : > { %v5617_v56 = vld [vmem:[#allocation6 + $0x18] sm:$0xf] }
 0x1d5   : > { %3122 = vmatpush.bf16.msrb.mxu0 %v5758_v30  ;;  %3135 = vmatpush.bf16.msrb.mxu1 %v6142_v31  ;;  %v7932_v30 = vld [vmem:[#allocation6 + $0x884] sm:$0xf0]  ;;  %v7057_v31 = vld [vmem:[#allocation6 + $0xb58] sm:$0xf] }
 0x1d6   : > { %3148 = vmatpush.bf16.msrb.mxu2 %v6526_v34  ;;  %3161 = vmatpush.bf16.msrb.mxu3 %v6910_v35  ;;  %v6290_v34 = vor.u32 %v7836_v27, %v6289_v24  ;;  %v5857_v35 = vld [vmem:[#allocation6 + $0x1f8] sm:$0xf]  ;;  %v6674_v38 = vor.u32 %v7932_v30, %v6673_v28  ;;  %v7058_v39 = vor.u32 %v8028_v32, %v7057_v31  ;;  %v7692_v24 = vld [vmem:[#allocation6 + $0x104] sm:$0xf0] }
 0x1d7   : > { %v5858_v52 = vor.u32 %v7728_v36, %v5857_v35  ;;  %v6914_v27 = vor.u32 %v7992_v17, %v6913_v16  ;;  %v6097_v28 = vld [vmem:[#allocation6 + $0x3d8] sm:$0xf]  ;;  %v7788_v30 = vld [vmem:[#allocation6 + $0x404] sm:$0xf0]  ;;  %v5714_v35 = vor.u32 %v7692_v24, %v5713_v23  ;;  %v7107_v16 = vld [vmem:[#allocation6 + $0xbe8] sm:$0xf0] }
 0x1d8   : > { %v6481_v31 = vld [vmem:[#allocation6 + $0x6d8] sm:$0xf]  ;;  %v7884_v32 = vld [vmem:[#allocation6 + $0x704] sm:$0xf0]  ;;  %v6098_v36 = vor.u32 %v7788_v30, %v6097_v28  ;;  %v7734_v24 = vld [vmem:[#allocation6 + $0x25c] sm:$0xf] }
 0x1d9   : > { %3123 = vmatpush.bf16.msrb.mxu0 %v5710_v42  ;;  %3136 = vmatpush.bf16.msrb.mxu1 %v6094_v43  ;;  %v6625_v42 = vld [vmem:[#allocation6 + $0x7f8] sm:$0xf]  ;;  %v7920_v43 = vld [vmem:[#allocation6 + $0x824] sm:$0xf0]  ;;  %v6482_v40 = vor.u32 %v7884_v32, %v6481_v31 }
 0x1da   : > { %3149 = vmatpush.bf16.msrb.mxu2 %v6478_v50  ;;  %3162 = vmatpush.bf16.msrb.mxu3 %v6862_v51  ;;  %v6626_v57 = vor.u32 %v7920_v43, %v6625_v42  ;;  %v7776_v42 = vld [vmem:[#allocation6 + $0x3a4] sm:$0xf0]  ;;  %v6433_v43 = vld [vmem:[#allocation6 + $0x678] sm:$0xf] }
 0x1dd   : > { %3124 = vmatpush.bf16.msrb.mxu0 %v5662_v59  ;;  %3137 = vmatpush.bf16.msrb.mxu1 %v6046_v60  ;;  %v6193_v59 = vld [vmem:[#allocation6 + $0x498] sm:$0xf]  ;;  %v7812_v60 = vld [vmem:[#allocation6 + $0x4c4] sm:$0xf0] }
 0x1de   : > { %3150 = vmatpush.bf16.msrb.mxu2 %v6430_v3  ;;  %3163 = vmatpush.bf16.msrb.mxu3 %v6814_v4  ;;  %v6961_v3 = vld [vmem:[#allocation6 + $0xa98] sm:$0xf]  ;;  %v8004_v4 = vld [vmem:[#allocation6 + $0xac4] sm:$0xf0]  ;;  %v6194_v6 = vor.u32 %v7812_v60, %v6193_v59 }
 0x1df   : > { %v6962_v10 = vor.u32 %v8004_v4, %v6961_v3  ;;  %v7668_v59 = vld [vmem:[#allocation6 + $0x44] sm:$0xf0]  ;;  %v6001_v60 = vld [vmem:[#allocation6 + $0x318] sm:$0xf] }
 0x1e0   : > { %v2867_v50 = vpop.f32.mrf.mxu0  ;;  %v2880_v51 = vpop.f32.mrf.mxu1  ;;  %v6385_v4 = vld [vmem:[#allocation6 + $0x618] sm:$0xf] }
 0x1e1   : > { %3125 = vmatpush.bf16.msrb.mxu0 %v5614_v61  ;;  %3138 = vmatpush.bf16.msrb.mxu1 %v5998_v14  ;;  %v2868_v54 = vadd.f32 %v2867_v50, %v914_v37  ;;  %v5665_v37 = vld [vmem:[#allocation6 + $0x78] sm:$0xf] }
 0x1e2   : > { %3151 = vmatpush.bf16.msrb.mxu2 %v6382_v18  ;;  %3164 = vmatpush.bf16.msrb.mxu3 %v6766_v19 }
 0x1e3   : > { %v2881_v63 = vadd.f32 %v2880_v51, %v2868_v54  ;;  %v7872_v51 = vld [vmem:[#allocation6 + $0x6a4] sm:$0xf0] }
 0x1e4   : > { %3126 = vmatmul.bf16.vlgmr.msrb.gmra.mxu0 %v8645_v44  ;;  %3139 = vmatmul.bf16.vlgmr.msrb.gmra.mxu1 %v8647_v45 }
 0x1e5   : > { %3170 = vmatpush.bf16.msra.mxu0 %v5954_v20  ;;  %3183 = vmatpush.bf16.msra.mxu1 %v6338_v21  ;;  %v5762_v21 = vor.u32 %v7704_v8, %v5761_v7  ;;  %v7956_v7 = vld [vmem:[#allocation6 + $0x944] sm:$0xf0]  ;;  %v7746_v8 = vld [vmem:[#allocation6 + $0x2bc] sm:$0xf] }
 0x1e6   : > { %3196 = vmatpush.bf16.msra.mxu2 %v6722_v25  ;;  %3209 = vmatpush.bf16.msra.mxu3 %v7106_v26  ;;  %v6530_v26 = vor.u32 %v7896_v15, %v6529_v13  ;;  %v5618_v13 = vor.u32 %v7668_v59, %v5617_v56  ;;  %v8034_v15 = vld [vmem:[#allocation6 + $0xbbc] sm:$0xf]  ;;  %v7011_v56 = vld [vmem:[#allocation6 + $0xb28] sm:$0xf0] }
 0x1e7   : > { %3152 = vmatmul.bf16.vlgmr.msrb.gmra.mxu2 %v8649_v46  ;;  %3165 = vmatmul.bf16.vlgmr.msrb.gmra.mxu3 %v8651_v47  ;;  %v2893_v61 = vpop.f32.mrf.mxu2  ;;  %v2906_v14 = vpop.f32.mrf.mxu3  ;;  %v7110_v28 = vor.u32 %v8034_v15, %v7107_v16  ;;  %v5763_v15 = vld [vmem:[#allocation6 + $0x168] sm:$0xf0] }
 0x1e8   : > { %v2894_v18 = vadd.f32 %v2893_v61, %v2881_v63  ;;  %v2869_v19 = vpop.f32.mrf.mxu0  ;;  %v2882_v20 = vpop.f32.mrf.mxu1  ;;  %v6434_v63 = vor.u32 %v7872_v51, %v6433_v43  ;;  %v6002_v61 = vor.u32 %v7764_v62, %v6001_v60  ;;  %v5859_v43 = vld [vmem:[#allocation6 + $0x228] sm:$0xf0] }
 0x1e9   : > { %3171 = vmatpush.bf16.msra.mxu0 %v5906_v33  ;;  %3184 = vmatpush.bf16.msra.mxu1 %v6290_v34  ;;  %v6865_v33 = vld [vmem:[#allocation6 + $0x9d8] sm:$0xf]  ;;  %v7980_v34 = vld [vmem:[#allocation6 + $0xa04] sm:$0xf0] }
 0x1ea   : > { %3197 = vmatpush.bf16.msra.mxu2 %v6674_v38  ;;  %3210 = vmatpush.bf16.msra.mxu3 %v7058_v39  ;;  %v8683_v25 = vadd.f32 %v2906_v14, %v2894_v18  ;;  %v7680_v38 = vld [vmem:[#allocation6 + $0xa4] sm:$0xf0]  ;;  %v6049_v39 = vld [vmem:[#allocation6 + $0x378] sm:$0xf]  ;;  %v6866_v41 = vor.u32 %v7980_v34, %v6865_v33  ;;  %v6723_v14 = vld [vmem:[#allocation6 + $0x8e8] sm:$0xf0] }
 0x1eb   : > { %v7830_v33 = vld [vmem:[#allocation6 + $0x55c] sm:$0xf]  ;;  %v6291_v34 = vld [vmem:[#allocation6 + $0x588] sm:$0xf0] }
 0x1ed   : > { %3172 = vmatpush.bf16.msra.mxu0 %v5858_v52  ;;  %3185 = vmatpush.bf16.msra.mxu1 %v6242_v53  ;;  %v6817_v52 = vld [vmem:[#allocation6 + $0x978] sm:$0xf]  ;;  %v7968_v53 = vld [vmem:[#allocation6 + $0x9a4] sm:$0xf0] }
 0x1ee   : > { %3198 = vmatpush.bf16.msra.mxu2 %v6626_v57  ;;  %3211 = vmatpush.bf16.msra.mxu3 %v7010_v58  ;;  %v5666_v57 = vor.u32 %v7680_v38, %v5665_v37  ;;  %v6050_v58 = vor.u32 %v7776_v42, %v6049_v39  ;;  %v6818_v2 = vor.u32 %v7968_v53, %v6817_v52  ;;  %v8022_v37 = vld [vmem:[#allocation6 + $0xb5c] sm:$0xf]  ;;  %v7059_v38 = vld [vmem:[#allocation6 + $0xb88] sm:$0xf0] }
 0x1ef   : > { %v2895_v49 = vpop.f32.mrf.mxu2  ;;  %v2908_v50 = vpop.f32.mrf.mxu3  ;;  %v7722_v42 = vld [vmem:[#allocation6 + $0x1fc] sm:$0xf]  ;;  %v7062_v51 = vor.u32 %v8022_v37, %v7059_v38  ;;  %v6243_v52 = vld [vmem:[#allocation6 + $0x528] sm:$0xf0] }
 0x1f0   : > { %v2919_v54 = vpop.f32.mrf.mxu0  ;;  %v2932_v55 = vpop.f32.mrf.mxu1  ;;  %v7914_v53 = vld [vmem:[#allocation6 + $0x7fc] sm:$0xf]  ;;  %v6483_v37 = vld [vmem:[#allocation6 + $0x708] sm:$0xf0] }
 0x1f1   : > { %3173 = vmatpush.bf16.msra.mxu0 %v5810_v5  ;;  %3186 = vmatpush.bf16.msra.mxu1 %v6194_v6  ;;  %v2920_v3 = vadd.f32 %v2919_v54, %v915_v48  ;;  %v7860_v5 = vld [vmem:[#allocation6 + $0x644] sm:$0xf0]  ;;  %v6769_v6 = vld [vmem:[#allocation6 + $0x918] sm:$0xf]  ;;  %v7818_v48 = vld [vmem:[#allocation6 + $0x4fc] sm:$0xf] }
 0x1f2   : > { %3199 = vmatpush.bf16.msra.mxu2 %v6578_v9  ;;  %3212 = vmatpush.bf16.msra.mxu3 %v6962_v10  ;;  %v5955_v9 = vld [vmem:[#allocation6 + $0x2e8] sm:$0xf0]  ;;  %v7842_v10 = vld [vmem:[#allocation6 + $0x5bc] sm:$0xf]  ;;  %v6386_v18 = vor.u32 %v7860_v5, %v6385_v4  ;;  %v6770_v19 = vor.u32 %v7956_v7, %v6769_v6  ;;  %v6246_v59 = vor.u32 %v7818_v48, %v6243_v52 }
 0x1f3   : > { %v2933_v17 = vadd.f32 %v2932_v55, %v2920_v3  ;;  %v5958_v20 = vor.u32 %v7746_v8, %v5955_v9  ;;  %v6627_v54 = vld [vmem:[#allocation6 + $0x828] sm:$0xf0]  ;;  %v8010_v55 = vld [vmem:[#allocation6 + $0xafc] sm:$0xf] }
 0x1f4   : > { %v6630_v3 = vor.u32 %v7914_v53, %v6627_v54  ;;  %v7014_v4 = vor.u32 %v8010_v55, %v7011_v56  ;;  %v7806_v5 = vld [vmem:[#allocation6 + $0x49c] sm:$0xf]  ;;  %v6195_v6 = vld [vmem:[#allocation6 + $0x4c8] sm:$0xf0] }
 0x1f5   : > { %3174 = vmatpush.bf16.msra.mxu0 %v5762_v21  ;;  %3187 = vmatpush.bf16.msra.mxu1 %v6146_v22  ;;  %v6342_v21 = vor.u32 %v7842_v10, %v6339_v11  ;;  %v7902_v7 = vld [vmem:[#allocation6 + $0x79c] sm:$0xf]  ;;  %v6579_v8 = vld [vmem:[#allocation6 + $0x7c8] sm:$0xf0] }
 0x1f6   : > { %3200 = vmatpush.bf16.msra.mxu2 %v6530_v26  ;;  %3213 = vmatpush.bf16.msra.mxu3 %v6914_v27  ;;  %v5907_v26 = vld [vmem:[#allocation6 + $0x288] sm:$0xf0]  ;;  %v6726_v27 = vor.u32 %v7938_v12, %v6723_v14  ;;  %v7998_v9 = vld [vmem:[#allocation6 + $0xa9c] sm:$0xf]  ;;  %v6582_v16 = vor.u32 %v7902_v7, %v6579_v8 }
 0x1f7   : > { %v2945_v22 = vpop.f32.mrf.mxu2  ;;  %v2958_v23 = vpop.f32.mrf.mxu3  ;;  %v6963_v10 = vld [vmem:[#allocation6 + $0xac8] sm:$0xf0]  ;;  %v7698_v14 = vld [vmem:[#allocation6 + $0x13c] sm:$0xf] }
 0x1f8   : > { %v2946_v30 = vadd.f32 %v2945_v22, %v2933_v17  ;;  %v2921_v31 = vpop.f32.mrf.mxu0  ;;  %v2934_v32 = vpop.f32.mrf.mxu1  ;;  %v6966_v17 = vor.u32 %v7998_v9, %v6963_v10  ;;  %v7986_v22 = vld [vmem:[#allocation6 + $0xa3c] sm:$0xf]  ;;  %v6051_v54 = vld [vmem:[#allocation6 + $0x3a8] sm:$0xf0] }
 0x1f9   : > { %3175 = vmatpush.bf16.msra.mxu0 %v5714_v35  ;;  %3188 = vmatpush.bf16.msra.mxu1 %v6098_v36  ;;  %v7926_v35 = vld [vmem:[#allocation6 + $0x85c] sm:$0xf]  ;;  %v6675_v36 = vld [vmem:[#allocation6 + $0x888] sm:$0xf0] }
 0x1fa   : > { %3201 = vmatpush.bf16.msra.mxu2 %v6482_v40  ;;  %3214 = vmatpush.bf16.msra.mxu3 %v6866_v41  ;;  %v8686_v39 = vadd.f32 %v2958_v23, %v2946_v30  ;;  %v5910_v40 = vor.u32 %v7734_v24, %v5907_v26  ;;  %v6294_v41 = vor.u32 %v7830_v33, %v6291_v34  ;;  %v6915_v23 = vld [vmem:[#allocation6 + $0xa68] sm:$0xf0]  ;;  %v7782_v32 = vld [vmem:[#allocation6 + $0x3dc] sm:$0xf] }
 0x1fb   : > { %v6678_v50 = vor.u32 %v7926_v35, %v6675_v36  ;;  %v5766_v24 = vor.u32 %v7698_v14, %v5763_v15  ;;  %v6918_v31 = vor.u32 %v7986_v22, %v6915_v23  ;;  %v6099_v33 = vld [vmem:[#allocation6 + $0x408] sm:$0xf0]  ;;  %v7878_v34 = vld [vmem:[#allocation6 + $0x6dc] sm:$0xf]  ;;  %v5961_v14 = vld [vmem:[#allocation6 + $0x2c0] sm:$0xf] }
 0x1fc   : > { %v3506_v49 = vrot.slane %v8686_v39, 4  ;;  %v7974_v38 = vld [vmem:[#allocation6 + $0x9dc] sm:$0xf]  ;;  %v6102_v48 = vor.u32 %v7782_v32, %v6099_v33  ;;  %v6435_v56 = vld [vmem:[#allocation6 + $0x6a8] sm:$0xf0] }
 0x1fd   : > { %3176 = vmatpush.bf16.msra.mxu0 %v5666_v57  ;;  %3189 = vmatpush.bf16.msra.mxu1 %v6050_v58  ;;  %v5862_v58 = vor.u32 %v7722_v42, %v5859_v43  ;;  %v7770_v53 = vld [vmem:[#allocation6 + $0x37c] sm:$0xf]  ;;  %v6387_v8 = vld [vmem:[#allocation6 + $0x648] sm:$0xf0]  ;;  %v7753_v15 = vld [vmem:[#allocation6 + $0x2ec] sm:$0xf0] }
 0x1fe   : > { %3202 = vmatpush.bf16.msra.mxu2 %v6434_v63  ;;  %3215 = vmatpush.bf16.msra.mxu3 %v6818_v2  ;;  %v8693_v57 = vsel %vm3507_vm8, %v3506_v49, %v8683_v25  ;;  %v7710_v63 = vld [vmem:[#allocation6 + $0x19c] sm:$0xf]  ;;  %v5811_v2 = vld [vmem:[#allocation6 + $0x1c8] sm:$0xf0]  ;;  %v7113_v22 = vld [vmem:[#allocation6 + $0xbc0] sm:$0xf] }
 0x1ff   : > { %v2947_v60 = vpop.f32.mrf.mxu2  ;;  %v2960_v62 = vpop.f32.mrf.mxu3  ;;  %v7674_v49 = vld [vmem:[#allocation6 + $0x7c] sm:$0xf]  ;;  %v8041_v23 = vld [vmem:[#allocation6 + $0xbec] sm:$0xf0] }
 0x200   : > { %v7866_v55 = vld [vmem:[#allocation6 + $0x67c] sm:$0xf]  ;;  %v7114_v33 = vor.u32 %v8041_v23, %v7113_v22 }
 0x201   : > { %3177 = vmatpush.bf16.msra.mxu0 %v5618_v13  ;;  %3190 = vmatpush.bf16.msra.mxu1 %v6002_v61  ;;  %v8697_v11 = vpop.f32.mrf.mxu0  ;;  %v8699_v12 = vpop.f32.mrf.mxu1  ;;  %v5814_v13 = vor.u32 %v7710_v63, %v5811_v2  ;;  %v6198_v61 = vor.u32 %v7806_v5, %v6195_v6  ;;  %v7662_v60 = vld [vmem:[#allocation6 + $0x1c] sm:$0xf]  ;;  %v6054_v63 = vor.u32 %v7770_v53, %v6051_v54  ;;  %v5619_v2 = vld [vmem:[#allocation6 + $0x48] sm:$0xf0]  ;;  %v6249_v53 = vld [vmem:[#allocation6 + $0x500] sm:$0xf] }
 0x202   : > { %3203 = vmatpush.bf16.msra.mxu2 %v6386_v18  ;;  %3216 = vmatpush.bf16.msra.mxu3 %v6770_v19  ;;  %v7794_v18 = vld [vmem:[#allocation6 + $0x43c] sm:$0xf]  ;;  %v6147_v19 = vld [vmem:[#allocation6 + $0x468] sm:$0xf0]  ;;  %v6438_v5 = vor.u32 %v7866_v55, %v6435_v56  ;;  %v7825_v54 = vld [vmem:[#allocation6 + $0x52c] sm:$0xf0] }
 0x203   : > { %v6150_v26 = vor.u32 %v7794_v18, %v6147_v19  ;;  %v7854_v7 = vld [vmem:[#allocation6 + $0x61c] sm:$0xf]  ;;  %v6729_v18 = vld [vmem:[#allocation6 + $0x8c0] sm:$0xf]  ;;  %v5622_v19 = vor.u32 %v7662_v60, %v5619_v2  ;;  %v7921_v56 = vld [vmem:[#allocation6 + $0x82c] sm:$0xf0] }
 0x204   : > { %3178 = vmatmul.bf16.vlgmr.msra.gmra.mxu0 %v8645_v44  ;;  %3191 = vmatmul.bf16.vlgmr.msra.gmra.mxu1 %v8647_v45  ;;  %v7950_v9 = vld [vmem:[#allocation6 + $0x91c] sm:$0xf]  ;;  %v6633_v55 = vld [vmem:[#allocation6 + $0x800] sm:$0xf]  ;;  %v916_v60 = vperm.slane %v8676_v29, 2  ;;  %v917_v2 = vperm.slane %v8676_v29, 3 }
 0x205   : > { %3222 = vmatpush.bf16.msrb.mxu0 %v5958_v20  ;;  %3235 = vmatpush.bf16.msrb.mxu1 %v6342_v21  ;;  %v7890_v20 = vld [vmem:[#allocation6 + $0x73c] sm:$0xf]  ;;  %v6531_v21 = vld [vmem:[#allocation6 + $0x768] sm:$0xf0] }
 0x206   : > { %3248 = vmatpush.bf16.msrb.mxu2 %v6726_v27  ;;  %3261 = vmatpush.bf16.msrb.mxu3 %v7110_v28  ;;  %v7686_v27 = vld [vmem:[#allocation6 + $0xdc] sm:$0xf]  ;;  %v5715_v28 = vld [vmem:[#allocation6 + $0x108] sm:$0xf0]  ;;  %v6534_v30 = vor.u32 %v7890_v20, %v6531_v21  ;;  %v7945_v21 = vld [vmem:[#allocation6 + $0x8ec] sm:$0xf0] }
 0x207   : > { %3204 = vmatmul.bf16.vlgmr.msra.gmra.mxu2 %v8649_v46  ;;  %3217 = vmatmul.bf16.vlgmr.msra.gmra.mxu3 %v8651_v47  ;;  %v5718_v43 = vor.u32 %v7686_v27, %v5715_v28  ;;  %v5962_v27 = vor.u32 %v7753_v15, %v5961_v14  ;;  %v6730_v32 = vor.u32 %v7945_v21, %v6729_v18 }
 0x209   : > { %3223 = vmatpush.bf16.msrb.mxu0 %v5910_v40  ;;  %3236 = vmatpush.bf16.msrb.mxu1 %v6294_v41  ;;  %v6867_v40 = vld [vmem:[#allocation6 + $0xa08] sm:$0xf0]  ;;  %v2973_v41 = vpop.f32.mrf.mxu0  ;;  %v2986_v42 = vpop.f32.mrf.mxu1 }
 0x20a   : > { %3249 = vmatpush.bf16.msrb.mxu2 %v6678_v50  ;;  %3262 = vmatpush.bf16.msrb.mxu3 %v7062_v51  ;;  %v8701_v35 = vpop.f32.mrf.mxu2  ;;  %v8703_v36 = vpop.f32.mrf.mxu3  ;;  %v5667_v50 = vld [vmem:[#allocation6 + $0xa8] sm:$0xf0]  ;;  %v6486_v51 = vor.u32 %v7878_v34, %v6483_v37  ;;  %v6870_v52 = vor.u32 %v7974_v38, %v6867_v40  ;;  %v6297_v34 = vld [vmem:[#allocation6 + $0x560] sm:$0xf]  ;;  %v7837_v37 = vld [vmem:[#allocation6 + $0x58c] sm:$0xf0] }
 0x20b   : > { %v5670_v62 = vor.u32 %v7674_v49, %v5667_v50  ;;  %v6681_v38 = vld [vmem:[#allocation6 + $0x860] sm:$0xf]  ;;  %v7933_v40 = vld [vmem:[#allocation6 + $0x88c] sm:$0xf0] }
 0x20c   : > { %v7065_v41 = vld [vmem:[#allocation6 + $0xb60] sm:$0xf]  ;;  %v8029_v42 = vld [vmem:[#allocation6 + $0xb8c] sm:$0xf0] }
 0x20d   : > { %3224 = vmatpush.bf16.msrb.mxu0 %v5862_v58  ;;  %3237 = vmatpush.bf16.msrb.mxu1 %v6246_v59  ;;  %v7962_v58 = vld [vmem:[#allocation6 + $0x97c] sm:$0xf]  ;;  %v6819_v59 = vld [vmem:[#allocation6 + $0x9a8] sm:$0xf0]  ;;  %v5865_v49 = vld [vmem:[#allocation6 + $0x200] sm:$0xf] }
 0x20e   : > { %3250 = vmatpush.bf16.msrb.mxu2 %v6630_v3  ;;  %3263 = vmatpush.bf16.msrb.mxu3 %v7014_v4  ;;  %v7758_v3 = vld [vmem:[#allocation6 + $0x31c] sm:$0xf]  ;;  %v6003_v4 = vld [vmem:[#allocation6 + $0x348] sm:$0xf0]  ;;  %v6822_v6 = vor.u32 %v7962_v58, %v6819_v59  ;;  %v7729_v50 = vld [vmem:[#allocation6 + $0x22c] sm:$0xf0] }
 0x20f   : > { %v6006_v20 = vor.u32 %v7758_v3, %v6003_v4  ;;  %v7017_v58 = vld [vmem:[#allocation6 + $0xb00] sm:$0xf]  ;;  %v8017_v59 = vld [vmem:[#allocation6 + $0xb2c] sm:$0xf0] }
 0x210   : > { %v5817_v3 = vld [vmem:[#allocation6 + $0x1a0] sm:$0xf]  ;;  %v7717_v4 = vld [vmem:[#allocation6 + $0x1cc] sm:$0xf0] }
 0x211   : > { %3225 = vmatpush.bf16.msrb.mxu0 %v5814_v13  ;;  %3238 = vmatpush.bf16.msrb.mxu1 %v6198_v61  ;;  %v6771_v61 = vld [vmem:[#allocation6 + $0x948] sm:$0xf0] }
 0x212   : > { %3251 = vmatpush.bf16.msrb.mxu2 %v6582_v16  ;;  %3264 = vmatpush.bf16.msrb.mxu3 %v6966_v17  ;;  %v2999_v10 = vpop.f32.mrf.mxu2  ;;  %v3012_v13 = vpop.f32.mrf.mxu3  ;;  %v6345_v16 = vld [vmem:[#allocation6 + $0x5c0] sm:$0xf]  ;;  %v7849_v17 = vld [vmem:[#allocation6 + $0x5ec] sm:$0xf0] }
 0x213   : > { %v6346_v28 = vor.u32 %v7849_v17, %v6345_v16  ;;  %v7909_v10 = vld [vmem:[#allocation6 + $0x7cc] sm:$0xf0]  ;;  %v6969_v13 = vld [vmem:[#allocation6 + $0xaa0] sm:$0xf]  ;;  %v2972_v16 = vadd.f32 %v8697_v11, %v916_v60  ;;  %v5818_v17 = vor.u32 %v7717_v4, %v5817_v3 }
 0x214   : > { %v5673_v60 = vld [vmem:[#allocation6 + $0x80] sm:$0xf] }
 0x215   : > { %3226 = vmatpush.bf16.msrb.mxu0 %v5766_v24  ;;  %3239 = vmatpush.bf16.msrb.mxu1 %v6150_v26  ;;  %v6390_v24 = vor.u32 %v7854_v7, %v6387_v8  ;;  %v6774_v26 = vor.u32 %v7950_v9, %v6771_v61  ;;  %v6201_v7 = vld [vmem:[#allocation6 + $0x4a0] sm:$0xf]  ;;  %v7813_v8 = vld [vmem:[#allocation6 + $0x4cc] sm:$0xf0] }
 0x216   : > { %3252 = vmatpush.bf16.msrb.mxu2 %v6534_v30  ;;  %3265 = vmatpush.bf16.msrb.mxu3 %v6918_v31  ;;  %v5913_v30 = vld [vmem:[#allocation6 + $0x260] sm:$0xf]  ;;  %v7741_v31 = vld [vmem:[#allocation6 + $0x28c] sm:$0xf0]  ;;  %v6202_v18 = vor.u32 %v7813_v8, %v6201_v7 }
 0x217   : > { %v6585_v9 = vld [vmem:[#allocation6 + $0x7a0] sm:$0xf]  ;;  %v8005_v61 = vld [vmem:[#allocation6 + $0xacc] sm:$0xf0] }
 0x218   : > { %v6586_v22 = vor.u32 %v7909_v10, %v6585_v9  ;;  %v6970_v23 = vor.u32 %v8005_v61, %v6969_v13  ;;  %v6057_v4 = vld [vmem:[#allocation6 + $0x380] sm:$0xf]  ;;  %v7873_v7 = vld [vmem:[#allocation6 + $0x6ac] sm:$0xf0] }
 0x219   : > { %3227 = vmatpush.bf16.msrb.mxu0 %v5718_v43  ;;  %3240 = vmatpush.bf16.msrb.mxu1 %v6102_v48  ;;  %v5914_v43 = vor.u32 %v7741_v31, %v5913_v30  ;;  %v6298_v48 = vor.u32 %v7837_v37, %v6297_v34  ;;  %v6921_v30 = vld [vmem:[#allocation6 + $0xa40] sm:$0xf]  ;;  %v7993_v31 = vld [vmem:[#allocation6 + $0xa6c] sm:$0xf0] }
 0x21a   : > { %3253 = vmatpush.bf16.msrb.mxu2 %v6486_v51  ;;  %3266 = vmatpush.bf16.msrb.mxu3 %v6870_v52  ;;  %v6682_v51 = vor.u32 %v7933_v40, %v6681_v38  ;;  %v7066_v52 = vor.u32 %v8029_v42, %v7065_v41  ;;  %v5721_v34 = vld [vmem:[#allocation6 + $0xe0] sm:$0xf]  ;;  %v7693_v37 = vld [vmem:[#allocation6 + $0x10c] sm:$0xf0]  ;;  %v6922_v41 = vor.u32 %v7993_v31, %v6921_v30  ;;  %v7843_v30 = vld [vmem:[#allocation6 + $0x5c4] sm:$0xf] }
 0x21b   : > { %v6105_v42 = vld [vmem:[#allocation6 + $0x3e0] sm:$0xf]  ;;  %v6347_v31 = vld [vmem:[#allocation6 + $0x5f0] sm:$0xf0] }
 0x21c   : > { %v6825_v8 = vld [vmem:[#allocation6 + $0x980] sm:$0xf] }
 0x21d   : > { %3228 = vmatpush.bf16.msrb.mxu0 %v5670_v62  ;;  %3241 = vmatpush.bf16.msrb.mxu1 %v6054_v63  ;;  %v5866_v62 = vor.u32 %v7729_v50, %v5865_v49  ;;  %v6250_v63 = vor.u32 %v7825_v54, %v6249_v53  ;;  %v7981_v53 = vld [vmem:[#allocation6 + $0xa0c] sm:$0xf0]  ;;  %v5625_v61 = vld [vmem:[#allocation6 + $0x20] sm:$0xf] }
 0x21e   : > { %3254 = vmatpush.bf16.msrb.mxu2 %v6438_v5  ;;  %3267 = vmatpush.bf16.msrb.mxu3 %v6822_v6  ;;  %v6634_v5 = vor.u32 %v7921_v56, %v6633_v55  ;;  %v7018_v6 = vor.u32 %v8017_v59, %v7017_v58  ;;  %v5722_v58 = vor.u32 %v7693_v37, %v5721_v34  ;;  %v6731_v34 = vld [vmem:[#allocation6 + $0x8f0] sm:$0xf0]  ;;  %v8035_v37 = vld [vmem:[#allocation6 + $0xbc4] sm:$0xf] }
 0x221   : > { %3229 = vmatpush.bf16.msrb.mxu0 %v5622_v19  ;;  %3242 = vmatpush.bf16.msrb.mxu1 %v6006_v20  ;;  %v3023_v14 = vpop.f32.mrf.mxu0  ;;  %v3036_v15 = vpop.f32.mrf.mxu1  ;;  %v5769_v19 = vld [vmem:[#allocation6 + $0x140] sm:$0xf]  ;;  %v7705_v20 = vld [vmem:[#allocation6 + $0x16c] sm:$0xf0] }
 0x222   : > { %3255 = vmatpush.bf16.msrb.mxu2 %v6390_v24  ;;  %3268 = vmatpush.bf16.msrb.mxu3 %v6774_v26  ;;  %v3024_v21 = vadd.f32 %v3023_v14, %v917_v2  ;;  %v6153_v24 = vld [vmem:[#allocation6 + $0x440] sm:$0xf]  ;;  %v7801_v26 = vld [vmem:[#allocation6 + $0x46c] sm:$0xf0]  ;;  %v5770_v11 = vor.u32 %v7705_v20, %v5769_v19 }
 0x224   : > { %3230 = vmatmul.bf16.vlgmr.msrb.gmra.mxu0 %v8645_v44  ;;  %3243 = vmatmul.bf16.vlgmr.msrb.gmra.mxu1 %v8647_v45  ;;  %v3037_v38 = vadd.f32 %v3036_v15, %v3024_v21  ;;  %v6393_v21 = vld [vmem:[#allocation6 + $0x620] sm:$0xf] }
 0x225   : > { %3274 = vmatpush.bf16.msra.mxu0 %v5962_v27  ;;  %3287 = vmatpush.bf16.msra.mxu1 %v6346_v28  ;;  %v6537_v27 = vld [vmem:[#allocation6 + $0x740] sm:$0xf]  ;;  %v7897_v28 = vld [vmem:[#allocation6 + $0x76c] sm:$0xf0] }
 0x226   : > { %3300 = vmatpush.bf16.msra.mxu2 %v6730_v32  ;;  %3313 = vmatpush.bf16.msra.mxu3 %v7114_v33  ;;  %v2985_v32 = vadd.f32 %v8699_v12, %v2972_v16  ;;  %v6154_v33 = vor.u32 %v7801_v26, %v6153_v24  ;;  %v6538_v40 = vor.u32 %v7897_v28, %v6537_v27  ;;  %v7669_v16 = vld [vmem:[#allocation6 + $0x4c] sm:$0xf0]  ;;  %v7747_v27 = vld [vmem:[#allocation6 + $0x2c4] sm:$0xf]  ;;  %v5963_v28 = vld [vmem:[#allocation6 + $0x2f0] sm:$0xf0] }
 0x227   : > { %3256 = vmatmul.bf16.vlgmr.msrb.gmra.mxu2 %v8649_v46  ;;  %3269 = vmatmul.bf16.vlgmr.msrb.gmra.mxu3 %v8651_v47  ;;  %v7957_v26 = vld [vmem:[#allocation6 + $0x94c] sm:$0xf0] }
 0x228   : > { %v2998_v12 = vadd.f32 %v8701_v35, %v2985_v32  ;;  %v7969_v35 = vld [vmem:[#allocation6 + $0x9ac] sm:$0xf0]  ;;  %v7939_v32 = vld [vmem:[#allocation6 + $0x8c4] sm:$0xf] }
 0x229   : > { %3275 = vmatpush.bf16.msra.mxu0 %v5914_v43  ;;  %3288 = vmatpush.bf16.msra.mxu1 %v6298_v48  ;;  %v7789_v43 = vld [vmem:[#allocation6 + $0x40c] sm:$0xf0]  ;;  %v6489_v48 = vld [vmem:[#allocation6 + $0x6e0] sm:$0xf]  ;;  %v3025_v55 = vpop.f32.mrf.mxu0  ;;  %v3038_v56 = vpop.f32.mrf.mxu1 }
 0x22a   : > { %3301 = vmatpush.bf16.msra.mxu2 %v6682_v51  ;;  %3314 = vmatpush.bf16.msra.mxu3 %v7066_v52  ;;  %v3049_v49 = vpop.f32.mrf.mxu2  ;;  %v3062_v50 = vpop.f32.mrf.mxu3  ;;  %v7885_v51 = vld [vmem:[#allocation6 + $0x70c] sm:$0xf0]  ;;  %v6873_v52 = vld [vmem:[#allocation6 + $0x9e0] sm:$0xf]  ;;  %v6106_v59 = vor.u32 %v7789_v43, %v6105_v42  ;;  %v8715_v9 = vadd.f32 %v8703_v36, %v2998_v12  ;;  %v6826_v36 = vor.u32 %v7969_v35, %v6825_v8  ;;  %v7927_v12 = vld [vmem:[#allocation6 + $0x864] sm:$0xf] }
 0x22b   : > { %v3050_v54 = vadd.f32 %v3049_v49, %v3037_v38  ;;  %v6490_v2 = vor.u32 %v7885_v51, %v6489_v48  ;;  %v6874_v3 = vor.u32 %v7981_v53, %v6873_v52  ;;  %v7115_v38 = vld [vmem:[#allocation6 + $0xbf0] sm:$0xf0]  ;;  %v5966_v42 = vor.u32 %v7747_v27, %v5963_v28  ;;  %v7831_v52 = vld [vmem:[#allocation6 + $0x564] sm:$0xf] }
 0x22c   : > { %v6350_v43 = vor.u32 %v7843_v30, %v6347_v31  ;;  %v6734_v48 = vor.u32 %v7939_v32, %v6731_v34  ;;  %v7118_v49 = vor.u32 %v8035_v37, %v7115_v38  ;;  %v5915_v51 = vld [vmem:[#allocation6 + $0x290] sm:$0xf0]  ;;  %v8023_v55 = vld [vmem:[#allocation6 + $0xb64] sm:$0xf] }
 0x22d   : > { %3276 = vmatpush.bf16.msra.mxu0 %v5866_v62  ;;  %3289 = vmatpush.bf16.msra.mxu1 %v6250_v63  ;;  %v7681_v62 = vld [vmem:[#allocation6 + $0xac] sm:$0xf0]  ;;  %v3063_v63 = vadd.f32 %v3062_v50, %v3050_v54  ;;  %v7735_v50 = vld [vmem:[#allocation6 + $0x264] sm:$0xf]  ;;  %v6299_v53 = vld [vmem:[#allocation6 + $0x590] sm:$0xf0] }
 0x22e   : > { %3302 = vmatpush.bf16.msra.mxu2 %v6634_v5  ;;  %3315 = vmatpush.bf16.msra.mxu3 %v7018_v6  ;;  %v7777_v5 = vld [vmem:[#allocation6 + $0x3ac] sm:$0xf0]  ;;  %v6441_v6 = vld [vmem:[#allocation6 + $0x680] sm:$0xf]  ;;  %v5674_v14 = vor.u32 %v7681_v62, %v5673_v60  ;;  %v6683_v54 = vld [vmem:[#allocation6 + $0x890] sm:$0xf0] }
 0x22f   : > { %v3519_v10 = vrot.slane %v3063_v63, 4  ;;  %v8249_v13 = vpack.i.bf16 %v8686_v39, %v3063_v63  ;;  %v6058_v15 = vor.u32 %v7777_v5, %v6057_v4  ;;  %v6442_v20 = vor.u32 %v7873_v7, %v6441_v6  ;;  %v7067_v56 = vld [vmem:[#allocation6 + $0xb90] sm:$0xf0]  ;;  %v7723_v62 = vld [vmem:[#allocation6 + $0x204] sm:$0xf] }
 0x230   : > { %v6686_v60 = vor.u32 %v7927_v12, %v6683_v54  ;;  %v5867_v63 = vld [vmem:[#allocation6 + $0x230] sm:$0xf0]  ;;  %v7070_v4 = vor.u32 %v8023_v55, %v7067_v56  ;;  %v7915_v6 = vld [vmem:[#allocation6 + $0x804] sm:$0xf] }
 0x231   : > { %3277 = vmatpush.bf16.msra.mxu0 %v5818_v17  ;;  %3290 = vmatpush.bf16.msra.mxu1 %v6202_v18  ;;  %v6009_v17 = vld [vmem:[#allocation6 + $0x320] sm:$0xf]  ;;  %v7765_v18 = vld [vmem:[#allocation6 + $0x34c] sm:$0xf0]  ;;  %v8720_v19 = vsel %vm3507_vm8, %v3519_v10, %v8715_v9  ;;  %v6251_v5 = vld [vmem:[#allocation6 + $0x530] sm:$0xf0]  ;;  %v5870_v10 = vor.u32 %v7723_v62, %v5867_v63 }
 0x232   : > { %3303 = vmatpush.bf16.msra.mxu2 %v6586_v22  ;;  %3316 = vmatpush.bf16.msra.mxu3 %v6970_v23  ;;  %v7861_v22 = vld [vmem:[#allocation6 + $0x64c] sm:$0xf0]  ;;  %v6777_v23 = vld [vmem:[#allocation6 + $0x920] sm:$0xf]  ;;  %v3051_v39 = vpop.f32.mrf.mxu2  ;;  %v3064_v24 = vpop.f32.mrf.mxu3  ;;  %v6635_v7 = vld [vmem:[#allocation6 + $0x830] sm:$0xf0] }
 0x233   : > { %8250 = vrot.lane.b32.xlu2 %v8249_v13, %s8499_s24  ;;  %v8011_v8 = vld [vmem:[#allocation6 + $0xb04] sm:$0xf]  ;;  %v7019_v35 = vld [vmem:[#allocation6 + $0xb30] sm:$0xf0]  ;;  %v6638_v13 = vor.u32 %v7915_v6, %v6635_v7 }
 0x234   : > { %v7699_v27 = vld [vmem:[#allocation6 + $0x144] sm:$0xf]  ;;  %v5771_v28 = vld [vmem:[#allocation6 + $0x170] sm:$0xf0] }
 0x235   : > { %3278 = vmatpush.bf16.msra.mxu0 %v5770_v11  ;;  %3291 = vmatpush.bf16.msra.mxu1 %v6154_v33  ;;  %v5626_v11 = vor.u32 %v7669_v16, %v5625_v61  ;;  %v6010_v33 = vor.u32 %v7765_v18, %v6009_v17  ;;  %v7711_v61 = vld [vmem:[#allocation6 + $0x1a4] sm:$0xf]  ;;  %v7022_v16 = vor.u32 %v8011_v8, %v7019_v35  ;;  %v6203_v17 = vld [vmem:[#allocation6 + $0x4d0] sm:$0xf0] }
 0x236   : > { %3304 = vmatpush.bf16.msra.mxu2 %v6538_v40  ;;  %3317 = vmatpush.bf16.msra.mxu3 %v6922_v41  ;;  %v6394_v40 = vor.u32 %v7861_v22, %v6393_v21  ;;  %v6778_v41 = vor.u32 %v7957_v26, %v6777_v23  ;;  %v7903_v18 = vld [vmem:[#allocation6 + $0x7a4] sm:$0xf]  ;;  %v6971_v23 = vld [vmem:[#allocation6 + $0xad0] sm:$0xf0] }
 0x237   : > { %v7999_v22 = vld [vmem:[#allocation6 + $0xaa4] sm:$0xf]  ;;  %v6539_v34 = vld [vmem:[#allocation6 + $0x770] sm:$0xf0] }
 0x238   : > { %v7795_v30 = vld [vmem:[#allocation6 + $0x444] sm:$0xf]  ;;  %v6974_v32 = vor.u32 %v7999_v22, %v6971_v23  ;;  %v6923_v38 = vld [vmem:[#allocation6 + $0xa70] sm:$0xf0] }
 0x239   : > { %3279 = vmatpush.bf16.msra.mxu0 %v5722_v58  ;;  %3292 = vmatpush.bf16.msra.mxu1 %v6106_v59  ;;  %v5918_v58 = vor.u32 %v7735_v50, %v5915_v51  ;;  %v6302_v59 = vor.u32 %v7831_v52, %v6299_v53  ;;  %v7987_v37 = vld [vmem:[#allocation6 + $0xa44] sm:$0xf]  ;;  %v6107_v53 = vld [vmem:[#allocation6 + $0x410] sm:$0xf0] }
 0x23a   : > { %3305 = vmatpush.bf16.msra.mxu2 %v6490_v2  ;;  %3318 = vmatpush.bf16.msra.mxu3 %v6874_v3  ;;  %v7819_v2 = vld [vmem:[#allocation6 + $0x504] sm:$0xf]  ;;  %v8254_v3 = vpack.i.bf16 %v8683_v25, %v8715_v9  ;;  %v918_v25 = vperm.slane %v8676_v29, 4  ;;  %v6926_v50 = vor.u32 %v7987_v37, %v6923_v38  ;;  %v6491_v54 = vld [vmem:[#allocation6 + $0x710] sm:$0xf0] }
 0x23b   : > { %v6254_v9 = vor.u32 %v7819_v2, %v6251_v5  ;;  %v7879_v12 = vld [vmem:[#allocation6 + $0x6e4] sm:$0xf]  ;;  %v5675_v5 = vld [vmem:[#allocation6 + $0xb0] sm:$0xf0]  ;;  %v8042_v37 = vld [vmem:[#allocation6 + $0xbf4] sm:$0xf0] }
 0x23c   : > { %8255 = vrot.lane.b32.xlu2 %v8254_v3, %s8499_s24  ;;  %v6494_v3 = vor.u32 %v7879_v12, %v6491_v54  ;;  %v7771_v6 = vld [vmem:[#allocation6 + $0x384] sm:$0xf]  ;;  %v6059_v8 = vld [vmem:[#allocation6 + $0x3b0] sm:$0xf0]  ;;  %v7073_v12 = vld [vmem:[#allocation6 + $0xb68] sm:$0xf] }
 0x23d   : > { %3280 = vmatpush.bf16.msra.mxu0 %v5674_v14  ;;  %3293 = vmatpush.bf16.msra.mxu1 %v6058_v15  ;;  %v5819_v14 = vld [vmem:[#allocation6 + $0x1d0] sm:$0xf0]  ;;  %v7807_v15 = vld [vmem:[#allocation6 + $0x4a4] sm:$0xf]  ;;  %v8030_v54 = vld [vmem:[#allocation6 + $0xb94] sm:$0xf0] }
 0x23e   : > { %3306 = vmatpush.bf16.msra.mxu2 %v6442_v20  ;;  %3319 = vmatpush.bf16.msra.mxu3 %v6826_v36  ;;  %v6587_v20 = vld [vmem:[#allocation6 + $0x7d0] sm:$0xf0]  ;;  %v5822_v24 = vor.u32 %v7711_v61, %v5819_v14  ;;  %v6206_v29 = vor.u32 %v7807_v15, %v6203_v17  ;;  %v7867_v35 = vld [vmem:[#allocation6 + $0x684] sm:$0xf]  ;;  %v6062_v15 = vor.u32 %v7771_v6, %v6059_v8  ;;  %v7025_v6 = vld [vmem:[#allocation6 + $0xb08] sm:$0xf] }
 0x23f   : > { %v6590_v26 = vor.u32 %v7903_v18, %v6587_v20  ;;  %v7663_v61 = vld [vmem:[#allocation6 + $0x24] sm:$0xf]  ;;  %v5627_v14 = vld [vmem:[#allocation6 + $0x50] sm:$0xf0] }
 0x240   : > { %v7759_v17 = vld [vmem:[#allocation6 + $0x324] sm:$0xf]  ;;  %v6011_v18 = vld [vmem:[#allocation6 + $0x350] sm:$0xf0] }
 0x241   : > { %3281 = vmatpush.bf16.msra.mxu0 %v5626_v11  ;;  %3294 = vmatpush.bf16.msra.mxu1 %v6010_v33  ;;  %v3075_v36 = vpop.f32.mrf.mxu0  ;;  %v3088_v21 = vpop.f32.mrf.mxu1  ;;  %v6155_v11 = vld [vmem:[#allocation6 + $0x470] sm:$0xf0]  ;;  %v7891_v33 = vld [vmem:[#allocation6 + $0x744] sm:$0xf] }
 0x242   : > { %3307 = vmatpush.bf16.msra.mxu2 %v6394_v40  ;;  %3320 = vmatpush.bf16.msra.mxu3 %v6778_v41  ;;  %v3076_v39 = vadd.f32 %v3075_v36, %v918_v25  ;;  %v5774_v40 = vor.u32 %v7699_v27, %v5771_v28  ;;  %v6158_v41 = vor.u32 %v7795_v30, %v6155_v11  ;;  %v7963_v25 = vld [vmem:[#allocation6 + $0x984] sm:$0xf]  ;;  %v6395_v23 = vld [vmem:[#allocation6 + $0x650] sm:$0xf0]  ;;  %v6353_v27 = vld [vmem:[#allocation6 + $0x5c8] sm:$0xf] }
 0x243   : > { %v7855_v20 = vld [vmem:[#allocation6 + $0x624] sm:$0xf]  ;;  %v5630_v28 = vor.u32 %v7663_v61, %v5627_v14  ;;  %v7850_v30 = vld [vmem:[#allocation6 + $0x5f4] sm:$0xf0]  ;;  %v6014_v11 = vor.u32 %v7759_v17, %v6011_v18  ;;  %v6209_v14 = vld [vmem:[#allocation6 + $0x4a8] sm:$0xf] }
 0x244   : > { %3282 = vmatmul.bf16.vlgmr.msra.gmra.mxu0 %v8645_v44  ;;  %3295 = vmatmul.bf16.vlgmr.msra.gmra.mxu1 %v8647_v45  ;;  %v3089_v31 = vadd.f32 %v3088_v21, %v3076_v39  ;;  %v7951_v39 = vld [vmem:[#allocation6 + $0x924] sm:$0xf]  ;;  %v7718_v61 = vld [vmem:[#allocation6 + $0x1d4] sm:$0xf0]  ;;  %v6593_v17 = vld [vmem:[#allocation6 + $0x7a8] sm:$0xf] }
 0x245   : > { %3326 = vmatpush.bf16.msrb.mxu0 %v5966_v42  ;;  %3339 = vmatpush.bf16.msrb.mxu1 %v6350_v43  ;;  %v6542_v42 = vor.u32 %v7891_v33, %v6539_v34  ;;  %v7687_v43 = vld [vmem:[#allocation6 + $0xe4] sm:$0xf]  ;;  %v6398_v33 = vor.u32 %v7855_v20, %v6395_v23  ;;  %v7121_v34 = vld [vmem:[#allocation6 + $0xbc8] sm:$0xf]  ;;  %v7910_v18 = vld [vmem:[#allocation6 + $0x7d4] sm:$0xf0] }
 0x246   : > { %3352 = vmatpush.bf16.msrb.mxu2 %v6734_v48  ;;  %3365 = vmatpush.bf16.msrb.mxu3 %v7118_v49  ;;  %v5723_v48 = vld [vmem:[#allocation6 + $0x110] sm:$0xf0]  ;;  %v7783_v49 = vld [vmem:[#allocation6 + $0x3e4] sm:$0xf] }
 0x247   : > { %3308 = vmatmul.bf16.vlgmr.msra.gmra.mxu2 %v8649_v46  ;;  %3321 = vmatmul.bf16.vlgmr.msra.gmra.mxu3 %v8651_v47  ;;  %v5726_v62 = vor.u32 %v7687_v43, %v5723_v48  ;;  %v6110_v2 = vor.u32 %v7783_v49, %v6107_v53  ;;  %v5921_v43 = vld [vmem:[#allocation6 + $0x268] sm:$0xf]  ;;  %v7742_v48 = vld [vmem:[#allocation6 + $0x294] sm:$0xf0] }
 0x248   : > { %v6305_v49 = vld [vmem:[#allocation6 + $0x568] sm:$0xf]  ;;  %v7934_v53 = vld [vmem:[#allocation6 + $0x894] sm:$0xf0] }
 0x249   : > { %3327 = vmatpush.bf16.msrb.mxu0 %v5918_v58  ;;  %3340 = vmatpush.bf16.msrb.mxu1 %v6302_v59  ;;  %v3077_v56 = vpop.f32.mrf.mxu0  ;;  %v3090_v58 = vpop.f32.mrf.mxu1  ;;  %v7975_v59 = vld [vmem:[#allocation6 + $0x9e4] sm:$0xf] }
 0x24a   : > { %3353 = vmatpush.bf16.msrb.mxu2 %v6686_v60  ;;  %3366 = vmatpush.bf16.msrb.mxu3 %v7070_v4  ;;  %v3101_v51 = vpop.f32.mrf.mxu2  ;;  %v3114_v52 = vpop.f32.mrf.mxu3  ;;  %v6875_v60 = vld [vmem:[#allocation6 + $0xa10] sm:$0xf0]  ;;  %v7675_v4 = vld [vmem:[#allocation6 + $0x84] sm:$0xf] }
 0x24b   : > { %v3102_v55 = vadd.f32 %v3101_v51, %v3089_v31  ;;  %v6878_v7 = vor.u32 %v7975_v59, %v6875_v60  ;;  %v6737_v31 = vld [vmem:[#allocation6 + $0x8c8] sm:$0xf]  ;;  %v7838_v51 = vld [vmem:[#allocation6 + $0x594] sm:$0xf0] }
 0x24c   : > { %v6306_v56 = vor.u32 %v7838_v51, %v6305_v49  ;;  %v5873_v59 = vld [vmem:[#allocation6 + $0x208] sm:$0xf]  ;;  %v7730_v60 = vld [vmem:[#allocation6 + $0x234] sm:$0xf0] }
 0x24d   : > { %3328 = vmatpush.bf16.msrb.mxu0 %v5870_v10  ;;  %3341 = vmatpush.bf16.msrb.mxu1 %v6254_v9  ;;  %v8731_v63 = vadd.f32 %v3114_v52, %v3102_v55  ;;  %v6443_v10 = vld [vmem:[#allocation6 + $0x6b0] sm:$0xf0]  ;;  %v6689_v52 = vld [vmem:[#allocation6 + $0x868] sm:$0xf]  ;;  %v5922_v55 = vor.u32 %v7742_v48, %v5921_v43  ;;  %v5874_v8 = vor.u32 %v7730_v60, %v5873_v59  ;;  %v7694_v43 = vld [vmem:[#allocation6 + $0x114] sm:$0xf0] }
 0x24e   : > { %3354 = vmatpush.bf16.msrb.mxu2 %v6638_v13  ;;  %3367 = vmatpush.bf16.msrb.mxu3 %v7022_v16  ;;  %v6827_v9 = vld [vmem:[#allocation6 + $0x9b0] sm:$0xf0]  ;;  %v5678_v13 = vor.u32 %v7675_v4, %v5675_v5  ;;  %v6446_v16 = vor.u32 %v7867_v35, %v6443_v10  ;;  %v6690_v58 = vor.u32 %v7934_v53, %v6689_v52  ;;  %v6641_v4 = vld [vmem:[#allocation6 + $0x808] sm:$0xf]  ;;  %v7922_v5 = vld [vmem:[#allocation6 + $0x834] sm:$0xf0] }
 0x24f   : > { %v6830_v36 = vor.u32 %v7963_v25, %v6827_v9  ;;  %v8740_v35 = vld [vmem:[%s9177_s5] sm:$0xff]  ;;  %v6642_v9 = vor.u32 %v7922_v5, %v6641_v4  ;;  %v6113_v48 = vld [vmem:[#allocation6 + $0x3e8] sm:$0xf]  ;;  %v7790_v52 = vld [vmem:[#allocation6 + $0x414] sm:$0xf0] }
 0x250   : > { %v919_v10 = vperm.slane %v8740_v35, 5  ;;  %v6497_v53 = vld [vmem:[#allocation6 + $0x6e8] sm:$0xf]  ;;  %v7982_v59 = vld [vmem:[#allocation6 + $0xa14] sm:$0xf0] }
 0x251   : > { %3329 = vmatpush.bf16.msrb.mxu0 %v5822_v24  ;;  %3342 = vmatpush.bf16.msrb.mxu1 %v6206_v29  ;;  %v6779_v24 = vld [vmem:[#allocation6 + $0x950] sm:$0xf0]  ;;  %v5969_v29 = vld [vmem:[#allocation6 + $0x2c8] sm:$0xf]  ;;  %v7682_v5 = vld [vmem:[#allocation6 + $0xb4] sm:$0xf0] }
 0x252   : > { %3355 = vmatpush.bf16.msrb.mxu2 %v6590_v26  ;;  %3368 = vmatpush.bf16.msrb.mxu3 %v6974_v32  ;;  %v3103_v21 = vpop.f32.mrf.mxu2  ;;  %v3116_v22 = vpop.f32.mrf.mxu3  ;;  %v7754_v26 = vld [vmem:[#allocation6 + $0x2f4] sm:$0xf0]  ;;  %v6782_v38 = vor.u32 %v7951_v39, %v6779_v24  ;;  %v5681_v4 = vld [vmem:[#allocation6 + $0x88] sm:$0xf] }
 0x253   : > { %v7946_v32 = vld [vmem:[#allocation6 + $0x8f4] sm:$0xf0]  ;;  %v6977_v21 = vld [vmem:[#allocation6 + $0xaa8] sm:$0xf] }
 0x254   : > { %v8006_v22 = vld [vmem:[#allocation6 + $0xad4] sm:$0xf0] }
 0x255   : > { %3330 = vmatpush.bf16.msrb.mxu0 %v5774_v40  ;;  %3343 = vmatpush.bf16.msrb.mxu1 %v6158_v41  ;;  %v5970_v40 = vor.u32 %v7754_v26, %v5969_v29  ;;  %v6354_v41 = vor.u32 %v7850_v30, %v6353_v27  ;;  %v6594_v29 = vor.u32 %v7910_v18, %v6593_v17  ;;  %v5777_v26 = vld [vmem:[#allocation6 + $0x148] sm:$0xf]  ;;  %v7706_v27 = vld [vmem:[#allocation6 + $0x174] sm:$0xf0] }
 0x256   : > { %3356 = vmatpush.bf16.msrb.mxu2 %v6542_v42  ;;  %3369 = vmatpush.bf16.msrb.mxu3 %v6926_v50  ;;  %v6738_v42 = vor.u32 %v7946_v32, %v6737_v31  ;;  %v7122_v50 = vor.u32 %v8042_v37, %v7121_v34  ;;  %v6978_v31 = vor.u32 %v8006_v22, %v6977_v21  ;;  %v7802_v32 = vld [vmem:[#allocation6 + $0x474] sm:$0xf0]  ;;  %v6929_v34 = vld [vmem:[#allocation6 + $0xa48] sm:$0xf] }
 0x257   : > { %v7994_v37 = vld [vmem:[#allocation6 + $0xa74] sm:$0xf0]  ;;  %v6401_v22 = vld [vmem:[#allocation6 + $0x628] sm:$0xf] }
 0x258   : > { %v6930_v49 = vor.u32 %v7994_v37, %v6929_v34  ;;  %v7766_v21 = vld [vmem:[#allocation6 + $0x354] sm:$0xf0]  ;;  %v6739_v34 = vld [vmem:[#allocation6 + $0x8f8] sm:$0xf0] }
 0x259   : > { %3331 = vmatpush.bf16.msrb.mxu0 %v5726_v62  ;;  %3344 = vmatpush.bf16.msrb.mxu1 %v6110_v2  ;;  %v6257_v62 = vld [vmem:[#allocation6 + $0x508] sm:$0xf]  ;;  %v7074_v2 = vor.u32 %v8030_v54, %v7073_v12  ;;  %v7886_v12 = vld [vmem:[#allocation6 + $0x714] sm:$0xf0] }
 0x25a   : > { %3357 = vmatpush.bf16.msrb.mxu2 %v6494_v3  ;;  %3370 = vmatpush.bf16.msrb.mxu3 %v6878_v7  ;;  %v7826_v3 = vld [vmem:[#allocation6 + $0x534] sm:$0xf0] }
 0x25b   : > { %v8018_v7 = vld [vmem:[#allocation6 + $0xb34] sm:$0xf0]  ;;  %v6258_v25 = vor.u32 %v7826_v3, %v6257_v62  ;;  %v6498_v3 = vor.u32 %v7886_v12, %v6497_v53  ;;  %v6307_v12 = vld [vmem:[#allocation6 + $0x598] sm:$0xf0] }
 0x25d   : > { %3332 = vmatpush.bf16.msrb.mxu0 %v5678_v13  ;;  %3345 = vmatpush.bf16.msrb.mxu1 %v6062_v15  ;;  %v5825_v13 = vld [vmem:[#allocation6 + $0x1a8] sm:$0xf]  ;;  %v7026_v15 = vor.u32 %v8018_v7, %v7025_v6 }
 0x25e   : > { %3358 = vmatpush.bf16.msrb.mxu2 %v6446_v16  ;;  %3371 = vmatpush.bf16.msrb.mxu3 %v6830_v36  ;;  %v7814_v16 = vld [vmem:[#allocation6 + $0x4d4] sm:$0xf0]  ;;  %v5826_v39 = vor.u32 %v7718_v61, %v5825_v13  ;;  %v6065_v6 = vld [vmem:[#allocation6 + $0x388] sm:$0xf] }
 0x25f   : > { %v6210_v24 = vor.u32 %v7814_v16, %v6209_v14  ;;  %v6833_v13 = vld [vmem:[#allocation6 + $0x988] sm:$0xf]  ;;  %v7970_v61 = vld [vmem:[#allocation6 + $0x9b4] sm:$0xf0]  ;;  %v5682_v14 = vor.u32 %v7682_v5, %v5681_v4  ;;  %v5875_v4 = vld [vmem:[#allocation6 + $0x238] sm:$0xf0] }
 0x260   : > { %v7670_v16 = vld [vmem:[#allocation6 + $0x54] sm:$0xf0]  ;;  %v7820_v5 = vld [vmem:[#allocation6 + $0x50c] sm:$0xf] }
 0x261   : > { %3333 = vmatpush.bf16.msrb.mxu0 %v5630_v28  ;;  %3346 = vmatpush.bf16.msrb.mxu1 %v6014_v11  ;;  %v3127_v20 = vpop.f32.mrf.mxu0  ;;  %v3140_v36 = vpop.f32.mrf.mxu1  ;;  %v6161_v28 = vld [vmem:[#allocation6 + $0x448] sm:$0xf] }
 0x262   : > { %3359 = vmatpush.bf16.msrb.mxu2 %v6398_v33  ;;  %3372 = vmatpush.bf16.msrb.mxu3 %v6782_v38  ;;  %v3128_v23 = vadd.f32 %v3127_v20, %v919_v10  ;;  %v6545_v11 = vld [vmem:[#allocation6 + $0x748] sm:$0xf]  ;;  %v7898_v33 = vld [vmem:[#allocation6 + $0x774] sm:$0xf0]  ;;  %v5778_v38 = vor.u32 %v7706_v27, %v5777_v26 }
 0x263   : > { %v6449_v10 = vld [vmem:[#allocation6 + $0x688] sm:$0xf]  ;;  %v7958_v27 = vld [vmem:[#allocation6 + $0x954] sm:$0xf0] }
 0x264   : > { %3334 = vmatmul.bf16.vlgmr.msrb.gmra.mxu0 %v8645_v44  ;;  %3347 = vmatmul.bf16.vlgmr.msrb.gmra.mxu1 %v8647_v45  ;;  %v3141_v30 = vadd.f32 %v3140_v36, %v3128_v23  ;;  %v6017_v36 = vld [vmem:[#allocation6 + $0x328] sm:$0xf]  ;;  %v6834_v23 = vor.u32 %v7970_v61, %v6833_v13 }
 0x265   : > { %3378 = vmatpush.bf16.msra.mxu0 %v5970_v40  ;;  %3391 = vmatpush.bf16.msra.mxu1 %v6354_v41  ;;  %v6162_v40 = vor.u32 %v7802_v32, %v6161_v28  ;;  %v6546_v41 = vor.u32 %v7898_v33, %v6545_v11  ;;  %v6785_v26 = vld [vmem:[#allocation6 + $0x928] sm:$0xf]  ;;  %v7748_v28 = vld [vmem:[#allocation6 + $0x2cc] sm:$0xf]  ;;  %v6355_v11 = vld [vmem:[#allocation6 + $0x5f8] sm:$0xf0]  ;;  %v6018_v37 = vor.u32 %v7766_v21, %v6017_v36 }
 0x266   : > { %3404 = vmatpush.bf16.msra.mxu2 %v6738_v42  ;;  %3417 = vmatpush.bf16.msra.mxu3 %v7122_v50  ;;  %v5729_v42 = vld [vmem:[#allocation6 + $0xe8] sm:$0xf]  ;;  %v7940_v33 = vld [vmem:[#allocation6 + $0x8cc] sm:$0xf]  ;;  %v6211_v36 = vld [vmem:[#allocation6 + $0x4d8] sm:$0xf0] }
 0x267   : > { %3360 = vmatmul.bf16.vlgmr.msrb.gmra.mxu2 %v8649_v46  ;;  %3373 = vmatmul.bf16.vlgmr.msrb.gmra.mxu3 %v8651_v47  ;;  %v5730_v60 = vor.u32 %v7694_v43, %v5729_v42  ;;  %v6786_v42 = vor.u32 %v7958_v27, %v6785_v26  ;;  %v7904_v21 = vld [vmem:[#allocation6 + $0x7ac] sm:$0xf] }
 0x269   : > { %3379 = vmatpush.bf16.msra.mxu0 %v5922_v55  ;;  %3392 = vmatpush.bf16.msra.mxu1 %v6306_v56  ;;  %v3129_v55 = vpop.f32.mrf.mxu0  ;;  %v3142_v56 = vpop.f32.mrf.mxu1 }
 0x26a   : > { %3405 = vmatpush.bf16.msra.mxu2 %v6690_v58  ;;  %3418 = vmatpush.bf16.msra.mxu3 %v7074_v2  ;;  %v3153_v50 = vpop.f32.mrf.mxu2  ;;  %v3166_v51 = vpop.f32.mrf.mxu3  ;;  %v6881_v58 = vld [vmem:[#allocation6 + $0x9e8] sm:$0xf]  ;;  %v6114_v2 = vor.u32 %v7790_v52, %v6113_v48  ;;  %v7832_v52 = vld [vmem:[#allocation6 + $0x56c] sm:$0xf]  ;;  %v6691_v55 = vld [vmem:[#allocation6 + $0x898] sm:$0xf0] }
 0x26b   : > { %v3154_v54 = vadd.f32 %v3153_v50, %v3141_v30  ;;  %v6882_v7 = vor.u32 %v7982_v59, %v6881_v58  ;;  %v5971_v30 = vld [vmem:[#allocation6 + $0x2f8] sm:$0xf0]  ;;  %v7736_v50 = vld [vmem:[#allocation6 + $0x26c] sm:$0xf] }
 0x26c   : > { %v5974_v43 = vor.u32 %v7748_v28, %v5971_v30  ;;  %v8024_v56 = vld [vmem:[#allocation6 + $0xb6c] sm:$0xf]  ;;  %v7075_v58 = vld [vmem:[#allocation6 + $0xb98] sm:$0xf0] }
 0x26d   : > { %3380 = vmatpush.bf16.msra.mxu0 %v5874_v8  ;;  %3393 = vmatpush.bf16.msra.mxu1 %v6258_v25  ;;  %v8743_v62 = vadd.f32 %v3166_v51, %v3154_v54  ;;  %v7778_v8 = vld [vmem:[#allocation6 + $0x3b4] sm:$0xf0]  ;;  %v5923_v51 = vld [vmem:[#allocation6 + $0x298] sm:$0xf0]  ;;  %v7928_v54 = vld [vmem:[#allocation6 + $0x86c] sm:$0xf] }
 0x26e   : > { %3406 = vmatpush.bf16.msra.mxu2 %v6642_v9  ;;  %3419 = vmatpush.bf16.msra.mxu3 %v7026_v15  ;;  %v7874_v25 = vld [vmem:[#allocation6 + $0x6b4] sm:$0xf0]  ;;  %v5633_v15 = vld [vmem:[#allocation6 + $0x28] sm:$0xf]  ;;  %v6066_v18 = vor.u32 %v7778_v8, %v6065_v6  ;;  %v5926_v59 = vor.u32 %v7736_v50, %v5923_v51  ;;  %v7078_v6 = vor.u32 %v8024_v56, %v7075_v58  ;;  %v7916_v8 = vld [vmem:[#allocation6 + $0x80c] sm:$0xf] }
 0x26f   : > { %v3643_v9 = vrot.slane %v8743_v62, 4  ;;  %v6450_v20 = vor.u32 %v7874_v25, %v6449_v10  ;;  %v5634_v32 = vor.u32 %v7670_v16, %v5633_v15  ;;  %v6643_v10 = vld [vmem:[#allocation6 + $0x838] sm:$0xf0]  ;;  %v8012_v25 = vld [vmem:[#allocation6 + $0xb0c] sm:$0xf] }
 0x270   : > { %v7712_v15 = vld [vmem:[#allocation6 + $0x1ac] sm:$0xf]  ;;  %v5827_v16 = vld [vmem:[#allocation6 + $0x1d8] sm:$0xf0] }
 0x271   : > { %3381 = vmatpush.bf16.msra.mxu0 %v5826_v39  ;;  %3394 = vmatpush.bf16.msra.mxu1 %v6210_v24  ;;  %v8748_v17 = vsel %vm3507_vm8, %v3643_v9, %v8731_v63  ;;  %v7027_v9 = vld [vmem:[#allocation6 + $0xb38] sm:$0xf0]  ;;  %v5830_v26 = vor.u32 %v7712_v15, %v5827_v16  ;;  %v7700_v30 = vld [vmem:[#allocation6 + $0x14c] sm:$0xf] }
 0x272   : > { %3407 = vmatpush.bf16.msra.mxu2 %v6594_v29  ;;  %3420 = vmatpush.bf16.msra.mxu3 %v6978_v31  ;;  %v3155_v39 = vpop.f32.mrf.mxu2  ;;  %v3168_v24 = vpop.f32.mrf.mxu3  ;;  %v7862_v29 = vld [vmem:[#allocation6 + $0x654] sm:$0xf0]  ;;  %v7844_v31 = vld [vmem:[#allocation6 + $0x5cc] sm:$0xf] }
 0x273   : > { %v6358_v48 = vor.u32 %v7844_v31, %v6355_v11  ;;  %v8000_v24 = vld [vmem:[#allocation6 + $0xaac] sm:$0xf]  ;;  %v5779_v31 = vld [vmem:[#allocation6 + $0x178] sm:$0xf0] }
 0x274   : > { %v7784_v50 = vld [vmem:[#allocation6 + $0x3ec] sm:$0xf] }
 0x275   : > { %3382 = vmatpush.bf16.msra.mxu0 %v5778_v38  ;;  %3395 = vmatpush.bf16.msra.mxu1 %v6162_v40  ;;  %v6402_v38 = vor.u32 %v7862_v29, %v6401_v22  ;;  %v8036_v40 = vld [vmem:[#allocation6 + $0xbcc] sm:$0xf]  ;;  %v6595_v22 = vld [vmem:[#allocation6 + $0x7d8] sm:$0xf0] }
 0x276   : > { %3408 = vmatpush.bf16.msra.mxu2 %v6546_v41  ;;  %3421 = vmatpush.bf16.msra.mxu3 %v6930_v49  ;;  %v7123_v41 = vld [vmem:[#allocation6 + $0xbf8] sm:$0xf0]  ;;  %v6742_v49 = vor.u32 %v7940_v33, %v6739_v34  ;;  %v6598_v28 = vor.u32 %v7904_v21, %v6595_v22  ;;  %v7892_v34 = vld [vmem:[#allocation6 + $0x74c] sm:$0xf] }
 0x277   : > { %v7126_v53 = vor.u32 %v8036_v40, %v7123_v41  ;;  %v6979_v29 = vld [vmem:[#allocation6 + $0xad8] sm:$0xf0]  ;;  %v5782_v41 = vor.u32 %v7700_v30, %v5779_v31 }
 0x278   : > { %v6982_v11 = vor.u32 %v8000_v24, %v6979_v29  ;;  %v6163_v33 = vld [vmem:[#allocation6 + $0x478] sm:$0xf0] }
 0x279   : > { %3383 = vmatpush.bf16.msra.mxu0 %v5730_v60  ;;  %3396 = vmatpush.bf16.msra.mxu1 %v6114_v2  ;;  %v6310_v60 = vor.u32 %v7832_v52, %v6307_v12  ;;  %v6694_v2 = vor.u32 %v7928_v54, %v6691_v55  ;;  %v6931_v40 = vld [vmem:[#allocation6 + $0xa78] sm:$0xf0]  ;;  %v7880_v54 = vld [vmem:[#allocation6 + $0x6ec] sm:$0xf] }
 0x27a   : > { %3409 = vmatpush.bf16.msra.mxu2 %v6498_v3  ;;  %3422 = vmatpush.bf16.msra.mxu3 %v6882_v7  ;;  %v7724_v3 = vld [vmem:[#allocation6 + $0x20c] sm:$0xf]  ;;  %v6259_v7 = vld [vmem:[#allocation6 + $0x538] sm:$0xf0] }
 0x27b   : > { %v5878_v13 = vor.u32 %v7724_v3, %v5875_v4  ;;  %v6262_v61 = vor.u32 %v7820_v5, %v6259_v7  ;;  %v6115_v12 = vld [vmem:[#allocation6 + $0x418] sm:$0xf0]  ;;  %v7676_v5 = vld [vmem:[#allocation6 + $0x8c] sm:$0xf] }
 0x27c   : > { %v6499_v55 = vld [vmem:[#allocation6 + $0x718] sm:$0xf0]  ;;  %v6118_v3 = vor.u32 %v7784_v50, %v6115_v12  ;;  %v7772_v7 = vld [vmem:[#allocation6 + $0x38c] sm:$0xf] }
 0x27d   : > { %3384 = vmatpush.bf16.msra.mxu0 %v5682_v14  ;;  %3397 = vmatpush.bf16.msra.mxu1 %v6066_v18  ;;  %v6646_v14 = vor.u32 %v7916_v8, %v6643_v10  ;;  %v7808_v18 = vld [vmem:[#allocation6 + $0x4ac] sm:$0xf]  ;;  %v6502_v4 = vor.u32 %v7880_v54, %v6499_v55  ;;  %v6067_v10 = vld [vmem:[#allocation6 + $0x3b8] sm:$0xf0]  ;;  %v921_v54 = vperm.slane %v8740_v35, 7 }
 0x27e   : > { %3410 = vmatpush.bf16.msra.mxu2 %v6450_v20  ;;  %3423 = vmatpush.bf16.msra.mxu3 %v6834_v23  ;;  %v7030_v20 = vor.u32 %v8012_v25, %v7027_v9  ;;  %v6214_v27 = vor.u32 %v7808_v18, %v6211_v36  ;;  %v7868_v25 = vld [vmem:[#allocation6 + $0x68c] sm:$0xf]  ;;  %v6451_v9 = vld [vmem:[#allocation6 + $0x6b8] sm:$0xf0]  ;;  %v6070_v15 = vor.u32 %v7772_v7, %v6067_v10 }
 0x27f   : > { %v6454_v16 = vor.u32 %v7868_v25, %v6451_v9  ;;  %v7664_v18 = vld [vmem:[#allocation6 + $0x2c] sm:$0xf]  ;;  %v6019_v29 = vld [vmem:[#allocation6 + $0x358] sm:$0xf0] }
 0x280   : > { %v7760_v36 = vld [vmem:[#allocation6 + $0x32c] sm:$0xf]  ;;  %v6787_v30 = vld [vmem:[#allocation6 + $0x958] sm:$0xf0] }
 0x281   : > { %3385 = vmatpush.bf16.msra.mxu0 %v5634_v32  ;;  %3398 = vmatpush.bf16.msra.mxu1 %v6018_v37  ;;  %v8754_v23 = vpop.f32.mrf.mxu0  ;;  %v8756_v39 = vpop.f32.mrf.mxu1  ;;  %v7796_v32 = vld [vmem:[#allocation6 + $0x44c] sm:$0xf]  ;;  %v6547_v37 = vld [vmem:[#allocation6 + $0x778] sm:$0xf0] }
 0x282   : > { %3411 = vmatpush.bf16.msra.mxu2 %v6402_v38  ;;  %3424 = vmatpush.bf16.msra.mxu3 %v6786_v42  ;;  %v7988_v38 = vld [vmem:[#allocation6 + $0xa4c] sm:$0xf]  ;;  %v6166_v42 = vor.u32 %v7796_v32, %v6163_v33 }
 0x283   : > { %v6934_v51 = vor.u32 %v7988_v38, %v6931_v40 }
 0x284   : > { %3386 = vmatmul.bf16.vlgmr.msra.gmra.mxu0 %v8645_v44  ;;  %3399 = vmatmul.bf16.vlgmr.msra.gmra.mxu1 %v8647_v45 }
 0x285   : > { %3430 = vmatpush.bf16.msrb.mxu0 %v5974_v43  ;;  %3443 = vmatpush.bf16.msrb.mxu1 %v6358_v48  ;;  %v6550_v43 = vor.u32 %v7892_v34, %v6547_v37  ;;  %v7688_v48 = vld [vmem:[#allocation6 + $0xec] sm:$0xf]  ;;  %v8500_v34 = vmov 1983009808  }
 0x286   : > { %3456 = vmatpush.bf16.msrb.mxu2 %v6742_v49  ;;  %3469 = vmatpush.bf16.msrb.mxu3 %v7126_v53  ;;  %v5731_v49 = vld [vmem:[#allocation6 + $0x118] sm:$0xf0]  ;;  %v3510_v37 = vunpack.c.l.s4 %v8500_v34 }
 0x287   : > { %3412 = vmatmul.bf16.vlgmr.msra.gmra.mxu2 %v8649_v46  ;;  %3425 = vmatmul.bf16.vlgmr.msra.gmra.mxu3 %v8651_v47 }
 0x288   : > { %v8762_v40 = vunpack.c.0.s8 %v3510_v37 }
 0x289   : > { %3431 = vmatpush.bf16.msrb.mxu0 %v5926_v59  ;;  %3444 = vmatpush.bf16.msrb.mxu1 %v6310_v60  ;;  %v3181_v56 = vpop.f32.mrf.mxu0  ;;  %v3194_v58 = vpop.f32.mrf.mxu1  ;;  %v7976_v59 = vld [vmem:[#allocation6 + $0x9ec] sm:$0xf]  ;;  %v6883_v60 = vld [vmem:[#allocation6 + $0xa18] sm:$0xf0] }
 0x28a   : > { %3457 = vmatpush.bf16.msrb.mxu2 %v6694_v2  ;;  %3470 = vmatpush.bf16.msrb.mxu3 %v7078_v6  ;;  %v8758_v52 = vpop.f32.mrf.mxu2  ;;  %v8760_v53 = vpop.f32.mrf.mxu3  ;;  %v5734_v2 = vor.u32 %v7688_v48, %v5731_v49  ;;  %v5683_v6 = vld [vmem:[#allocation6 + $0xb8] sm:$0xf0]  ;;  %v6886_v8 = vor.u32 %v7976_v59, %v6883_v60  ;;  %v3512_v49 = vperm.slane %v8693_v57, %v8762_v40 }
 0x28b   : > { %v3524_v50 = vperm.slane %v8720_v19, %v8762_v40 }
 0x28c   : > { %v3533_v60 = vrot.slane %v3512_v49, 4 }
 0x28d   : > { %3432 = vmatpush.bf16.msrb.mxu0 %v5878_v13  ;;  %3445 = vmatpush.bf16.msrb.mxu1 %v6262_v61  ;;  %v7964_v13 = vld [vmem:[#allocation6 + $0x98c] sm:$0xf]  ;;  %v6835_v61 = vld [vmem:[#allocation6 + $0x9b8] sm:$0xf0]  ;;  %v8251_v31 = vpop.permute.xlu2 %8250 }
 0x28e   : > { %3458 = vmatpush.bf16.msrb.mxu2 %v6646_v14  ;;  %3471 = vmatpush.bf16.msrb.mxu3 %v7030_v20  ;;  %v5686_v14 = vor.u32 %v7676_v5, %v5683_v6  ;;  %v5635_v20 = vld [vmem:[#allocation6 + $0x58] sm:$0xf0]  ;;  %v6838_v21 = vor.u32 %v7964_v13, %v6835_v61 }
 0x28f   : > { %v5638_v32 = vor.u32 %v7664_v18, %v5635_v20 }
 0x291   : > { %3433 = vmatpush.bf16.msrb.mxu0 %v5830_v26  ;;  %3446 = vmatpush.bf16.msrb.mxu1 %v6214_v27  ;;  %v7856_v26 = vld [vmem:[#allocation6 + $0x62c] sm:$0xf]  ;;  %v6403_v27 = vld [vmem:[#allocation6 + $0x658] sm:$0xf0] }
 0x292   : > { %3459 = vmatpush.bf16.msrb.mxu2 %v6598_v28  ;;  %3472 = vmatpush.bf16.msrb.mxu3 %v6982_v11  ;;  %v3207_v22 = vpop.f32.mrf.mxu2  ;;  %v3220_v24 = vpop.f32.mrf.mxu3  ;;  %v7952_v28 = vld [vmem:[#allocation6 + $0x92c] sm:$0xf]  ;;  %v6022_v11 = vor.u32 %v7760_v36, %v6019_v29  ;;  %v6406_v33 = vor.u32 %v7856_v26, %v6403_v27 }
 0x293   : > { %v6790_v38 = vor.u32 %v7952_v28, %v6787_v30 }
 0x295   : > { %3434 = vmatpush.bf16.msrb.mxu0 %v5782_v41  ;;  %3447 = vmatpush.bf16.msrb.mxu1 %v6166_v42  ;;  %v8253_v41 = vunpack.i.h.bf16 %v8251_v31  ;;  %v8252_v42 = vunpack.i.l.bf16 %v8251_v31 }
 0x296   : > { %3460 = vmatpush.bf16.msrb.mxu2 %v6550_v43  ;;  %3473 = vmatpush.bf16.msrb.mxu3 %v6934_v51  ;;  %v8501_v43 = vmov 1934713408   ;;  %v920_v51 = vperm.slane %v8740_v35, 6  ;;  %v8256_v12 = vpop.permute.xlu2 %8255 }
 0x297   : > { %v3536_v48 = vunpack.c.l.s4 %v8501_v43  ;;  %v3525_v55 = vrot.slane %v8252_v42, 4  ;;  %v8257_v56 = vunpack.i.l.bf16 %v8256_v12 }
 0x298   : > { %v3180_v35 = vadd.f32 %v8754_v23, %v920_v51 }
 0x299   : > { %3435 = vmatpush.bf16.msrb.mxu0 %v5734_v2  ;;  %3448 = vmatpush.bf16.msrb.mxu1 %v6118_v3  ;;  %v3526_v58 = vsel %vm3507_vm8, %v3525_v55, %v8257_v56  ;;  %v3545_v2 = vrot.slane %v3524_v50, 4 }
 0x29a   : > { %3461 = vmatpush.bf16.msrb.mxu2 %v6502_v4  ;;  %3474 = vmatpush.bf16.msrb.mxu3 %v6886_v8  ;;  %v3530_v3 = vperm.slane %v3526_v58, %v8762_v40 }
 0x29c   : > { %v3543_v7 = vrot.slane %v3530_v3, 4  ;;  %v3546_v8 = vsel %vm3507_vm8, %v3530_v3, %v3545_v2 }
 0x29d   : > { %3436 = vmatpush.bf16.msrb.mxu0 %v5686_v14  ;;  %3449 = vmatpush.bf16.msrb.mxu1 %v6070_v15 }
 0x29e   : > { %3462 = vmatpush.bf16.msrb.mxu2 %v6454_v16  ;;  %3475 = vmatpush.bf16.msrb.mxu3 %v6838_v21  ;;  %v3544_v13 = vsel %vm3507_vm8, %v3543_v7, %v3524_v50  ;;  %v3193_v16 = vadd.f32 %v8756_v39, %v3180_v35 }
 0x2a1   : > { %3437 = vmatpush.bf16.msrb.mxu0 %v5638_v32  ;;  %3450 = vmatpush.bf16.msrb.mxu1 %v6022_v11  ;;  %v3231_v59 = vpop.f32.mrf.mxu0  ;;  %v3244_v57 = vpop.f32.mrf.mxu1  ;;  %v3206_v32 = vadd.f32 %v8758_v52, %v3193_v16 }
 0x2a2   : > { %3463 = vmatpush.bf16.msrb.mxu2 %v6406_v33  ;;  %3476 = vmatpush.bf16.msrb.mxu3 %v6790_v38  ;;  %v3232_v4 = vadd.f32 %v3231_v59, %v921_v54 }
 0x2a3   : > { %v3219_v54 = vadd.f32 %v8760_v53, %v3206_v32 }
 0x2a4   : > { %3438 = vmatmul.bf16.vlgmr.msrb.gmra.mxu0 %v8645_v44  ;;  %3451 = vmatmul.bf16.vlgmr.msrb.gmra.mxu1 %v8647_v45  ;;  %v3513_v44 = vrot.slane %v8253_v41, 4  ;;  %v8258_v45 = vunpack.i.h.bf16 %v8256_v12  ;;  %v3245_v18 = vadd.f32 %v3244_v57, %v3232_v4 }
 0x2a5   : > { %3464 = vmatmul.bf16.vlgmr.msrb.gmra.mxu2 %v8649_v46  ;;  %3477 = vmatmul.bf16.vlgmr.msrb.gmra.mxu3 %v8651_v47  ;;  %v8774_v46 = vunpack.c.0.s8 %v3536_v48  ;;  %v8244_v2 = vpack.i.bf16 %v8731_v63, %v3219_v54 }
 0x2a6   : > { %v3514_v47 = vsel %vm3507_vm8, %v3513_v44, %v8258_v45 }
 0x2a7   : > { %v3518_v19 = vperm.slane %v3514_v47, %v8762_v40  ;;  %v3554_v25 = vperm.slane %v3546_v8, %v8774_v46  ;;  %v3550_v14 = vperm.slane %v3544_v13, %v8774_v46 }
 0x2a9   : > { %v3531_v5 = vrot.slane %v3518_v19, 4  ;;  %v3534_v6 = vsel %vm3507_vm8, %v3518_v19, %v3533_v60  ;;  %v3559_v23 = vrot.slane %v3554_v25, 4  ;;  %v3555_v21 = vrot.slane %v3550_v14, 4  ;;  %v3233_v26 = vpop.f32.mrf.mxu0  ;;  %v3246_v27 = vpop.f32.mrf.mxu1  ;;  %v911_v19 = vld [vmem:[%s9177_s5 + $0x8] sm:$0xf] }
 0x2aa   : > { %v3542_v10 = vperm.slane %v3534_v6, %v8774_v46  ;;  %v3257_v20 = vpop.f32.mrf.mxu2  ;;  %v3270_v36 = vpop.f32.mrf.mxu3  ;;  %v922_v3 = vperm.slane %v911_v19, 0 }
 0x2ab   : > { %v3532_v9 = vsel %vm3507_vm8, %v3531_v5, %v3512_v49  ;;  %v3258_v31 = vadd.f32 %v3257_v20, %v3245_v18 }
 0x2ac   : > { %v3538_v61 = vperm.slane %v3532_v9, %v8774_v46  ;;  %v3561_v15 = vrot.slane %v3542_v10, 4  ;;  %v3560_v24 = vsel %vm3507_vm8, %v3559_v23, %v3542_v10 }
 0x2ad   : > { %v3563_v28 = vrot.slane %v3560_v24, 4  ;;  %v3271_v43 = vadd.f32 %v3270_v36, %v3258_v31  ;;  %v924_v31 = vperm.slane %v911_v19, 2 }
 0x2ae   : > { %v3557_v22 = vrot.slane %v3538_v61, 4  ;;  %v3562_v29 = vsel %vm3507_vm8, %v3554_v25, %v3561_v15  ;;  %v3556_v11 = vsel %vm3507_vm8, %v3555_v21, %v3538_v61 }
 0x2af   : > { %v3575_v30 = vrot.slane %v3562_v29, 4  ;;  %v3564_v33 = vsel %vm3507_vm8, %v3563_v28, %v3556_v11  ;;  %v3565_v34 = vrot.slane %v3556_v11, 4  ;;  %v3655_v44 = vrot.slane %v3271_v43, 4 }
 0x2b0   : > { %v3558_v39 = vsel %vm3507_vm8, %v3550_v14, %v3557_v22  ;;  %v3570_v41 = vperm.slane %v3564_v33, %v8762_v40  ;;  %v8239_v55 = vpack.i.bf16 %v8743_v62, %v3271_v43  ;;  %v923_v14 = vperm.slane %v911_v19, 1 }
 0x2b1   : > { %v3576_v37 = vsel %vm3507_vm8, %v3575_v30, %v3558_v39  ;;  %v3577_v38 = vrot.slane %v3558_v39, 4  ;;  %v3566_v48 = vsel %vm3507_vm8, %v3560_v24, %v3565_v34  ;;  %v8812_v60 = vsel %vm3507_vm8, %v3655_v44, %v3219_v54 }
 0x2b2   : > { %v3582_v42 = vperm.slane %v3576_v37, %v8762_v40  ;;  %v3574_v52 = vperm.slane %v3566_v48, %v8762_v40  ;;  %v3589_v12 = vrot.slane %v3570_v41, 4  ;;  %v3259_v45 = vpop.f32.mrf.mxu2  ;;  %v3272_v56 = vpop.f32.mrf.mxu3  ;;  %8240 = vrot.lane.b32.xlu1 %v8239_v55, %s8499_s24 }
 0x2b3   : > { %v3578_v49 = vsel %vm3507_vm8, %v3562_v29, %v3577_v38 }
 0x2b4   : > { %v3586_v50 = vperm.slane %v3578_v49, %v8762_v40  ;;  %v3587_v51 = vrot.slane %v3582_v42, 4  ;;  %v3601_v58 = vrot.slane %v3574_v52, 4  ;;  %v8809_v57 = vsel %vm3507_vm8, %v3582_v42, %v3589_v12 }
 0x2b6   : > { %v3599_v47 = vrot.slane %v3586_v50, 4  ;;  %v8806_v59 = vsel %vm3507_vm8, %v3587_v51, %v3570_v41  ;;  %v8819_v62 = vsel %vm3507_vm8, %v3586_v50, %v3601_v58  ;;  %v925_v50 = vperm.slane %v911_v19, 3 }
 0x2b8   : > { %v8816_v53 = vsel %vm3507_vm8, %v3599_v47, %v3574_v52 }
 0x2ba   : > { %8245 = vrot.lane.b32.xlu1 %v8244_v2, %s8499_s24 }
 0x2c1   : > { %v3283_v35 = vpop.f32.mrf.mxu0  ;;  %v3296_v4 = vpop.f32.mrf.mxu1 }
 0x2c2   : > { %v3284_v5 = vadd.f32 %v3283_v35, %v922_v3 }
 0x2c4   : > { %v3297_v6 = vadd.f32 %v3296_v4, %v3284_v5 }
 0x2c9   : > { %v3285_v25 = vpop.f32.mrf.mxu0  ;;  %v3298_v9 = vpop.f32.mrf.mxu1 }
 0x2ca   : > { %v3309_v7 = vpop.f32.mrf.mxu2  ;;  %v3322_v8 = vpop.f32.mrf.mxu3  ;;  %v3660_v25 = vperm.slane %v8812_v60, %v8762_v40 }
 0x2cb   : > { %v3310_v10 = vadd.f32 %v3309_v7, %v3297_v6 }
 0x2cd   : > { %v8826_v13 = vadd.f32 %v3322_v8, %v3310_v10  ;;  %v3648_v10 = vperm.slane %v8748_v17, %v8762_v40 }
 0x2d2   : > { %v3311_v61 = vpop.f32.mrf.mxu2  ;;  %v3324_v63 = vpop.f32.mrf.mxu3 }
 0x2e1   : > { %v3335_v23 = vpop.f32.mrf.mxu0  ;;  %v3348_v16 = vpop.f32.mrf.mxu1 }
 0x2e2   : > { %v3336_v15 = vadd.f32 %v3335_v23, %v923_v14 }
 0x2e4   : > { %v3349_v18 = vadd.f32 %v3348_v16, %v3336_v15 }
 0x2e9   : > { %v3337_v22 = vpop.f32.mrf.mxu0  ;;  %v3350_v24 = vpop.f32.mrf.mxu1 }
 0x2ea   : > { %v3361_v20 = vpop.f32.mrf.mxu2  ;;  %v3374_v21 = vpop.f32.mrf.mxu3 }
 0x2eb   : > { %v3362_v36 = vadd.f32 %v3361_v20, %v3349_v18  ;;  %v3669_v18 = vrot.slane %v3648_v10, 4  ;;  %v3681_v20 = vrot.slane %v3660_v25, 4 }
 0x2ed   : > { %v8828_v29 = vadd.f32 %v3374_v21, %v3362_v36 }
 0x2ef   : > { %v3779_v26 = vrot.slane %v8828_v29, 4 }
 0x2f1   : > { %v8833_v27 = vsel %vm3507_vm8, %v3779_v26, %v8826_v13 }
 0x2f2   : > { %v3363_v28 = vpop.f32.mrf.mxu2  ;;  %v3376_v30 = vpop.f32.mrf.mxu3 }
 0x301   : > { %v3387_v32 = vpop.f32.mrf.mxu0  ;;  %v3400_v39 = vpop.f32.mrf.mxu1 }
 0x302   : > { %v3388_v11 = vadd.f32 %v3387_v32, %v924_v31 }
 0x304   : > { %v3401_v33 = vadd.f32 %v3400_v39, %v3388_v11 }
 0x309   : > { %v3389_v41 = vpop.f32.mrf.mxu0  ;;  %v3402_v42 = vpop.f32.mrf.mxu1 }
 0x30a   : > { %v3413_v34 = vpop.f32.mrf.mxu2  ;;  %v3426_v38 = vpop.f32.mrf.mxu3 }
 0x30b   : > { %v3414_v37 = vadd.f32 %v3413_v34, %v3401_v33 }
 0x30d   : > { %v8835_v43 = vadd.f32 %v3426_v38, %v3414_v37 }
 0x30f   : > { %v8264_v48 = vpack.i.bf16 %v8826_v13, %v8835_v43 }
 0x312   : > { %v3415_v49 = vpop.f32.mrf.mxu2  ;;  %v3428_v52 = vpop.f32.mrf.mxu3 }
 0x321   : > { %v3439_v51 = vpop.f32.mrf.mxu0  ;;  %v3452_v54 = vpop.f32.mrf.mxu1 }
 0x322   : > { %v3440_v12 = vadd.f32 %v3439_v51, %v925_v50 }
 0x324   : > { %v3453_v44 = vadd.f32 %v3452_v54, %v3440_v12  ;;  %v8241_v4 = vpop.permute.xlu1 %8240 }
 0x325   : > { %v8243_v7 = vunpack.i.h.bf16 %v8241_v4  ;;  %v8242_v8 = vunpack.i.l.bf16 %v8241_v4 }
 0x327   : > { %v3649_v61 = vrot.slane %v8243_v7, 4  ;;  %v3661_v63 = vrot.slane %v8242_v8, 4 }
 0x328   : > { %v3465_v55 = vpop.f32.mrf.mxu2  ;;  %v3478_v56 = vpop.f32.mrf.mxu3 }
 0x329   : > { %v3466_v45 = vadd.f32 %v3465_v55, %v3453_v44  ;;  %v3441_v47 = vpop.f32.mrf.mxu0  ;;  %v3454_v58 = vpop.f32.mrf.mxu1 }
 0x32b   : > { %v8839_v2 = vadd.f32 %v3478_v56, %v3466_v45 }
 0x32c   : > { %v8246_v9 = vpop.permute.xlu1 %8245 }
 0x32d   : > { %v3791_v3 = vrot.slane %v8839_v2, 4  ;;  %v8259_v35 = vpack.i.bf16 %v8828_v29, %v8839_v2  ;;  %v8248_v14 = vunpack.i.h.bf16 %v8246_v9  ;;  %v8247_v23 = vunpack.i.l.bf16 %v8246_v9  ;;  %v3486_v29 = vld [vmem:[%s9172_s0 + $0x10] sm:$0xf] }
 0x32e   : > { %vm4064_vm3 = vcmp.eq.f32.partialorder %v3486_v29, 0.0 }
 0x32f   : > { %v8846_v19 = vsel %vm3507_vm8, %v3791_v3, %v8835_v43  ;;  %v3650_v15 = vsel %vm3507_vm8, %v3649_v61, %v8248_v14  ;;  %v3662_v16 = vsel %vm3507_vm8, %v3661_v63, %v8247_v23 }
 0x330   : > { %v3467_v5 = vpop.f32.mrf.mxu2  ;;  %v3480_v6 = vpop.f32.mrf.mxu3  ;;  %v3654_v36 = vperm.slane %v3650_v15, %v8762_v40  ;;  %v3666_v21 = vperm.slane %v3662_v16, %v8762_v40 }
 0x332   : > { %v3667_v22 = vrot.slane %v3654_v36, 4  ;;  %v3670_v17 = vsel %vm3507_vm8, %v3654_v36, %v3669_v18  ;;  %v3679_v24 = vrot.slane %v3666_v21, 4  ;;  %v3682_v60 = vsel %vm3507_vm8, %v3666_v21, %v3681_v20 }
 0x333   : > { %v3678_v26 = vperm.slane %v3670_v17, %v8774_v46  ;;  %v3690_v28 = vperm.slane %v3682_v60, %v8774_v46  ;;  %v3594_v36 = vperm.slane %v8806_v59, %v8774_v46  ;;  %v3598_v21 = vperm.slane %v8809_v57, %v8774_v46 }
 0x334   : > { %v3668_v30 = vsel %vm3507_vm8, %v3667_v22, %v3648_v10  ;;  %v3680_v31 = vsel %vm3507_vm8, %v3679_v24, %v3660_v25 }
 0x335   : > { %v3674_v32 = vperm.slane %v3668_v30, %v8774_v46  ;;  %v3686_v11 = vperm.slane %v3680_v31, %v8774_v46  ;;  %v3695_v39 = vrot.slane %v3690_v28, 4  ;;  %v3697_v33 = vrot.slane %v3678_v26, 4 }
 0x337   : > { %v3691_v34 = vrot.slane %v3686_v11, 4  ;;  %v3693_v37 = vrot.slane %v3674_v32, 4  ;;  %v3696_v38 = vsel %vm3507_vm8, %v3695_v39, %v3678_v26  ;;  %v3698_v41 = vsel %vm3507_vm8, %v3690_v28, %v3697_v33 }
 0x338   : > { %v3699_v42 = vrot.slane %v3696_v38, 4  ;;  %v3711_v49 = vrot.slane %v3698_v41, 4 }
 0x339   : > { %v3692_v52 = vsel %vm3507_vm8, %v3691_v34, %v3674_v32  ;;  %v3694_v50 = vsel %vm3507_vm8, %v3686_v11, %v3693_v37  ;;  %v3611_v34 = vrot.slane %v3594_v36, 4  ;;  %v3613_v37 = vrot.slane %v3598_v21, 4 }
 0x33a   : > { %v3700_v51 = vsel %vm3507_vm8, %v3699_v42, %v3692_v52  ;;  %v3701_v12 = vrot.slane %v3692_v52, 4  ;;  %v3712_v54 = vsel %vm3507_vm8, %v3711_v49, %v3694_v50  ;;  %v3713_v44 = vrot.slane %v3694_v50, 4 }
 0x33b   : > { %v3706_v55 = vperm.slane %v3700_v51, %v8762_v40  ;;  %v3718_v45 = vperm.slane %v3712_v54, %v8762_v40  ;;  %v3619_v51 = vpack.c.bf16 %v3594_v36, %v3594_v36  ;;  %v3612_v54 = vsel %vm3507_vm8, 0.0, %v3611_v34  ;;  %v3485_v36 = vld [vmem:[%s9172_s0 + $0xc] sm:$0xf] }
 0x33c   : > { %v3702_v56 = vsel %vm3507_vm8, %v3696_v38, %v3701_v12  ;;  %v3714_v47 = vsel %vm3507_vm8, %v3698_v41, %v3713_v44  ;;  %v3621_v12 = vpack.c.bf16 %v3598_v21, %v3598_v21  ;;  %v3614_v44 = vsel %vm3507_vm8, 0.0, %v3613_v37 }
 0x33d   : > { %v3723_v58 = vrot.slane %v3718_v45, 4  ;;  %v3725_v3 = vrot.slane %v3706_v55, 4  ;;  %v3710_v4 = vperm.slane %v3702_v56, %v8762_v40  ;;  %v3722_v5 = vperm.slane %v3714_v47, %v8762_v40 }
 0x33e   : > { %v3606_v56 = vperm.slane %v8816_v53, %v8774_v46  ;;  %v3610_v47 = vperm.slane %v8819_v62, %v8774_v46  ;;  %v3482_v53 = vld [vmem:[%s9172_s0] sm:$0xf]  ;;  %vm4063_vm14 = vcmp.eq.f32.partialorder %v3485_v36, 0.0 }
 0x33f   : > { %v3724_v6 = vsel %vm3507_vm8, %v3723_v58, %v3706_v55  ;;  %v3726_v7 = vsel %vm3507_vm8, %v3718_v45, %v3725_v3  ;;  %v3735_v8 = vrot.slane %v3722_v5, 4  ;;  %v3737_v10 = vrot.slane %v3710_v4, 4 }
 0x340   : > { %v3730_v25 = vperm.slane %v3724_v6, %v8774_v46  ;;  %v3734_v9 = vperm.slane %v3726_v7, %v8774_v46  ;;  %v3620_v55 = vpack.c.bf16 %v3612_v54, %v3612_v54  ;;  %v3622_v45 = vpack.c.bf16 %v3614_v44, %v3614_v44  ;;  %v3487_v54 = vld [vmem:[%s9172_s0 + $0x14] sm:$0xf] }
 0x341   : > { %v3736_v61 = vsel %vm3507_vm8, %v3735_v8, %v3710_v4  ;;  %v3738_v63 = vsel %vm3507_vm8, %v3722_v5, %v3737_v10  ;;  %v3615_v58 = vrot.slane %v3606_v56, 4  ;;  %v3617_v3 = vrot.slane %v3610_v47, 4 }
 0x342   : > { %v3755_v14 = vpack.c.bf16 %v3730_v25, %v3730_v25  ;;  %v3757_v23 = vpack.c.bf16 %v3734_v9, %v3734_v9  ;;  %v3742_v15 = vperm.slane %v3736_v61, %v8774_v46  ;;  %v3746_v16 = vperm.slane %v3738_v63, %v8774_v46  ;;  %v3484_v63 = vld [vmem:[%s9172_s0 + $0x8] sm:$0xf] }
 0x343   : > { %v3747_v18 = vrot.slane %v3730_v25, 4  ;;  %v3749_v20 = vrot.slane %v3734_v9, 4  ;;  %v3623_v4 = vpack.c.bf16 %v3606_v56, %v3606_v56  ;;  %v3625_v5 = vpack.c.bf16 %v3610_v47, %v3610_v47  ;;  %v3483_v9 = vld [vmem:[%s9172_s0 + $0x4] sm:$0xf] }
 0x344   : > { %v3904_v22 = vsel %vm3899_vm9, %v3755_v14, 0  ;;  %v3942_v17 = vsel %vm3899_vm9, %v3757_v23, 0  ;;  %v3759_v24 = vpack.c.bf16 %v3742_v15, %v3742_v15  ;;  %v3761_v60 = vpack.c.bf16 %v3746_v16, %v3746_v16 }
 0x345   : > { %3913 = vmatpush.bf16.xpose.msra.mxu0 %v3904_v22  ;;  %3951 = vmatpush.bf16.xpose.msra.mxu2 %v3942_v17  ;;  %v3748_v26 = vsel %vm3507_vm8, 0.0, %v3747_v18  ;;  %v3750_v28 = vsel %vm3507_vm8, 0.0, %v3749_v20  ;;  %v3751_v30 = vrot.slane %v3742_v15, 4  ;;  %v3753_v31 = vrot.slane %v3746_v16, 4 }
 0x346   : > { %v3980_v32 = vsel %vm3899_vm9, %v3759_v24, 0  ;;  %v4018_v59 = vsel %vm3899_vm9, %v3761_v60, 0  ;;  %v3756_v11 = vpack.c.bf16 %v3748_v26, %v3748_v26  ;;  %v3758_v57 = vpack.c.bf16 %v3750_v28, %v3750_v28 }
 0x347   : > { %v3752_v39 = vsel %vm3507_vm8, 0.0, %v3751_v30  ;;  %v3754_v33 = vsel %vm3507_vm8, 0.0, %v3753_v31  ;;  %v3616_v6 = vsel %vm3507_vm8, 0.0, %v3615_v58  ;;  %v3618_v7 = vsel %vm3507_vm8, 0.0, %v3617_v3 }
 0x348   : > { %v3923_v38 = vsel %vm3899_vm9, %v3756_v11, 0  ;;  %v3961_v41 = vsel %vm3899_vm9, %v3758_v57, 0  ;;  %v3760_v42 = vpack.c.bf16 %v3752_v39, %v3752_v39  ;;  %v3762_v49 = vpack.c.bf16 %v3754_v33, %v3754_v33  ;;  %v3488_v57 = vld [vmem:[%s9172_s0 + $0x18] sm:$0xf] }
 0x349   : > { %3932 = vmatpush.bf16.xpose.msra.mxu1 %v3923_v38  ;;  %3970 = vmatpush.bf16.xpose.msra.mxu3 %v3961_v41  ;;  %v3624_v8 = vpack.c.bf16 %v3616_v6, %v3616_v6  ;;  %v3626_v10 = vpack.c.bf16 %v3618_v7, %v3618_v7  ;;  %vm4060_vm10 = vcmp.eq.f32.partialorder %v3482_v53, 0.0  ;;  %vm4061_vm12 = vcmp.eq.f32.partialorder %v3483_v9, 0.0  ;;  %v3489_v41 = vld [vmem:[%s9172_s0 + $0x1c] sm:$0xf] }
 0x34a   : > { %v3999_v52 = vsel %vm3899_vm9, %v3760_v42, 0  ;;  %v4037_v50 = vsel %vm3899_vm9, %v3762_v49, 0  ;;  %vm4062_vm13 = vcmp.eq.f32.partialorder %v3484_v63, 0.0  ;;  %vm4066_vm15 = vcmp.eq.f32.partialorder %v3488_v57, 0.0 }
 0x34b   : > { %vm4067_vm1 = vcmp.eq.f32.partialorder %v3489_v41, 0.0  ;;  %vm4065_vm2 = vcmp.eq.f32.partialorder %v3487_v54, 0.0 }
 0x34c   : > { %7127 = vmatmul.msk.bf16.vlgmr.msra.gmra.mxu0 %vm3899_vm9, %v3619_v51  ;;  %7129 = vmatmul.msk.bf16.vlgmr.msra.gmra.mxu2 %vm3899_vm9, %v3621_v12 }
 0x34d   : > { %3989 = vmatpush.bf16.xpose.msrb.mxu0 %v3980_v32  ;;  %4027 = vmatpush.bf16.xpose.msrb.mxu2 %v4018_v59 }
 0x350   : > { %7128 = vmatmul.msk.bf16.vlgmr.msra.gmra.mxu1 %vm3899_vm9, %v3620_v55  ;;  %7130 = vmatmul.msk.bf16.vlgmr.msra.gmra.mxu3 %vm3899_vm9, %v3622_v45 }
 0x351   : > { %4008 = vmatpush.bf16.xpose.msrb.mxu1 %v3999_v52  ;;  %4046 = vmatpush.bf16.xpose.msrb.mxu3 %v4037_v50 }
 0x35c   : > { %7131 = vmatmul.msk.bf16.vlgmr.msrb.gmra.mxu0 %vm3899_vm9, %v3623_v4  ;;  %7133 = vmatmul.msk.bf16.vlgmr.msrb.gmra.mxu2 %vm3899_vm9, %v3625_v5 }
 0x360   : > { %7132 = vmatmul.msk.bf16.vlgmr.msrb.gmra.mxu1 %vm3899_vm9, %v3624_v8  ;;  %7134 = vmatmul.msk.bf16.vlgmr.msrb.gmra.mxu3 %vm3899_vm9, %v3626_v10 }
 0x3c9   : > { %v3915_v62 = vpop.f32.mrf.mxu0 }
 0x3ca   : > { %v4052_v25 = vmul.f32 0.125, %v3915_v62 }
 0x3cc   : > { %v8922_v61 = vsel %vm4060_vm10, -1e+09, %v4052_v25 }
 0x3cd   : > { %v3934_v14 = vpop.f32.mrf.mxu1  ;;  %v4077_v23 = vsel %vm4076_vm11, %v8922_v61, -inf }
 0x3ce   : > { %v4053_v15 = vmul.f32 0.125, %v3934_v14  ;;  %4078 = vmax.xlane.f32.xlu0 %v4077_v23 }
 0x3cf   : > { %v3953_v16 = vpop.f32.mrf.mxu2 }
 0x3d0   : > { %v4054_v18 = vmul.f32 0.125, %v3953_v16  ;;  %v8929_v20 = vsel %vm4061_vm12, -1e+09, %v4053_v15 }
 0x3d1   : > { %v3917_v21 = vpop.f32.mrf.mxu0  ;;  %v4080_v22 = vsel %vm4076_vm11, %v8929_v20, -inf }
 0x3d2   : > { %4081 = vmax.xlane.f32.xlu2 %v4080_v22  ;;  %v4070_v17 = vsel %vm4062_vm13, -1e+09, %v4054_v18 }
 0x3d3   : > { %v3972_v24 = vpop.f32.mrf.mxu3  ;;  %v4083_v60 = vsel %vm4076_vm11, %v4070_v17, -inf }
 0x3d4   : > { %v4055_v26 = vmul.f32 0.125, %v3972_v24  ;;  %4084 = vmax.xlane.f32.xlu1 %v4083_v60 }
 0x3d5   : > { %v3936_v28 = vpop.f32.mrf.mxu1 }
 0x3d6   : > { %v4071_v30 = vsel %vm4063_vm14, -1e+09, %v4055_v26 }
 0x3d7   : > { %v3955_v31 = vpop.f32.mrf.mxu2  ;;  %v4086_v32 = vsel %vm4076_vm11, %v4071_v30, -inf }
 0x3d8   : > { %4087 = vmax.xlane.f32.xlu0 %v4086_v32 }
 0x3d9   : > { %v3991_v59 = vpop.f32.mrf.mxu0 }
 0x3db   : > { %v3974_v11 = vpop.f32.mrf.mxu3 }
 0x3dd   : > { %v4010_v39 = vpop.f32.mrf.mxu1 }
 0x3de   : > { %v4057_v45 = vmul.f32 0.125, %v4010_v39 }
 0x3df   : > { %v4029_v33 = vpop.f32.mrf.mxu2 }
 0x3e0   : > { %v4058_v34 = vmul.f32 0.125, %v4029_v33  ;;  %v8960_v56 = vsel %vm4065_vm2, -1e+09, %v4057_v45 }
 0x3e1   : > { %v3993_v37 = vpop.f32.mrf.mxu0  ;;  %v4092_v2 = vsel %vm4076_vm11, %v8960_v56, -inf }
 0x3e2   : > { %v4074_v38 = vsel %vm4066_vm15, -1e+09, %v4058_v34 }
 0x3e3   : > { %v4048_v42 = vpop.f32.mrf.mxu3  ;;  %v4095_v49 = vsel %vm4076_vm11, %v4074_v38, -inf }
 0x3e4   : > { %v4059_v52 = vmul.f32 0.125, %v4048_v42  ;;  %4096 = vmax.xlane.f32.xlu0 %v4095_v49 }
 0x3e5   : > { %v4012_v50 = vpop.f32.mrf.mxu1 }
 0x3e6   : > { %v8945_v12 = vsel %vm4067_vm1, -1e+09, %v4059_v52 }
 0x3e7   : > { %v4031_v51 = vpop.f32.mrf.mxu2  ;;  %v4098_v55 = vsel %vm4076_vm11, %v8945_v12, -inf }
 0x3ea   : > { %8260 = vrot.lane.b32.xlu2 %v8259_v35, %s8499_s24  ;;  %v4056_v35 = vmul.f32 0.125, %v3991_v59 }
 0x3eb   : > { %v4050_v44 = vpop.f32.mrf.mxu3 }
 0x3ec   : > { %4099 = vmax.xlane.f32.xlu0 %v4098_v55  ;;  %v8967_v47 = vsel %vm4064_vm3, -1e+09, %v4056_v35 }
 0x3ed   : > { %8265 = vrot.lane.b32.xlu1 %v8264_v48, %s8499_s24  ;;  %v4089_v58 = vsel %vm4076_vm11, %v8967_v47, -inf }
 0x3f4   : > { %4093 = vmax.xlane.f32.xlu0 %v4092_v2 }
 0x3fc   : > { %4090 = vmax.xlane.f32.xlu0 %v4089_v58 }
 0x441   : > { %v4079_v13 = vpop.xlane.xlu0 %4078 }
 0x442   : > { %v4101_v43 = vsub.f32 %v8922_v61, %v4079_v13 }
 0x444   : > { %v4109_v48 = vmul.f32 1.442695, %v4101_v43 }
 0x445   : > { %v4082_v53 = vpop.xlane.xlu2 %4081 }
 0x446   : > { %8285 = vpow2.f32 %v4109_v48  ;;  %v4102_v9 = vsub.f32 %v8929_v20, %v4082_v53  ;;  %v3784_v20 = vperm.slane %v8833_v27, %v8762_v40 }
 0x447   : > { %v4085_v3 = vpop.xlane.xlu1 %4084 }
 0x448   : > { %v4103_v4 = vsub.f32 %v4070_v17, %v4085_v3  ;;  %v4111_v63 = vmul.f32 1.442695, %v4102_v9  ;;  %v3796_v17 = vperm.slane %v8846_v19, %v8762_v40  ;;  %v3805_v11 = vrot.slane %v3784_v20, 4 }
 0x44a   : > { %v4113_v5 = vmul.f32 1.442695, %v4103_v4  ;;  %v3817_v33 = vrot.slane %v3796_v17, 4 }
 0x44b   : > { %v4088_v6 = vpop.xlane.xlu0 %4087 }
 0x44c   : > { %v8972_v7 = vpop.eup %8285  ;;  %8287 = vpow2.f32 %v4113_v5  ;;  %v4104_v8 = vsub.f32 %v4071_v30, %v4088_v6 }
 0x44d   : > { %v4125_v10 = vsel %vm4076_vm11, %v8972_v7, 0.0  ;;  %v8261_v15 = vpop.permute.xlu2 %8260 }
 0x44e   : > { %v4115_v62 = vmul.f32 1.442695, %v4104_v8  ;;  %4126 = vadd.xlane.f32.xlu2 %v4125_v10  ;;  %v8263_v18 = vunpack.i.h.bf16 %v8261_v15  ;;  %v8262_v36 = vunpack.i.l.bf16 %v8261_v15 }
 0x450   : > { %8289 = vpow2.f32 %v4115_v62  ;;  %v3785_v24 = vrot.slane %v8263_v18, 4  ;;  %v3797_v60 = vrot.slane %v8262_v36, 4 }
 0x451   : > { %8291 = vpow2.f32 %v4111_v63 }
 0x452   : > { %v8976_v25 = vpop.eup %8287 }
 0x453   : > { %v4131_v61 = vsel %vm4076_vm11, %v8976_v25, 0.0 }
 0x454   : > { %4132 = vadd.xlane.f32.xlu0 %v4131_v61 }
 0x456   : > { %v8981_v23 = vpop.eup %8289 }
 0x457   : > { %v4097_v14 = vpop.xlane.xlu0 %4096  ;;  %v4134_v21 = vsel %vm4076_vm11, %v8981_v23, 0.0  ;;  %v8989_v30 = vpop.eup %8291 }
 0x458   : > { %v4107_v16 = vsub.f32 %v4074_v38, %v4097_v14  ;;  %v4128_v37 = vsel %vm4076_vm11, %v8989_v30, 0.0 }
 0x45a   : > { %v4121_v22 = vmul.f32 1.442695, %v4107_v16 }
 0x45c   : > { %4135 = vadd.xlane.f32.xlu0 %v4134_v21  ;;  %8293 = vpow2.f32 %v4121_v22 }
 0x45f   : > { %v8266_v26 = vpop.permute.xlu1 %8265  ;;  %v4100_v28 = vpop.xlane.xlu0 %4099 }
 0x460   : > { %v8268_v31 = vunpack.i.h.bf16 %v8266_v26  ;;  %v8267_v32 = vunpack.i.l.bf16 %v8266_v26  ;;  %v4108_v59 = vsub.f32 %v8945_v12, %v4100_v28 }
 0x462   : > { %v3786_v57 = vsel %vm3507_vm8, %v3785_v24, %v8268_v31  ;;  %v3798_v39 = vsel %vm3507_vm8, %v3797_v60, %v8267_v32  ;;  %v4123_v27 = vmul.f32 1.442695, %v4108_v59  ;;  %v9000_v52 = vpop.eup %8293 }
 0x463   : > { %v3790_v19 = vperm.slane %v3786_v57, %v8762_v40  ;;  %v3802_v34 = vperm.slane %v3798_v39, %v8762_v40  ;;  %v4143_v58 = vsel %vm4076_vm11, %v9000_v52, 0.0 }
 0x464   : > { %8295 = vpow2.f32 %v4123_v27  ;;  %4129 = vadd.xlane.f32.xlu0 %v4128_v37 }
 0x465   : > { %v3803_v38 = vrot.slane %v3790_v19, 4  ;;  %v3806_v41 = vsel %vm3507_vm8, %v3790_v19, %v3805_v11  ;;  %v3815_v42 = vrot.slane %v3802_v34, 4  ;;  %v3818_v49 = vsel %vm3507_vm8, %v3802_v34, %v3817_v33 }
 0x466   : > { %v3814_v50 = vperm.slane %v3806_v41, %v8774_v46  ;;  %v3826_v51 = vperm.slane %v3818_v49, %v8774_v46 }
 0x467   : > { %v3804_v12 = vsel %vm3507_vm8, %v3803_v38, %v3784_v20  ;;  %v3816_v54 = vsel %vm3507_vm8, %v3815_v42, %v3796_v17  ;;  %v4094_v44 = vpop.xlane.xlu0 %4093 }
 0x468   : > { %v3810_v55 = vperm.slane %v3804_v12, %v8774_v46  ;;  %v3822_v45 = vperm.slane %v3816_v54, %v8774_v46  ;;  %v3831_v29 = vrot.slane %v3826_v51, 4  ;;  %v3833_v2 = vrot.slane %v3814_v50, 4 }
 0x469   : > { %v4106_v35 = vsub.f32 %v8960_v56, %v4094_v44 }
 0x46a   : > { %v9011_v13 = vpop.eup %8295  ;;  %v3827_v43 = vrot.slane %v3822_v45, 4  ;;  %v3829_v48 = vrot.slane %v3810_v55, 4  ;;  %v3832_v3 = vsel %vm3507_vm8, %v3831_v29, %v3814_v50  ;;  %v3834_v4 = vsel %vm3507_vm8, %v3826_v51, %v3833_v2 }
 0x46b   : > { %v3835_v5 = vrot.slane %v3832_v3, 4  ;;  %v3847_v6 = vrot.slane %v3834_v4, 4  ;;  %v4119_v8 = vmul.f32 1.442695, %v4106_v35  ;;  %v4146_v10 = vsel %vm4076_vm11, %v9011_v13, 0.0 }
 0x46c   : > { %4147 = vadd.xlane.f32.xlu1 %v4146_v10  ;;  %4144 = vadd.xlane.f32.xlu0 %v4143_v58  ;;  %v3828_v56 = vsel %vm3507_vm8, %v3827_v43, %v3810_v55  ;;  %v3830_v53 = vsel %vm3507_vm8, %v3822_v45, %v3829_v48 }
 0x46d   : > { %8297 = vpow2.f32 %v4119_v8  ;;  %v3836_v62 = vsel %vm3507_vm8, %v3835_v5, %v3828_v56  ;;  %v3837_v9 = vrot.slane %v3828_v56, 4  ;;  %v3848_v61 = vsel %vm3507_vm8, %v3847_v6, %v3830_v53 }
 0x46e   : > { %v3842_v63 = vperm.slane %v3836_v62, %v8762_v40  ;;  %v3849_v14 = vrot.slane %v3830_v53, 4  ;;  %v3854_v15 = vperm.slane %v3848_v61, %v8762_v40 }
 0x46f   : > { %v4091_v16 = vpop.xlane.xlu0 %4090  ;;  %v3838_v18 = vsel %vm3507_vm8, %v3832_v3, %v3837_v9 }
 0x470   : > { %v4105_v36 = vsub.f32 %v8967_v47, %v4091_v16  ;;  %v3859_v21 = vrot.slane %v3854_v15, 4  ;;  %v3861_v22 = vrot.slane %v3842_v63, 4  ;;  %v3846_v20 = vperm.slane %v3838_v18, %v8762_v40 }
 0x471   : > { %v3850_v17 = vsel %vm3507_vm8, %v3834_v4, %v3849_v14 }
 0x472   : > { %v4117_v24 = vmul.f32 1.442695, %v4105_v36  ;;  %v3860_v60 = vsel %vm3507_vm8, %v3859_v21, %v3842_v63  ;;  %v3862_v26 = vsel %vm3507_vm8, %v3854_v15, %v3861_v22  ;;  %v3858_v28 = vperm.slane %v3850_v17, %v8762_v40 }
 0x473   : > { %v9030_v31 = vpop.eup %8297  ;;  %v3866_v32 = vperm.slane %v3860_v60, %v8774_v46  ;;  %v3870_v59 = vperm.slane %v3862_v26, %v8774_v46  ;;  %v3873_v47 = vrot.slane %v3846_v20, 4 }
 0x474   : > { %8299 = vpow2.f32 %v4117_v24  ;;  %v4140_v11 = vsel %vm4076_vm11, %v9030_v31, 0.0  ;;  %v3871_v57 = vrot.slane %v3858_v28, 4 }
 0x475   : > { %4141 = vadd.xlane.f32.xlu0 %v4140_v11  ;;  %v3891_v39 = vpack.c.bf16 %v3866_v32, %v3866_v32  ;;  %v3893_v27 = vpack.c.bf16 %v3870_v59, %v3870_v59  ;;  %v3874_v33 = vsel %vm3507_vm8, %v3858_v28, %v3873_v47  ;;  %v3883_v19 = vrot.slane %v3866_v32, 4 }
 0x476   : > { %v3872_v34 = vsel %vm3507_vm8, %v3871_v57, %v3846_v20  ;;  %v3882_v37 = vperm.slane %v3874_v33, %v8774_v46  ;;  %v3885_v38 = vrot.slane %v3870_v59, 4 }
 0x477   : > { %v4179_v41 = vsel %vm4177_vm4, %v3891_v39, 0  ;;  %v4217_v42 = vsel %vm4177_vm4, %v3893_v27, 0  ;;  %v3878_v49 = vperm.slane %v3872_v34, %v8774_v46  ;;  %v3884_v50 = vsel %vm3507_vm8, 0.0, %v3883_v19 }
 0x478   : > { %4188 = vmatpush.bf16.msra.mxu0 %v4179_v41  ;;  %4226 = vmatpush.bf16.msra.mxu2 %v4217_v42  ;;  %v3897_v51 = vpack.c.bf16 %v3882_v37, %v3882_v37  ;;  %v3892_v12 = vpack.c.bf16 %v3884_v50, %v3884_v50  ;;  %v3886_v54 = vsel %vm3507_vm8, 0.0, %v3885_v38  ;;  %v3889_v44 = vrot.slane %v3882_v37, 4 }
 0x479   : > { %v3895_v55 = vpack.c.bf16 %v3878_v49, %v3878_v49  ;;  %v3894_v45 = vpack.c.bf16 %v3886_v54, %v3886_v54  ;;  %v3887_v29 = vrot.slane %v3878_v49, 4 }
 0x47a   : > { %v9044_v2 = vpop.eup %8299  ;;  %v4293_v35 = vsel %vm4177_vm4, %v3897_v51, 0  ;;  %v4198_v58 = vsel %vm4177_vm4, %v3892_v12, 0  ;;  %v3890_v43 = vsel %vm3507_vm8, 0.0, %v3889_v44 }
 0x47b   : > { %v4255_v48 = vsel %vm4177_vm4, %v3895_v55, 0  ;;  %4207 = vmatpush.bf16.msra.mxu1 %v4198_v58  ;;  %v4236_v3 = vsel %vm4177_vm4, %v3894_v45, 0  ;;  %v4137_v4 = vsel %vm4076_vm11, %v9044_v2, 0.0  ;;  %v3888_v5 = vsel %vm3507_vm8, 0.0, %v3887_v29 }
 0x47c   : > { %4302 = vmatpush.bf16.msrb.mxu2 %v4293_v35  ;;  %4264 = vmatpush.bf16.msrb.mxu0 %v4255_v48  ;;  %v3896_v6 = vpack.c.bf16 %v3888_v5, %v3888_v5  ;;  %v3898_v8 = vpack.c.bf16 %v3890_v43, %v3890_v43  ;;  %v7257_v48 = vld [vmem:[#allocation7 + $0xe0] sm:$0xf] }
 0x47d   : > { %4245 = vmatpush.bf16.msra.mxu3 %v4236_v3  ;;  %4138 = vadd.xlane.f32.xlu0 %v4137_v4  ;;  %v8073_v3 = vld [vmem:[#allocation7 + $0xec] sm:$0xf0]  ;;  %v7385_v4 = vld [vmem:[#allocation7 + $0x1e0] sm:$0xf] }
 0x47e   : > { %v4274_v10 = vsel %vm4177_vm4, %v3896_v6, 0  ;;  %v4312_v56 = vsel %vm4177_vm4, %v3898_v8, 0  ;;  %v7258_v6 = vor.u32 %v8073_v3, %v7257_v48  ;;  %v8105_v8 = vld [vmem:[#allocation7 + $0x1ec] sm:$0xf0]  ;;  %v7321_v3 = vld [vmem:[#allocation7 + $0x160] sm:$0xf] }
 0x47f   : > { %4283 = vmatpush.bf16.msrb.mxu1 %v4274_v10  ;;  %v7241_v10 = vld [vmem:[#allocation7 + $0xc0] sm:$0xf] }
 0x481   : > { %4321 = vmatpush.bf16.msrb.mxu3 %v4312_v56 }
 0x4c1   : > { %v4127_v53 = vpop.xlane.xlu2 %4126 }
 0x4c2   : > { %8301 = vrcp.f32 %v4127_v53 }
 0x4c7   : > { %v4133_v62 = vpop.xlane.xlu0 %4132 }
 0x4c8   : > { %v8302_v9 = vpop.eup %8301  ;;  %8303 = vrcp.f32 %v4133_v62  ;;  %v7386_v62 = vor.u32 %v8105_v8, %v7385_v4  ;;  %v8089_v4 = vld [vmem:[#allocation7 + $0x16c] sm:$0xf0] }
 0x4c9   : > { %v4157_v61 = vmul.f32 %v8302_v9, %v8972_v7  ;;  %v8069_v9 = vld [vmem:[#allocation7 + $0xcc] sm:$0xf0] }
 0x4cb   : > { %v4165_v63 = vpack.c.bf16 %v4157_v61, %v4157_v61  ;;  %v7369_v61 = vld [vmem:[#allocation7 + $0x1c0] sm:$0xf] }
 0x4cd   : > { %7135 = vmatmul.msk.bf16.vlgmr.msra.gmra.mxu0 %vm4173_vm5, %v4165_v63  ;;  %v8101_v63 = vld [vmem:[#allocation7 + $0x1cc] sm:$0xf0] }
 0x4ce   : > { %v8304_v14 = vpop.eup %8303  ;;  %5231 = vmatpush.bf16.msra.mxu0 %v7258_v6 }
 0x4cf   : > { %v4159_v15 = vmul.f32 %v8304_v14, %v8976_v25  ;;  %v4136_v16 = vpop.xlane.xlu0 %4135 }
 0x4d0   : > { %8305 = vrcp.f32 %v4136_v16 }
 0x4d1   : > { %v4167_v18 = vpack.c.bf16 %v4159_v15, %v4159_v15 }
 0x4d3   : > { %7137 = vmatmul.msk.bf16.vlgmr.msra.gmra.mxu2 %vm4173_vm5, %v4167_v18  ;;  %v7242_v18 = vor.u32 %v8069_v9, %v7241_v10 }
 0x4d5   : > { %5232 = vmatpush.bf16.msra.mxu0 %v7242_v18  ;;  %v7322_v18 = vor.u32 %v8089_v4, %v7321_v3  ;;  %v8121_v3 = vld [vmem:[#allocation7 + $0x26c] sm:$0xf0]  ;;  %v7577_v4 = vld [vmem:[#allocation7 + $0x360] sm:$0xf] }
 0x4d6   : > { %v8306_v36 = vpop.eup %8305 }
 0x4d7   : > { %v4160_v21 = vmul.f32 %v8306_v36, %v8981_v23  ;;  %v4130_v22 = vpop.xlane.xlu0 %4129 }
 0x4d8   : > { %8307 = vrcp.f32 %v4130_v22  ;;  %v7225_v22 = vld [vmem:[#allocation7 + $0xa0] sm:$0xf] }
 0x4d9   : > { %v4168_v20 = vpack.c.bf16 %v4160_v21, %v4160_v21  ;;  %v7370_v21 = vor.u32 %v8101_v63, %v7369_v61  ;;  %v7177_v63 = vld [vmem:[#allocation7 + $0x40] sm:$0xf] }
 0x4db   : > { %7138 = vmatmul.msk.bf16.vlgmr.msra.gmra.mxu3 %vm4173_vm5, %v4168_v20  ;;  %v8065_v20 = vld [vmem:[#allocation7 + $0xac] sm:$0xf0] }
 0x4de   : > { %v8308_v7 = vpop.eup %8307 }
 0x4df   : > { %v4158_v17 = vmul.f32 %v8308_v7, %v8989_v30  ;;  %v4148_v24 = vpop.xlane.xlu1 %4147  ;;  %v4145_v60 = vpop.xlane.xlu0 %4144 }
 0x4e0   : > { %8309 = vrcp.f32 %v4148_v24  ;;  %v7353_v24 = vld [vmem:[#allocation7 + $0x1a0] sm:$0xf] }
 0x4e1   : > { %v4166_v25 = vpack.c.bf16 %v4158_v17, %v4158_v17  ;;  %8311 = vrcp.f32 %v4145_v60  ;;  %v8097_v60 = vld [vmem:[#allocation7 + $0x1ac] sm:$0xf0] }
 0x4e3   : > { %7136 = vmatmul.msk.bf16.vlgmr.msra.gmra.mxu1 %vm4173_vm5, %v4166_v25 }
 0x4e4   : > { %5244 = vmatpush.bf16.msra.mxu1 %v7386_v62 }
 0x4e6   : > { %v8310_v26 = vpop.eup %8309 }
 0x4e7   : > { %v8312_v28 = vpop.eup %8311  ;;  %v4164_v32 = vmul.f32 %v8310_v26, %v9011_v13 }
 0x4e8   : > { %v4163_v23 = vmul.f32 %v8312_v28, %v9000_v52  ;;  %v4142_v59 = vpop.xlane.xlu0 %4141  ;;  %5245 = vmatpush.bf16.msra.mxu1 %v7370_v21  ;;  %v8085_v21 = vld [vmem:[#allocation7 + $0x14c] sm:$0xf0] }
 0x4e9   : > { %v4172_v47 = vpack.c.bf16 %v4164_v32, %v4164_v32  ;;  %8313 = vrcp.f32 %v4142_v59  ;;  %v7226_v59 = vor.u32 %v8065_v20, %v7225_v22  ;;  %v7481_v22 = vld [vmem:[#allocation7 + $0x2a0] sm:$0xf] }
 0x4ea   : > { %v4171_v11 = vpack.c.bf16 %v4163_v23, %v4163_v23 }
 0x4eb   : > { %7142 = vmatmul.msk.bf16.vlgmr.msrb.gmra.mxu3 %vm4173_vm5, %v4172_v47  ;;  %v7209_v47 = vld [vmem:[#allocation7 + $0x80] sm:$0xf]  ;;  %5233 = vmatpush.bf16.msra.mxu0 %v7226_v59 }
 0x4ec   : > { %7141 = vmatmul.msk.bf16.vlgmr.msrb.gmra.mxu2 %vm4173_vm5, %v4171_v11  ;;  %v8061_v11 = vld [vmem:[#allocation7 + $0x8c] sm:$0xf0] }
 0x4ef   : > { %v8314_v30 = vpop.eup %8313 }
 0x4f0   : > { %v4162_v57 = vmul.f32 %v8314_v30, %v9030_v31  ;;  %v4139_v39 = vpop.xlane.xlu0 %4138  ;;  %v7337_v30 = vld [vmem:[#allocation7 + $0x180] sm:$0xf] }
 0x4f1   : > { %8315 = vrcp.f32 %v4139_v39  ;;  %v8093_v39 = vld [vmem:[#allocation7 + $0x18c] sm:$0xf0] }
 0x4f2   : > { %v4170_v27 = vpack.c.bf16 %v4162_v57, %v4162_v57  ;;  %v7354_v57 = vor.u32 %v8097_v60, %v7353_v24  ;;  %v8129_v24 = vld [vmem:[#allocation7 + $0x2ac] sm:$0xf0]  ;;  %v7609_v60 = vld [vmem:[#allocation7 + $0x3a0] sm:$0xf] }
 0x4f4   : > { %7140 = vmatmul.msk.bf16.vlgmr.msrb.gmra.mxu1 %vm4173_vm5, %v4170_v27  ;;  %v7513_v27 = vld [vmem:[#allocation7 + $0x2e0] sm:$0xf] }
 0x4f5   : > { %5246 = vmatpush.bf16.msra.mxu1 %v7354_v57  ;;  %v8049_v57 = vld [vmem:[#allocation7 + $0x2c] sm:$0xf0] }
 0x4f7   : > { %v8316_v33 = vpop.eup %8315 }
 0x4f8   : > { %v4161_v13 = vmul.f32 %v8316_v33, %v9044_v2  ;;  %v8137_v33 = vld [vmem:[#allocation7 + $0x2ec] sm:$0xf0] }
 0x4fa   : > { %v4169_v52 = vpack.c.bf16 %v4161_v13, %v4161_v13 }
 0x4fc   : > { %7139 = vmatmul.msk.bf16.vlgmr.msrb.gmra.mxu0 %vm4173_vm5, %v4169_v52 }
 0x54a   : > { %v4190_v19 = vpop.f32.mrf.mxu0 }
 0x552   : > { %v4192_v34 = vpop.f32.mrf.mxu0 }
 0x553   : > { %v7641_v34 = vld [vmem:[#allocation7 + $0x3e0] sm:$0xf] }
 0x556   : > { %v4228_v37 = vpop.f32.mrf.mxu2 }
 0x557   : > { %v4327_v51 = vrot.slane %v4228_v37, 4  ;;  %v8169_v37 = vld [vmem:[#allocation7 + $0x3ec] sm:$0xf0] }
 0x559   : > { %v4328_v54 = vsel %vm3507_vm8, %v4327_v51, %v4190_v19  ;;  %v7514_v19 = vor.u32 %v8137_v33, %v7513_v27  ;;  %v7210_v51 = vor.u32 %v8061_v11, %v7209_v47 }
 0x55a   : > { %v4332_v2 = vperm.slane %v4328_v54, %v8762_v40  ;;  %v7497_v54 = vld [vmem:[#allocation7 + $0x2c0] sm:$0xf] }
 0x55b   : > { %5257 = vmatpush.bf16.msra.mxu2 %v7514_v19  ;;  %5234 = vmatpush.bf16.msra.mxu0 %v7210_v51 }
 0x55c   : > { %v4353_v5 = vrot.slane %v4332_v2, 4 }
 0x55e   : > { %v4230_v38 = vpop.f32.mrf.mxu2  ;;  %v4247_v41 = vpop.f32.mrf.mxu3 }
 0x55f   : > { %v4333_v50 = vrot.slane %v4247_v41, 4 }
 0x560   : > { %v4209_v42 = vpop.f32.mrf.mxu1 }
 0x561   : > { %v4334_v12 = vsel %vm3507_vm8, %v4333_v50, %v4209_v42  ;;  %v7642_v50 = vor.u32 %v8169_v37, %v7641_v34  ;;  %v7465_v34 = vld [vmem:[#allocation7 + $0x280] sm:$0xf]  ;;  %v8125_v37 = vld [vmem:[#allocation7 + $0x28c] sm:$0xf0] }
 0x562   : > { %v4338_v55 = vperm.slane %v4334_v12, %v8762_v40  ;;  %v8057_v12 = vld [vmem:[#allocation7 + $0x6c] sm:$0xf0] }
 0x563   : > { %5270 = vmatpush.bf16.msra.mxu3 %v7642_v50  ;;  %v8157_v50 = vld [vmem:[#allocation7 + $0x38c] sm:$0xf0] }
 0x564   : > { %v4351_v58 = vrot.slane %v4338_v55, 4  ;;  %v4354_v15 = vsel %vm3507_vm8, %v4338_v55, %v4353_v5 }
 0x565   : > { %v4362_v26 = vperm.slane %v4354_v15, %v8774_v46 }
 0x566   : > { %v4249_v49 = vpop.f32.mrf.mxu3  ;;  %v4352_v14 = vsel %vm3507_vm8, %v4351_v58, %v4332_v2  ;;  %v7338_v2 = vor.u32 %v8093_v39, %v7337_v30  ;;  %v8165_v58 = vld [vmem:[#allocation7 + $0x3cc] sm:$0xf0]  ;;  %v7161_v30 = vld [vmem:[#allocation7 + $0x20] sm:$0xf] }
 0x567   : > { %v4358_v25 = vperm.slane %v4352_v14, %v8774_v46  ;;  %v4381_v41 = vrot.slane %v4362_v26, 4  ;;  %v7193_v49 = vld [vmem:[#allocation7 + $0x60] sm:$0xf]  ;;  %v8053_v14 = vld [vmem:[#allocation7 + $0x4c] sm:$0xf0] }
 0x568   : > { %v4211_v31 = vpop.f32.mrf.mxu1  ;;  %v7194_v61 = vor.u32 %v8057_v12, %v7193_v49  ;;  %5247 = vmatpush.bf16.msra.mxu1 %v7338_v2  ;;  %v7178_v47 = vor.u32 %v8053_v14, %v7177_v63  ;;  %v7289_v39 = vld [vmem:[#allocation7 + $0x120] sm:$0xf]  ;;  %v7162_v2 = vor.u32 %v8049_v57, %v7161_v30 }
 0x569   : > { %v4377_v38 = vrot.slane %v4358_v25, 4  ;;  %v7593_v49 = vld [vmem:[#allocation7 + $0x380] sm:$0xf] }
 0x56a   : > { %5235 = vmatpush.bf16.msra.mxu0 %v7194_v61  ;;  %v7387_v61 = vld [vmem:[#allocation7 + $0x1f0] sm:$0xf0]  ;;  %v7417_v57 = vld [vmem:[#allocation7 + $0x220] sm:$0xf] }
 0x56c   : > { %5248 = vmatpush.bf16.msra.mxu1 %v7322_v18 }
 0x56e   : > { %v4323_v44 = vpop.f32.mrf.mxu3  ;;  %5236 = vmatpush.bf16.msra.mxu0 %v7178_v47  ;;  %v7371_v47 = vld [vmem:[#allocation7 + $0x1d0] sm:$0xf0] }
 0x56f   : > { %v4304_v45 = vpop.f32.mrf.mxu2  ;;  %v4345_v29 = vrot.slane %v4323_v44, 4  ;;  %v8133_v44 = vld [vmem:[#allocation7 + $0x2cc] sm:$0xf0] }
 0x570   : > { %v4339_v36 = vrot.slane %v4304_v45, 4  ;;  %v7498_v5 = vor.u32 %v8133_v44, %v7497_v54  ;;  %v7145_v54 = vld [vmem:[#allocation7] sm:$0xf]  ;;  %v7594_v44 = vor.u32 %v8157_v50, %v7593_v49 }
 0x571   : > { %v4285_v35 = vpop.f32.mrf.mxu1  ;;  %v7401_v50 = vld [vmem:[#allocation7 + $0x200] sm:$0xf] }
 0x572   : > { %v4346_v43 = vsel %vm3507_vm8, %v4345_v29, %v4285_v35  ;;  %v7625_v35 = vld [vmem:[#allocation7 + $0x3c0] sm:$0xf]  ;;  %5258 = vmatpush.bf16.msra.mxu2 %v7498_v5  ;;  %v8153_v5 = vld [vmem:[#allocation7 + $0x36c] sm:$0xf0]  ;;  %5237 = vmatpush.bf16.msra.mxu0 %v7162_v2 }
 0x573   : > { %v4350_v56 = vperm.slane %v4346_v43, %v8762_v40  ;;  %v7626_v6 = vor.u32 %v8165_v58, %v7625_v35  ;;  %v7273_v35 = vld [vmem:[#allocation7 + $0x100] sm:$0xf]  ;;  %v7578_v14 = vor.u32 %v8153_v5, %v7577_v4 }
 0x574   : > { %v7449_v58 = vld [vmem:[#allocation7 + $0x260] sm:$0xf] }
 0x575   : > { %v4363_v28 = vrot.slane %v4350_v56, 4  ;;  %5271 = vmatpush.bf16.msra.mxu3 %v7626_v6  ;;  %v7450_v63 = vor.u32 %v8121_v3, %v7449_v58  ;;  %v8059_v58 = vld [vmem:[#allocation7 + $0x84] sm:$0xf]  ;;  %v7339_v3 = vld [vmem:[#allocation7 + $0x190] sm:$0xf0] }
 0x576   : > { %v4325_v53 = vpop.f32.mrf.mxu3 }
 0x577   : > { %v4306_v16 = vpop.f32.mrf.mxu2 }
 0x579   : > { %v4266_v7 = vpop.f32.mrf.mxu0  ;;  %v4287_v17 = vpop.f32.mrf.mxu1 }
 0x57a   : > { %v4340_v32 = vsel %vm3507_vm8, %v4339_v36, %v4266_v7  ;;  %v7305_v36 = vld [vmem:[#allocation7 + $0x140] sm:$0xf] }
 0x57b   : > { %v4344_v23 = vperm.slane %v4340_v32, %v8762_v40  ;;  %v7482_v32 = vor.u32 %v8129_v24, %v7481_v22  ;;  %v7306_v11 = vor.u32 %v8085_v21, %v7305_v36 }
 0x57d   : > { %v4364_v13 = vsel %vm3507_vm8, %v4363_v28, %v4344_v23  ;;  %v4365_v52 = vrot.slane %v4344_v23, 4  ;;  %v8161_v23 = vld [vmem:[#allocation7 + $0x3ac] sm:$0xf0]  ;;  %5259 = vmatpush.bf16.msra.mxu2 %v7482_v32  ;;  %5249 = vmatpush.bf16.msra.mxu1 %v7306_v11  ;;  %v7243_v32 = vld [vmem:[#allocation7 + $0xd0] sm:$0xf0] }
 0x57e   : > { %v4370_v42 = vperm.slane %v4364_v13, %v8774_v46  ;;  %v7610_v27 = vor.u32 %v8161_v23, %v7609_v60 }
 0x57f   : > { %v4366_v31 = vsel %vm3507_vm8, %v4350_v56, %v4365_v52 }
 0x580   : > { %v4374_v55 = vperm.slane %v4366_v31, %v8774_v46  ;;  %v4375_v45 = vrot.slane %v4370_v42, 4  ;;  %v4378_v29 = vsel %vm3507_vm8, %v4370_v42, %v4377_v38  ;;  %5272 = vmatpush.bf16.msra.mxu3 %v7610_v27  ;;  %v7466_v42 = vor.u32 %v8125_v37, %v7465_v34  ;;  %v7545_v27 = vld [vmem:[#allocation7 + $0x320] sm:$0xf]  ;;  %v7227_v34 = vld [vmem:[#allocation7 + $0xb0] sm:$0xf0] }
 0x581   : > { %v4397_v43 = vrot.slane %v4378_v29, 4  ;;  %v4268_v48 = vpop.f32.mrf.mxu0  ;;  %v8095_v37 = vld [vmem:[#allocation7 + $0x1a4] sm:$0xf] }
 0x582   : > { %v4376_v8 = vsel %vm3507_vm8, %v4375_v45, %v4358_v25  ;;  %v4379_v10 = vrot.slane %v4374_v55, 4  ;;  %v4382_v56 = vsel %vm3507_vm8, %v4374_v55, %v4381_v41  ;;  %v8081_v41 = vld [vmem:[#allocation7 + $0x12c] sm:$0xf0]  ;;  %5260 = vmatpush.bf16.msra.mxu2 %v7466_v42 }
 0x583   : > { %v4385_v53 = vrot.slane %v4376_v8, 4  ;;  %v4395_v62 = vrot.slane %v4382_v56, 4  ;;  %v4398_v9 = vsel %vm3507_vm8, %v4382_v56, %v4397_v43  ;;  %v7290_v48 = vor.u32 %v8081_v41, %v7289_v39  ;;  %v8077_v56 = vld [vmem:[#allocation7 + $0x10c] sm:$0xf0]  ;;  %v7355_v41 = vld [vmem:[#allocation7 + $0x1b0] sm:$0xf0] }
 0x584   : > { %v4380_v15 = vsel %vm3507_vm8, %v4379_v10, %v4362_v26  ;;  %v4406_v16 = vperm.slane %v4398_v9, %v8762_v40  ;;  %5273 = vmatpush.bf16.msra.mxu3 %v7594_v44  ;;  %v8103_v9 = vld [vmem:[#allocation7 + $0x1e4] sm:$0xf]  ;;  %v7274_v22 = vor.u32 %v8077_v56, %v7273_v35  ;;  %v8113_v39 = vld [vmem:[#allocation7 + $0x22c] sm:$0xf0]  ;;  %v7358_v35 = vor.u32 %v8095_v37, %v7355_v41 }
 0x585   : > { %v4383_v20 = vrot.slane %v4380_v15, 4  ;;  %v4396_v7 = vsel %vm3507_vm8, %v4395_v62, %v4378_v29  ;;  %v4386_v17 = vsel %vm3507_vm8, %v4380_v15, %v4385_v53  ;;  %v8071_v53 = vld [vmem:[#allocation7 + $0xe4] sm:$0xf]  ;;  %v7259_v62 = vld [vmem:[#allocation7 + $0xf0] sm:$0xf0]  ;;  %5250 = vmatpush.bf16.msra.mxu1 %v7290_v48  ;;  %v7418_v42 = vor.u32 %v8113_v39, %v7417_v57 }
 0x586   : > { %v4394_v25 = vperm.slane %v4386_v17, %v8762_v40  ;;  %v4419_v28 = vrot.slane %v4406_v16, 4  ;;  %v4402_v26 = vperm.slane %v4396_v7, %v8762_v40  ;;  %5261 = vmatpush.bf16.msra.mxu2 %v7450_v63  ;;  %v7561_v7 = vld [vmem:[#allocation7 + $0x340] sm:$0xf]  ;;  %v8149_v17 = vld [vmem:[#allocation7 + $0x34c] sm:$0xf0] }
 0x587   : > { %v4384_v59 = vsel %vm3507_vm8, %v4383_v20, %v4376_v8  ;;  %v8117_v20 = vld [vmem:[#allocation7 + $0x24c] sm:$0xf0]  ;;  %v7562_v30 = vor.u32 %v8149_v17, %v7561_v7  ;;  %v8167_v44 = vld [vmem:[#allocation7 + $0x3e4] sm:$0xf]  ;;  %v7323_v63 = vld [vmem:[#allocation7 + $0x170] sm:$0xf0] }
 0x588   : > { %v4420_v33 = vsel %vm3507_vm8, %v4419_v28, %v4394_v25  ;;  %v4421_v13 = vrot.slane %v4394_v25, 4  ;;  %v4390_v52 = vperm.slane %v4384_v59, %v8762_v40  ;;  %v4407_v19 = vrot.slane %v4402_v26, 4  ;;  %v8045_v40 = vld [vmem:[#allocation7 + $0xc] sm:$0xf0]  ;;  %5274 = vmatpush.bf16.msra.mxu3 %v7578_v14  ;;  %v8099_v59 = vld [vmem:[#allocation7 + $0x1c4] sm:$0xf] }
 0x589   : > { %v9102_v38 = vperm.slane %v4420_v33, %v8774_v46  ;;  %v7146_v36 = vor.u32 %v8045_v40, %v7145_v54  ;;  %v7262_v25 = vor.u32 %v8071_v53, %v7259_v62  ;;  %v7390_v28 = vor.u32 %v8103_v9, %v7387_v61  ;;  %v8145_v33 = vld [vmem:[#allocation7 + $0x32c] sm:$0xf0]  ;;  %5251 = vmatpush.bf16.msra.mxu1 %v7274_v22  ;;  %v8135_v54 = vld [vmem:[#allocation7 + $0x2e4] sm:$0xf]  ;;  %v7515_v40 = vld [vmem:[#allocation7 + $0x2f0] sm:$0xf0] }
 0x58a   : > { %v4422_v31 = vsel %vm3507_vm8, %v4406_v16, %v4421_v13  ;;  %v4408_v51 = vsel %vm3507_vm8, %v4407_v19, %v4390_v52  ;;  %v4409_v12 = vrot.slane %v4390_v52, 4  ;;  %v7374_v52 = vor.u32 %v8099_v59, %v7371_v47  ;;  %v8063_v19 = vld [vmem:[#allocation7 + $0xa4] sm:$0xf]  ;;  %v7195_v9 = vld [vmem:[#allocation7 + $0x70] sm:$0xf0] }
 0x58b   : > { %v9107_v55 = vperm.slane %v4422_v31, %v8774_v46  ;;  %v4435_v45 = vrot.slane %v9102_v38, 4  ;;  %v9111_v29 = vperm.slane %v4408_v51, %v8774_v46  ;;  %5238 = vmatpush.bf16.msra.mxu0 %v7146_v36  ;;  %v7546_v49 = vor.u32 %v8145_v33, %v7545_v27  ;;  %v8109_v31 = vld [vmem:[#allocation7 + $0x20c] sm:$0xf0]  ;;  %v7529_v51 = vld [vmem:[#allocation7 + $0x300] sm:$0xf] }
 0x58c   : > { %v4410_v43 = vsel %vm3507_vm8, %v4402_v26, %v4409_v12  ;;  %v8067_v26 = vld [vmem:[#allocation7 + $0xc4] sm:$0xf]  ;;  %5275 = vmatpush.bf16.msra.mxu3 %v7562_v30  ;;  %v8141_v12 = vld [vmem:[#allocation7 + $0x30c] sm:$0xf0]  ;;  %v7230_v2 = vor.u32 %v8063_v19, %v7227_v34  ;;  %v7402_v4 = vor.u32 %v8109_v31, %v7401_v50  ;;  %v7163_v7 = vld [vmem:[#allocation7 + $0x30] sm:$0xf0] }
 0x58d   : > { %v4437_v6 = vrot.slane %v9107_v55, 4  ;;  %v9116_v8 = vperm.slane %v4410_v43, %v8774_v46  ;;  %v4431_v10 = vrot.slane %v9111_v29, 4  ;;  %v4436_v15 = vsel %vm3507_vm8, 0.0, %v4435_v45  ;;  %v7433_v46 = vld [vmem:[#allocation7 + $0x240] sm:$0xf]  ;;  %5296 = vmatpush.bf16.msrb.mxu1 %v7390_v28 }
 0x58e   : > { %v7434_v11 = vor.u32 %v8117_v20, %v7433_v46  ;;  %v7246_v13 = vor.u32 %v8067_v26, %v7243_v32  ;;  %v7643_v45 = vld [vmem:[#allocation7 + $0x3f0] sm:$0xf0]  ;;  %v8091_v48 = vld [vmem:[#allocation7 + $0x184] sm:$0xf]  ;;  %v7530_v5 = vor.u32 %v8141_v12, %v7529_v51 }
 0x58f   : > { %v4438_v16 = vsel %vm3507_vm8, 0.0, %v4437_v6  ;;  %v4433_v18 = vrot.slane %v9116_v8, 4  ;;  %v4432_v24 = vsel %vm3507_vm8, 0.0, %v4431_v10  ;;  %5283 = vmatpush.bf16.msrb.mxu0 %v7262_v25  ;;  %v7211_v43 = vld [vmem:[#allocation7 + $0x90] sm:$0xf0]  ;;  %v7518_v6 = vor.u32 %v8135_v54, %v7515_v40 }
 0x590   : > { %v8269_v21 = vpack.i.bf16 %v4438_v16, %v4436_v15  ;;  %5262 = vmatpush.bf16.msra.mxu2 %v7434_v11  ;;  %5276 = vmatpush.bf16.msra.mxu3 %v7546_v49  ;;  %v7646_v10 = vor.u32 %v8167_v44, %v7643_v45  ;;  %v7214_v56 = vor.u32 %v8059_v58, %v7211_v43  ;;  %v8055_v62 = vld [vmem:[#allocation7 + $0x64] sm:$0xf]  ;;  %v7307_v46 = vld [vmem:[#allocation7 + $0x150] sm:$0xf0] }
 0x591   : > { %v4434_v60 = vsel %vm3507_vm8, 0.0, %v4433_v18  ;;  %5297 = vmatpush.bf16.msrb.mxu1 %v7374_v52  ;;  %v7342_v53 = vor.u32 %v8091_v48, %v7339_v3  ;;  %v8087_v61 = vld [vmem:[#allocation7 + $0x164] sm:$0xf]  ;;  %v7198_v14 = vor.u32 %v8055_v62, %v7195_v9  ;;  %v7179_v18 = vld [vmem:[#allocation7 + $0x50] sm:$0xf0] }
 0x592   : > { %8270 = vrot.lane.b32.xlu0 %v8269_v21, %s8499_s24  ;;  %v8274_v23 = vpack.i.bf16 %v4434_v60, %v4432_v24  ;;  %v7326_v15 = vor.u32 %v8087_v61, %v7323_v63  ;;  %v8051_v16 = vld [vmem:[#allocation7 + $0x44] sm:$0xf]  ;;  %v7291_v60 = vld [vmem:[#allocation7 + $0x130] sm:$0xf0] }
 0x593   : > { %5284 = vmatpush.bf16.msrb.mxu0 %v7246_v13  ;;  %v8083_v36 = vld [vmem:[#allocation7 + $0x144] sm:$0xf]  ;;  %v7182_v21 = vor.u32 %v8051_v16, %v7179_v18  ;;  %v7499_v26 = vld [vmem:[#allocation7 + $0x2d0] sm:$0xf0] }
 0x594   : > { %8275 = vrot.lane.b32.xlu2 %v8274_v23, %s8499_s24  ;;  %5263 = vmatpush.bf16.msra.mxu2 %v7418_v42  ;;  %v7310_v22 = vor.u32 %v8083_v36, %v7307_v46  ;;  %v8047_v20 = vld [vmem:[#allocation7 + $0x24] sm:$0xf]  ;;  %v7627_v59 = vld [vmem:[#allocation7 + $0x3d0] sm:$0xf0]  ;;  %v7265_v36 = vld [vmem:[#allocation7 + $0xe8] sm:$0xf] }
 0x595   : > { %5298 = vmatpush.bf16.msrb.mxu1 %v7358_v35  ;;  %5277 = vmatpush.bf16.msra.mxu3 %v7530_v5  ;;  %v8079_v17 = vld [vmem:[#allocation7 + $0x124] sm:$0xf]  ;;  %v7166_v24 = vor.u32 %v8047_v20, %v7163_v7  ;;  %v7147_v30 = vld [vmem:[#allocation7 + $0x10] sm:$0xf0]  ;;  %v8106_v20 = vld [vmem:[#allocation7 + $0x1f4] sm:$0xf0] }
 0x596   : > { %v7294_v25 = vor.u32 %v8079_v17, %v7291_v60  ;;  %v8131_v28 = vld [vmem:[#allocation7 + $0x2c4] sm:$0xf]  ;;  %v7275_v27 = vld [vmem:[#allocation7 + $0x110] sm:$0xf0] }
 0x597   : > { %5285 = vmatpush.bf16.msrb.mxu0 %v7230_v2  ;;  %v8163_v32 = vld [vmem:[#allocation7 + $0x3c4] sm:$0xf]  ;;  %v7502_v23 = vor.u32 %v8131_v28, %v7499_v26  ;;  %v7483_v52 = vld [vmem:[#allocation7 + $0x2b0] sm:$0xf0]  ;;  %v7249_v26 = vld [vmem:[#allocation7 + $0xc8] sm:$0xf] }
 0x598   : > { %5264 = vmatpush.bf16.msra.mxu2 %v7402_v4  ;;  %v7630_v47 = vor.u32 %v8163_v32, %v7627_v59  ;;  %v8043_v11 = vld [vmem:[#allocation7 + $0x4] sm:$0xf]  ;;  %v7611_v34 = vld [vmem:[#allocation7 + $0x3b0] sm:$0xf0]  ;;  %v8070_v59 = vld [vmem:[#allocation7 + $0xd4] sm:$0xf0] }
 0x599   : > { %5322 = vmatpush.bf16.msrb.mxu3 %v7646_v10  ;;  %5299 = vmatpush.bf16.msrb.mxu1 %v7342_v53  ;;  %v8075_v57 = vld [vmem:[#allocation7 + $0x104] sm:$0xf]  ;;  %v7150_v39 = vor.u32 %v8043_v11, %v7147_v30  ;;  %v7467_v49 = vld [vmem:[#allocation7 + $0x290] sm:$0xf0]  ;;  %v8102_v11 = vld [vmem:[#allocation7 + $0x1d4] sm:$0xf0] }
 0x59a   : > { %v7278_v33 = vor.u32 %v8075_v57, %v7275_v27  ;;  %v8127_v13 = vld [vmem:[#allocation7 + $0x2a4] sm:$0xf]  ;;  %v7595_v51 = vld [vmem:[#allocation7 + $0x390] sm:$0xf0]  ;;  %v7233_v57 = vld [vmem:[#allocation7 + $0xa8] sm:$0xf] }
 0x59b   : > { %5286 = vmatpush.bf16.msrb.mxu0 %v7214_v56  ;;  %v8159_v19 = vld [vmem:[#allocation7 + $0x3a4] sm:$0xf]  ;;  %v7486_v37 = vor.u32 %v8127_v13, %v7483_v52  ;;  %v7451_v40 = vld [vmem:[#allocation7 + $0x270] sm:$0xf0]  ;;  %v8098_v27 = vld [vmem:[#allocation7 + $0x1b4] sm:$0xf0] }
 0x59c   : > { %5309 = vmatpush.bf16.msrb.mxu2 %v7518_v6  ;;  %v7614_v41 = vor.u32 %v8159_v19, %v7611_v34  ;;  %v8123_v42 = vld [vmem:[#allocation7 + $0x284] sm:$0xf]  ;;  %v7579_v2 = vld [vmem:[#allocation7 + $0x370] sm:$0xf0]  ;;  %v7217_v52 = vld [vmem:[#allocation7 + $0x88] sm:$0xf] }
 0x59d   : > { %5300 = vmatpush.bf16.msrb.mxu1 %v7326_v15  ;;  %5323 = vmatpush.bf16.msrb.mxu3 %v7630_v47  ;;  %v8155_v50 = vld [vmem:[#allocation7 + $0x384] sm:$0xf]  ;;  %v7470_v31 = vor.u32 %v8123_v42, %v7467_v49  ;;  %v7435_v43 = vld [vmem:[#allocation7 + $0x250] sm:$0xf0]  ;;  %v7377_v47 = vld [vmem:[#allocation7 + $0x1c8] sm:$0xf] }
 0x59e   : > { %v7598_v12 = vor.u32 %v8155_v50, %v7595_v51  ;;  %v8119_v54 = vld [vmem:[#allocation7 + $0x264] sm:$0xf]  ;;  %v7563_v4 = vld [vmem:[#allocation7 + $0x350] sm:$0xf0]  ;;  %v7378_v30 = vor.u32 %v8102_v11, %v7377_v47  ;;  %v8062_v19 = vld [vmem:[#allocation7 + $0x94] sm:$0xf0] }
 0x59f   : > { %5287 = vmatpush.bf16.msrb.mxu0 %v7198_v14  ;;  %v8151_v44 = vld [vmem:[#allocation7 + $0x364] sm:$0xf]  ;;  %v7454_v45 = vor.u32 %v8119_v54, %v7451_v40  ;;  %v7419_v10 = vld [vmem:[#allocation7 + $0x230] sm:$0xf0]  ;;  %v7345_v34 = vld [vmem:[#allocation7 + $0x188] sm:$0xf] }
 0x5a0   : > { %5310 = vmatpush.bf16.msrb.mxu2 %v7502_v23  ;;  %v7582_v35 = vor.u32 %v8151_v44, %v7579_v2  ;;  %v8115_v58 = vld [vmem:[#allocation7 + $0x244] sm:$0xf]  ;;  %v7547_v62 = vld [vmem:[#allocation7 + $0x330] sm:$0xf0]  ;;  %v7201_v49 = vld [vmem:[#allocation7 + $0x68] sm:$0xf] }
 0x5a1   : > { %5301 = vmatpush.bf16.msrb.mxu1 %v7310_v22  ;;  %5324 = vmatpush.bf16.msrb.mxu3 %v7614_v41  ;;  %v8147_v48 = vld [vmem:[#allocation7 + $0x344] sm:$0xf]  ;;  %v7438_v3 = vor.u32 %v8115_v58, %v7435_v43  ;;  %v7403_v63 = vld [vmem:[#allocation7 + $0x210] sm:$0xf0]  ;;  %v7393_v22 = vld [vmem:[#allocation7 + $0x1e8] sm:$0xf]  ;;  %v7218_v41 = vor.u32 %v8062_v19, %v7217_v52 }
 0x5a2   : > { %v7566_v5 = vor.u32 %v8147_v48, %v7563_v4  ;;  %v8111_v6 = vld [vmem:[#allocation7 + $0x224] sm:$0xf]  ;;  %v7531_v16 = vld [vmem:[#allocation7 + $0x310] sm:$0xf0]  ;;  %v7394_v28 = vor.u32 %v8106_v20, %v7393_v22  ;;  %v8058_v50 = vld [vmem:[#allocation7 + $0x74] sm:$0xf0] }
 0x5a3   : > { %5288 = vmatpush.bf16.msrb.mxu0 %v7182_v21  ;;  %v7422_v56 = vor.u32 %v8111_v6, %v7419_v10  ;;  %v8143_v53 = vld [vmem:[#allocation7 + $0x324] sm:$0xf]  ;;  %v8074_v21 = vld [vmem:[#allocation7 + $0xf4] sm:$0xf0]  ;;  %v7185_v40 = vld [vmem:[#allocation7 + $0x48] sm:$0xf] }
 0x5a4   : > { %5311 = vmatpush.bf16.msrb.mxu2 %v7486_v37  ;;  %v7550_v9 = vor.u32 %v8143_v53, %v7547_v62  ;;  %v8107_v61 = vld [vmem:[#allocation7 + $0x204] sm:$0xf]  ;;  %v8094_v37 = vld [vmem:[#allocation7 + $0x194] sm:$0xf0]  ;;  %v7649_v48 = vld [vmem:[#allocation7 + $0x3e8] sm:$0xf] }
 0x5a5   : > { %5302 = vmatpush.bf16.msrb.mxu1 %v7294_v25  ;;  %5325 = vmatpush.bf16.msrb.mxu3 %v7598_v12  ;;  %v7406_v14 = vor.u32 %v8107_v61, %v7403_v63  ;;  %v8139_v15 = vld [vmem:[#allocation7 + $0x304] sm:$0xf]  ;;  %v7266_v25 = vor.u32 %v8074_v21, %v7265_v36  ;;  %v7346_v42 = vor.u32 %v8094_v37, %v7345_v34  ;;  %v8090_v51 = vld [vmem:[#allocation7 + $0x174] sm:$0xf0]  ;;  %v7297_v62 = vld [vmem:[#allocation7 + $0x128] sm:$0xf] }
 0x5a6   : > { %v7534_v18 = vor.u32 %v8139_v15, %v7531_v16  ;;  %v7202_v12 = vor.u32 %v8058_v50, %v7201_v49  ;;  %v8054_v44 = vld [vmem:[#allocation7 + $0x54] sm:$0xf0]  ;;  %v7505_v16 = vld [vmem:[#allocation7 + $0x2c8] sm:$0xf]  ;;  %v7395_v47 = vld [vmem:[#allocation7 + $0x1f8] sm:$0xf0] }
 0x5a7   : > { %5289 = vmatpush.bf16.msrb.mxu0 %v7166_v24  ;;  %v8086_v2 = vld [vmem:[#allocation7 + $0x154] sm:$0xf0]  ;;  %v7186_v6 = vor.u32 %v8054_v44, %v7185_v40  ;;  %v7633_v21 = vld [vmem:[#allocation7 + $0x3c8] sm:$0xf]  ;;  %v7251_v52 = vld [vmem:[#allocation7 + $0xd8] sm:$0xf0] }
 0x5a8   : > { %5312 = vmatpush.bf16.msrb.mxu2 %v7470_v31  ;;  %v7329_v31 = vld [vmem:[#allocation7 + $0x168] sm:$0xf]  ;;  %v8138_v43 = vld [vmem:[#allocation7 + $0x2f4] sm:$0xf0]  ;;  %v8100_v37 = vld [vmem:[#allocation7 + $0x1cc] sm:$0xf] }
 0x5a9   : > { %5303 = vmatpush.bf16.msrb.mxu1 %v7278_v33  ;;  %5326 = vmatpush.bf16.msrb.mxu3 %v7582_v35  ;;  %v7330_v54 = vor.u32 %v8090_v51, %v7329_v31  ;;  %v7521_v35 = vld [vmem:[#allocation7 + $0x2e8] sm:$0xf]  ;;  %v8050_v53 = vld [vmem:[#allocation7 + $0x34] sm:$0xf0] }
 0x5aa   : > { %v8166_v22 = vld [vmem:[#allocation7 + $0x3d4] sm:$0xf0]  ;;  %v7489_v11 = vld [vmem:[#allocation7 + $0x2a8] sm:$0xf] }
 0x5ab   : > { %5290 = vmatpush.bf16.msrb.mxu0 %v7150_v39  ;;  %v7361_v39 = vld [vmem:[#allocation7 + $0x1a8] sm:$0xf]  ;;  %v8126_v49 = vld [vmem:[#allocation7 + $0x294] sm:$0xf0] }
 0x5ac   : > { %5313 = vmatpush.bf16.msrb.mxu2 %v7454_v45  ;;  %v7362_v13 = vor.u32 %v8098_v27, %v7361_v39  ;;  %v7313_v45 = vld [vmem:[#allocation7 + $0x148] sm:$0xf]  ;;  %v8158_v31 = vld [vmem:[#allocation7 + $0x394] sm:$0xf0] }
 0x5ad   : > { %5327 = vmatpush.bf16.msrb.mxu3 %v7566_v5  ;;  %v7314_v10 = vor.u32 %v8086_v2, %v7313_v45  ;;  %v7601_v50 = vld [vmem:[#allocation7 + $0x388] sm:$0xf]  ;;  %v7235_v45 = vld [vmem:[#allocation7 + $0xb8] sm:$0xf0]  ;;  %v8096_v2 = vld [vmem:[#allocation7 + $0x1ac] sm:$0xf] }
 0x5ae   : > { %v7602_v44 = vor.u32 %v8158_v31, %v7601_v50  ;;  %v8080_v50 = vld [vmem:[#allocation7 + $0x12c] sm:$0xf]  ;;  %v7299_v31 = vld [vmem:[#allocation7 + $0x138] sm:$0xf0] }
 0x5b0   : > { %5314 = vmatpush.bf16.msrb.mxu2 %v7438_v3  ;;  %v8170_v3 = vld [vmem:[#allocation7 + $0x3f4] sm:$0xf0] }
 0x5b1   : > { %5328 = vmatpush.bf16.msrb.mxu3 %v7550_v9  ;;  %v8082_v9 = vld [vmem:[#allocation7 + $0x134] sm:$0xf0]  ;;  %v7650_v15 = vor.u32 %v8170_v3, %v7649_v48  ;;  %v7585_v48 = vld [vmem:[#allocation7 + $0x368] sm:$0xf] }
 0x5b2   : > { %v8154_v3 = vld [vmem:[#allocation7 + $0x374] sm:$0xf0] }
 0x5b4   : > { %5315 = vmatpush.bf16.msrb.mxu2 %v7422_v56  ;;  %v7169_v56 = vld [vmem:[#allocation7 + $0x28] sm:$0xf] }
 0x5b5   : > { %5329 = vmatpush.bf16.msrb.mxu3 %v7534_v18  ;;  %v7170_v20 = vor.u32 %v8050_v53, %v7169_v56  ;;  %v8092_v56 = vld [vmem:[#allocation7 + $0x18c] sm:$0xf]  ;;  %v7347_v53 = vld [vmem:[#allocation7 + $0x198] sm:$0xf0] }
 0x5b8   : > { %5316 = vmatpush.bf16.msrb.mxu2 %v7406_v14  ;;  %v7522_v14 = vor.u32 %v8138_v43, %v7521_v35  ;;  %v7363_v35 = vld [vmem:[#allocation7 + $0x1b8] sm:$0xf0]  ;;  %v8122_v43 = vld [vmem:[#allocation7 + $0x274] sm:$0xf0] }
 0x5ee   : > { %v8276_v46 = vpop.permute.xlu2 %8275 }
 0x5ef   : > { %v8278_v7 = vunpack.i.h.bf16 %v8276_v46  ;;  %v8277_v17 = vunpack.i.l.bf16 %v8276_v46  ;;  %v8134_v46 = vld [vmem:[#allocation7 + $0x2d4] sm:$0xf0] }
 0x5f1   : > { %v4456_v24 = vsel %vm3899_vm9, %v9116_v8, %v8278_v7  ;;  %v4455_v60 = vsel %vm3899_vm9, %v9111_v29, %v8277_v17  ;;  %v7250_v8 = vor.u32 %v8070_v59, %v7249_v26  ;;  %v8066_v29 = vld [vmem:[#allocation7 + $0xb4] sm:$0xf0]  ;;  %v7298_v7 = vor.u32 %v8082_v9, %v7297_v62  ;;  %v7153_v17 = vld [vmem:[#allocation7 + $0x8] sm:$0xf]  ;;  %v8104_v59 = vld [vmem:[#allocation7 + $0x1ec] sm:$0xf] }
 0x5f2   : > { %v9130_v32 = vpack.c.bf16 %v4456_v24, %v4456_v24  ;;  %v9132_v23 = vpack.c.bf16 %v4455_v60, %v4455_v60  ;;  %v7234_v33 = vor.u32 %v8066_v29, %v7233_v57  ;;  %v8046_v24 = vld [vmem:[#allocation7 + $0x14] sm:$0xf0]  ;;  %v8072_v60 = vld [vmem:[#allocation7 + $0xec] sm:$0xf]  ;;  %v7634_v26 = vor.u32 %v8166_v22, %v7633_v21  ;;  %v7203_v22 = vld [vmem:[#allocation7 + $0x78] sm:$0xf0] }
 0x5f3   : > { %v8162_v57 = vld [vmem:[#allocation7 + $0x3b4] sm:$0xf0]  ;;  %v7154_v29 = vor.u32 %v8046_v24, %v7153_v17  ;;  %v7586_v9 = vor.u32 %v8154_v3, %v7585_v48  ;;  %v8056_v21 = vld [vmem:[#allocation7 + $0x6c] sm:$0xf]  ;;  %v7155_v3 = vld [vmem:[#allocation7 + $0x18] sm:$0xf0] }
 0x5f4   : > { %5239 = vmatmul.bf16.vlgmr.msra.gmra.mxu0 %v9132_v23  ;;  %5252 = vmatmul.bf16.vlgmr.msra.gmra.mxu1 %v9130_v32  ;;  %v8044_v48 = vld [vmem:[#allocation7 + $0xc] sm:$0xf] }
 0x5f5   : > { %5335 = vmatpush.bf16.msra.mxu0 %v7266_v25  ;;  %5348 = vmatpush.bf16.msra.mxu1 %v7394_v28  ;;  %v7267_v25 = vld [vmem:[#allocation7 + $0xf8] sm:$0xf0]  ;;  %v7506_v28 = vor.u32 %v8134_v46, %v7505_v16  ;;  %v7350_v46 = vor.u32 %v8092_v56, %v7347_v53  ;;  %v8128_v56 = vld [vmem:[#allocation7 + $0x2ac] sm:$0xf]  ;;  %v7158_v53 = vor.u32 %v8044_v48, %v7155_v3  ;;  %v5451_v48 = vld [vmem:[#allocation9] sm:$0xf] }
 0x5f6   : > { %v7270_v27 = vor.u32 %v8072_v60, %v7267_v25  ;;  %v7553_v60 = vld [vmem:[#allocation7 + $0x328] sm:$0xf]  ;;  %v8146_v25 = vld [vmem:[#allocation7 + $0x334] sm:$0xf0] }
 0x5f9   : > { %5336 = vmatpush.bf16.msra.mxu0 %v7250_v8  ;;  %5349 = vmatpush.bf16.msra.mxu1 %v7378_v30  ;;  %v8130_v8 = vld [vmem:[#allocation7 + $0x2b4] sm:$0xf0]  ;;  %v7617_v30 = vld [vmem:[#allocation7 + $0x3a8] sm:$0xf] }
 0x5fa   : > { %v7490_v19 = vor.u32 %v8130_v8, %v7489_v11  ;;  %v7618_v34 = vor.u32 %v8162_v57, %v7617_v30  ;;  %v8084_v11 = vld [vmem:[#allocation7 + $0x14c] sm:$0xf]  ;;  %v7315_v8 = vld [vmem:[#allocation7 + $0x158] sm:$0xf0]  ;;  %v7554_v57 = vor.u32 %v8146_v25, %v7553_v60 }
 0x5fd   : > { %5337 = vmatpush.bf16.msra.mxu0 %v7234_v33  ;;  %5350 = vmatpush.bf16.msra.mxu1 %v7362_v13  ;;  %v7398_v33 = vor.u32 %v8104_v59, %v7395_v47  ;;  %v8068_v13 = vld [vmem:[#allocation7 + $0xcc] sm:$0xf]  ;;  %v7187_v47 = vld [vmem:[#allocation7 + $0x58] sm:$0xf0] }
 0x5fe   : > { %v7254_v51 = vor.u32 %v8068_v13, %v7251_v52  ;;  %v8052_v59 = vld [vmem:[#allocation7 + $0x4c] sm:$0xf]  ;;  %v7523_v52 = vld [vmem:[#allocation7 + $0x2f8] sm:$0xf0] }
 0x5ff   : > { %v8136_v13 = vld [vmem:[#allocation7 + $0x2ec] sm:$0xf] }
 0x601   : > { %5338 = vmatpush.bf16.msra.mxu0 %v7218_v41  ;;  %5351 = vmatpush.bf16.msra.mxu1 %v7346_v42  ;;  %v7379_v41 = vld [vmem:[#allocation7 + $0x1d8] sm:$0xf0]  ;;  %v7473_v42 = vld [vmem:[#allocation7 + $0x288] sm:$0xf] }
 0x602   : > { %v7474_v40 = vor.u32 %v8126_v49, %v7473_v42  ;;  %v8048_v42 = vld [vmem:[#allocation7 + $0x2c] sm:$0xf]  ;;  %v7171_v49 = vld [vmem:[#allocation7 + $0x38] sm:$0xf0] }
 0x604   : > { %v8271_v58 = vpop.permute.xlu0 %8270  ;;  %5291 = vmatmul.bf16.vlgmr.msrb.gmra.mxu0 %v9132_v23  ;;  %5304 = vmatmul.bf16.vlgmr.msrb.gmra.mxu1 %v9130_v32 }
 0x605   : > { %v8273_v4 = vunpack.i.h.bf16 %v8271_v58  ;;  %v8272_v5 = vunpack.i.l.bf16 %v8271_v58  ;;  %5339 = vmatpush.bf16.msra.mxu0 %v7202_v12  ;;  %5352 = vmatpush.bf16.msra.mxu1 %v7330_v54  ;;  %v7382_v12 = vor.u32 %v8100_v37, %v7379_v41  ;;  %v8064_v54 = vld [vmem:[#allocation7 + $0xac] sm:$0xf]  ;;  %v7457_v58 = vld [vmem:[#allocation7 + $0x268] sm:$0xf]  ;;  %v7651_v41 = vld [vmem:[#allocation7 + $0x3f8] sm:$0xf0] }
 0x606   : > { %v7458_v62 = vor.u32 %v8122_v43, %v7457_v58  ;;  %v8168_v37 = vld [vmem:[#allocation7 + $0x3ec] sm:$0xf]  ;;  %v7635_v43 = vld [vmem:[#allocation7 + $0x3d8] sm:$0xf0] }
 0x607   : > { %v4458_v61 = vsel %vm3899_vm9, %v9107_v55, %v8273_v4  ;;  %v4457_v63 = vsel %vm3899_vm9, %v9102_v38, %v8272_v5  ;;  %v7281_v55 = vld [vmem:[#allocation7 + $0x108] sm:$0xf]  ;;  %v8078_v38 = vld [vmem:[#allocation7 + $0x114] sm:$0xf0]  ;;  %v7238_v4 = vor.u32 %v8064_v54, %v7235_v45  ;;  %v7366_v5 = vor.u32 %v8096_v2, %v7363_v35  ;;  %v7507_v45 = vld [vmem:[#allocation7 + $0x2d8] sm:$0xf0] }
 0x608   : > { %v9142_v18 = vpack.c.bf16 %v4458_v61, %v4458_v61  ;;  %v9144_v36 = vpack.c.bf16 %v4457_v63, %v4457_v63  ;;  %v7282_v39 = vor.u32 %v8078_v38, %v7281_v55  ;;  %v7441_v61 = vld [vmem:[#allocation7 + $0x248] sm:$0xf]  ;;  %v8118_v63 = vld [vmem:[#allocation7 + $0x254] sm:$0xf0]  ;;  %v7526_v54 = vor.u32 %v8136_v13, %v7523_v52  ;;  %v8164_v58 = vld [vmem:[#allocation7 + $0x3cc] sm:$0xf] }
 0x609   : > { %5340 = vmatpush.bf16.msra.mxu0 %v7186_v6  ;;  %5353 = vmatpush.bf16.msra.mxu1 %v7314_v10  ;;  %v8060_v6 = vld [vmem:[#allocation7 + $0x8c] sm:$0xf]  ;;  %v7219_v10 = vld [vmem:[#allocation7 + $0x98] sm:$0xf0]  ;;  %v7442_v17 = vor.u32 %v8118_v63, %v7441_v61  ;;  %v7425_v55 = vld [vmem:[#allocation7 + $0x228] sm:$0xf]  ;;  %v7174_v2 = vor.u32 %v8048_v42, %v7171_v49  ;;  %v7302_v35 = vor.u32 %v8080_v50, %v7299_v31 }
 0x60a   : > { %5265 = vmatmul.bf16.vlgmr.msra.gmra.mxu2 %v9144_v36  ;;  %5278 = vmatmul.bf16.vlgmr.msra.gmra.mxu3 %v9142_v18  ;;  %v7222_v16 = vor.u32 %v8060_v6, %v7219_v10  ;;  %v8114_v38 = vld [vmem:[#allocation7 + $0x234] sm:$0xf0]  ;;  %v7638_v10 = vor.u32 %v8164_v58, %v7635_v43  ;;  %v8160_v61 = vld [vmem:[#allocation7 + $0x3ac] sm:$0xf]  ;;  %v7619_v63 = vld [vmem:[#allocation7 + $0x3b8] sm:$0xf0] }
 0x60b   : > { %5361 = vmatpush.bf16.msra.mxu2 %v7522_v14  ;;  %5374 = vmatpush.bf16.msra.mxu3 %v7650_v15  ;;  %v7569_v14 = vld [vmem:[#allocation7 + $0x348] sm:$0xf]  ;;  %v8150_v15 = vld [vmem:[#allocation7 + $0x354] sm:$0xf0]  ;;  %v7426_v30 = vor.u32 %v8114_v38, %v7425_v55  ;;  %v8152_v55 = vld [vmem:[#allocation7 + $0x36c] sm:$0xf] }
 0x60c   : > { %v7570_v24 = vor.u32 %v8150_v15, %v7569_v14  ;;  %v7622_v15 = vor.u32 %v8160_v61, %v7619_v63  ;;  %v7587_v38 = vld [vmem:[#allocation7 + $0x378] sm:$0xf0]  ;;  %v8140_v13 = vld [vmem:[#allocation7 + $0x30c] sm:$0xf] }
 0x60d   : > { %5341 = vmatpush.bf16.msra.mxu0 %v7170_v20  ;;  %5354 = vmatpush.bf16.msra.mxu1 %v7298_v7  ;;  %v8088_v20 = vld [vmem:[#allocation7 + $0x16c] sm:$0xf]  ;;  %v7331_v7 = vld [vmem:[#allocation7 + $0x178] sm:$0xf0]  ;;  %v7590_v25 = vor.u32 %v8152_v55, %v7587_v38 }
 0x60e   : > { %v7539_v52 = vld [vmem:[#allocation7 + $0x318] sm:$0xf0] }
 0x60f   : > { %5362 = vmatpush.bf16.msra.mxu2 %v7506_v28  ;;  %5375 = vmatpush.bf16.msra.mxu3 %v7634_v26  ;;  %v7206_v28 = vor.u32 %v8056_v21, %v7203_v22  ;;  %v7334_v26 = vor.u32 %v8088_v20, %v7331_v7  ;;  %v8156_v21 = vld [vmem:[#allocation7 + $0x38c] sm:$0xf]  ;;  %v7603_v22 = vld [vmem:[#allocation7 + $0x398] sm:$0xf0] }
 0x610   : > { %v7606_v7 = vor.u32 %v8156_v21, %v7603_v22 }
 0x611   : > { %5342 = vmatpush.bf16.msra.mxu0 %v7154_v29  ;;  %5355 = vmatpush.bf16.msra.mxu1 %v7282_v39  ;;  %v7409_v29 = vld [vmem:[#allocation7 + $0x208] sm:$0xf]  ;;  %v8110_v39 = vld [vmem:[#allocation7 + $0x214] sm:$0xf0] }
 0x613   : > { %5363 = vmatpush.bf16.msra.mxu2 %v7490_v19  ;;  %5376 = vmatpush.bf16.msra.mxu3 %v7618_v34  ;;  %v7190_v19 = vor.u32 %v8052_v59, %v7187_v47  ;;  %v7318_v34 = vor.u32 %v8084_v11, %v7315_v8  ;;  %v8148_v59 = vld [vmem:[#allocation7 + $0x34c] sm:$0xf]  ;;  %v7571_v47 = vld [vmem:[#allocation7 + $0x358] sm:$0xf0] }
 0x614   : > { %5343 = vmatmul.bf16.vlgmr.msra.gmra.mxu0 %v9132_v23  ;;  %5356 = vmatmul.bf16.vlgmr.msra.gmra.mxu1 %v9130_v32  ;;  %v7574_v8 = vor.u32 %v8148_v59, %v7571_v47 }
 0x615   : > { %5387 = vmatpush.bf16.msrb.mxu0 %v7270_v27  ;;  %5400 = vmatpush.bf16.msrb.mxu1 %v7398_v33  ;;  %v7537_v27 = vld [vmem:[#allocation7 + $0x308] sm:$0xf]  ;;  %v8142_v33 = vld [vmem:[#allocation7 + $0x314] sm:$0xf0] }
 0x617   : > { %5364 = vmatpush.bf16.msra.mxu2 %v7474_v40  ;;  %5377 = vmatpush.bf16.msra.mxu3 %v7602_v44  ;;  %v7654_v40 = vor.u32 %v8168_v37, %v7651_v41  ;;  %v8132_v44 = vld [vmem:[#allocation7 + $0x2cc] sm:$0xf] }
 0x618   : > { %v7510_v6 = vor.u32 %v8132_v44, %v7507_v45 }
 0x619   : > { %5388 = vmatpush.bf16.msrb.mxu0 %v7254_v51  ;;  %5401 = vmatpush.bf16.msrb.mxu1 %v7382_v12  ;;  %v7410_v51 = vor.u32 %v8110_v39, %v7409_v29  ;;  %v7538_v12 = vor.u32 %v8142_v33, %v7537_v27  ;;  %v7555_v29 = vld [vmem:[#allocation7 + $0x338] sm:$0xf0]  ;;  %v8108_v27 = vld [vmem:[#allocation7 + $0x20c] sm:$0xf] }
 0x61a   : > { %5317 = vmatmul.bf16.vlgmr.msrb.gmra.mxu2 %v9144_v36  ;;  %5330 = vmatmul.bf16.vlgmr.msrb.gmra.mxu3 %v9142_v18  ;;  %v7411_v33 = vld [vmem:[#allocation7 + $0x218] sm:$0xf0] }
 0x61b   : > { %5365 = vmatpush.bf16.msra.mxu2 %v7458_v62  ;;  %5378 = vmatpush.bf16.msra.mxu3 %v7586_v9  ;;  %v7491_v9 = vld [vmem:[#allocation7 + $0x2b8] sm:$0xf0] }
 0x61c   : > { %v7494_v14 = vor.u32 %v8128_v56, %v7491_v9 }
 0x61d   : > { %5389 = vmatpush.bf16.msrb.mxu0 %v7238_v4  ;;  %5402 = vmatpush.bf16.msrb.mxu1 %v7366_v5  ;;  %v8076_v4 = vld [vmem:[#allocation7 + $0x10c] sm:$0xf]  ;;  %v7283_v5 = vld [vmem:[#allocation7 + $0x118] sm:$0xf0] }
 0x61e   : > { %v7286_v62 = vor.u32 %v8076_v4, %v7283_v5 }
 0x61f   : > { %5366 = vmatpush.bf16.msra.mxu2 %v7442_v17  ;;  %5379 = vmatpush.bf16.msra.mxu3 %v7570_v24  ;;  %v8120_v17 = vld [vmem:[#allocation7 + $0x26c] sm:$0xf]  ;;  %v7459_v24 = vld [vmem:[#allocation7 + $0x278] sm:$0xf0] }
 0x620   : > { %v7462_v60 = vor.u32 %v8120_v17, %v7459_v24 }
 0x621   : > { %5390 = vmatpush.bf16.msrb.mxu0 %v7222_v16  ;;  %5403 = vmatpush.bf16.msrb.mxu1 %v7350_v46  ;;  %v8124_v16 = vld [vmem:[#allocation7 + $0x28c] sm:$0xf]  ;;  %v7475_v46 = vld [vmem:[#allocation7 + $0x298] sm:$0xf0] }
 0x622   : > { %v7478_v20 = vor.u32 %v8124_v16, %v7475_v46 }
 0x623   : > { %5367 = vmatpush.bf16.msra.mxu2 %v7426_v30  ;;  %5380 = vmatpush.bf16.msra.mxu3 %v7554_v57  ;;  %v8112_v30 = vld [vmem:[#allocation7 + $0x22c] sm:$0xf]  ;;  %v7427_v57 = vld [vmem:[#allocation7 + $0x238] sm:$0xf0] }
 0x625   : > { %5391 = vmatpush.bf16.msrb.mxu0 %v7206_v28  ;;  %5404 = vmatpush.bf16.msrb.mxu1 %v7334_v26  ;;  %v8116_v28 = vld [vmem:[#allocation7 + $0x24c] sm:$0xf]  ;;  %v7443_v26 = vld [vmem:[#allocation7 + $0x258] sm:$0xf0] }
 0x626   : > { %v7446_v11 = vor.u32 %v8116_v28, %v7443_v26 }
 0x627   : > { %5368 = vmatpush.bf16.msra.mxu2 %v7410_v51  ;;  %5381 = vmatpush.bf16.msra.mxu3 %v7538_v12 }
 0x629   : > { %5392 = vmatpush.bf16.msrb.mxu0 %v7190_v19  ;;  %5405 = vmatpush.bf16.msrb.mxu1 %v7318_v34  ;;  %v7414_v19 = vor.u32 %v8108_v27, %v7411_v33  ;;  %v7542_v34 = vor.u32 %v8140_v13, %v7539_v52 }
 0x62a   : > { %5369 = vmatmul.bf16.vlgmr.msra.gmra.mxu2 %v9144_v36  ;;  %5382 = vmatmul.bf16.vlgmr.msra.gmra.mxu3 %v9142_v18 }
 0x62b   : > { %5413 = vmatpush.bf16.msrb.mxu2 %v7526_v54  ;;  %5426 = vmatpush.bf16.msrb.mxu3 %v7654_v40 }
 0x62d   : > { %5393 = vmatpush.bf16.msrb.mxu0 %v7174_v2  ;;  %5406 = vmatpush.bf16.msrb.mxu1 %v7302_v35 }
 0x62f   : > { %5414 = vmatpush.bf16.msrb.mxu2 %v7510_v6  ;;  %5427 = vmatpush.bf16.msrb.mxu3 %v7638_v10 }
 0x631   : > { %5394 = vmatpush.bf16.msrb.mxu0 %v7158_v53  ;;  %5407 = vmatpush.bf16.msrb.mxu1 %v7286_v62  ;;  %v5453_v53 = vperm.slane %v5451_v48, 0 }
 0x633   : > { %5415 = vmatpush.bf16.msrb.mxu2 %v7494_v14  ;;  %5428 = vmatpush.bf16.msrb.mxu3 %v7622_v15 }
 0x634   : > { %5395 = vmatmul.bf16.vlgmr.msrb.gmra.mxu0 %v9132_v23  ;;  %5408 = vmatmul.bf16.vlgmr.msrb.gmra.mxu1 %v9130_v32  ;;  %v8144_v23 = vld [vmem:[#allocation7 + $0x32c] sm:$0xf]  ;;  %v7430_v32 = vor.u32 %v8112_v30, %v7427_v57  ;;  %v5455_v30 = vperm.slane %v5451_v48, 2 }
 0x635   : > { %v7558_v39 = vor.u32 %v8144_v23, %v7555_v29 }
 0x637   : > { %5416 = vmatpush.bf16.msrb.mxu2 %v7478_v20  ;;  %5429 = vmatpush.bf16.msrb.mxu3 %v7606_v7 }
 0x63b   : > { %5417 = vmatpush.bf16.msrb.mxu2 %v7462_v60  ;;  %5430 = vmatpush.bf16.msrb.mxu3 %v7590_v25 }
 0x63f   : > { %5418 = vmatpush.bf16.msrb.mxu2 %v7446_v11  ;;  %5431 = vmatpush.bf16.msrb.mxu3 %v7574_v8 }
 0x643   : > { %5419 = vmatpush.bf16.msrb.mxu2 %v7430_v32  ;;  %5432 = vmatpush.bf16.msrb.mxu3 %v7558_v39 }
 0x647   : > { %5420 = vmatpush.bf16.msrb.mxu2 %v7414_v19  ;;  %5433 = vmatpush.bf16.msrb.mxu3 %v7542_v34 }
 0x64a   : > { %5421 = vmatmul.bf16.vlgmr.msrb.gmra.mxu2 %v9144_v36  ;;  %5434 = vmatmul.bf16.vlgmr.msrb.gmra.mxu3 %v9142_v18  ;;  %v5454_v18 = vperm.slane %v5451_v48, 1 }
 0x64c   : > { %v5457_v62 = vrot.slane %v5454_v18, 4 }
 0x64e   : > { %v5459_v14 = vsel %vm401_vm0, %v5453_v53, %v5457_v62 }
 0x671   : > { %v5240_v37 = vpop.f32.mrf.mxu0  ;;  %v5253_v41 = vpop.f32.mrf.mxu1 }
 0x672   : > { %v5254_v36 = vadd.f32 %v5253_v41, %v5240_v37 }
 0x679   : > { %v5242_v42 = vpop.f32.mrf.mxu0  ;;  %v5255_v49 = vpop.f32.mrf.mxu1 }
 0x681   : > { %v5292_v50 = vpop.f32.mrf.mxu0  ;;  %v5305_v31 = vpop.f32.mrf.mxu1 }
 0x682   : > { %v5306_v3 = vadd.f32 %v5305_v31, %v5292_v50 }
 0x689   : > { %v5294_v51 = vpop.f32.mrf.mxu0  ;;  %v5307_v12 = vpop.f32.mrf.mxu1 }
 0x68d   : > { %v5266_v54 = vpop.f32.mrf.mxu2  ;;  %v5279_v40 = vpop.f32.mrf.mxu3 }
 0x68e   : > { %v5267_v6 = vadd.f32 %v5266_v54, %v5254_v36 }
 0x690   : > { %v5280_v9 = vadd.f32 %v5279_v40, %v5267_v6 }
 0x691   : > { %v5344_v44 = vpop.f32.mrf.mxu0  ;;  %v5357_v45 = vpop.f32.mrf.mxu1 }
 0x692   : > { %v5358_v25 = vadd.f32 %v5357_v45, %v5344_v44 }
 0x695   : > { %v5268_v2 = vpop.f32.mrf.mxu2  ;;  %v5281_v35 = vpop.f32.mrf.mxu3 }
 0x699   : > { %v5346_v58 = vpop.f32.mrf.mxu0  ;;  %v5359_v43 = vpop.f32.mrf.mxu1 }
 0x69d   : > { %v5318_v4 = vpop.f32.mrf.mxu2  ;;  %v5331_v5 = vpop.f32.mrf.mxu3 }
 0x69e   : > { %v5319_v10 = vadd.f32 %v5318_v4, %v5306_v3 }
 0x6a0   : > { %v5332_v56 = vadd.f32 %v5331_v5, %v5319_v10 }
 0x6a2   : > { %v5443_v61 = vrot.slane %v5332_v56, 4 }
 0x6a4   : > { %v5445_v63 = vsel %vm401_vm0, %v5280_v9, %v5443_v61 }
 0x6a5   : > { %v5449_v15 = vadd.f32 %v5445_v63, %v8619_v0  ;;  %v5320_v16 = vpop.f32.mrf.mxu2  ;;  %v5333_v46 = vpop.f32.mrf.mxu3  ;;  %v5456_v0 = vperm.slane %v5451_v48, 3 }
 0x6a7   : > { %v5463_v21 = vadd.f32 %v5459_v14, %v5449_v15  ;;  %v5458_v57 = vrot.slane %v5456_v0, 4 }
 0x6a9   : > { %5465 = vst [vmem:[%s382_s29] sm:$0xff] %v5463_v21  ;;  %v5460_v39 = vsel %vm401_vm0, %v5455_v30, %v5458_v57 }
 0x6ad   : > { %v5370_v22 = vpop.f32.mrf.mxu2  ;;  %v5383_v20 = vpop.f32.mrf.mxu3 }
 0x6ae   : > { %v5371_v47 = vadd.f32 %v5370_v22, %v5358_v25 }
 0x6b0   : > { %v5384_v23 = vadd.f32 %v5383_v20, %v5371_v47 }
 0x6b1   : > { %v5396_v7 = vpop.f32.mrf.mxu0  ;;  %v5409_v17 = vpop.f32.mrf.mxu1 }
 0x6b2   : > { %v5410_v28 = vadd.f32 %v5409_v17, %v5396_v7 }
 0x6b5   : > { %v5372_v24 = vpop.f32.mrf.mxu2  ;;  %v5385_v55 = vpop.f32.mrf.mxu3 }
 0x6b9   : > { %v5398_v38 = vpop.f32.mrf.mxu0  ;;  %v5411_v60 = vpop.f32.mrf.mxu1 }
 0x6cd   : > { %v5422_v26 = vpop.f32.mrf.mxu2  ;;  %v5435_v59 = vpop.f32.mrf.mxu3 }
 0x6ce   : > { %v5423_v11 = vadd.f32 %v5422_v26, %v5410_v28 }
 0x6d0   : > { %v5436_v8 = vadd.f32 %v5435_v59, %v5423_v11 }
 0x6d2   : > { %v5444_v29 = vrot.slane %v5436_v8, 4 }
 0x6d4   : > { %v5446_v32 = vsel %vm401_vm0, %v5384_v23, %v5444_v29 }
 0x6d5   : > { %v5450_v27 = vadd.f32 %v5446_v32, %v8621_v1  ;;  %v5424_v33 = vpop.f32.mrf.mxu2  ;;  %v5437_v13 = vpop.f32.mrf.mxu3 }
 0x6d7   : > { %v5464_v52 = vadd.f32 %v5460_v39, %v5450_v27 }
 0x6d9   : > { %5466 = vst [vmem:[%s382_s29 + $0x8] sm:$0xff] %v5464_v52 }
 0x6da PF: > { %s21_s27 = sadd.s32 1, %s8486_s27  }
 0x6db   : > { %p18_p7 = scmp.ge.s32.totalorder %s21_s27, 4  }
 0x6dd   :  { %20 = sbr.rel (!%p18_p7) target bundleno = 3 (0x3), region = 106 }
 0x6e2   :  { %5488 = vsyncpa [#allocation3], 1 }
 0x6e3   :  { %5490 = vsyncpa [#allocation3 + $0x1], 1 }
 0x6e4   :  { %5491 = vsyncpa [#allocation5], 1 }
 0x6e5   :  { %5492 = vsyncpa [#allocation8], 1 }

</bundles_post_ra>
